<compile_context>
chip_gen: v7x
topology: tpu7x:2x2x1
jax: 0.10.0
libtpu: 0.0.40
codegen_flags: <defaults>
</compile_context>

<pallas_src>
import jax
import jax.numpy as jnp
import numpy as np
from jax.experimental import pallas as pl
from jax.experimental.pallas import tpu as pltpu


# ----------------------------- kernel ---------------------------------------
def critic_kernel(x_ref,
                  w1_ref, b1_ref,
                  w2_ref, b2_ref,
                  w3_ref, b3_ref,
                  w4_ref, b4_ref,
                  w5_ref, b5_ref,
                  o_ref):
    # Layers 1..4: bf16 MXU matmuls with f32 accumulation, f32 bias + ReLU.
    h = jnp.dot(x_ref[...].astype(jnp.bfloat16), w1_ref[...],
                preferred_element_type=jnp.float32)
    h = jnp.maximum(h + b1_ref[...], 0.0)

    h = jnp.dot(h.astype(jnp.bfloat16), w2_ref[...],
                preferred_element_type=jnp.float32)
    h = jnp.maximum(h + b2_ref[...], 0.0)

    h = jnp.dot(h.astype(jnp.bfloat16), w3_ref[...],
                preferred_element_type=jnp.float32)
    h = jnp.maximum(h + b3_ref[...], 0.0)

    h = jnp.dot(h.astype(jnp.bfloat16), w4_ref[...],
                preferred_element_type=jnp.float32)
    h = jnp.maximum(h + b4_ref[...], 0.0)

    # Value head Linear(64, 1), no activation.  VPU multiply + cross-lane
    # reduction (XLU) instead of an MXU pass with 1/256 column utilization.
    v = jnp.sum(h * w5_ref[...], axis=-1, keepdims=True)          # [B, 1] f32
    o_ref[...] = v + b5_ref[...]


# ----------------------------- wrapper ---------------------------------------
def critic_forward(x, params):
    """x: [B, obs_dim].  params: list of (W [in,out], b [1,out])."""
    x = x.astype(jnp.float32)
    B = x.shape[0]

    (w1, b1), (w2, b2), (w3, b3), (w4, b4), (w5, b5) = params
    # Final-layer weight passed as a [1, 64] f32 row for the VPU-reduce path.
    w5_row = jnp.transpose(w5).astype(jnp.float32)                 # [1, 64]
    b5_ = b5.reshape(1, 1).astype(jnp.float32)                     # [1, 1]

    flat = [x, w1, b1, w2, b2, w3, b3, w4, b4, w5_row, b5_]
    vmem = pl.BlockSpec(memory_space=pltpu.MemorySpace.VMEM)

    return pl.pallas_call(
        critic_kernel,
        out_shape=jax.ShapeDtypeStruct((B, 1), jnp.float32),
        in_specs=[vmem] * len(flat),
        out_specs=vmem,
        compiler_params=pltpu.CompilerParams(vmem_limit_bytes=32 << 20),
    )(*flat)


# ----------------------------- param init ------------------------------------
def make_params(key, obs_dim):
    """Orthogonal init matching layer_init() in the PyTorch code.

    PyTorch weight is [out, in] with orthogonal_(std); we store the transpose
    [in, out].  Biases are constant 0.0.  Hidden-layer weights are kept in
    bf16 (they are only ever fed to the bf16 MXU); the tiny final (64,1)
    weight and all biases stay f32.
    """
    dims = [(obs_dim, 2048), (2048, 1024), (1024, 512), (512, 64), (64, 1)]
    stds = [np.sqrt(2), np.sqrt(2), np.sqrt(2), np.sqrt(2), 1.0]
    params = []
    for i, ((fan_in, fan_out), std) in enumerate(zip(dims, stds)):
        key, sub = jax.random.split(key)
        w = jax.nn.initializers.orthogonal(scale=std)(
            sub, (fan_in, fan_out), jnp.float32)
        if i < len(dims) - 1:
            w = w.astype(jnp.bfloat16)   # stream in bf16: halves HBM bytes
        b = jnp.zeros((1, fan_out), jnp.float32)  # bias_const = 0.0
        params.append((w, b))
    return params


# ----------------------------- references ------------------------------------
def critic_ref(x, params):
    """Plain-JAX reference with the SAME mixed precision as the kernel."""
    h = x.astype(jnp.float32)
    for (w, b) in params[:-1]:
        h = jnp.dot(h.astype(w.dtype), w,
                    preferred_element_type=jnp.float32) + b
        h = jnp.maximum(h, 0.0)
    w5, b5 = params[-1]
    return h @ w5.astype(jnp.float32) + b5


def critic_ref_f32(x, params):
    """Full-f32 reference (numerics of the original PyTorch module)."""
    h = x.astype(jnp.float32)
    for i, (w, b) in enumerate(params):
        h = h @ w.astype(jnp.float32) + b
        if i < len(params) - 1:
            h = jnp.maximum(h, 0.0)
    return h


# ----------------------------- main -------------------------------------------
if __name__ == "__main__":
    key = jax.random.PRNGKey(0)

    B, obs_dim = 8, 32            # small shapes: batch=8, flattened cent obs=32
    k_x, k_p = jax.random.split(key)
    x = jax.random.normal(k_x, (B, obs_dim), dtype=jnp.float32)
    params = make_params(k_p, obs_dim)

    out = critic_forward(x, params)
    out = jax.block_until_ready(out)
    assert out.shape == (B, 1), out.shape

    # Exact-path check vs a JAX reference using the same bf16-weight math.
    ref = critic_ref(x, params)
    np.testing.assert_allclose(np.asarray(out), np.asarray(ref),
                               rtol=2e-2, atol=2e-2)

    # Informational: deviation from the pure-f32 PyTorch-equivalent numerics
    # (expected ~1e-2-level relative error from bf16 weight storage).
    ref32 = critic_ref_f32(x, params)
    max_dev = float(jnp.max(jnp.abs(out - ref32)))
    print(f"max |kernel - f32_ref| = {max_dev:.3e}")

    print("KERNEL_OK")
</pallas_src>

<mosaic_0001>
module attributes {stable_mosaic.version = 11 : i64} {
  func.func @critic_kernel(%arg0: memref<8x32xf32, #tpu.memory_space<vmem>>, %arg1: memref<32x2048xbf16, #tpu.memory_space<vmem>>, %arg2: memref<1x2048xf32, #tpu.memory_space<vmem>>, %arg3: memref<2048x1024xbf16, #tpu.memory_space<vmem>>, %arg4: memref<1x1024xf32, #tpu.memory_space<vmem>>, %arg5: memref<1024x512xbf16, #tpu.memory_space<vmem>>, %arg6: memref<1x512xf32, #tpu.memory_space<vmem>>, %arg7: memref<512x64xbf16, #tpu.memory_space<vmem>>, %arg8: memref<1x64xf32, #tpu.memory_space<vmem>>, %arg9: memref<1x64xf32, #tpu.memory_space<vmem>>, %arg10: memref<1x1xf32, #tpu.memory_space<vmem>>, %arg11: memref<8x1xf32, #tpu.memory_space<vmem>>) attributes {dimension_semantics = [], scalar_prefetch = 0 : i64, scratch_operands = 0 : i64, tpu.core_type = #tpu.core_type<tc>} {
    %c0 = arith.constant 0 : index
    %c0_0 = arith.constant 0 : index
    %0 = vector.load %arg0[%c0, %c0_0] : memref<8x32xf32, #tpu.memory_space<vmem>>, vector<8x32xf32>
    %1 = arith.truncf %0 : vector<8x32xf32> to vector<8x32xbf16>
    %c0_1 = arith.constant 0 : index
    %c0_2 = arith.constant 0 : index
    %2 = vector.load %arg1[%c0_1, %c0_2] : memref<32x2048xbf16, #tpu.memory_space<vmem>>, vector<32x2048xbf16>
    %cst = arith.constant dense<0.000000e+00> : vector<8x2048xf32>
    %3 = tpu.matmul %1, %2, %cst {dimension_numbers = #tpu.dot_dimension_numbers<[1], [0], [0], [1], [0, 0, 1, 1], [], []>} : vector<8x32xbf16>, vector<32x2048xbf16>, vector<8x2048xf32> -> vector<8x2048xf32>
    %c0_3 = arith.constant 0 : index
    %c0_4 = arith.constant 0 : index
    %4 = vector.load %arg2[%c0_3, %c0_4] : memref<1x2048xf32, #tpu.memory_space<vmem>>, vector<1x2048xf32>
    %5 = vector.broadcast %4 : vector<1x2048xf32> to vector<8x2048xf32>
    %6 = arith.addf %3, %5 : vector<8x2048xf32>
    %cst_5 = arith.constant 0.000000e+00 : f32
    %7 = vector.broadcast %cst_5 : f32 to vector<8x2048xf32>
    %8 = arith.maximumf %6, %7 : vector<8x2048xf32>
    %9 = arith.truncf %8 : vector<8x2048xf32> to vector<8x2048xbf16>
    %c0_6 = arith.constant 0 : index
    %c0_7 = arith.constant 0 : index
    %10 = vector.load %arg3[%c0_6, %c0_7] : memref<2048x1024xbf16, #tpu.memory_space<vmem>>, vector<2048x1024xbf16>
    %cst_8 = arith.constant dense<0.000000e+00> : vector<8x1024xf32>
    %11 = tpu.matmul %9, %10, %cst_8 {dimension_numbers = #tpu.dot_dimension_numbers<[1], [0], [0], [1], [0, 0, 1, 1], [], []>} : vector<8x2048xbf16>, vector<2048x1024xbf16>, vector<8x1024xf32> -> vector<8x1024xf32>
    %c0_9 = arith.constant 0 : index
    %c0_10 = arith.constant 0 : index
    %12 = vector.load %arg4[%c0_9, %c0_10] : memref<1x1024xf32, #tpu.memory_space<vmem>>, vector<1x1024xf32>
    %13 = vector.broadcast %12 : vector<1x1024xf32> to vector<8x1024xf32>
    %14 = arith.addf %11, %13 : vector<8x1024xf32>
    %cst_11 = arith.constant 0.000000e+00 : f32
    %15 = vector.broadcast %cst_11 : f32 to vector<8x1024xf32>
    %16 = arith.maximumf %14, %15 : vector<8x1024xf32>
    %17 = arith.truncf %16 : vector<8x1024xf32> to vector<8x1024xbf16>
    %c0_12 = arith.constant 0 : index
    %c0_13 = arith.constant 0 : index
    %18 = vector.load %arg5[%c0_12, %c0_13] : memref<1024x512xbf16, #tpu.memory_space<vmem>>, vector<1024x512xbf16>
    %cst_14 = arith.constant dense<0.000000e+00> : vector<8x512xf32>
    %19 = tpu.matmul %17, %18, %cst_14 {dimension_numbers = #tpu.dot_dimension_numbers<[1], [0], [0], [1], [0, 0, 1, 1], [], []>} : vector<8x1024xbf16>, vector<1024x512xbf16>, vector<8x512xf32> -> vector<8x512xf32>
    %c0_15 = arith.constant 0 : index
    %c0_16 = arith.constant 0 : index
    %20 = vector.load %arg6[%c0_15, %c0_16] : memref<1x512xf32, #tpu.memory_space<vmem>>, vector<1x512xf32>
    %21 = vector.broadcast %20 : vector<1x512xf32> to vector<8x512xf32>
    %22 = arith.addf %19, %21 : vector<8x512xf32>
    %cst_17 = arith.constant 0.000000e+00 : f32
    %23 = vector.broadcast %cst_17 : f32 to vector<8x512xf32>
    %24 = arith.maximumf %22, %23 : vector<8x512xf32>
    %25 = arith.truncf %24 : vector<8x512xf32> to vector<8x512xbf16>
    %c0_18 = arith.constant 0 : index
    %c0_19 = arith.constant 0 : index
    %26 = vector.load %arg7[%c0_18, %c0_19] : memref<512x64xbf16, #tpu.memory_space<vmem>>, vector<512x64xbf16>
    %cst_20 = arith.constant dense<0.000000e+00> : vector<8x64xf32>
    %27 = tpu.matmul %25, %26, %cst_20 {dimension_numbers = #tpu.dot_dimension_numbers<[1], [0], [0], [1], [0, 0, 1, 1], [], []>} : vector<8x512xbf16>, vector<512x64xbf16>, vector<8x64xf32> -> vector<8x64xf32>
    %c0_21 = arith.constant 0 : index
    %c0_22 = arith.constant 0 : index
    %28 = vector.load %arg8[%c0_21, %c0_22] : memref<1x64xf32, #tpu.memory_space<vmem>>, vector<1x64xf32>
    %29 = vector.broadcast %28 : vector<1x64xf32> to vector<8x64xf32>
    %30 = arith.addf %27, %29 : vector<8x64xf32>
    %cst_23 = arith.constant 0.000000e+00 : f32
    %31 = vector.broadcast %cst_23 : f32 to vector<8x64xf32>
    %32 = arith.maximumf %30, %31 : vector<8x64xf32>
    %c0_24 = arith.constant 0 : index
    %c0_25 = arith.constant 0 : index
    %33 = vector.load %arg9[%c0_24, %c0_25] : memref<1x64xf32, #tpu.memory_space<vmem>>, vector<1x64xf32>
    %34 = vector.broadcast %33 : vector<1x64xf32> to vector<8x64xf32>
    %35 = arith.mulf %32, %34 : vector<8x64xf32>
    %cst_26 = arith.constant dense<0.000000e+00> : vector<8xf32>
    %36 = vector.multi_reduction <add>, %35, %cst_26 [1] : vector<8x64xf32> to vector<8xf32>
    %37 = vector.shape_cast %36 : vector<8xf32> to vector<8x1xf32>
    %c0_27 = arith.constant 0 : index
    %c0_28 = arith.constant 0 : index
    %38 = vector.load %arg10[%c0_27, %c0_28] : memref<1x1xf32, #tpu.memory_space<vmem>>, vector<1x1xf32>
    %39 = vector.broadcast %38 : vector<1x1xf32> to vector<8x1xf32>
    %40 = arith.addf %37, %39 : vector<8x1xf32>
    %c0_29 = arith.constant 0 : index
    %c0_30 = arith.constant 0 : index
    %41 = vector.load %arg11[%c0_29, %c0_30] : memref<8x1xf32, #tpu.memory_space<vmem>>, vector<8x1xf32>
    tpu.vector_store %arg11[%c0_29, %c0_30], %40 {strides = array<i32>} : memref<8x1xf32, #tpu.memory_space<vmem>>, vector<8x1xf32>,
    return
  }
}

</mosaic_0001>

<bundles_post_ra>
// kernel: tpu_custom_call.1
= control target key start
LH: loop header
LB: loop body
LE: loop exit
PB: predicated region body
PF: predicated region fallthrough
CT: control target
= control target key end

     0   :  { %s13312_s0 = inlined_call_operand.hbm [shape: f32[8,32], index: 0, kind: input, shape index: {}]   ;;  %s13313_s1 = inlined_call_operand.hbm [shape: bf16[32,2048], index: 1, kind: input, shape index: {}]   ;;  %s13314_s2 = inlined_call_operand.hbm [shape: f32[1,2048], index: 2, kind: input, shape index: {}]   ;;  %s13315_s3 = inlined_call_operand.hbm [shape: bf16[2048,1024], index: 3, kind: input, shape index: {}]   ;;  %s13316_s4 = inlined_call_operand.hbm [shape: f32[1,1024], index: 4, kind: input, shape index: {}]   ;;  %s13317_s5 = inlined_call_operand.hbm [shape: bf16[1024,512], index: 5, kind: input, shape index: {}]   ;;  %s13318_s6 = inlined_call_operand.hbm [shape: f32[1,512], index: 6, kind: input, shape index: {}]   ;;  %s13319_s7 = inlined_call_operand.vmem [shape: bf16[512,64], index: 7, kind: input, shape index: {}]   ;;  %s13320_s8 = inlined_call_operand.hbm [shape: f32[1,64], index: 8, kind: input, shape index: {}]   ;;  %s13321_s9 = inlined_call_operand.hbm [shape: f32[1,64], index: 9, kind: input, shape index: {}]   ;;  %s13322_s10 = inlined_call_operand.<no memory space> [shape: f32[1,1], index: 10, kind: input, shape index: {}]   ;;  %s13323_s11 = inlined_call_operand.vmem [shape: f32[8,1], index: 11, kind: output, shape index: {}]  }
   0x1   :  { %v16_v0 = vstv %s13322_s10 }
   0x2   :  { %17 = vst [vmem:[#allocation2] sm:$0x1] %v16_v0 }
   0x3   :  { %18 = vsyncpa [#allocation4], 0 }
   0x4   :  { %19 = vsyncpa [#allocation6], 0 }
   0x5   :  { %20 = vsyncpa [#allocation9], 0 }
   0x6   :  { %21 = vsyncpa [#allocation12], 0 }
   0x7   :  { %22 = vsyncpa [#allocation15], 0  ;;  %s12766_s19 = smov [#allocation5]   ;;  %s12558_s23 = scalar_lea.hbm %s13313_s1, 4096 }
   0x8   :  { %s38_s20 = sshll.u32 %s12766_s19, 4  ;;  %p12559_p0 = scmp.ne.s32.totalorder %s13313_s1, %s12558_s23  ;;  %s39_s20 = int_to_ptr.vmem [resolvable:$true] %s38_s20 }
   0x9   :  { %p12562_p1 = scmp.lt.u32.totalorder %s12558_s23, %s13313_s1 }
   0xb   :  { %p12564_p2 = pnand %p12562_p1, %p12559_p0 }
   0xd   :  { %12567 = shalt.err (!%p12564_p2)
}
   0xe   :  { %s12568_s10 = scalar_lea.vmem %s39_s20, 4096  ;;  %p12573_p4 = scmp.lt.s32.totalorder %s39_s20, %s39_s20 }
   0xf   :  { %p12569_p3 = scmp.ne.s32.totalorder %s39_s20, %s12568_s10  ;;  %p12574_p5 = scmp.lt.s32.totalorder %s12568_s10, %s12568_s10 }
  0x11   :  { %p12575_p6 = por %p12574_p5, %p12573_p4 }
  0x13   :  { %p12576_p7 = pnand %p12575_p6, %p12569_p3 }
  0x15   :  { %12579 = shalt.err (!%p12576_p7)
}
  0x16   :  { %s12767_s28 = smov 1024   ;;  %s12768_s29 = smov 64  }
  0x17   :  { %44 = dma.hbm_to_vmem [thread:$0]  %s13313_s1, 4096, %s39_s20, [#allocation6], %s12767_s28, %s12767_s28, %s12768_s29  }
  0x18   :  { %s12769_s13 = smov [#allocation8]   ;;  %s12580_s17 = scalar_lea.hbm %s13315_s3, 131072 }
  0x19   :  { %s60_s14 = sshll.u32 %s12769_s13, 4  ;;  %p12581_p8 = scmp.ne.s32.totalorder %s13315_s3, %s12580_s17  ;;  %s61_s14 = int_to_ptr.vmem [resolvable:$true] %s60_s14 }
  0x1a   :  { %p12584_p9 = scmp.lt.u32.totalorder %s12580_s17, %s13315_s3 }
  0x1c   :  { %p12586_p10 = pnand %p12584_p9, %p12581_p8 }
  0x1e   :  { %12589 = shalt.err (!%p12586_p10)
}
  0x1f   :  { %s12590_s23 = scalar_lea.vmem %s61_s14, 131072  ;;  %p12595_p12 = scmp.lt.s32.totalorder %s61_s14, %s61_s14 }
  0x20   :  { %p12591_p11 = scmp.ne.s32.totalorder %s61_s14, %s12590_s23  ;;  %p12596_p13 = scmp.lt.s32.totalorder %s12590_s23, %s12590_s23 }
  0x22   :  { %p12597_p0 = por %p12596_p13, %p12595_p12 }
  0x24   :  { %p12598_p1 = pnand %p12597_p0, %p12591_p11 }
  0x26   :  { %12601 = shalt.err (!%p12598_p1)
}
  0x27   :  { %s12770_s1 = smov 512   ;;  %s12771_s20 = smov 32  }
  0x28   :  { %66 = dma.hbm_to_vmem [thread:$0]  %s13315_s3, 131072, %s61_s14, [#allocation9], %s12770_s1, %s12770_s1, %s12771_s20  }
  0x29   :  { %s12772_s26 = smov [#allocation11]   ;;  %s12602_s29 = scalar_lea.hbm %s13317_s5, 32768 }
  0x2a   :  { %s82_s27 = sshll.u32 %s12772_s26, 4  ;;  %p12603_p2 = scmp.ne.s32.totalorder %s13317_s5, %s12602_s29  ;;  %s83_s27 = int_to_ptr.vmem [resolvable:$true] %s82_s27 }
  0x2b   :  { %p12606_p3 = scmp.lt.u32.totalorder %s12602_s29, %s13317_s5 }
  0x2d   :  { %p12608_p4 = pnand %p12606_p3, %p12603_p2 }
  0x2f   :  { %12611 = shalt.err (!%p12608_p4)
}
  0x30   :  { %s12612_s16 = scalar_lea.vmem %s83_s27, 32768  ;;  %p12617_p6 = scmp.lt.s32.totalorder %s83_s27, %s83_s27 }
  0x31   :  { %p12613_p5 = scmp.ne.s32.totalorder %s83_s27, %s12612_s16  ;;  %p12618_p7 = scmp.lt.s32.totalorder %s12612_s16, %s12612_s16 }
  0x33   :  { %p12619_p8 = por %p12618_p7, %p12617_p6 }
  0x35   :  { %p12620_p9 = pnand %p12619_p8, %p12613_p5 }
  0x37   :  { %12623 = shalt.err (!%p12620_p9)
}
  0x38   :  { %s12773_s3 = smov 256   ;;  %s12774_s14 = smov 16  }
  0x39   :  { %88 = dma.hbm_to_vmem [thread:$0]  %s13317_s5, 32768, %s83_s27, [#allocation12], %s12773_s3, %s12773_s3, %s12774_s14  }
  0x3a   :  { %s12775_s19 = smov [#allocation14]   ;;  %s12776_s22 = smov [#allocation3]  }
  0x3b   :  { %s107_s21 = sshll.u32 %s12775_s19, 4  ;;  %s29_s23 = sshll.u32 %s12776_s22, 4  ;;  %s108_s21 = int_to_ptr.vmem [resolvable:$true] %s107_s21  ;;  %s30_s23 = int_to_ptr.vmem [resolvable:$true] %s29_s23 }
  0x3c   :  { %s12624_s24 = scalar_lea.hbm %s13320_s8, 16 }
  0x3d   :  { %p12625_p10 = scmp.ne.s32.totalorder %s13320_s8, %s12624_s24  ;;  %p12628_p11 = scmp.lt.u32.totalorder %s12624_s24, %s13320_s8 }
  0x3f   :  { %p12630_p12 = pnand %p12628_p11, %p12625_p10 }
  0x41   :  { %12633 = shalt.err (!%p12630_p12)
}
  0x42   :  { %s12634_s5 = scalar_lea.vmem %s108_s21, 16  ;;  %s12638_s27 = scalar_lea.vmem %s108_s21, 32 }
  0x43   :  { %p12635_p13 = scmp.ne.s32.totalorder %s108_s21, %s12634_s5  ;;  %p12639_p0 = scmp.lt.s32.totalorder %s108_s21, %s108_s21 }
  0x44   :  { %p12640_p1 = scmp.lt.s32.totalorder %s12638_s27, %s12634_s5 }
  0x46   :  { %p12641_p2 = por %p12640_p1, %p12639_p0 }
  0x48   :  { %p12642_p3 = pnand %p12641_p2, %p12635_p13 }
  0x4a   :  { %12645 = shalt.err (!%p12642_p3)
}
  0x4b   :  { %110 = dma.hbm_to_vmem [thread:$0]  %s13320_s8, 16, %s108_s21, [#allocation15]  }
  0x4c   :  { %s12646_s15 = scalar_lea.hbm %s13312_s0, 128 }
  0x4d   :  { %p12647_p4 = scmp.ne.s32.totalorder %s13312_s0, %s12646_s15  ;;  %p12650_p5 = scmp.lt.u32.totalorder %s12646_s15, %s13312_s0 }
  0x4f   :  { %p12652_p6 = pnand %p12650_p5, %p12647_p4 }
  0x51   :  { %12655 = shalt.err (!%p12652_p6)
}
  0x52   :  { %s12656_s18 = scalar_lea.vmem %s30_s23, 128  ;;  %p12661_p8 = scmp.lt.s32.totalorder %s30_s23, %s30_s23 }
  0x53   :  { %p12657_p7 = scmp.ne.s32.totalorder %s30_s23, %s12656_s18  ;;  %p12662_p9 = scmp.lt.s32.totalorder %s12656_s18, %s12656_s18 }
  0x55   :  { %p12663_p10 = por %p12662_p9, %p12661_p8 }
  0x57   :  { %p12664_p11 = pnand %p12663_p10, %p12657_p7 }
  0x59   :  { %12667 = shalt.err (!%p12664_p11)
}
  0x5a   :  { %32 = dma.hbm_to_vmem [thread:$0]  %s13312_s0, 128, %s30_s23, [#allocation4]  }
  0x5b   :  { %s12777_s21 = smov [#allocation7]   ;;  %s12778_s1 = smov [#allocation10]  }
  0x5c   :  { %s51_s22 = sshll.u32 %s12777_s21, 4  ;;  %s73_s20 = sshll.u32 %s12778_s1, 4  ;;  %s52_s22 = int_to_ptr.vmem [resolvable:$true] %s51_s22  ;;  %s74_s20 = int_to_ptr.vmem [resolvable:$true] %s73_s20 }
  0x5d   :  { %s12668_s26 = scalar_lea.hbm %s13314_s2, 256 }
  0x5e   :  { %p12669_p12 = scmp.ne.s32.totalorder %s13314_s2, %s12668_s26  ;;  %p12672_p13 = scmp.lt.u32.totalorder %s12668_s26, %s13314_s2 }
  0x60   :  { %p12674_p0 = pnand %p12672_p13, %p12669_p12 }
  0x62   :  { %12677 = shalt.err (!%p12674_p0)
}
  0x63   :  { %s12678_s0 = scalar_lea.vmem %s52_s22, 256  ;;  %p12683_p2 = scmp.lt.s32.totalorder %s52_s22, %s52_s22 }
  0x64   :  { %p12679_p1 = scmp.ne.s32.totalorder %s52_s22, %s12678_s0  ;;  %p12684_p3 = scmp.lt.s32.totalorder %s12678_s0, %s12678_s0 }
  0x66   :  { %p12685_p4 = por %p12684_p3, %p12683_p2 }
  0x68   :  { %p12686_p5 = pnand %p12685_p4, %p12679_p1 }
  0x6a   :  { %12689 = shalt.err (!%p12686_p5)
}
  0x6b   :  { %54 = dma.hbm_to_vmem [thread:$0]  %s13314_s2, 256, %s52_s22, [#allocation6]  }
  0x6c   :  { %s12690_s13 = scalar_lea.hbm %s13316_s4, 128 }
  0x6d   :  { %p12691_p6 = scmp.ne.s32.totalorder %s13316_s4, %s12690_s13  ;;  %p12694_p7 = scmp.lt.u32.totalorder %s12690_s13, %s13316_s4 }
  0x6f   :  { %p12696_p8 = pnand %p12694_p7, %p12691_p6 }
  0x71   :  { %12699 = shalt.err (!%p12696_p8)
}
  0x72   :  { %s12700_s17 = scalar_lea.vmem %s74_s20, 128  ;;  %p12705_p10 = scmp.lt.s32.totalorder %s74_s20, %s74_s20 }
  0x73   :  { %p12701_p9 = scmp.ne.s32.totalorder %s74_s20, %s12700_s17  ;;  %p12706_p11 = scmp.lt.s32.totalorder %s12700_s17, %s12700_s17 }
  0x75   :  { %p12707_p12 = por %p12706_p11, %p12705_p10 }
  0x77   :  { %p12708_p13 = pnand %p12707_p12, %p12701_p9 }
  0x79   :  { %12711 = shalt.err (!%p12708_p13)
}
  0x7a   :  { %76 = dma.hbm_to_vmem [thread:$0]  %s13316_s4, 128, %s74_s20, [#allocation9]  }
  0x7b   :  { %s12779_s8 = smov [#allocation13]   ;;  %s12780_s21 = smov [#allocation16]  }
  0x7c   :  { %s95_s19 = sshll.u32 %s12779_s8, 4  ;;  %s117_s22 = sshll.u32 %s12780_s21, 4  ;;  %s96_s19 = int_to_ptr.vmem [resolvable:$true] %s95_s19  ;;  %s118_s22 = int_to_ptr.vmem [resolvable:$true] %s117_s22 }
  0x7d   :  { %s12712_s25 = scalar_lea.hbm %s13318_s6, 64 }
  0x7e   :  { %p12713_p0 = scmp.ne.s32.totalorder %s13318_s6, %s12712_s25  ;;  %p12716_p1 = scmp.lt.u32.totalorder %s12712_s25, %s13318_s6 }
  0x80   :  { %p12718_p2 = pnand %p12716_p1, %p12713_p0 }
  0x82   :  { %12721 = shalt.err (!%p12718_p2)
}
  0x83   :  { %s12722_s4 = scalar_lea.vmem %s96_s19, 64  ;;  %p12727_p4 = scmp.lt.s32.totalorder %s96_s19, %s96_s19 }
  0x84   :  { %p12723_p3 = scmp.ne.s32.totalorder %s96_s19, %s12722_s4  ;;  %p12728_p5 = scmp.lt.s32.totalorder %s12722_s4, %s12722_s4 }
  0x86   :  { %p12729_p6 = por %p12728_p5, %p12727_p4 }
  0x88   :  { %p12730_p7 = pnand %p12729_p6, %p12723_p3 }
  0x8a   :  { %12733 = shalt.err (!%p12730_p7)
}
  0x8b   :  { %98 = dma.hbm_to_vmem [thread:$0]  %s13318_s6, 64, %s96_s19, [#allocation12]  }
  0x8c   :  { %s12734_s29 = scalar_lea.hbm %s13321_s9, 16 }
  0x8d   :  { %p12735_p8 = scmp.ne.s32.totalorder %s13321_s9, %s12734_s29  ;;  %p12738_p9 = scmp.lt.u32.totalorder %s12734_s29, %s13321_s9 }
  0x8f   :  { %p12740_p10 = pnand %p12738_p9, %p12735_p8 }
  0x91   :  { %12743 = shalt.err (!%p12740_p10)
}
  0x92   :  { %s12744_s16 = scalar_lea.vmem %s118_s22, 16  ;;  %s12748_s3 = scalar_lea.vmem %s118_s22, 32 }
  0x93   :  { %p12745_p11 = scmp.ne.s32.totalorder %s118_s22, %s12744_s16  ;;  %p12749_p12 = scmp.lt.s32.totalorder %s118_s22, %s118_s22 }
  0x94   :  { %p12750_p13 = scmp.lt.s32.totalorder %s12748_s3, %s12744_s16 }
  0x96   :  { %p12751_p0 = por %p12750_p13, %p12749_p12 }
  0x98   :  { %p12752_p1 = pnand %p12751_p0, %p12745_p11 }
  0x9a   :  { %12755 = shalt.err (!%p12752_p1)
}
  0x9b   :  { %120 = dma.hbm_to_vmem [thread:$0]  %s13321_s9, 16, %s118_s22, [#allocation15]  }
  0x9c   :  { %12756 = dma.done.wait [#allocation4], 128  }
  0x9d   :  { %12757 = vsyncadd [#allocation4], 4294967168 }
  0x9e   :  { %12758 = dma.done.wait [#allocation6], 4352  }
  0x9f   :  { %12759 = vsyncadd [#allocation6], 4294962944 }
  0xa0   :  { %12760 = dma.done.wait [#allocation9], 131200  }
  0xa1   :  { %12761 = vsyncadd [#allocation9], 4294836096 }
  0xa2   :  { %12762 = dma.done.wait [#allocation12], 32832  }
  0xa3   :  { %12763 = vsyncadd [#allocation12], 4294934464 }
  0xa4   :  { %12764 = dma.done.wait [#allocation15], 32  }
  0xa5   :  { %12765 = vsyncadd [#allocation15], 4294967264  ;;  %v12781_v1 = vmov 0   ;;  %v153_v2 = vld [vmem:[#allocation5] sm:$0xff]  ;;  %v154_v8 = vld [vmem:[#allocation5 + $0x8] sm:$0xff]  ;;  %vm429_vm0 = vcmask 261120  }
  0xa6   :  { %465 = vmatprep.mubr.bf16.mxu0 %v12781_v1  ;;  %506 = vmatprep.mubr.bf16.mxu1 %v12781_v1  ;;  %v161_v3 = vld [vmem:[#allocation5 + $0x40] sm:$0xff]  ;;  %v162_v10 = vld [vmem:[#allocation5 + $0x48] sm:$0xff]  ;;  %v155_v16 = vld [vmem:[#allocation5 + $0x10] sm:$0xff]  ;;  %vm10553_vm1 = vcmask 523264   ;;  %vm10565_vm2 = vcmask 7168  }
  0xa7   :  { %v169_v4 = vld [vmem:[#allocation5 + $0x80] sm:$0xff]  ;;  %v10577_v5 = vcombine.high %v153_v2, %v161_v3  ;;  %v10576_v6 = vcombine.low %v153_v2, %v161_v3  ;;  %v170_v11 = vld [vmem:[#allocation5 + $0x88] sm:$0xff]  ;;  %v10579_v13 = vcombine.high %v154_v8, %v162_v10  ;;  %v10578_v14 = vcombine.low %v154_v8, %v162_v10  ;;  %v163_v17 = vld [vmem:[#allocation5 + $0x50] sm:$0xff] }
  0xa8   :  { %v177_v7 = vld [vmem:[#allocation5 + $0xc0] sm:$0xff]  ;;  %v178_v12 = vld [vmem:[#allocation5 + $0xc8] sm:$0xff]  ;;  %v151_v19 = vld [vmem:[#allocation3] sm:$0xff]  ;;  %v10581_v22 = vcombine.high %v155_v16, %v163_v17  ;;  %v10580_v28 = vcombine.low %v155_v16, %v163_v17 }
  0xa9   :  { %v10593_v9 = vcombine.high %v169_v4, %v177_v7  ;;  %433 = vmatprep.subr.bf16.mxu0 %v10577_v5  ;;  %v10595_v15 = vcombine.high %v170_v11, %v178_v12  ;;  %v10592_v18 = vcombine.low %v169_v4, %v177_v7  ;;  %v156_v20 = vld [vmem:[#allocation5 + $0x18] sm:$0xff]  ;;  %474 = vmatprep.subr.bf16.mxu1 %v10579_v13  ;;  %v171_v24 = vld [vmem:[#allocation5 + $0x90] sm:$0xff]  ;;  %v157_v33 = vld [vmem:[#allocation5 + $0x20] sm:$0xff] }
  0xaa   :  { %434 = vmatpush1.bf16.msra.mxu0 %v10576_v6  ;;  %v164_v21 = vld [vmem:[#allocation5 + $0x58] sm:$0xff]  ;;  %475 = vmatpush1.bf16.msra.mxu1 %v10578_v14  ;;  %v10594_v23 = vcombine.low %v170_v11, %v178_v12  ;;  %v179_v25 = vld [vmem:[#allocation5 + $0xd0] sm:$0xff]  ;;  %v12955_v26 = vpack.c.bf16 %v151_v19, %v151_v19  ;;  %v165_v34 = vld [vmem:[#allocation5 + $0x60] sm:$0xff] }
  0xab   :  { %435 = vmatprep.subr.bf16.mxu0 %v10593_v9  ;;  %476 = vmatprep.subr.bf16.mxu1 %v10595_v15  ;;  %v10583_v27 = vcombine.high %v156_v20, %v164_v21  ;;  %v172_v29 = vld [vmem:[#allocation5 + $0x98] sm:$0xff]  ;;  %v10597_v31 = vcombine.high %v171_v24, %v179_v25  ;;  %v10582_v32 = vcombine.low %v156_v20, %v164_v21  ;;  %v158_v37 = vld [vmem:[#allocation5 + $0x28] sm:$0xff]  ;;  %v173_v41 = vld [vmem:[#allocation5 + $0xa0] sm:$0xff] }
  0xac   :  { %v180_v30 = vld [vmem:[#allocation5 + $0xd8] sm:$0xff]  ;;  %v10596_v36 = vcombine.low %v171_v24, %v179_v25  ;;  %v166_v38 = vld [vmem:[#allocation5 + $0x68] sm:$0xff]  ;;  %v10585_v39 = vcombine.high %v157_v33, %v165_v34  ;;  %v181_v42 = vld [vmem:[#allocation5 + $0xe0] sm:$0xff]  ;;  %v10584_v44 = vcombine.low %v157_v33, %v165_v34 }
  0xad   :  { %v10599_v35 = vcombine.high %v172_v29, %v180_v30  ;;  %v10598_v40 = vcombine.low %v172_v29, %v180_v30  ;;  %v10587_v43 = vcombine.high %v158_v37, %v166_v38  ;;  %v174_v45 = vld [vmem:[#allocation5 + $0xa8] sm:$0xff]  ;;  %v10601_v47 = vcombine.high %v173_v41, %v181_v42  ;;  %v159_v49 = vld [vmem:[#allocation5 + $0x30] sm:$0xff]  ;;  %v160_v53 = vld [vmem:[#allocation5 + $0x38] sm:$0xff] }
  0xae   :  { %436 = vmatpush1.bf16.msra.mxu0 %v10592_v18  ;;  %477 = vmatpush1.bf16.msra.mxu1 %v10594_v23  ;;  %v182_v46 = vld [vmem:[#allocation5 + $0xe8] sm:$0xff]  ;;  %v10586_v48 = vcombine.low %v158_v37, %v166_v38  ;;  %v167_v50 = vld [vmem:[#allocation5 + $0x70] sm:$0xff]  ;;  %v10600_v52 = vcombine.low %v173_v41, %v181_v42  ;;  %v168_v54 = vld [vmem:[#allocation5 + $0x78] sm:$0xff] }
  0xaf   :  { %515 = vmatprep.subr.bf16.mxu0 %v10581_v22  ;;  %556 = vmatprep.subr.bf16.mxu1 %v10583_v27  ;;  %v10603_v51 = vcombine.high %v174_v45, %v182_v46  ;;  %v10589_v55 = vcombine.high %v159_v49, %v167_v50  ;;  %v10602_v56 = vcombine.low %v174_v45, %v182_v46  ;;  %v175_v57 = vld [vmem:[#allocation5 + $0xb0] sm:$0xff]  ;;  %v176_v61 = vld [vmem:[#allocation5 + $0xb8] sm:$0xff] }
  0xb0   :  { %v183_v58 = vld [vmem:[#allocation5 + $0xf0] sm:$0xff]  ;;  %v10591_v59 = vcombine.high %v160_v53, %v168_v54  ;;  %v10588_v60 = vcombine.low %v159_v49, %v167_v50  ;;  %v184_v62 = vld [vmem:[#allocation5 + $0xf8] sm:$0xff]  ;;  %v10590_v0 = vcombine.low %v160_v53, %v168_v54 }
  0xb1   :  { %10608 = vmatmul.mubr.msk.bf16.vlgmr.msra.gmra.mrb[0].mxu0 %vm429_vm0, %v12955_v26  ;;  %10609 = vmatmul.mubr.msk.bf16.vlgmr.msra.gmra.mrb[0].mxu1 %vm429_vm0, %v12955_v26  ;;  %v10605_v63 = vcombine.high %v175_v57, %v183_v58  ;;  %v793_v2 = vld [vmem:[#allocation8] sm:$0xff]  ;;  %v10607_v4 = vcombine.high %v176_v61, %v184_v62  ;;  %v10604_v5 = vcombine.low %v175_v57, %v183_v58  ;;  %v794_v6 = vld [vmem:[#allocation8 + $0x8] sm:$0xff] }
  0xb2   :  { %516 = vmatpush1.bf16.msra.mxu0 %v10580_v28  ;;  %547 = vmatprep.mubr.bf16.mxu0 %v12781_v1  ;;  %v797_v3 = vld [vmem:[#allocation8 + $0x20] sm:$0xff]  ;;  %v798_v7 = vld [vmem:[#allocation8 + $0x28] sm:$0xff]  ;;  %v10606_v11 = vcombine.low %v176_v61, %v184_v62 }
  0xb3   :  { %517 = vmatprep.subr.bf16.mxu0 %v10597_v31  ;;  %557 = vmatpush1.bf16.msra.mxu1 %v10582_v32  ;;  %v10617_v8 = vcombine.high %v793_v2, %v797_v3  ;;  %v801_v9 = vld [vmem:[#allocation8 + $0x40] sm:$0xff]  ;;  %v802_v12 = vld [vmem:[#allocation8 + $0x48] sm:$0xff]  ;;  %v10619_v14 = vcombine.high %v794_v6, %v798_v7  ;;  %v10616_v15 = vcombine.low %v793_v2, %v797_v3 }
  0xb4   :  { %588 = vmatprep.mubr.bf16.mxu1 %v12781_v1  ;;  %558 = vmatprep.subr.bf16.mxu1 %v10599_v35  ;;  %v805_v10 = vld [vmem:[#allocation8 + $0x60] sm:$0xff]  ;;  %v806_v13 = vld [vmem:[#allocation8 + $0x68] sm:$0xff]  ;;  %v10618_v19 = vcombine.low %v794_v6, %v798_v7 }
  0xb5   :  { %v809_v16 = vld [vmem:[#allocation8 + $0x80] sm:$0xff]  ;;  %v10625_v18 = vcombine.high %v801_v9, %v805_v10  ;;  %v810_v20 = vld [vmem:[#allocation8 + $0x88] sm:$0xff]  ;;  %v10627_v22 = vcombine.high %v802_v12, %v806_v13  ;;  %v10626_v27 = vcombine.low %v802_v12, %v806_v13 }
  0xb6   :  { %518 = vmatpush1.bf16.msra.mxu0 %v10596_v36  ;;  %v813_v17 = vld [vmem:[#allocation8 + $0xa0] sm:$0xff]  ;;  %v814_v21 = vld [vmem:[#allocation8 + $0xa8] sm:$0xff] }
  0xb7   :  { %597 = vmatprep.subr.bf16.mxu0 %v10585_v39  ;;  %559 = vmatpush1.bf16.msra.mxu1 %v10598_v40  ;;  %v817_v23 = vld [vmem:[#allocation8 + $0xc0] sm:$0xff]  ;;  %v10633_v25 = vcombine.high %v809_v16, %v813_v17  ;;  %v818_v28 = vld [vmem:[#allocation8 + $0xc8] sm:$0xff]  ;;  %v10635_v30 = vcombine.high %v810_v20, %v814_v21  ;;  %v10632_v31 = vcombine.low %v809_v16, %v813_v17 }
  0xb8   :  { %638 = vmatprep.subr.bf16.mxu1 %v10587_v43  ;;  %v821_v24 = vld [vmem:[#allocation8 + $0xe0] sm:$0xff]  ;;  %v822_v29 = vld [vmem:[#allocation8 + $0xe8] sm:$0xff]  ;;  %v10634_v35 = vcombine.low %v810_v20, %v814_v21 }
  0xb9   :  { %10610 = vmatmul.mubr.msk.bf16.vlgmr.msra.gmra.mrb[4].mxu0 %vm429_vm0, %v12955_v26  ;;  %v825_v32 = vld [vmem:[#allocation8 + $0x100] sm:$0xff]  ;;  %v10641_v34 = vcombine.high %v817_v23, %v821_v24  ;;  %v826_v36 = vld [vmem:[#allocation8 + $0x108] sm:$0xff]  ;;  %v10640_v38 = vcombine.low %v817_v23, %v821_v24  ;;  %v10642_v42 = vcombine.low %v818_v28, %v822_v29 }
  0xba   :  { %598 = vmatpush1.bf16.msra.mxu0 %v10584_v44  ;;  %629 = vmatprep.mubr.bf16.mxu0 %v12781_v1  ;;  %v829_v33 = vld [vmem:[#allocation8 + $0x120] sm:$0xff]  ;;  %v830_v37 = vld [vmem:[#allocation8 + $0x128] sm:$0xff] }
  0xbb   :  { %10611 = vmatmul.mubr.msk.bf16.vlgmr.msra.gmra.mrb[4].mxu1 %vm429_vm0, %v12955_v26  ;;  %599 = vmatprep.subr.bf16.mxu0 %v10601_v47  ;;  %v833_v39 = vld [vmem:[#allocation8 + $0x140] sm:$0xff]  ;;  %v10649_v41 = vcombine.high %v825_v32, %v829_v33  ;;  %v834_v43 = vld [vmem:[#allocation8 + $0x148] sm:$0xff]  ;;  %v10651_v45 = vcombine.high %v826_v36, %v830_v37  ;;  %v10648_v46 = vcombine.low %v825_v32, %v829_v33 }
  0xbc   :  { %639 = vmatpush1.bf16.msra.mxu1 %v10586_v48  ;;  %670 = vmatprep.mubr.bf16.mxu1 %v12781_v1  ;;  %v837_v40 = vld [vmem:[#allocation8 + $0x160] sm:$0xff]  ;;  %v838_v44 = vld [vmem:[#allocation8 + $0x168] sm:$0xff]  ;;  %v10650_v50 = vcombine.low %v826_v36, %v830_v37 }
  0xbd   :  { %640 = vmatprep.subr.bf16.mxu1 %v10603_v51  ;;  %v841_v47 = vld [vmem:[#allocation8 + $0x180] sm:$0xff]  ;;  %v10657_v49 = vcombine.high %v833_v39, %v837_v40  ;;  %v842_v51 = vld [vmem:[#allocation8 + $0x188] sm:$0xff]  ;;  %v10659_v53 = vcombine.high %v834_v43, %v838_v44  ;;  %v10656_v54 = vcombine.low %v833_v39, %v837_v40  ;;  %v10658_v58 = vcombine.low %v834_v43, %v838_v44 }
  0xbe   :  { %600 = vmatpush1.bf16.msra.mxu0 %v10600_v52  ;;  %v845_v48 = vld [vmem:[#allocation8 + $0x1a0] sm:$0xff]  ;;  %v846_v52 = vld [vmem:[#allocation8 + $0x1a8] sm:$0xff] }
  0xbf   :  { %679 = vmatprep.subr.bf16.mxu0 %v10589_v55  ;;  %v849_v55 = vld [vmem:[#allocation8 + $0x1c0] sm:$0xff]  ;;  %v10665_v57 = vcombine.high %v841_v47, %v845_v48  ;;  %v10667_v61 = vcombine.high %v842_v51, %v846_v52  ;;  %v10664_v62 = vcombine.low %v841_v47, %v845_v48  ;;  %v10666_v3 = vcombine.low %v842_v51, %v846_v52  ;;  %v866_v12 = vld [vmem:[#allocation8 + $0x248] sm:$0xff] }
  0xc0   :  { %641 = vmatpush1.bf16.msra.mxu1 %v10602_v56  ;;  %v853_v56 = vld [vmem:[#allocation8 + $0x1e0] sm:$0xff]  ;;  %v870_v13 = vld [vmem:[#allocation8 + $0x268] sm:$0xff] }
  0xc1   :  { %10612 = vmatmul.mubr.msk.bf16.vlgmr.msra.gmra.mrb[8].mxu0 %vm429_vm0, %v12955_v26  ;;  %720 = vmatprep.subr.bf16.mxu1 %v10591_v59  ;;  %v850_v59 = vld [vmem:[#allocation8 + $0x1c8] sm:$0xff]  ;;  %v10673_v2 = vcombine.high %v849_v55, %v853_v56  ;;  %v10672_v7 = vcombine.low %v849_v55, %v853_v56  ;;  %v873_v16 = vld [vmem:[#allocation8 + $0x280] sm:$0xff] }
  0xc2   :  { %680 = vmatpush1.bf16.msra.mxu0 %v10588_v60  ;;  %711 = vmatprep.mubr.bf16.mxu0 %v12781_v1  ;;  %v854_v60 = vld [vmem:[#allocation8 + $0x1e8] sm:$0xff]  ;;  %v877_v17 = vld [vmem:[#allocation8 + $0x2a0] sm:$0xff] }
  0xc3   :  { %10613 = vmatmul.mubr.msk.bf16.vlgmr.msra.gmra.mrb[8].mxu1 %vm429_vm0, %v12955_v26  ;;  %681 = vmatprep.subr.bf16.mxu0 %v10605_v63  ;;  %v857_v63 = vld [vmem:[#allocation8 + $0x200] sm:$0xff]  ;;  %v10675_v6 = vcombine.high %v850_v59, %v854_v60  ;;  %v874_v20 = vld [vmem:[#allocation8 + $0x288] sm:$0xff] }
  0xc4   :  { %721 = vmatpush1.bf16.msra.mxu1 %v10590_v0  ;;  %752 = vmatprep.mubr.bf16.mxu1 %v12781_v1  ;;  %v10624_v1 = vcombine.low %v801_v9, %v805_v10  ;;  %v861_v0 = vld [vmem:[#allocation8 + $0x220] sm:$0xff]  ;;  %v878_v21 = vld [vmem:[#allocation8 + $0x2a8] sm:$0xff] }
  0xc5   :  { %722 = vmatprep.subr.bf16.mxu1 %v10607_v4  ;;  %v858_v4 = vld [vmem:[#allocation8 + $0x208] sm:$0xff]  ;;  %v869_v9 = vld [vmem:[#allocation8 + $0x260] sm:$0xff]  ;;  %v10681_v10 = vcombine.high %v857_v63, %v861_v0 }
  0xc6   :  { %682 = vmatpush1.bf16.msra.mxu0 %v10604_v5  ;;  %v862_v5 = vld [vmem:[#allocation8 + $0x228] sm:$0xff]  ;;  %v881_v23 = vld [vmem:[#allocation8 + $0x2c0] sm:$0xff] }
  0xc7   :  { %6979 = vmatprep.subr.bf16.mxu0 %v10617_v8  ;;  %v865_v8 = vld [vmem:[#allocation8 + $0x240] sm:$0xff]  ;;  %v890_v36 = vld [vmem:[#allocation8 + $0x308] sm:$0xff] }
  0xc8   :  { %723 = vmatpush1.bf16.msra.mxu1 %v10606_v11  ;;  %v10674_v11 = vcombine.low %v850_v59, %v854_v60  ;;  %v885_v24 = vld [vmem:[#allocation8 + $0x2e0] sm:$0xff]  ;;  %v894_v37 = vld [vmem:[#allocation8 + $0x328] sm:$0xff] }
  0xc9   :  { %10614 = vmatmul.mubr.msk.bf16.vlgmr.msra.gmra.mrb[12].mxu0 %vm429_vm0, %v12955_v26  ;;  %7307 = vmatprep.subr.bf16.mxu1 %v10619_v14  ;;  %v10683_v14 = vcombine.high %v858_v4, %v862_v5  ;;  %v889_v32 = vld [vmem:[#allocation8 + $0x300] sm:$0xff]  ;;  %v898_v43 = vld [vmem:[#allocation8 + $0x348] sm:$0xff]  ;;  %v10714_v48 = vcombine.low %v890_v36, %v894_v37 }
  0xca   :  { %6980 = vmatpush1.bf16.msra.mxu0 %v10616_v15  ;;  %v10680_v15 = vcombine.low %v857_v63, %v861_v0  ;;  %v893_v33 = vld [vmem:[#allocation8 + $0x320] sm:$0xff]  ;;  %v902_v44 = vld [vmem:[#allocation8 + $0x368] sm:$0xff] }
  0xcb   :  { %10615 = vmatmul.mubr.msk.bf16.vlgmr.msra.gmra.mrb[12].mxu1 %vm429_vm0, %v12955_v26  ;;  %6981 = vmatprep.subr.bf16.mxu0 %v10625_v18  ;;  %v10643_v26 = vcombine.high %v818_v28, %v822_v29  ;;  %v10689_v18 = vcombine.high %v865_v8, %v869_v9  ;;  %v882_v28 = vld [vmem:[#allocation8 + $0x2c8] sm:$0xff]  ;;  %v897_v39 = vld [vmem:[#allocation8 + $0x340] sm:$0xff]  ;;  %v10722_v51 = vcombine.low %v898_v43, %v902_v44 }
  0xcc   :  { %7308 = vmatpush1.bf16.msra.mxu1 %v10618_v19  ;;  %v10682_v19 = vcombine.low %v858_v4, %v862_v5  ;;  %v886_v29 = vld [vmem:[#allocation8 + $0x2e8] sm:$0xff]  ;;  %v901_v40 = vld [vmem:[#allocation8 + $0x360] sm:$0xff] }
  0xcd   :  { %7309 = vmatprep.subr.bf16.mxu1 %v10627_v22  ;;  %v10691_v22 = vcombine.high %v866_v12, %v870_v13  ;;  %v10721_v47 = vcombine.high %v897_v39, %v901_v40  ;;  %v905_v52 = vld [vmem:[#allocation8 + $0x380] sm:$0xff]  ;;  %v910_v56 = vld [vmem:[#allocation8 + $0x3a8] sm:$0xff] }
  0xce   :  { %6982 = vmatpush1.bf16.msra.mxu0 %v10624_v1  ;;  %v10688_v1 = vcombine.low %v865_v8, %v869_v9  ;;  %v913_v60 = vld [vmem:[#allocation8 + $0x3c0] sm:$0xff]  ;;  %v918_v0 = vld [vmem:[#allocation8 + $0x3e8] sm:$0xff] }
  0xcf   :  { %6983 = vmatprep.subr.bf16.mxu0 %v10633_v25  ;;  %v10697_v25 = vcombine.high %v873_v16, %v877_v17  ;;  %v921_v5 = vld [vmem:[#allocation8 + $0x400] sm:$0xff]  ;;  %v926_v9 = vld [vmem:[#allocation8 + $0x428] sm:$0xff] }
  0xd0   :  { %7310 = vmatpush1.bf16.msra.mxu1 %v10626_v27  ;;  %v10690_v27 = vcombine.low %v866_v12, %v870_v13  ;;  %v189_v13 = vlaneseq }
  0xd1   :  { %7311 = vmatprep.subr.bf16.mxu1 %v10635_v30  ;;  %v10699_v30 = vcombine.high %v874_v20, %v878_v21 }
  0xd2   :  { %6984 = vmatpush1.bf16.msra.mxu0 %v10632_v31  ;;  %v10696_v31 = vcombine.low %v873_v16, %v877_v17  ;;  %v12984_v16 = vld [vmem:[#allocation7] sm:$0xff] }
  0xd3   :  { %6985 = vmatprep.subr.bf16.mxu0 %v10641_v34  ;;  %v10705_v34 = vcombine.high %v881_v23, %v885_v24 }
  0xd4   :  { %7312 = vmatpush1.bf16.msra.mxu1 %v10634_v35  ;;  %v10698_v35 = vcombine.low %v874_v20, %v878_v21 }
  0xd5   :  { %7313 = vmatprep.subr.bf16.mxu1 %v10643_v26  ;;  %v10707_v26 = vcombine.high %v882_v28, %v886_v29 }
  0xd6   :  { %6986 = vmatpush1.bf16.msra.mxu0 %v10640_v38  ;;  %v10704_v38 = vcombine.low %v881_v23, %v885_v24 }
  0xd7   :  { %6987 = vmatprep.subr.bf16.mxu0 %v10649_v41  ;;  %v10713_v41 = vcombine.high %v889_v32, %v893_v33 }
  0xd8   :  { %7314 = vmatpush1.bf16.msra.mxu1 %v10642_v42  ;;  %v10706_v42 = vcombine.low %v882_v28, %v886_v29 }
  0xd9   :  { %7315 = vmatprep.subr.bf16.mxu1 %v10651_v45  ;;  %v10715_v45 = vcombine.high %v890_v36, %v894_v37 }
  0xda   :  { %6988 = vmatpush1.bf16.msra.mxu0 %v10648_v46  ;;  %v10712_v46 = vcombine.low %v889_v32, %v893_v33  ;;  %v933_v33 = vld [vmem:[#allocation8 + $0x460] sm:$0xff] }
  0xdb   :  { %6989 = vmatprep.subr.bf16.mxu0 %v10657_v49  ;;  %v10723_v49 = vcombine.high %v898_v43, %v902_v44  ;;  %v937_v43 = vld [vmem:[#allocation8 + $0x480] sm:$0xff] }
  0xdc   :  { %7316 = vmatpush1.bf16.msra.mxu1 %v10650_v50  ;;  %v10720_v50 = vcombine.low %v897_v39, %v901_v40  ;;  %v941_v44 = vld [vmem:[#allocation8 + $0x4a0] sm:$0xff] }
  0xdd   :  { %7317 = vmatprep.subr.bf16.mxu1 %v10659_v53  ;;  %v909_v53 = vld [vmem:[#allocation8 + $0x3a0] sm:$0xff] }
  0xde   :  { %6990 = vmatpush1.bf16.msra.mxu0 %v10656_v54  ;;  %v906_v54 = vld [vmem:[#allocation8 + $0x388] sm:$0xff]  ;;  %v10729_v55 = vcombine.high %v905_v52, %v909_v53 }
  0xdf   :  { %6991 = vmatprep.subr.bf16.mxu0 %v10665_v57  ;;  %v10728_v57 = vcombine.low %v905_v52, %v909_v53  ;;  %v10731_v59 = vcombine.high %v906_v54, %v910_v56  ;;  %v10761_v53 = vcombine.high %v937_v43, %v941_v44 }
  0xe0   :  { %7318 = vmatpush1.bf16.msra.mxu1 %v10658_v58  ;;  %v10730_v58 = vcombine.low %v906_v54, %v910_v56 }
  0xe1   :  { %7319 = vmatprep.subr.bf16.mxu1 %v10667_v61  ;;  %v917_v61 = vld [vmem:[#allocation8 + $0x3e0] sm:$0xff] }
  0xe2   :  { %6992 = vmatpush1.bf16.msra.mxu0 %v10664_v62  ;;  %v914_v62 = vld [vmem:[#allocation8 + $0x3c8] sm:$0xff]  ;;  %v10737_v63 = vcombine.high %v913_v60, %v917_v61 }
  0xe3   :  { %6993 = vmatprep.subr.bf16.mxu0 %v10673_v2  ;;  %v10736_v2 = vcombine.low %v913_v60, %v917_v61  ;;  %v10739_v4 = vcombine.high %v914_v62, %v918_v0  ;;  %v10760_v60 = vcombine.low %v937_v43, %v941_v44  ;;  %v977_v44 = vld [vmem:[#allocation8 + $0x5c0] sm:$0xff] }
  0xe4   :  { %7320 = vmatpush1.bf16.msra.mxu1 %v10666_v3  ;;  %v10738_v3 = vcombine.low %v914_v62, %v918_v0  ;;  %v953_v0 = vld [vmem:[#allocation8 + $0x500] sm:$0xff] }
  0xe5   :  { %7321 = vmatprep.subr.bf16.mxu1 %v10675_v6  ;;  %v925_v6 = vld [vmem:[#allocation8 + $0x420] sm:$0xff] }
  0xe6   :  { %6994 = vmatpush1.bf16.msra.mxu0 %v10672_v7  ;;  %v922_v7 = vld [vmem:[#allocation8 + $0x408] sm:$0xff]  ;;  %v10745_v8 = vcombine.high %v921_v5, %v925_v6 }
  0xe7   :  { %6995 = vmatprep.subr.bf16.mxu0 %v10681_v10  ;;  %v10744_v10 = vcombine.low %v921_v5, %v925_v6  ;;  %v10747_v12 = vcombine.high %v922_v7, %v926_v9 }
  0xe8   :  { %7322 = vmatpush1.bf16.msra.mxu1 %v10674_v11  ;;  %v10746_v11 = vcombine.low %v922_v7, %v926_v9 }
  0xe9   :  { %7323 = vmatprep.subr.bf16.mxu1 %v10683_v14  ;;  %v12979_v14 = vshrl.u32 %v189_v13, 7  ;;  %v965_v13 = vld [vmem:[#allocation8 + $0x560] sm:$0xff] }
  0xea   :  { %6996 = vmatpush1.bf16.msra.mxu0 %v10680_v15 }
  0xeb   :  { %6997 = vmatprep.subr.bf16.mxu0 %v10689_v18  ;;  %v12982_v15 = vsub.s32 0, %v12979_v14  ;;  %v12987_v17 = vsub.s32 1, %v12979_v14  ;;  %v12990_v18 = vsub.s32 3, %v12979_v14 }
  0xec   :  { %7324 = vmatpush1.bf16.msra.mxu1 %v10682_v19 }
  0xed   :  { %7325 = vmatprep.subr.bf16.mxu1 %v10691_v22  ;;  %v192_v19 = vrot.slane %v12984_v16, %v12982_v15  ;;  %v196_v20 = vrot.slane %v12984_v16, %v12987_v17  ;;  %v204_v22 = vrot.slane %v12984_v16, %v12990_v18 }
  0xee   :  { %6998 = vmatpush1.bf16.msra.mxu0 %v10688_v1 }
  0xef   :  { %6999 = vmatprep.subr.bf16.mxu0 %v10697_v25 }
  0xf0   :  { %7326 = vmatpush1.bf16.msra.mxu1 %v10690_v27 }
  0xf1   :  { %7327 = vmatprep.subr.bf16.mxu1 %v10699_v30  ;;  %v929_v30 = vld [vmem:[#allocation8 + $0x440] sm:$0xff] }
  0xf2   :  { %7000 = vmatpush1.bf16.msra.mxu0 %v10696_v31 }
  0xf3   :  { %7001 = vmatprep.subr.bf16.mxu0 %v10705_v34  ;;  %v930_v34 = vld [vmem:[#allocation8 + $0x448] sm:$0xff] }
  0xf4   :  { %7328 = vmatpush1.bf16.msra.mxu1 %v10698_v35  ;;  %v934_v35 = vld [vmem:[#allocation8 + $0x468] sm:$0xff] }
  0xf5   :  { %7329 = vmatprep.subr.bf16.mxu1 %v10707_v26 }
  0xf6   :  { %7002 = vmatpush1.bf16.msra.mxu0 %v10704_v38 }
  0xf7   :  { %7003 = vmatprep.subr.bf16.mxu0 %v10713_v41  ;;  %v10753_v41 = vcombine.high %v929_v30, %v933_v33 }
  0xf8   :  { %7330 = vmatpush1.bf16.msra.mxu1 %v10706_v42  ;;  %v10755_v42 = vcombine.high %v930_v34, %v934_v35 }
  0xf9   :  { %7331 = vmatprep.subr.bf16.mxu1 %v10715_v45  ;;  %v938_v45 = vld [vmem:[#allocation8 + $0x488] sm:$0xff] }
  0xfa   :  { %7004 = vmatpush1.bf16.msra.mxu0 %v10712_v46  ;;  %v942_v46 = vld [vmem:[#allocation8 + $0x4a8] sm:$0xff] }
  0xfb   :  { %7005 = vmatprep.subr.bf16.mxu0 %v10721_v47  ;;  %v10763_v54 = vcombine.high %v938_v45, %v942_v46  ;;  %v10762_v61 = vcombine.low %v938_v45, %v942_v46  ;;  %v981_v46 = vld [vmem:[#allocation8 + $0x5e0] sm:$0xff] }
  0xfc   :  { %7332 = vmatpush1.bf16.msra.mxu1 %v10714_v48 }
  0xfd   :  { %7333 = vmatprep.subr.bf16.mxu1 %v10723_v49 }
  0xfe   :  { %7006 = vmatpush1.bf16.msra.mxu0 %v10720_v50  ;;  %v10752_v50 = vcombine.low %v929_v30, %v933_v33  ;;  %v974_v33 = vld [vmem:[#allocation8 + $0x5a8] sm:$0xff] }
  0xff   :  { %7007 = vmatprep.subr.bf16.mxu0 %v10729_v55  ;;  %v945_v55 = vld [vmem:[#allocation8 + $0x4c0] sm:$0xff] }
 0x100   :  { %7334 = vmatpush1.bf16.msra.mxu1 %v10722_v51  ;;  %v10754_v51 = vcombine.low %v930_v34, %v934_v35  ;;  %v13028_v34 = vsub.s32 5, %v12979_v14 }
 0x101   :  { %7335 = vmatprep.subr.bf16.mxu1 %v10731_v59  ;;  %v950_v59 = vld [vmem:[#allocation8 + $0x4e8] sm:$0xff] }
 0x102   :  { %7008 = vmatpush1.bf16.msra.mxu0 %v10728_v57  ;;  %v949_v57 = vld [vmem:[#allocation8 + $0x4e0] sm:$0xff] }
 0x103   :  { %7009 = vmatprep.subr.bf16.mxu0 %v10737_v63  ;;  %v10769_v62 = vcombine.high %v945_v55, %v949_v57  ;;  %v10768_v6 = vcombine.low %v945_v55, %v949_v57 }
 0x104   :  { %7336 = vmatpush1.bf16.msra.mxu1 %v10730_v58  ;;  %v946_v58 = vld [vmem:[#allocation8 + $0x4c8] sm:$0xff] }
 0x105   :  { %7337 = vmatprep.subr.bf16.mxu1 %v10739_v4  ;;  %v10771_v63 = vcombine.high %v946_v58, %v950_v59  ;;  %v958_v4 = vld [vmem:[#allocation8 + $0x528] sm:$0xff]  ;;  %v10770_v7 = vcombine.low %v946_v58, %v950_v59  ;;  %v985_v58 = vld [vmem:[#allocation8 + $0x600] sm:$0xff] }
 0x106   :  { %7010 = vmatpush1.bf16.msra.mxu0 %v10736_v2  ;;  %v957_v2 = vld [vmem:[#allocation8 + $0x520] sm:$0xff] }
 0x107   :  { %7020 = vmatprep.subr.bf16.mxu0 %v10745_v8  ;;  %v10777_v9 = vcombine.high %v953_v0, %v957_v2  ;;  %v989_v59 = vld [vmem:[#allocation8 + $0x620] sm:$0xff] }
 0x108   :  { %7338 = vmatpush1.bf16.msra.mxu1 %v10738_v3  ;;  %v954_v3 = vld [vmem:[#allocation8 + $0x508] sm:$0xff] }
 0x109   :  { %7348 = vmatprep.subr.bf16.mxu1 %v10747_v12 }
 0x184   :  { %v467_v21 = vpop.f32.mrb[0].mxu0  ;;  %v12998_v27 = vpop.f32.mrb[0].mxu1 }
 0x185   :  { %v468_v1 = vadd.f32 %v467_v21, %v192_v19  ;;  %v469_v23 = vpop.f32.mrb[1].mxu0  ;;  %v510_v31 = vpop.f32.mrb[1].mxu1  ;;  %v962_v19 = vld [vmem:[#allocation8 + $0x548] sm:$0xff] }
 0x186   :  { %v470_v24 = vadd.f32 %v469_v23, %v196_v20  ;;  %v471_v25 = vpop.f32.mrb[2].mxu0  ;;  %v511_v36 = vadd.f32 %v510_v31, %v204_v22  ;;  %v512_v37 = vpop.f32.mrb[2].mxu1  ;;  %v966_v20 = vld [vmem:[#allocation8 + $0x568] sm:$0xff]  ;;  %v13021_v22 = vsub.s32 4, %v12979_v14  ;;  %v10778_v23 = vcombine.low %v954_v3, %v958_v4  ;;  %v973_v31 = vld [vmem:[#allocation8 + $0x5a0] sm:$0xff] }
 0x187   :  { %v761_v28 = vmax.f32 %v468_v1, 0.0  ;;  %v472_v29 = vpop.f32.mrb[3].mxu0  ;;  %v513_v26 = vpop.f32.mrb[3].mxu1  ;;  %v10776_v1 = vcombine.low %v953_v0, %v957_v2  ;;  %v10809_v0 = vcombine.high %v985_v58, %v989_v59 }
 0x188   :  { %v762_v32 = vmax.f32 %v470_v24, 0.0  ;;  %v764_v39 = vmax.f32 %v511_v36, 0.0  ;;  %v13023_v24 = vld [vmem:[#allocation7 + $0x8] sm:$0xff]  ;;  %v969_v29 = vld [vmem:[#allocation8 + $0x580] sm:$0xff]  ;;  %v10786_v26 = vcombine.low %v962_v19, %v966_v20 }
 0x189   :  { %v13002_v40 = vpack.c.bf16 %v761_v28, %v761_v28  ;;  %v10787_v28 = vcombine.high %v962_v19, %v966_v20  ;;  %v240_v30 = vrot.slane %v13023_v24, %v13021_v22  ;;  %v1001_v19 = vld [vmem:[#allocation8 + $0x680] sm:$0xff] }
 0x18a   :  { %v13000_v38 = vpack.c.bf16 %v762_v32, %v762_v32  ;;  %v13006_v47 = vpack.c.bf16 %v764_v39, %v764_v39  ;;  %v970_v32 = vld [vmem:[#allocation8 + $0x588] sm:$0xff]  ;;  %v244_v39 = vrot.slane %v13023_v24, %v13028_v34 }
 0x18b   :  { %v10795_v43 = vcombine.high %v970_v32, %v974_v33  ;;  %v10794_v55 = vcombine.low %v970_v32, %v974_v33  ;;  %v1009_v33 = vld [vmem:[#allocation8 + $0x6c0] sm:$0xff] }
 0x18c   :  { %7011 = vmatprep.mubr.bf16.mxu0 %v13000_v38  ;;  %7339 = vmatprep.mubr.bf16.mxu1 %v13000_v38  ;;  %v13008_v48 = vpop.f32.mrb[4].mxu0 }
 0x18d   :  { %7012 = vmatmul.mubr.bf16.vlgmr.msra.gmra.mrb[16].mxu0 %v13002_v40  ;;  %7340 = vmatmul.mubr.bf16.vlgmr.msra.gmra.mrb[16].mxu1 %v13002_v40  ;;  %v13012_v49 = vpop.f32.mrb[5].mxu0 }
 0x18e   :  { %7021 = vmatpush1.bf16.msra.mxu0 %v10744_v10  ;;  %7349 = vmatpush1.bf16.msra.mxu1 %v10746_v11  ;;  %v553_v52 = vpop.f32.mrb[6].mxu0  ;;  %v10779_v10 = vcombine.high %v954_v3, %v958_v4  ;;  %v961_v11 = vld [vmem:[#allocation8 + $0x540] sm:$0xff] }
 0x18f   :  { %7022 = vmatprep.subr.bf16.mxu0 %v10753_v41  ;;  %7350 = vmatprep.subr.bf16.mxu1 %v10755_v42  ;;  %v554_v56 = vpop.f32.mrb[7].mxu0  ;;  %v10785_v25 = vcombine.high %v961_v11, %v965_v13  ;;  %v10784_v37 = vcombine.low %v961_v11, %v965_v13  ;;  %v10793_v42 = vcombine.high %v969_v29, %v973_v31  ;;  %v993_v3 = vld [vmem:[#allocation8 + $0x640] sm:$0xff]  ;;  %v13036_v11 = vpop.f32.mrb[4].mxu1 }
 0x190   :  { %7052 = vmatprep.mubr.bf16.mxu0 %v13006_v47  ;;  %7380 = vmatprep.mubr.bf16.mxu1 %v13006_v47  ;;  %v10801_v56 = vcombine.high %v977_v44, %v981_v46  ;;  %v997_v4 = vld [vmem:[#allocation8 + $0x660] sm:$0xff]  ;;  %v13038_v20 = vpop.f32.mrb[5].mxu1 }
 0x192   :  { %7023 = vmatpush1.bf16.msra.mxu0 %v10752_v50  ;;  %7351 = vmatpush1.bf16.msra.mxu1 %v10754_v51  ;;  %v978_v50 = vld [vmem:[#allocation8 + $0x5c8] sm:$0xff] }
 0x193   :  { %7024 = vmatprep.subr.bf16.mxu0 %v10761_v53  ;;  %7352 = vmatprep.subr.bf16.mxu1 %v10763_v54  ;;  %v982_v51 = vld [vmem:[#allocation8 + $0x5e8] sm:$0xff]  ;;  %v10792_v54 = vcombine.low %v969_v29, %v973_v31  ;;  %v10816_v29 = vcombine.low %v993_v3, %v997_v4 }
 0x194   :  { %v13016_v5 = vpop.f32.mrb[8].mxu0  ;;  %v10803_v57 = vcombine.high %v978_v50, %v982_v51 }
 0x195   :  { %v13018_v8 = vpop.f32.mrb[9].mxu0 }
 0x196   :  { %7025 = vmatpush1.bf16.msra.mxu0 %v10760_v60  ;;  %7353 = vmatpush1.bf16.msra.mxu1 %v10762_v61  ;;  %v635_v12 = vpop.f32.mrb[10].mxu0  ;;  %v986_v60 = vld [vmem:[#allocation8 + $0x608] sm:$0xff] }
 0x197   :  { %7026 = vmatprep.subr.bf16.mxu0 %v10769_v62  ;;  %7354 = vmatprep.subr.bf16.mxu1 %v10771_v63  ;;  %v636_v21 = vpop.f32.mrb[11].mxu0  ;;  %v990_v61 = vld [vmem:[#allocation8 + $0x628] sm:$0xff]  ;;  %v10800_v62 = vcombine.low %v977_v44, %v981_v46  ;;  %v10802_v63 = vcombine.low %v978_v50, %v982_v51  ;;  %v10817_v12 = vcombine.high %v993_v3, %v997_v4  ;;  %v1017_v50 = vld [vmem:[#allocation8 + $0x700] sm:$0xff] }
 0x198   :  { %v10811_v2 = vcombine.high %v986_v60, %v990_v61  ;;  %v1005_v21 = vld [vmem:[#allocation8 + $0x6a0] sm:$0xff]  ;;  %v236_v51 = vrot.slane %v13023_v24, %v12990_v18  ;;  %v1026_v4 = vld [vmem:[#allocation8 + $0x748] sm:$0xff] }
 0x199   :  { %v10825_v31 = vcombine.high %v1001_v19, %v1005_v21  ;;  %v1029_v3 = vld [vmem:[#allocation8 + $0x760] sm:$0xff] }
 0x19a   :  { %7027 = vmatpush1.bf16.msra.mxu0 %v10768_v6  ;;  %7355 = vmatpush1.bf16.msra.mxu1 %v10770_v7  ;;  %v994_v6 = vld [vmem:[#allocation8 + $0x648] sm:$0xff] }
 0x19b   :  { %7028 = vmatprep.subr.bf16.mxu0 %v10777_v9  ;;  %7356 = vmatprep.subr.bf16.mxu1 %v10779_v10  ;;  %v998_v7 = vld [vmem:[#allocation8 + $0x668] sm:$0xff]  ;;  %v10808_v9 = vcombine.low %v985_v58, %v989_v59  ;;  %v10810_v10 = vcombine.low %v986_v60, %v990_v61 }
 0x19c   :  { %v713_v35 = vpop.f32.mrb[12].mxu0  ;;  %v10819_v13 = vcombine.high %v994_v6, %v998_v7 }
 0x19d   :  { %v13030_v36 = vadd.f32 %v713_v35, %v240_v30  ;;  %v715_v41 = vpop.f32.mrb[13].mxu0  ;;  %v10818_v30 = vcombine.low %v994_v6, %v998_v7  ;;  %v1013_v35 = vld [vmem:[#allocation8 + $0x6e0] sm:$0xff]  ;;  %v1030_v6 = vld [vmem:[#allocation8 + $0x768] sm:$0xff]  ;;  %v13052_v7 = vsub.s32 6, %v12979_v14 }
 0x19e   :  { %7029 = vmatpush1.bf16.msra.mxu0 %v10776_v1  ;;  %7357 = vmatpush1.bf16.msra.mxu1 %v10778_v23  ;;  %v717_v45 = vpop.f32.mrb[14].mxu0  ;;  %v13034_v52 = vadd.f32 %v715_v41, %v244_v39  ;;  %v1002_v1 = vld [vmem:[#allocation8 + $0x688] sm:$0xff]  ;;  %v13041_v39 = vsub.s32 2, %v12979_v14  ;;  %v10824_v41 = vcombine.low %v1001_v19, %v1005_v21  ;;  %v10832_v61 = vcombine.low %v1009_v33, %v1013_v35 }
 0x19f   :  { %7030 = vmatprep.subr.bf16.mxu0 %v10785_v25  ;;  %7358 = vmatprep.subr.bf16.mxu1 %v10787_v28  ;;  %v718_v53 = vpop.f32.mrb[15].mxu0  ;;  %v1006_v23 = vld [vmem:[#allocation8 + $0x6a8] sm:$0xff]  ;;  %v594_v25 = vpop.f32.mrb[6].mxu1  ;;  %v10833_v45 = vcombine.high %v1009_v33, %v1013_v35 }
 0x1a0   :  { %v595_v28 = vpop.f32.mrb[7].mxu1  ;;  %v10827_v32 = vcombine.high %v1002_v1, %v1006_v23  ;;  %v1033_v25 = vld [vmem:[#allocation8 + $0x780] sm:$0xff]  ;;  %v200_v35 = vrot.slane %v12984_v16, %v13041_v39 }
 0x1a1   :  { %v672_v44 = vpop.f32.mrb[8].mxu1 }
 0x1a2   :  { %7031 = vmatpush1.bf16.msra.mxu0 %v10784_v37  ;;  %7359 = vmatpush1.bf16.msra.mxu1 %v10786_v26  ;;  %v1010_v37 = vld [vmem:[#allocation8 + $0x6c8] sm:$0xff]  ;;  %v674_v53 = vpop.f32.mrb[9].mxu1 }
 0x1a3   :  { %7032 = vmatprep.subr.bf16.mxu0 %v10793_v42  ;;  %7360 = vmatprep.subr.bf16.mxu1 %v10795_v43  ;;  %v1014_v26 = vld [vmem:[#allocation8 + $0x6e8] sm:$0xff]  ;;  %v10826_v42 = vcombine.low %v1002_v1, %v1006_v23  ;;  %v232_v43 = vrot.slane %v13023_v24, %v13041_v39  ;;  %v676_v58 = vpop.f32.mrb[10].mxu1  ;;  %v13049_v59 = vadd.f32 %v674_v53, %v236_v51 }
 0x1a4   :  { %v10835_v46 = vcombine.high %v1010_v37, %v1014_v26  ;;  %v677_v60 = vpop.f32.mrb[11].mxu1  ;;  %v10851_v23 = vcombine.high %v1026_v4, %v1030_v6  ;;  %v509_v51 = vadd.f32 %v12998_v27, %v200_v35  ;;  %v1049_v58 = vld [vmem:[#allocation8 + $0x800] sm:$0xff] }
 0x1a5   :  { %v754_v19 = vpop.f32.mrb[12].mxu1  ;;  %v1053_v60 = vld [vmem:[#allocation8 + $0x820] sm:$0xff] }
 0x1a6   :  { %7033 = vmatpush1.bf16.msra.mxu0 %v10792_v54  ;;  %7361 = vmatpush1.bf16.msra.mxu1 %v10794_v55  ;;  %v1021_v54 = vld [vmem:[#allocation8 + $0x720] sm:$0xff]  ;;  %v1018_v55 = vld [vmem:[#allocation8 + $0x708] sm:$0xff]  ;;  %v756_v28 = vpop.f32.mrb[13].mxu1  ;;  %v10873_v27 = vcombine.high %v1049_v58, %v1053_v60 }
 0x1a7   :  { %7034 = vmatprep.subr.bf16.mxu0 %v10801_v56  ;;  %7362 = vmatprep.subr.bf16.mxu1 %v10803_v57  ;;  %v1022_v56 = vld [vmem:[#allocation8 + $0x728] sm:$0xff]  ;;  %v13047_v57 = vadd.f32 %v672_v44, %v232_v43  ;;  %v758_v33 = vpop.f32.mrb[14].mxu1  ;;  %v1041_v43 = vld [vmem:[#allocation8 + $0x7c0] sm:$0xff] }
 0x1a8   :  { %v1045_v44 = vld [vmem:[#allocation8 + $0x7e0] sm:$0xff] }
 0x1aa   :  { %7035 = vmatpush1.bf16.msra.mxu0 %v10800_v62  ;;  %7363 = vmatpush1.bf16.msra.mxu1 %v10802_v63  ;;  %v10834_v62 = vcombine.low %v1010_v37, %v1014_v26  ;;  %v10841_v63 = vcombine.high %v1017_v50, %v1021_v54  ;;  %v759_v37 = vpop.f32.mrb[15].mxu1  ;;  %v10850_v26 = vcombine.low %v1026_v4, %v1030_v6  ;;  %v1057_v6 = vld [vmem:[#allocation8 + $0x840] sm:$0xff] }
 0x1ab   :  { %7036 = vmatprep.subr.bf16.mxu0 %v10809_v0  ;;  %7364 = vmatprep.subr.bf16.mxu1 %v10811_v2  ;;  %v10843_v0 = vcombine.high %v1018_v55, %v1022_v56  ;;  %v1025_v2 = vld [vmem:[#allocation8 + $0x740] sm:$0xff] }
 0x1ac   :  { %v10849_v1 = vcombine.high %v1025_v2, %v1029_v3 }
 0x1ae   :  { %7037 = vmatpush1.bf16.msra.mxu0 %v10808_v9  ;;  %7365 = vmatpush1.bf16.msra.mxu1 %v10810_v10  ;;  %v13055_v9 = vsub.s32 7, %v12979_v14  ;;  %v10840_v10 = vcombine.low %v1017_v50, %v1021_v54  ;;  %v1034_v14 = vld [vmem:[#allocation8 + $0x788] sm:$0xff]  ;;  %v212_v50 = vrot.slane %v12984_v16, %v13028_v34 }
 0x1af   :  { %7038 = vmatprep.subr.bf16.mxu0 %v10817_v12  ;;  %7366 = vmatprep.subr.bf16.mxu1 %v10819_v13  ;;  %v10842_v12 = vcombine.low %v1018_v55, %v1022_v56  ;;  %v248_v13 = vrot.slane %v13023_v24, %v13052_v7  ;;  %v10865_v55 = vcombine.high %v1041_v43, %v1045_v44 }
 0x1b0   :  { %v252_v21 = vrot.slane %v13023_v24, %v13055_v9  ;;  %v10848_v24 = vcombine.low %v1025_v2, %v1029_v3  ;;  %v10864_v2 = vcombine.low %v1041_v43, %v1045_v44  ;;  %v1074_v43 = vld [vmem:[#allocation8 + $0x8c8] sm:$0xff] }
 0x1b1   :  { %v1078_v44 = vld [vmem:[#allocation8 + $0x8e8] sm:$0xff] }
 0x1b2   :  { %7039 = vmatpush1.bf16.msra.mxu0 %v10816_v29  ;;  %7367 = vmatpush1.bf16.msra.mxu1 %v10818_v30  ;;  %v1037_v29 = vld [vmem:[#allocation8 + $0x7a0] sm:$0xff]  ;;  %v1038_v30 = vld [vmem:[#allocation8 + $0x7a8] sm:$0xff] }
 0x1b3   :  { %7040 = vmatprep.subr.bf16.mxu0 %v10825_v31  ;;  %7368 = vmatprep.subr.bf16.mxu1 %v10827_v32  ;;  %v13061_v31 = vadd.f32 %v754_v19, %v248_v13  ;;  %v13063_v32 = vadd.f32 %v756_v28, %v252_v21  ;;  %v10856_v53 = vcombine.low %v1033_v25, %v1037_v29  ;;  %v1062_v13 = vld [vmem:[#allocation8 + $0x868] sm:$0xff]  ;;  %v1065_v28 = vld [vmem:[#allocation8 + $0x880] sm:$0xff] }
 0x1b4   :  { %v10858_v54 = vcombine.low %v1034_v14, %v1038_v30 }
 0x1b6   :  { %7041 = vmatpush1.bf16.msra.mxu0 %v10824_v41  ;;  %7369 = vmatpush1.bf16.msra.mxu1 %v10826_v42  ;;  %v10857_v41 = vcombine.high %v1033_v25, %v1037_v29  ;;  %v10859_v42 = vcombine.high %v1034_v14, %v1038_v30  ;;  %v1069_v29 = vld [vmem:[#allocation8 + $0x8a0] sm:$0xff]  ;;  %v1066_v14 = vld [vmem:[#allocation8 + $0x888] sm:$0xff] }
 0x1b7   :  { %7042 = vmatprep.subr.bf16.mxu0 %v10833_v45  ;;  %7370 = vmatprep.subr.bf16.mxu1 %v10835_v46  ;;  %v1042_v45 = vld [vmem:[#allocation8 + $0x7c8] sm:$0xff] }
 0x1b8   :  { %v1046_v46 = vld [vmem:[#allocation8 + $0x7e8] sm:$0xff] }
 0x1b9   :  { %v10867_v56 = vcombine.high %v1042_v45, %v1046_v46  ;;  %v10866_v3 = vcombine.low %v1042_v45, %v1046_v46  ;;  %v1070_v30 = vld [vmem:[#allocation8 + $0x8a8] sm:$0xff]  ;;  %v10888_v45 = vcombine.low %v1065_v28, %v1069_v29 }
 0x1ba   :  { %7043 = vmatpush1.bf16.msra.mxu0 %v10832_v61  ;;  %7371 = vmatpush1.bf16.msra.mxu1 %v10834_v62  ;;  %v1050_v61 = vld [vmem:[#allocation8 + $0x808] sm:$0xff]  ;;  %v10890_v46 = vcombine.low %v1066_v14, %v1070_v30 }
 0x1bb   :  { %7044 = vmatprep.subr.bf16.mxu0 %v10841_v63  ;;  %7372 = vmatprep.subr.bf16.mxu1 %v10843_v0  ;;  %v1054_v62 = vld [vmem:[#allocation8 + $0x828] sm:$0xff]  ;;  %v552_v63 = vadd.f32 %v13012_v49, %v212_v50  ;;  %v763_v0 = vmax.f32 %v509_v51, 0.0  ;;  %v10899_v51 = vcombine.high %v1074_v43, %v1078_v44 }
 0x1bc   :  { %v10875_v4 = vcombine.high %v1050_v61, %v1054_v62  ;;  %v10874_v49 = vcombine.low %v1050_v61, %v1054_v62 }
 0x1bd   :  { %v766_v19 = vmax.f32 %v552_v63, 0.0  ;;  %v13071_v21 = vpack.c.bf16 %v763_v0, %v763_v0  ;;  %v1089_v63 = vld [vmem:[#allocation8 + $0x940] sm:$0xff] }
 0x1be   :  { %7045 = vmatpush1.bf16.msra.mxu0 %v10840_v10  ;;  %7373 = vmatpush1.bf16.msra.mxu1 %v10842_v12  ;;  %v1061_v10 = vld [vmem:[#allocation8 + $0x860] sm:$0xff]  ;;  %v1058_v12 = vld [vmem:[#allocation8 + $0x848] sm:$0xff] }
 0x1bf   :  { %7046 = vmatprep.subr.bf16.mxu0 %v10849_v1  ;;  %7374 = vmatprep.subr.bf16.mxu1 %v10851_v23  ;;  %v10872_v1 = vcombine.low %v1049_v58, %v1053_v60  ;;  %v10881_v23 = vcombine.high %v1057_v6, %v1061_v10  ;;  %v10883_v25 = vcombine.high %v1058_v12, %v1062_v13  ;;  %v1093_v0 = vld [vmem:[#allocation8 + $0x960] sm:$0xff] }
 0x1c0   :  { %v13073_v33 = vpack.c.bf16 %v766_v19, %v766_v19  ;;  %v10880_v35 = vcombine.low %v1057_v6, %v1061_v10  ;;  %v10882_v37 = vcombine.low %v1058_v12, %v1062_v13  ;;  %v10898_v60 = vcombine.low %v1074_v43, %v1078_v44  ;;  %v1097_v12 = vld [vmem:[#allocation8 + $0x980] sm:$0xff]  ;;  %v1098_v19 = vld [vmem:[#allocation8 + $0x988] sm:$0xff] }
 0x1c1   :  { %v10913_v6 = vcombine.high %v1089_v63, %v1093_v0  ;;  %v1101_v13 = vld [vmem:[#allocation8 + $0x9a0] sm:$0xff]  ;;  %v1114_v44 = vld [vmem:[#allocation8 + $0xa08] sm:$0xff] }
 0x1c2   :  { %7047 = vmatpush1.bf16.msra.mxu0 %v10848_v24  ;;  %7375 = vmatpush1.bf16.msra.mxu1 %v10850_v26  ;;  %v10889_v24 = vcombine.high %v1065_v28, %v1069_v29  ;;  %v10891_v26 = vcombine.high %v1066_v14, %v1070_v30  ;;  %v1105_v29 = vld [vmem:[#allocation8 + $0x9c0] sm:$0xff]  ;;  %v1106_v30 = vld [vmem:[#allocation8 + $0x9c8] sm:$0xff] }
 0x1c3   :  { %7048 = vmatprep.subr.bf16.mxu0 %v10857_v41  ;;  %7376 = vmatprep.subr.bf16.mxu1 %v10859_v42  ;;  %v1073_v41 = vld [vmem:[#allocation8 + $0x8c0] sm:$0xff] }
 0x1c4   :  { %v1077_v42 = vld [vmem:[#allocation8 + $0x8e0] sm:$0xff] }
 0x1c5   :  { %v10897_v50 = vcombine.high %v1073_v41, %v1077_v42  ;;  %v10896_v58 = vcombine.low %v1073_v41, %v1077_v42  ;;  %v1109_v14 = vld [vmem:[#allocation8 + $0x9e0] sm:$0xff] }
 0x1c6   :  { %7049 = vmatpush1.bf16.msra.mxu0 %v10856_v53  ;;  %7377 = vmatpush1.bf16.msra.mxu1 %v10858_v54  ;;  %v1081_v53 = vld [vmem:[#allocation8 + $0x900] sm:$0xff] }
 0x1c7   :  { %7050 = vmatprep.subr.bf16.mxu0 %v10865_v55  ;;  %7378 = vmatprep.subr.bf16.mxu1 %v10867_v56  ;;  %v1085_v54 = vld [vmem:[#allocation8 + $0x920] sm:$0xff]  ;;  %v1082_v55 = vld [vmem:[#allocation8 + $0x908] sm:$0xff] }
 0x1c8   :  { %v1086_v56 = vld [vmem:[#allocation8 + $0x928] sm:$0xff]  ;;  %v10905_v61 = vcombine.high %v1081_v53, %v1085_v54  ;;  %v1113_v42 = vld [vmem:[#allocation8 + $0xa00] sm:$0xff] }
 0x1c9   :  { %v10907_v62 = vcombine.high %v1082_v55, %v1086_v56  ;;  %v1117_v43 = vld [vmem:[#allocation8 + $0xa20] sm:$0xff] }
 0x1ca   :  { %7051 = vmatpush1.bf16.msra.mxu0 %v10864_v2  ;;  %7379 = vmatpush1.bf16.msra.mxu1 %v10866_v3  ;;  %v1090_v2 = vld [vmem:[#allocation8 + $0x948] sm:$0xff] }
 0x1cb   :  { %7061 = vmatprep.subr.bf16.mxu0 %v10873_v27  ;;  %7389 = vmatprep.subr.bf16.mxu1 %v10875_v4  ;;  %v1094_v3 = vld [vmem:[#allocation8 + $0x968] sm:$0xff]  ;;  %v10904_v27 = vcombine.low %v1081_v53, %v1085_v54  ;;  %v10906_v4 = vcombine.low %v1082_v55, %v1086_v56  ;;  %v1121_v54 = vld [vmem:[#allocation8 + $0xa40] sm:$0xff] }
 0x1cc   :  { %v10915_v10 = vcombine.high %v1090_v2, %v1094_v3  ;;  %v1125_v55 = vld [vmem:[#allocation8 + $0xa60] sm:$0xff]  ;;  %v1122_v56 = vld [vmem:[#allocation8 + $0xa48] sm:$0xff] }
 0x1cd   :  { %7053 = vmatmul.mubr.bf16.vlgmr.msra.gmra.mrb[16].mxu0 %v13071_v21  ;;  %7381 = vmatmul.mubr.bf16.vlgmr.msra.gmra.mrb[16].mxu1 %v13071_v21 }
 0x1ce   :  { %7062 = vmatpush1.bf16.msra.mxu0 %v10872_v1  ;;  %7390 = vmatpush1.bf16.msra.mxu1 %v10874_v49  ;;  %v1102_v1 = vld [vmem:[#allocation8 + $0x9a8] sm:$0xff]  ;;  %v10912_v49 = vcombine.low %v1089_v63, %v1093_v0  ;;  %v1129_v0 = vld [vmem:[#allocation8 + $0xa80] sm:$0xff] }
 0x1cf   :  { %7063 = vmatprep.subr.bf16.mxu0 %v10881_v23  ;;  %7391 = vmatprep.subr.bf16.mxu1 %v10883_v25  ;;  %v10914_v23 = vcombine.low %v1090_v2, %v1094_v3  ;;  %v10921_v25 = vcombine.high %v1097_v12, %v1101_v13  ;;  %v10923_v28 = vcombine.high %v1098_v19, %v1102_v1  ;;  %v1133_v2 = vld [vmem:[#allocation8 + $0xaa0] sm:$0xff]  ;;  %v1130_v3 = vld [vmem:[#allocation8 + $0xa88] sm:$0xff] }
 0x1d0   :  { %7093 = vmatprep.mubr.bf16.mxu0 %v13073_v33  ;;  %7421 = vmatprep.mubr.bf16.mxu1 %v13073_v33 }
 0x1d2   :  { %7064 = vmatpush1.bf16.msra.mxu0 %v10880_v35  ;;  %7392 = vmatpush1.bf16.msra.mxu1 %v10882_v37  ;;  %v1110_v35 = vld [vmem:[#allocation8 + $0x9e8] sm:$0xff]  ;;  %v10920_v37 = vcombine.low %v1097_v12, %v1101_v13  ;;  %v1137_v13 = vld [vmem:[#allocation8 + $0xac0] sm:$0xff] }
 0x1d3   :  { %7065 = vmatprep.subr.bf16.mxu0 %v10889_v24  ;;  %7393 = vmatprep.subr.bf16.mxu1 %v10891_v26  ;;  %v10922_v24 = vcombine.low %v1098_v19, %v1102_v1  ;;  %v10929_v26 = vcombine.high %v1105_v29, %v1109_v14  ;;  %v10931_v41 = vcombine.high %v1106_v30, %v1110_v35  ;;  %v1141_v19 = vld [vmem:[#allocation8 + $0xae0] sm:$0xff]  ;;  %v1138_v1 = vld [vmem:[#allocation8 + $0xac8] sm:$0xff] }
 0x1d6   :  { %7066 = vmatpush1.bf16.msra.mxu0 %v10888_v45  ;;  %7394 = vmatpush1.bf16.msra.mxu1 %v10890_v46  ;;  %v1118_v45 = vld [vmem:[#allocation8 + $0xa28] sm:$0xff]  ;;  %v10928_v46 = vcombine.low %v1105_v29, %v1109_v14  ;;  %v1145_v14 = vld [vmem:[#allocation8 + $0xb00] sm:$0xff] }
 0x1d7   :  { %7067 = vmatprep.subr.bf16.mxu0 %v10897_v50  ;;  %7395 = vmatprep.subr.bf16.mxu1 %v10899_v51  ;;  %v10930_v50 = vcombine.low %v1106_v30, %v1110_v35  ;;  %v10937_v51 = vcombine.high %v1113_v42, %v1117_v43  ;;  %v10939_v53 = vcombine.high %v1114_v44, %v1118_v45  ;;  %v1149_v30 = vld [vmem:[#allocation8 + $0xb20] sm:$0xff]  ;;  %v1146_v35 = vld [vmem:[#allocation8 + $0xb08] sm:$0xff] }
 0x1da   :  { %7068 = vmatpush1.bf16.msra.mxu0 %v10896_v58  ;;  %7396 = vmatpush1.bf16.msra.mxu1 %v10898_v60  ;;  %v1126_v58 = vld [vmem:[#allocation8 + $0xa68] sm:$0xff]  ;;  %v10936_v60 = vcombine.low %v1113_v42, %v1117_v43  ;;  %v1153_v43 = vld [vmem:[#allocation8 + $0xb40] sm:$0xff] }
 0x1db   :  { %7069 = vmatprep.subr.bf16.mxu0 %v10905_v61  ;;  %7397 = vmatprep.subr.bf16.mxu1 %v10907_v62  ;;  %v10938_v61 = vcombine.low %v1114_v44, %v1118_v45  ;;  %v10945_v62 = vcombine.high %v1121_v54, %v1125_v55  ;;  %v10947_v63 = vcombine.high %v1122_v56, %v1126_v58  ;;  %v1157_v44 = vld [vmem:[#allocation8 + $0xb60] sm:$0xff]  ;;  %v1154_v45 = vld [vmem:[#allocation8 + $0xb48] sm:$0xff] }
 0x1de   :  { %7070 = vmatpush1.bf16.msra.mxu0 %v10904_v27  ;;  %7398 = vmatpush1.bf16.msra.mxu1 %v10906_v4  ;;  %v1134_v27 = vld [vmem:[#allocation8 + $0xaa8] sm:$0xff]  ;;  %v10944_v4 = vcombine.low %v1121_v54, %v1125_v55  ;;  %v1161_v55 = vld [vmem:[#allocation8 + $0xb80] sm:$0xff] }
 0x1df   :  { %7071 = vmatprep.subr.bf16.mxu0 %v10913_v6  ;;  %7399 = vmatprep.subr.bf16.mxu1 %v10915_v10  ;;  %v10946_v6 = vcombine.low %v1122_v56, %v1126_v58  ;;  %v10953_v10 = vcombine.high %v1129_v0, %v1133_v2  ;;  %v10955_v12 = vcombine.high %v1130_v3, %v1134_v27  ;;  %v1165_v56 = vld [vmem:[#allocation8 + $0xba0] sm:$0xff]  ;;  %v1162_v58 = vld [vmem:[#allocation8 + $0xb88] sm:$0xff] }
 0x1e2   :  { %7072 = vmatpush1.bf16.msra.mxu0 %v10912_v49  ;;  %7400 = vmatpush1.bf16.msra.mxu1 %v10914_v23  ;;  %v1142_v49 = vld [vmem:[#allocation8 + $0xae8] sm:$0xff]  ;;  %v10952_v23 = vcombine.low %v1129_v0, %v1133_v2  ;;  %v10985_v0 = vcombine.high %v1161_v55, %v1165_v56 }
 0x1e3   :  { %7073 = vmatprep.subr.bf16.mxu0 %v10921_v25  ;;  %7401 = vmatprep.subr.bf16.mxu1 %v10923_v28  ;;  %v10954_v25 = vcombine.low %v1130_v3, %v1134_v27  ;;  %v10961_v28 = vcombine.high %v1137_v13, %v1141_v19  ;;  %v10963_v29 = vcombine.high %v1138_v1, %v1142_v49  ;;  %v1169_v3 = vld [vmem:[#allocation8 + $0xbc0] sm:$0xff] }
 0x1e4   :  { %v1173_v27 = vld [vmem:[#allocation8 + $0xbe0] sm:$0xff] }
 0x1e6   :  { %7074 = vmatpush1.bf16.msra.mxu0 %v10920_v37  ;;  %7402 = vmatpush1.bf16.msra.mxu1 %v10922_v24  ;;  %v1150_v37 = vld [vmem:[#allocation8 + $0xb28] sm:$0xff]  ;;  %v10960_v24 = vcombine.low %v1137_v13, %v1141_v19  ;;  %v10984_v13 = vcombine.low %v1161_v55, %v1165_v56 }
 0x1e7   :  { %7075 = vmatprep.subr.bf16.mxu0 %v10929_v26  ;;  %7403 = vmatprep.subr.bf16.mxu1 %v10931_v41  ;;  %v10962_v26 = vcombine.low %v1138_v1, %v1142_v49  ;;  %v10969_v41 = vcombine.high %v1145_v14, %v1149_v30  ;;  %v10971_v42 = vcombine.high %v1146_v35, %v1150_v37  ;;  %v1198_v55 = vld [vmem:[#allocation8 + $0xca8] sm:$0xff] }
 0x1e8   :  { %v10993_v1 = vcombine.high %v1169_v3, %v1173_v27 }
 0x1ea   :  { %7076 = vmatpush1.bf16.msra.mxu0 %v10928_v46  ;;  %7404 = vmatpush1.bf16.msra.mxu1 %v10930_v50  ;;  %v1158_v46 = vld [vmem:[#allocation8 + $0xb68] sm:$0xff]  ;;  %v10968_v50 = vcombine.low %v1145_v14, %v1149_v30 }
 0x1eb   :  { %7077 = vmatprep.subr.bf16.mxu0 %v10937_v51  ;;  %7405 = vmatprep.subr.bf16.mxu1 %v10939_v53  ;;  %v10970_v51 = vcombine.low %v1146_v35, %v1150_v37  ;;  %v10977_v53 = vcombine.high %v1153_v43, %v1157_v44  ;;  %v10979_v54 = vcombine.high %v1154_v45, %v1158_v46 }
 0x1ee   :  { %7078 = vmatpush1.bf16.msra.mxu0 %v10936_v60  ;;  %7406 = vmatpush1.bf16.msra.mxu1 %v10938_v61  ;;  %v1166_v60 = vld [vmem:[#allocation8 + $0xba8] sm:$0xff]  ;;  %v208_v61 = vrot.slane %v12984_v16, %v13021_v22 }
 0x1ef   :  { %7079 = vmatprep.subr.bf16.mxu0 %v10945_v62  ;;  %7407 = vmatprep.subr.bf16.mxu1 %v10947_v63  ;;  %v10976_v62 = vcombine.low %v1153_v43, %v1157_v44  ;;  %v10978_v63 = vcombine.low %v1154_v45, %v1158_v46  ;;  %v10987_v2 = vcombine.high %v1162_v58, %v1166_v60 }
 0x1f0   :  { %v10986_v19 = vcombine.low %v1162_v58, %v1166_v60 }
 0x1f2   :  { %7080 = vmatpush1.bf16.msra.mxu0 %v10944_v4  ;;  %7408 = vmatpush1.bf16.msra.mxu1 %v10946_v6  ;;  %v1170_v4 = vld [vmem:[#allocation8 + $0xbc8] sm:$0xff] }
 0x1f3   :  { %7081 = vmatprep.subr.bf16.mxu0 %v10953_v10  ;;  %7409 = vmatprep.subr.bf16.mxu1 %v10955_v12  ;;  %v1174_v6 = vld [vmem:[#allocation8 + $0xbe8] sm:$0xff]  ;;  %v220_v10 = vrot.slane %v12984_v16, %v13055_v9  ;;  %v550_v12 = vadd.f32 %v13008_v48, %v208_v61  ;;  %v10992_v16 = vcombine.low %v1169_v3, %v1173_v27 }
 0x1f4   :  { %v10995_v49 = vcombine.high %v1170_v4, %v1174_v6  ;;  %v10994_v35 = vcombine.low %v1170_v4, %v1174_v6  ;;  %v1206_v3 = vld [vmem:[#allocation8 + $0xce8] sm:$0xff] }
 0x1f5   :  { %v593_v14 = vadd.f32 %v13038_v20, %v220_v10  ;;  %v765_v30 = vmax.f32 %v550_v12, 0.0  ;;  %v1209_v12 = vld [vmem:[#allocation8 + $0xd00] sm:$0xff] }
 0x1f6   :  { %7082 = vmatpush1.bf16.msra.mxu0 %v10952_v23  ;;  %7410 = vmatpush1.bf16.msra.mxu1 %v10954_v25  ;;  %v1177_v23 = vld [vmem:[#allocation8 + $0xc00] sm:$0xff] }
 0x1f7   :  { %7083 = vmatprep.subr.bf16.mxu0 %v10961_v28  ;;  %7411 = vmatprep.subr.bf16.mxu1 %v10963_v29  ;;  %v1181_v25 = vld [vmem:[#allocation8 + $0xc20] sm:$0xff]  ;;  %v1178_v28 = vld [vmem:[#allocation8 + $0xc08] sm:$0xff]  ;;  %v768_v43 = vmax.f32 %v593_v14, 0.0  ;;  %v13085_v44 = vpack.c.bf16 %v765_v30, %v765_v30 }
 0x1f8   :  { %v1182_v29 = vld [vmem:[#allocation8 + $0xc28] sm:$0xff]  ;;  %v11001_v48 = vcombine.high %v1177_v23, %v1181_v25  ;;  %v11000_v45 = vcombine.low %v1177_v23, %v1181_v25  ;;  %v1221_v14 = vld [vmem:[#allocation8 + $0xd60] sm:$0xff] }
 0x1f9   :  { %v11003_v37 = vcombine.high %v1178_v28, %v1182_v29  ;;  %v11002_v20 = vcombine.low %v1178_v28, %v1182_v29  ;;  %v13087_v56 = vpack.c.bf16 %v768_v43, %v768_v43  ;;  %v1217_v29 = vld [vmem:[#allocation8 + $0xd40] sm:$0xff]  ;;  %v1218_v30 = vld [vmem:[#allocation8 + $0xd48] sm:$0xff] }
 0x1fa   :  { %7084 = vmatpush1.bf16.msra.mxu0 %v10960_v24  ;;  %7412 = vmatpush1.bf16.msra.mxu1 %v10962_v26  ;;  %v1185_v24 = vld [vmem:[#allocation8 + $0xc40] sm:$0xff]  ;;  %v1230_v43 = vld [vmem:[#allocation8 + $0xda8] sm:$0xff] }
 0x1fb   :  { %7085 = vmatprep.subr.bf16.mxu0 %v10969_v41  ;;  %7413 = vmatprep.subr.bf16.mxu1 %v10971_v42  ;;  %v1189_v26 = vld [vmem:[#allocation8 + $0xc60] sm:$0xff]  ;;  %v1186_v41 = vld [vmem:[#allocation8 + $0xc48] sm:$0xff] }
 0x1fc   :  { %v1190_v42 = vld [vmem:[#allocation8 + $0xc68] sm:$0xff]  ;;  %v11009_v46 = vcombine.high %v1185_v24, %v1189_v26  ;;  %v11008_v58 = vcombine.low %v1185_v24, %v1189_v26  ;;  %v1225_v26 = vld [vmem:[#allocation8 + $0xd80] sm:$0xff] }
 0x1fd   :  { %v11010_v60 = vcombine.low %v1186_v41, %v1190_v42 }
 0x1fe   :  { %7086 = vmatpush1.bf16.msra.mxu0 %v10968_v50  ;;  %7414 = vmatpush1.bf16.msra.mxu1 %v10970_v51  ;;  %v11011_v50 = vcombine.high %v1186_v41, %v1190_v42  ;;  %v1193_v51 = vld [vmem:[#allocation8 + $0xc80] sm:$0xff]  ;;  %v1226_v42 = vld [vmem:[#allocation8 + $0xd88] sm:$0xff] }
 0x1ff   :  { %7087 = vmatprep.subr.bf16.mxu0 %v10977_v53  ;;  %7415 = vmatprep.subr.bf16.mxu1 %v10979_v54  ;;  %v1197_v53 = vld [vmem:[#allocation8 + $0xca0] sm:$0xff]  ;;  %v1194_v54 = vld [vmem:[#allocation8 + $0xc88] sm:$0xff] }
 0x200   :  { %v11017_v61 = vcombine.high %v1193_v51, %v1197_v53  ;;  %v11016_v27 = vcombine.low %v1193_v51, %v1197_v53  ;;  %v11018_v4 = vcombine.low %v1194_v54, %v1198_v55  ;;  %v1229_v41 = vld [vmem:[#allocation8 + $0xda0] sm:$0xff] }
 0x201   :  { %v1233_v51 = vld [vmem:[#allocation8 + $0xdc0] sm:$0xff] }
 0x202   :  { %7088 = vmatpush1.bf16.msra.mxu0 %v10976_v62  ;;  %7416 = vmatpush1.bf16.msra.mxu1 %v10978_v63  ;;  %v11019_v62 = vcombine.high %v1194_v54, %v1198_v55  ;;  %v1201_v63 = vld [vmem:[#allocation8 + $0xcc0] sm:$0xff]  ;;  %v1234_v54 = vld [vmem:[#allocation8 + $0xdc8] sm:$0xff] }
 0x203   :  { %7089 = vmatprep.subr.bf16.mxu0 %v10985_v0  ;;  %7417 = vmatprep.subr.bf16.mxu1 %v10987_v2  ;;  %v1205_v0 = vld [vmem:[#allocation8 + $0xce0] sm:$0xff]  ;;  %v1202_v2 = vld [vmem:[#allocation8 + $0xcc8] sm:$0xff] }
 0x204   :  { %v11025_v6 = vcombine.high %v1201_v63, %v1205_v0  ;;  %v11027_v10 = vcombine.high %v1202_v2, %v1206_v3  ;;  %v11026_v23 = vcombine.low %v1202_v2, %v1206_v3  ;;  %v1237_v53 = vld [vmem:[#allocation8 + $0xde0] sm:$0xff]  ;;  %v1238_v55 = vld [vmem:[#allocation8 + $0xde8] sm:$0xff] }
 0x205   :  { %v1242_v2 = vld [vmem:[#allocation8 + $0xe08] sm:$0xff] }
 0x206   :  { %7090 = vmatpush1.bf16.msra.mxu0 %v10984_v13  ;;  %7418 = vmatpush1.bf16.msra.mxu1 %v10986_v19  ;;  %v1213_v13 = vld [vmem:[#allocation8 + $0xd20] sm:$0xff]  ;;  %v1210_v19 = vld [vmem:[#allocation8 + $0xd08] sm:$0xff] }
 0x207   :  { %7091 = vmatprep.subr.bf16.mxu0 %v10993_v1  ;;  %7419 = vmatprep.subr.bf16.mxu1 %v10995_v49  ;;  %v1214_v1 = vld [vmem:[#allocation8 + $0xd28] sm:$0xff]  ;;  %v11024_v49 = vcombine.low %v1201_v63, %v1205_v0  ;;  %v11033_v25 = vcombine.high %v1209_v12, %v1213_v13  ;;  %v1241_v63 = vld [vmem:[#allocation8 + $0xe00] sm:$0xff] }
 0x208   :  { %v11035_v28 = vcombine.high %v1210_v19, %v1214_v1  ;;  %v1245_v0 = vld [vmem:[#allocation8 + $0xe20] sm:$0xff]  ;;  %v1246_v3 = vld [vmem:[#allocation8 + $0xe28] sm:$0xff] }
 0x20a   :  { %7092 = vmatpush1.bf16.msra.mxu0 %v10992_v16  ;;  %7420 = vmatpush1.bf16.msra.mxu1 %v10994_v35  ;;  %v1222_v16 = vld [vmem:[#allocation8 + $0xd68] sm:$0xff]  ;;  %v11032_v35 = vcombine.low %v1209_v12, %v1213_v13  ;;  %v1249_v12 = vld [vmem:[#allocation8 + $0xe40] sm:$0xff] }
 0x20b   :  { %7102 = vmatprep.subr.bf16.mxu0 %v11001_v48  ;;  %7430 = vmatprep.subr.bf16.mxu1 %v11003_v37  ;;  %v11034_v48 = vcombine.low %v1210_v19, %v1214_v1  ;;  %v11041_v37 = vcombine.high %v1217_v29, %v1221_v14  ;;  %v11043_v24 = vcombine.high %v1218_v30, %v1222_v16  ;;  %v1253_v13 = vld [vmem:[#allocation8 + $0xe60] sm:$0xff]  ;;  %v1250_v19 = vld [vmem:[#allocation8 + $0xe48] sm:$0xff] }
 0x20c   :  { %v1254_v1 = vld [vmem:[#allocation8 + $0xe68] sm:$0xff] }
 0x20d   :  { %7094 = vmatmul.mubr.bf16.vlgmr.msra.gmra.mrb[16].mxu0 %v13085_v44  ;;  %7422 = vmatmul.mubr.bf16.vlgmr.msra.gmra.mrb[16].mxu1 %v13085_v44 }
 0x20e   :  { %7103 = vmatpush1.bf16.msra.mxu0 %v11000_v45  ;;  %7431 = vmatpush1.bf16.msra.mxu1 %v11002_v20  ;;  %v11040_v45 = vcombine.low %v1217_v29, %v1221_v14  ;;  %v11042_v20 = vcombine.low %v1218_v30, %v1222_v16  ;;  %v1257_v29 = vld [vmem:[#allocation8 + $0xe80] sm:$0xff]  ;;  %v1258_v30 = vld [vmem:[#allocation8 + $0xe88] sm:$0xff] }
 0x20f   :  { %7104 = vmatprep.subr.bf16.mxu0 %v11009_v46  ;;  %7432 = vmatprep.subr.bf16.mxu1 %v11011_v50  ;;  %v11049_v46 = vcombine.high %v1225_v26, %v1229_v41  ;;  %v11051_v50 = vcombine.high %v1226_v42, %v1230_v43  ;;  %v1261_v14 = vld [vmem:[#allocation8 + $0xea0] sm:$0xff]  ;;  %v1262_v16 = vld [vmem:[#allocation8 + $0xea8] sm:$0xff] }
 0x210   :  { %7134 = vmatprep.mubr.bf16.mxu0 %v13087_v56  ;;  %7462 = vmatprep.mubr.bf16.mxu1 %v13087_v56 }
 0x212   :  { %7105 = vmatpush1.bf16.msra.mxu0 %v11008_v58  ;;  %7433 = vmatpush1.bf16.msra.mxu1 %v11010_v60  ;;  %v11048_v58 = vcombine.low %v1225_v26, %v1229_v41  ;;  %v11050_v60 = vcombine.low %v1226_v42, %v1230_v43  ;;  %v1265_v26 = vld [vmem:[#allocation8 + $0xec0] sm:$0xff]  ;;  %v1266_v42 = vld [vmem:[#allocation8 + $0xec8] sm:$0xff] }
 0x213   :  { %7106 = vmatprep.subr.bf16.mxu0 %v11017_v61  ;;  %7434 = vmatprep.subr.bf16.mxu1 %v11019_v62  ;;  %v11057_v61 = vcombine.high %v1233_v51, %v1237_v53  ;;  %v11059_v62 = vcombine.high %v1234_v54, %v1238_v55  ;;  %v1269_v41 = vld [vmem:[#allocation8 + $0xee0] sm:$0xff]  ;;  %v1270_v43 = vld [vmem:[#allocation8 + $0xee8] sm:$0xff] }
 0x216   :  { %7107 = vmatpush1.bf16.msra.mxu0 %v11016_v27  ;;  %7435 = vmatpush1.bf16.msra.mxu1 %v11018_v4  ;;  %v11056_v27 = vcombine.low %v1233_v51, %v1237_v53  ;;  %v11058_v4 = vcombine.low %v1234_v54, %v1238_v55  ;;  %v1273_v51 = vld [vmem:[#allocation8 + $0xf00] sm:$0xff]  ;;  %v1274_v54 = vld [vmem:[#allocation8 + $0xf08] sm:$0xff] }
 0x217   :  { %7108 = vmatprep.subr.bf16.mxu0 %v11025_v6  ;;  %7436 = vmatprep.subr.bf16.mxu1 %v11027_v10  ;;  %v11065_v6 = vcombine.high %v1241_v63, %v1245_v0  ;;  %v11067_v10 = vcombine.high %v1242_v2, %v1246_v3  ;;  %v1277_v53 = vld [vmem:[#allocation8 + $0xf20] sm:$0xff]  ;;  %v1278_v55 = vld [vmem:[#allocation8 + $0xf28] sm:$0xff] }
 0x21a   :  { %7109 = vmatpush1.bf16.msra.mxu0 %v11024_v49  ;;  %7437 = vmatpush1.bf16.msra.mxu1 %v11026_v23  ;;  %v11064_v49 = vcombine.low %v1241_v63, %v1245_v0  ;;  %v11066_v23 = vcombine.low %v1242_v2, %v1246_v3  ;;  %v1281_v63 = vld [vmem:[#allocation8 + $0xf40] sm:$0xff]  ;;  %v1282_v2 = vld [vmem:[#allocation8 + $0xf48] sm:$0xff] }
 0x21b   :  { %7110 = vmatprep.subr.bf16.mxu0 %v11033_v25  ;;  %7438 = vmatprep.subr.bf16.mxu1 %v11035_v28  ;;  %v11073_v25 = vcombine.high %v1249_v12, %v1253_v13  ;;  %v11075_v28 = vcombine.high %v1250_v19, %v1254_v1  ;;  %v1285_v0 = vld [vmem:[#allocation8 + $0xf60] sm:$0xff]  ;;  %v1286_v3 = vld [vmem:[#allocation8 + $0xf68] sm:$0xff] }
 0x21e   :  { %7111 = vmatpush1.bf16.msra.mxu0 %v11032_v35  ;;  %7439 = vmatpush1.bf16.msra.mxu1 %v11034_v48  ;;  %v11072_v35 = vcombine.low %v1249_v12, %v1253_v13  ;;  %v11074_v48 = vcombine.low %v1250_v19, %v1254_v1  ;;  %v1289_v12 = vld [vmem:[#allocation8 + $0xf80] sm:$0xff]  ;;  %v1290_v19 = vld [vmem:[#allocation8 + $0xf88] sm:$0xff] }
 0x21f   :  { %7112 = vmatprep.subr.bf16.mxu0 %v11041_v37  ;;  %7440 = vmatprep.subr.bf16.mxu1 %v11043_v24  ;;  %v11081_v37 = vcombine.high %v1257_v29, %v1261_v14  ;;  %v11083_v24 = vcombine.high %v1258_v30, %v1262_v16  ;;  %v1293_v13 = vld [vmem:[#allocation8 + $0xfa0] sm:$0xff]  ;;  %v1294_v1 = vld [vmem:[#allocation8 + $0xfa8] sm:$0xff] }
 0x222   :  { %7113 = vmatpush1.bf16.msra.mxu0 %v11040_v45  ;;  %7441 = vmatpush1.bf16.msra.mxu1 %v11042_v20  ;;  %v11080_v45 = vcombine.low %v1257_v29, %v1261_v14  ;;  %v11082_v20 = vcombine.low %v1258_v30, %v1262_v16  ;;  %v11113_v29 = vcombine.high %v1289_v12, %v1293_v13  ;;  %v1297_v30 = vld [vmem:[#allocation8 + $0xfc0] sm:$0xff]  ;;  %v13094_v16 = vld [vmem:[#allocation7 + $0x8] sm:$0xff] }
 0x223   :  { %7114 = vmatprep.subr.bf16.mxu0 %v11049_v46  ;;  %7442 = vmatprep.subr.bf16.mxu1 %v11051_v50  ;;  %v11089_v46 = vcombine.high %v1265_v26, %v1269_v41  ;;  %v11091_v50 = vcombine.high %v1266_v42, %v1270_v43  ;;  %v11115_v14 = vcombine.high %v1290_v19, %v1294_v1 }
 0x226   :  { %7115 = vmatpush1.bf16.msra.mxu0 %v11048_v58  ;;  %7443 = vmatpush1.bf16.msra.mxu1 %v11050_v60  ;;  %v11088_v58 = vcombine.low %v1265_v26, %v1269_v41  ;;  %v11090_v60 = vcombine.low %v1266_v42, %v1270_v43  ;;  %v11112_v26 = vcombine.low %v1289_v12, %v1293_v13  ;;  %v1321_v12 = vld [vmem:[#allocation8 + $0x1080] sm:$0xff] }
 0x227   :  { %7116 = vmatprep.subr.bf16.mxu0 %v11057_v61  ;;  %7444 = vmatprep.subr.bf16.mxu1 %v11059_v62  ;;  %v11097_v61 = vcombine.high %v1273_v51, %v1277_v53  ;;  %v11099_v62 = vcombine.high %v1274_v54, %v1278_v55  ;;  %v11114_v41 = vcombine.low %v1290_v19, %v1294_v1  ;;  %v1325_v13 = vld [vmem:[#allocation8 + $0x10a0] sm:$0xff]  ;;  %v1322_v19 = vld [vmem:[#allocation8 + $0x1088] sm:$0xff] }
 0x228   :  { %v1326_v1 = vld [vmem:[#allocation8 + $0x10a8] sm:$0xff] }
 0x22a   :  { %7117 = vmatpush1.bf16.msra.mxu0 %v11056_v27  ;;  %7445 = vmatpush1.bf16.msra.mxu1 %v11058_v4  ;;  %v11096_v27 = vcombine.low %v1273_v51, %v1277_v53  ;;  %v11098_v4 = vcombine.low %v1274_v54, %v1278_v55  ;;  %v1306_v51 = vld [vmem:[#allocation8 + $0x1008] sm:$0xff] }
 0x22b   :  { %7118 = vmatprep.subr.bf16.mxu0 %v11065_v6  ;;  %7446 = vmatprep.subr.bf16.mxu1 %v11067_v10  ;;  %v11105_v6 = vcombine.high %v1281_v63, %v1285_v0  ;;  %v11107_v10 = vcombine.high %v1282_v2, %v1286_v3  ;;  %v1310_v53 = vld [vmem:[#allocation8 + $0x1028] sm:$0xff] }
 0x22e   :  { %7119 = vmatpush1.bf16.msra.mxu0 %v11064_v49  ;;  %7447 = vmatpush1.bf16.msra.mxu1 %v11066_v23  ;;  %v11104_v49 = vcombine.low %v1281_v63, %v1285_v0  ;;  %v11106_v23 = vcombine.low %v1282_v2, %v1286_v3  ;;  %v1317_v63 = vld [vmem:[#allocation8 + $0x1060] sm:$0xff]  ;;  %v1314_v0 = vld [vmem:[#allocation8 + $0x1048] sm:$0xff] }
 0x22f   :  { %7120 = vmatprep.subr.bf16.mxu0 %v11073_v25  ;;  %7448 = vmatprep.subr.bf16.mxu1 %v11075_v28  ;;  %v12555_v25 = vld [vmem:[#allocation7] sm:$0xff]  ;;  %v1318_v2 = vld [vmem:[#allocation8 + $0x1068] sm:$0xff] }
 0x230   :  { %v216_v28 = vrot.slane %v12555_v25, %v13052_v7  ;;  %v11145_v25 = vcombine.high %v1321_v12, %v1325_v13 }
 0x232   :  { %7121 = vmatpush1.bf16.msra.mxu0 %v11072_v35  ;;  %7449 = vmatpush1.bf16.msra.mxu1 %v11074_v48  ;;  %v228_v35 = vrot.slane %v13094_v16, %v12987_v17  ;;  %v1301_v48 = vld [vmem:[#allocation8 + $0xfe0] sm:$0xff]  ;;  %v591_v42 = vadd.f32 %v13036_v11, %v216_v28  ;;  %v11147_v28 = vcombine.high %v1322_v19, %v1326_v1 }
 0x233   :  { %7122 = vmatprep.subr.bf16.mxu0 %v11081_v37  ;;  %7450 = vmatprep.subr.bf16.mxu1 %v11083_v24  ;;  %v1298_v37 = vld [vmem:[#allocation8 + $0xfc8] sm:$0xff]  ;;  %v11121_v43 = vcombine.high %v1297_v30, %v1301_v48  ;;  %v11120_v54 = vcombine.low %v1297_v30, %v1301_v48  ;;  %v11144_v48 = vcombine.low %v1321_v12, %v1325_v13  ;;  %v1361_v13 = vld [vmem:[#allocation8 + $0x11c0] sm:$0xff] }
 0x234   :  { %v1302_v24 = vld [vmem:[#allocation8 + $0xfe8] sm:$0xff] }
 0x235   :  { %v11122_v55 = vcombine.low %v1298_v37, %v1302_v24  ;;  %v1330_v30 = vld [vmem:[#allocation8 + $0x10c8] sm:$0xff] }
 0x236   :  { %7123 = vmatpush1.bf16.msra.mxu0 %v11080_v45  ;;  %7451 = vmatpush1.bf16.msra.mxu1 %v11082_v20  ;;  %v11123_v45 = vcombine.high %v1298_v37, %v1302_v24  ;;  %v1305_v20 = vld [vmem:[#allocation8 + $0x1000] sm:$0xff]  ;;  %v11146_v37 = vcombine.low %v1322_v19, %v1326_v1  ;;  %v1362_v1 = vld [vmem:[#allocation8 + $0x11c8] sm:$0xff] }
 0x237   :  { %7124 = vmatprep.subr.bf16.mxu0 %v11089_v46  ;;  %7452 = vmatprep.subr.bf16.mxu1 %v11091_v50  ;;  %v634_v46 = vadd.f32 %v13018_v8, %v228_v35  ;;  %v1309_v50 = vld [vmem:[#allocation8 + $0x1020] sm:$0xff]  ;;  %v1334_v35 = vld [vmem:[#allocation8 + $0x10e8] sm:$0xff] }
 0x238   :  { %v11128_v8 = vcombine.low %v1305_v20, %v1309_v50  ;;  %v1365_v19 = vld [vmem:[#allocation8 + $0x11e0] sm:$0xff] }
 0x239   :  { %v770_v11 = vmax.f32 %v634_v46, 0.0  ;;  %v11154_v46 = vcombine.low %v1330_v30, %v1334_v35 }
 0x23a   :  { %7125 = vmatpush1.bf16.msra.mxu0 %v11088_v58  ;;  %7453 = vmatpush1.bf16.msra.mxu1 %v11090_v60  ;;  %v767_v58 = vmax.f32 %v591_v42, 0.0  ;;  %v11129_v60 = vcombine.high %v1305_v20, %v1309_v50  ;;  %v1341_v42 = vld [vmem:[#allocation8 + $0x1120] sm:$0xff] }
 0x23b   :  { %7126 = vmatprep.subr.bf16.mxu0 %v11097_v61  ;;  %7454 = vmatprep.subr.bf16.mxu1 %v11099_v62  ;;  %v11131_v61 = vcombine.high %v1306_v51, %v1310_v53  ;;  %v1313_v62 = vld [vmem:[#allocation8 + $0x1040] sm:$0xff] }
 0x23c   :  { %v13100_v3 = vpack.c.bf16 %v767_v58, %v767_v58  ;;  %v1350_v58 = vld [vmem:[#allocation8 + $0x1168] sm:$0xff] }
 0x23e   :  { %7127 = vmatpush1.bf16.msra.mxu0 %v11096_v27  ;;  %7455 = vmatpush1.bf16.msra.mxu1 %v11098_v4  ;;  %v11130_v27 = vcombine.low %v1306_v51, %v1310_v53  ;;  %v13102_v4 = vpack.c.bf16 %v770_v11, %v770_v11  ;;  %v1345_v53 = vld [vmem:[#allocation8 + $0x1140] sm:$0xff] }
 0x23f   :  { %7128 = vmatprep.subr.bf16.mxu0 %v11105_v6  ;;  %7456 = vmatprep.subr.bf16.mxu1 %v11107_v10  ;;  %v11137_v6 = vcombine.high %v1313_v62, %v1317_v63  ;;  %v11139_v10 = vcombine.high %v1314_v0, %v1318_v2 }
 0x242   :  { %7129 = vmatpush1.bf16.msra.mxu0 %v11104_v49  ;;  %7457 = vmatpush1.bf16.msra.mxu1 %v11106_v23  ;;  %v11136_v49 = vcombine.low %v1313_v62, %v1317_v63  ;;  %v11138_v23 = vcombine.low %v1314_v0, %v1318_v2  ;;  %v1353_v63 = vld [vmem:[#allocation8 + $0x1180] sm:$0xff]  ;;  %v1354_v2 = vld [vmem:[#allocation8 + $0x1188] sm:$0xff] }
 0x243   :  { %7130 = vmatprep.subr.bf16.mxu0 %v11113_v29  ;;  %7458 = vmatprep.subr.bf16.mxu1 %v11115_v14  ;;  %v1329_v29 = vld [vmem:[#allocation8 + $0x10c0] sm:$0xff] }
 0x244   :  { %v1333_v14 = vld [vmem:[#allocation8 + $0x10e0] sm:$0xff] }
 0x245   :  { %v11153_v24 = vcombine.high %v1329_v29, %v1333_v14  ;;  %v11152_v20 = vcombine.low %v1329_v29, %v1333_v14  ;;  %v1357_v0 = vld [vmem:[#allocation8 + $0x11a0] sm:$0xff] }
 0x246   :  { %7131 = vmatpush1.bf16.msra.mxu0 %v11112_v26  ;;  %7459 = vmatpush1.bf16.msra.mxu1 %v11114_v41  ;;  %v11155_v26 = vcombine.high %v1330_v30, %v1334_v35  ;;  %v1337_v41 = vld [vmem:[#allocation8 + $0x1100] sm:$0xff]  ;;  %v1370_v35 = vld [vmem:[#allocation8 + $0x1208] sm:$0xff] }
 0x247   :  { %7132 = vmatprep.subr.bf16.mxu0 %v11121_v43  ;;  %7460 = vmatprep.subr.bf16.mxu1 %v11123_v45  ;;  %v1338_v43 = vld [vmem:[#allocation8 + $0x1108] sm:$0xff]  ;;  %v11161_v50 = vcombine.high %v1337_v41, %v1341_v42  ;;  %v1369_v14 = vld [vmem:[#allocation8 + $0x1200] sm:$0xff] }
 0x248   :  { %v1342_v45 = vld [vmem:[#allocation8 + $0x1128] sm:$0xff]  ;;  %v1373_v30 = vld [vmem:[#allocation8 + $0x1220] sm:$0xff] }
 0x249   :  { %v11163_v51 = vcombine.high %v1338_v43, %v1342_v45 }
 0x24a   :  { %7133 = vmatpush1.bf16.msra.mxu0 %v11120_v54  ;;  %7461 = vmatpush1.bf16.msra.mxu1 %v11122_v55  ;;  %v1349_v54 = vld [vmem:[#allocation8 + $0x1160] sm:$0xff]  ;;  %v1346_v55 = vld [vmem:[#allocation8 + $0x1148] sm:$0xff] }
 0x24b   :  { %7143 = vmatprep.subr.bf16.mxu0 %v11129_v60  ;;  %7471 = vmatprep.subr.bf16.mxu1 %v11131_v61  ;;  %v11160_v60 = vcombine.low %v1337_v41, %v1341_v42  ;;  %v11162_v61 = vcombine.low %v1338_v43, %v1342_v45  ;;  %v11169_v11 = vcombine.high %v1345_v53, %v1349_v54  ;;  %v1377_v42 = vld [vmem:[#allocation8 + $0x1240] sm:$0xff]  ;;  %v1378_v45 = vld [vmem:[#allocation8 + $0x1248] sm:$0xff] }
 0x24c   :  { %v11171_v62 = vcombine.high %v1346_v55, %v1350_v58  ;;  %v1381_v43 = vld [vmem:[#allocation8 + $0x1260] sm:$0xff] }
 0x24d   :  { %7135 = vmatmul.mubr.bf16.vlgmr.msra.gmra.mrb[16].mxu0 %v13100_v3  ;;  %7463 = vmatmul.mubr.bf16.vlgmr.msra.gmra.mrb[16].mxu1 %v13100_v3 }
 0x24e   :  { %7144 = vmatpush1.bf16.msra.mxu0 %v11128_v8  ;;  %7175 = vmatprep.mubr.bf16.mxu0 %v13102_v4  ;;  %v1358_v8 = vld [vmem:[#allocation8 + $0x11a8] sm:$0xff] }
 0x24f   :  { %7472 = vmatpush1.bf16.msra.mxu1 %v11130_v27  ;;  %7503 = vmatprep.mubr.bf16.mxu1 %v13102_v4  ;;  %v11168_v27 = vcombine.low %v1345_v53, %v1349_v54  ;;  %v11179_v12 = vcombine.high %v1354_v2, %v1358_v8  ;;  %v1385_v54 = vld [vmem:[#allocation8 + $0x1280] sm:$0xff] }
 0x250   :  { %7145 = vmatprep.subr.bf16.mxu0 %v11137_v6  ;;  %7473 = vmatprep.subr.bf16.mxu1 %v11139_v10  ;;  %v11170_v6 = vcombine.low %v1346_v55, %v1350_v58  ;;  %v11177_v10 = vcombine.high %v1353_v63, %v1357_v0  ;;  %v1389_v55 = vld [vmem:[#allocation8 + $0x12a0] sm:$0xff]  ;;  %v1386_v58 = vld [vmem:[#allocation8 + $0x1288] sm:$0xff] }
 0x252   :  { %7146 = vmatpush1.bf16.msra.mxu0 %v11136_v49  ;;  %v1366_v49 = vld [vmem:[#allocation8 + $0x11e8] sm:$0xff] }
 0x253   :  { %7474 = vmatpush1.bf16.msra.mxu1 %v11138_v23  ;;  %7147 = vmatprep.subr.bf16.mxu0 %v11145_v25  ;;  %v11176_v23 = vcombine.low %v1353_v63, %v1357_v0  ;;  %v11178_v25 = vcombine.low %v1354_v2, %v1358_v8  ;;  %v11187_v29 = vcombine.high %v1362_v1, %v1366_v49  ;;  %v1393_v0 = vld [vmem:[#allocation8 + $0x12c0] sm:$0xff]  ;;  %v1394_v8 = vld [vmem:[#allocation8 + $0x12c8] sm:$0xff] }
 0x254   :  { %7475 = vmatprep.subr.bf16.mxu1 %v11147_v28  ;;  %v11185_v28 = vcombine.high %v1361_v13, %v1365_v19  ;;  %v1397_v2 = vld [vmem:[#allocation8 + $0x12e0] sm:$0xff] }
 0x256   :  { %7148 = vmatpush1.bf16.msra.mxu0 %v11144_v48  ;;  %v1374_v48 = vld [vmem:[#allocation8 + $0x1228] sm:$0xff] }
 0x257   :  { %7476 = vmatpush1.bf16.msra.mxu1 %v11146_v37  ;;  %7149 = vmatprep.subr.bf16.mxu0 %v11153_v24  ;;  %v11184_v37 = vcombine.low %v1361_v13, %v1365_v19  ;;  %v11186_v24 = vcombine.low %v1362_v1, %v1366_v49  ;;  %v11195_v41 = vcombine.high %v1370_v35, %v1374_v48  ;;  %v1401_v19 = vld [vmem:[#allocation8 + $0x1300] sm:$0xff]  ;;  %v1402_v49 = vld [vmem:[#allocation8 + $0x1308] sm:$0xff] }
 0x258   :  { %7477 = vmatprep.subr.bf16.mxu1 %v11155_v26  ;;  %v11193_v26 = vcombine.high %v1369_v14, %v1373_v30  ;;  %v1405_v1 = vld [vmem:[#allocation8 + $0x1320] sm:$0xff] }
 0x25a   :  { %7150 = vmatpush1.bf16.msra.mxu0 %v11152_v20  ;;  %v1382_v20 = vld [vmem:[#allocation8 + $0x1268] sm:$0xff] }
 0x25b   :  { %7478 = vmatpush1.bf16.msra.mxu1 %v11154_v46  ;;  %7151 = vmatprep.subr.bf16.mxu0 %v11161_v50  ;;  %v11192_v46 = vcombine.low %v1369_v14, %v1373_v30  ;;  %v11194_v50 = vcombine.low %v1370_v35, %v1374_v48  ;;  %v11203_v53 = vcombine.high %v1378_v45, %v1382_v20  ;;  %v1409_v30 = vld [vmem:[#allocation8 + $0x1340] sm:$0xff]  ;;  %v1410_v48 = vld [vmem:[#allocation8 + $0x1348] sm:$0xff] }
 0x25c   :  { %7479 = vmatprep.subr.bf16.mxu1 %v11163_v51  ;;  %v11201_v51 = vcombine.high %v1377_v42, %v1381_v43  ;;  %v1413_v35 = vld [vmem:[#allocation8 + $0x1360] sm:$0xff] }
 0x25e   :  { %7152 = vmatpush1.bf16.msra.mxu0 %v11160_v60  ;;  %v1390_v60 = vld [vmem:[#allocation8 + $0x12a8] sm:$0xff] }
 0x25f   :  { %7480 = vmatpush1.bf16.msra.mxu1 %v11162_v61  ;;  %7153 = vmatprep.subr.bf16.mxu0 %v11169_v11  ;;  %v11200_v61 = vcombine.low %v1377_v42, %v1381_v43  ;;  %v11202_v11 = vcombine.low %v1378_v45, %v1382_v20  ;;  %v11211_v63 = vcombine.high %v1386_v58, %v1390_v60  ;;  %v1417_v43 = vld [vmem:[#allocation8 + $0x1380] sm:$0xff]  ;;  %v1418_v20 = vld [vmem:[#allocation8 + $0x1388] sm:$0xff] }
 0x260   :  { %7481 = vmatprep.subr.bf16.mxu1 %v11171_v62  ;;  %v11209_v62 = vcombine.high %v1385_v54, %v1389_v55  ;;  %v1421_v45 = vld [vmem:[#allocation8 + $0x13a0] sm:$0xff] }
 0x262   :  { %7154 = vmatpush1.bf16.msra.mxu0 %v11168_v27  ;;  %v1398_v27 = vld [vmem:[#allocation8 + $0x12e8] sm:$0xff] }
 0x263   :  { %7482 = vmatpush1.bf16.msra.mxu1 %v11170_v6  ;;  %7155 = vmatprep.subr.bf16.mxu0 %v11177_v10  ;;  %v11208_v6 = vcombine.low %v1385_v54, %v1389_v55  ;;  %v11210_v10 = vcombine.low %v1386_v58, %v1390_v60  ;;  %v11219_v13 = vcombine.high %v1394_v8, %v1398_v27  ;;  %v1425_v58 = vld [vmem:[#allocation8 + $0x13c0] sm:$0xff] }
 0x264   :  { %7483 = vmatprep.subr.bf16.mxu1 %v11179_v12  ;;  %v11217_v12 = vcombine.high %v1393_v0, %v1397_v2  ;;  %v11241_v54 = vcombine.high %v1417_v43, %v1421_v45  ;;  %v1429_v60 = vld [vmem:[#allocation8 + $0x13e0] sm:$0xff] }
 0x266   :  { %7156 = vmatpush1.bf16.msra.mxu0 %v11176_v23  ;;  %v1406_v23 = vld [vmem:[#allocation8 + $0x1328] sm:$0xff] }
 0x267   :  { %7484 = vmatpush1.bf16.msra.mxu1 %v11178_v25  ;;  %7157 = vmatprep.subr.bf16.mxu0 %v11185_v28  ;;  %v11216_v25 = vcombine.low %v1393_v0, %v1397_v2  ;;  %v11218_v28 = vcombine.low %v1394_v8, %v1398_v27  ;;  %v11227_v14 = vcombine.high %v1402_v49, %v1406_v23  ;;  %v1433_v8 = vld [vmem:[#allocation8 + $0x1400] sm:$0xff] }
 0x268   :  { %7485 = vmatprep.subr.bf16.mxu1 %v11187_v29  ;;  %v11225_v29 = vcombine.high %v1401_v19, %v1405_v1  ;;  %v11249_v2 = vcombine.high %v1425_v58, %v1429_v60  ;;  %v1437_v27 = vld [vmem:[#allocation8 + $0x1420] sm:$0xff] }
 0x26a   :  { %7158 = vmatpush1.bf16.msra.mxu0 %v11184_v37  ;;  %v1414_v37 = vld [vmem:[#allocation8 + $0x1368] sm:$0xff] }
 0x26b   :  { %7486 = vmatpush1.bf16.msra.mxu1 %v11186_v24  ;;  %7159 = vmatprep.subr.bf16.mxu0 %v11193_v26  ;;  %v11224_v24 = vcombine.low %v1401_v19, %v1405_v1  ;;  %v11226_v26 = vcombine.low %v1402_v49, %v1406_v23  ;;  %v11235_v42 = vcombine.high %v1410_v48, %v1414_v37  ;;  %v1441_v23 = vld [vmem:[#allocation8 + $0x1440] sm:$0xff] }
 0x26c   :  { %7487 = vmatprep.subr.bf16.mxu1 %v11195_v41  ;;  %v11233_v41 = vcombine.high %v1409_v30, %v1413_v35  ;;  %v11257_v1 = vcombine.high %v1433_v8, %v1437_v27 }
 0x26e   :  { %7160 = vmatpush1.bf16.msra.mxu0 %v11192_v46  ;;  %v1422_v46 = vld [vmem:[#allocation8 + $0x13a8] sm:$0xff] }
 0x26f   :  { %7488 = vmatpush1.bf16.msra.mxu1 %v11194_v50  ;;  %7161 = vmatprep.subr.bf16.mxu0 %v11201_v51  ;;  %v11232_v50 = vcombine.low %v1409_v30, %v1413_v35  ;;  %v224_v51 = vrot.slane %v13094_v16, %v12982_v15  ;;  %v11243_v55 = vcombine.high %v1418_v20, %v1422_v46 }
 0x270   :  { %7489 = vmatprep.subr.bf16.mxu1 %v11203_v53  ;;  %v11234_v53 = vcombine.low %v1410_v48, %v1414_v37  ;;  %v11242_v0 = vcombine.low %v1418_v20, %v1422_v46  ;;  %v1449_v37 = vld [vmem:[#allocation8 + $0x1480] sm:$0xff] }
 0x272   :  { %7162 = vmatpush1.bf16.msra.mxu0 %v11200_v61  ;;  %v1426_v61 = vld [vmem:[#allocation8 + $0x13c8] sm:$0xff] }
 0x273   :  { %7490 = vmatpush1.bf16.msra.mxu1 %v11202_v11  ;;  %7163 = vmatprep.subr.bf16.mxu0 %v11209_v62  ;;  %v1430_v11 = vld [vmem:[#allocation8 + $0x13e8] sm:$0xff]  ;;  %v11240_v62 = vcombine.low %v1417_v43, %v1421_v45 }
 0x274   :  { %7491 = vmatprep.subr.bf16.mxu1 %v11211_v63  ;;  %v632_v63 = vadd.f32 %v13016_v5, %v224_v51  ;;  %v11251_v16 = vcombine.high %v1426_v61, %v1430_v11  ;;  %v11250_v19 = vcombine.low %v1426_v61, %v1430_v11  ;;  %v772_v5 = vmax.f32 %v13049_v59, 0.0  ;;  %v1461_v51 = vld [vmem:[#allocation8 + $0x14e0] sm:$0xff] }
 0x275   :  { %v1465_v11 = vld [vmem:[#allocation8 + $0x1500] sm:$0xff] }
 0x276   :  { %7164 = vmatpush1.bf16.msra.mxu0 %v11208_v6  ;;  %v1434_v6 = vld [vmem:[#allocation8 + $0x1408] sm:$0xff] }
 0x277   :  { %7492 = vmatpush1.bf16.msra.mxu1 %v11210_v10  ;;  %7165 = vmatprep.subr.bf16.mxu0 %v11217_v12  ;;  %v1438_v10 = vld [vmem:[#allocation8 + $0x1428] sm:$0xff]  ;;  %v11248_v12 = vcombine.low %v1425_v58, %v1429_v60 }
 0x278   :  { %7493 = vmatprep.subr.bf16.mxu1 %v11219_v13  ;;  %v769_v13 = vmax.f32 %v632_v63, 0.0  ;;  %v11259_v49 = vcombine.high %v1434_v6, %v1438_v10  ;;  %v11258_v35 = vcombine.low %v1434_v6, %v1438_v10  ;;  %v1466_v63 = vld [vmem:[#allocation8 + $0x1508] sm:$0xff]  ;;  %v1473_v6 = vld [vmem:[#allocation8 + $0x1540] sm:$0xff] }
 0x279   :  { %v1477_v10 = vld [vmem:[#allocation8 + $0x1560] sm:$0xff] }
 0x27a   :  { %7166 = vmatpush1.bf16.msra.mxu0 %v11216_v25  ;;  %v1445_v25 = vld [vmem:[#allocation8 + $0x1460] sm:$0xff]  ;;  %v13112_v30 = vpack.c.bf16 %v769_v13, %v769_v13  ;;  %v1478_v13 = vld [vmem:[#allocation8 + $0x1568] sm:$0xff] }
 0x27b   :  { %7494 = vmatpush1.bf16.msra.mxu1 %v11218_v28  ;;  %7167 = vmatprep.subr.bf16.mxu0 %v11225_v29  ;;  %v11256_v28 = vcombine.low %v1433_v8, %v1437_v27  ;;  %v1442_v29 = vld [vmem:[#allocation8 + $0x1448] sm:$0xff]  ;;  %v11265_v48 = vcombine.high %v1441_v23, %v1445_v25  ;;  %v11264_v43 = vcombine.low %v1441_v23, %v1445_v25  ;;  %v1481_v23 = vld [vmem:[#allocation8 + $0x1580] sm:$0xff] }
 0x27c   :  { %7495 = vmatprep.subr.bf16.mxu1 %v11227_v14  ;;  %v1446_v14 = vld [vmem:[#allocation8 + $0x1468] sm:$0xff]  ;;  %v1485_v25 = vld [vmem:[#allocation8 + $0x15a0] sm:$0xff] }
 0x27d   :  { %v11267_v59 = vcombine.high %v1442_v29, %v1446_v14  ;;  %v11266_v45 = vcombine.low %v1442_v29, %v1446_v14  ;;  %v1486_v29 = vld [vmem:[#allocation8 + $0x15a8] sm:$0xff]  ;;  %v11296_v14 = vcombine.low %v1473_v6, %v1477_v10 }
 0x27e   :  { %7168 = vmatpush1.bf16.msra.mxu0 %v11224_v24  ;;  %v1453_v24 = vld [vmem:[#allocation8 + $0x14a0] sm:$0xff] }
 0x27f   :  { %7496 = vmatpush1.bf16.msra.mxu1 %v11226_v26  ;;  %7169 = vmatprep.subr.bf16.mxu0 %v11233_v41  ;;  %v13114_v26 = vpack.c.bf16 %v772_v5, %v772_v5  ;;  %v1450_v41 = vld [vmem:[#allocation8 + $0x1488] sm:$0xff]  ;;  %v11273_v20 = vcombine.high %v1449_v37, %v1453_v24 }
 0x280   :  { %7497 = vmatprep.subr.bf16.mxu1 %v11235_v42  ;;  %v1454_v42 = vld [vmem:[#allocation8 + $0x14a8] sm:$0xff] }
 0x281   :  { %v11275_v46 = vcombine.high %v1450_v41, %v1454_v42  ;;  %v11274_v58 = vcombine.low %v1450_v41, %v1454_v42  ;;  %v1490_v41 = vld [vmem:[#allocation8 + $0x15c8] sm:$0xff] }
 0x282   :  { %7170 = vmatpush1.bf16.msra.mxu0 %v11232_v50  ;;  %v1457_v50 = vld [vmem:[#allocation8 + $0x14c0] sm:$0xff]  ;;  %v1494_v42 = vld [vmem:[#allocation8 + $0x15e8] sm:$0xff] }
 0x283   :  { %7498 = vmatpush1.bf16.msra.mxu1 %v11234_v53  ;;  %7171 = vmatprep.subr.bf16.mxu0 %v11241_v54  ;;  %v1458_v53 = vld [vmem:[#allocation8 + $0x14c8] sm:$0xff]  ;;  %v11281_v60 = vcombine.high %v1457_v50, %v1461_v51 }
 0x284   :  { %7499 = vmatprep.subr.bf16.mxu1 %v11243_v55  ;;  %v1462_v54 = vld [vmem:[#allocation8 + $0x14e8] sm:$0xff]  ;;  %v11272_v55 = vcombine.low %v1449_v37, %v1453_v24  ;;  %v1489_v24 = vld [vmem:[#allocation8 + $0x15c0] sm:$0xff] }
 0x285   :  { %v11283_v61 = vcombine.high %v1458_v53, %v1462_v54 }
 0x286   :  { %7172 = vmatpush1.bf16.msra.mxu0 %v11240_v62  ;;  %v1469_v62 = vld [vmem:[#allocation8 + $0x1520] sm:$0xff] }
 0x287   :  { %7500 = vmatpush1.bf16.msra.mxu1 %v11242_v0  ;;  %7173 = vmatprep.subr.bf16.mxu0 %v11249_v2  ;;  %v1470_v0 = vld [vmem:[#allocation8 + $0x1528] sm:$0xff]  ;;  %v11280_v2 = vcombine.low %v1457_v50, %v1461_v51  ;;  %v11289_v8 = vcombine.high %v1465_v11, %v1469_v62  ;;  %v1497_v50 = vld [vmem:[#allocation8 + $0x1600] sm:$0xff] }
 0x288   :  { %7501 = vmatprep.subr.bf16.mxu1 %v11251_v16  ;;  %v11282_v16 = vcombine.low %v1458_v53, %v1462_v54  ;;  %v11291_v27 = vcombine.high %v1466_v63, %v1470_v0  ;;  %v1501_v51 = vld [vmem:[#allocation8 + $0x1620] sm:$0xff]  ;;  %v1498_v53 = vld [vmem:[#allocation8 + $0x1608] sm:$0xff] }
 0x289   :  { %v1502_v54 = vld [vmem:[#allocation8 + $0x1628] sm:$0xff] }
 0x28a   :  { %7174 = vmatpush1.bf16.msra.mxu0 %v11248_v12  ;;  %v1474_v12 = vld [vmem:[#allocation8 + $0x1548] sm:$0xff] }
 0x28b   :  { %7502 = vmatpush1.bf16.msra.mxu1 %v11250_v19  ;;  %7184 = vmatprep.subr.bf16.mxu0 %v11257_v1  ;;  %v11288_v19 = vcombine.low %v1465_v11, %v1469_v62  ;;  %v11290_v1 = vcombine.low %v1466_v63, %v1470_v0  ;;  %v11299_v5 = vcombine.high %v1474_v12, %v1478_v13  ;;  %v1505_v11 = vld [vmem:[#allocation8 + $0x1640] sm:$0xff]  ;;  %v1506_v63 = vld [vmem:[#allocation8 + $0x1648] sm:$0xff] }
 0x28c   :  { %7512 = vmatprep.subr.bf16.mxu1 %v11259_v49  ;;  %v11297_v49 = vcombine.high %v1473_v6, %v1477_v10  ;;  %v1509_v62 = vld [vmem:[#allocation8 + $0x1660] sm:$0xff]  ;;  %v1510_v0 = vld [vmem:[#allocation8 + $0x1668] sm:$0xff] }
 0x28d   :  { %7176 = vmatmul.mubr.bf16.vlgmr.msra.gmra.mrb[16].mxu0 %v13112_v30  ;;  %v1513_v6 = vld [vmem:[#allocation8 + $0x1680] sm:$0xff] }
 0x28e   :  { %7504 = vmatmul.mubr.bf16.vlgmr.msra.gmra.mrb[16].mxu1 %v13112_v30  ;;  %7185 = vmatpush1.bf16.msra.mxu0 %v11256_v28  ;;  %v1482_v28 = vld [vmem:[#allocation8 + $0x1588] sm:$0xff]  ;;  %v1517_v10 = vld [vmem:[#allocation8 + $0x16a0] sm:$0xff] }
 0x28f   :  { %7216 = vmatprep.mubr.bf16.mxu0 %v13114_v26  ;;  %7513 = vmatpush1.bf16.msra.mxu1 %v11258_v35  ;;  %v11298_v35 = vcombine.low %v1474_v12, %v1478_v13  ;;  %v11307_v37 = vcombine.high %v1482_v28, %v1486_v29  ;;  %v1514_v12 = vld [vmem:[#allocation8 + $0x1688] sm:$0xff] }
 0x290   :  { %7544 = vmatprep.mubr.bf16.mxu1 %v13114_v26  ;;  %7186 = vmatprep.subr.bf16.mxu0 %v11265_v48  ;;  %v11305_v48 = vcombine.high %v1481_v23, %v1485_v25  ;;  %v1518_v13 = vld [vmem:[#allocation8 + $0x16a8] sm:$0xff] }
 0x291   :  { %7514 = vmatprep.subr.bf16.mxu1 %v11267_v59  ;;  %v1493_v59 = vld [vmem:[#allocation8 + $0x15e0] sm:$0xff] }
 0x292   :  { %7187 = vmatpush1.bf16.msra.mxu0 %v11264_v43  ;;  %v11304_v43 = vcombine.low %v1481_v23, %v1485_v25  ;;  %v1521_v23 = vld [vmem:[#allocation8 + $0x16c0] sm:$0xff] }
 0x293   :  { %7515 = vmatpush1.bf16.msra.mxu1 %v11266_v45  ;;  %7188 = vmatprep.subr.bf16.mxu0 %v11273_v20  ;;  %v11306_v45 = vcombine.low %v1482_v28, %v1486_v29  ;;  %v11313_v20 = vcombine.high %v1489_v24, %v1493_v59  ;;  %v1525_v25 = vld [vmem:[#allocation8 + $0x16e0] sm:$0xff]  ;;  %v1522_v28 = vld [vmem:[#allocation8 + $0x16c8] sm:$0xff] }
 0x294   :  { %7516 = vmatprep.subr.bf16.mxu1 %v11275_v46  ;;  %v11315_v46 = vcombine.high %v1490_v41, %v1494_v42  ;;  %v1526_v29 = vld [vmem:[#allocation8 + $0x16e8] sm:$0xff] }
 0x296   :  { %7189 = vmatpush1.bf16.msra.mxu0 %v11272_v55  ;;  %v11312_v55 = vcombine.low %v1489_v24, %v1493_v59  ;;  %v1529_v24 = vld [vmem:[#allocation8 + $0x1700] sm:$0xff] }
 0x297   :  { %7517 = vmatpush1.bf16.msra.mxu1 %v11274_v58  ;;  %7190 = vmatprep.subr.bf16.mxu0 %v11281_v60  ;;  %v11314_v58 = vcombine.low %v1490_v41, %v1494_v42  ;;  %v11321_v60 = vcombine.high %v1497_v50, %v1501_v51  ;;  %v1533_v59 = vld [vmem:[#allocation8 + $0x1720] sm:$0xff]  ;;  %v1530_v41 = vld [vmem:[#allocation8 + $0x1708] sm:$0xff] }
 0x298   :  { %7518 = vmatprep.subr.bf16.mxu1 %v11283_v61  ;;  %v11323_v61 = vcombine.high %v1498_v53, %v1502_v54  ;;  %v1534_v42 = vld [vmem:[#allocation8 + $0x1728] sm:$0xff] }
 0x29a   :  { %7191 = vmatpush1.bf16.msra.mxu0 %v11280_v2  ;;  %v11320_v2 = vcombine.low %v1497_v50, %v1501_v51  ;;  %v1537_v50 = vld [vmem:[#allocation8 + $0x1740] sm:$0xff] }
 0x29b   :  { %7519 = vmatpush1.bf16.msra.mxu1 %v11282_v16  ;;  %7192 = vmatprep.subr.bf16.mxu0 %v11289_v8  ;;  %v11322_v16 = vcombine.low %v1498_v53, %v1502_v54  ;;  %v11329_v8 = vcombine.high %v1505_v11, %v1509_v62  ;;  %v1541_v51 = vld [vmem:[#allocation8 + $0x1760] sm:$0xff]  ;;  %v1538_v53 = vld [vmem:[#allocation8 + $0x1748] sm:$0xff] }
 0x29c   :  { %7520 = vmatprep.subr.bf16.mxu1 %v11291_v27  ;;  %v11331_v27 = vcombine.high %v1506_v63, %v1510_v0  ;;  %v1542_v54 = vld [vmem:[#allocation8 + $0x1768] sm:$0xff] }
 0x29e   :  { %7193 = vmatpush1.bf16.msra.mxu0 %v11288_v19  ;;  %v11328_v19 = vcombine.low %v1505_v11, %v1509_v62  ;;  %v1545_v11 = vld [vmem:[#allocation8 + $0x1780] sm:$0xff] }
 0x29f   :  { %7521 = vmatpush1.bf16.msra.mxu1 %v11290_v1  ;;  %7194 = vmatprep.subr.bf16.mxu0 %v11297_v49  ;;  %v11330_v1 = vcombine.low %v1506_v63, %v1510_v0  ;;  %v11337_v49 = vcombine.high %v1513_v6, %v1517_v10  ;;  %v1549_v62 = vld [vmem:[#allocation8 + $0x17a0] sm:$0xff]  ;;  %v1546_v63 = vld [vmem:[#allocation8 + $0x1788] sm:$0xff] }
 0x2a0   :  { %7522 = vmatprep.subr.bf16.mxu1 %v11299_v5  ;;  %v11339_v5 = vcombine.high %v1514_v12, %v1518_v13  ;;  %v1550_v0 = vld [vmem:[#allocation8 + $0x17a8] sm:$0xff] }
 0x2a2   :  { %7195 = vmatpush1.bf16.msra.mxu0 %v11296_v14  ;;  %v11336_v14 = vcombine.low %v1513_v6, %v1517_v10  ;;  %v1553_v6 = vld [vmem:[#allocation8 + $0x17c0] sm:$0xff] }
 0x2a3   :  { %7523 = vmatpush1.bf16.msra.mxu1 %v11298_v35  ;;  %7196 = vmatprep.subr.bf16.mxu0 %v11305_v48  ;;  %v11338_v35 = vcombine.low %v1514_v12, %v1518_v13  ;;  %v11345_v48 = vcombine.high %v1521_v23, %v1525_v25  ;;  %v1557_v10 = vld [vmem:[#allocation8 + $0x17e0] sm:$0xff]  ;;  %v1554_v12 = vld [vmem:[#allocation8 + $0x17c8] sm:$0xff] }
 0x2a4   :  { %7524 = vmatprep.subr.bf16.mxu1 %v11307_v37  ;;  %v11347_v37 = vcombine.high %v1522_v28, %v1526_v29  ;;  %v1558_v13 = vld [vmem:[#allocation8 + $0x17e8] sm:$0xff] }
 0x2a6   :  { %7197 = vmatpush1.bf16.msra.mxu0 %v11304_v43  ;;  %v11344_v43 = vcombine.low %v1521_v23, %v1525_v25  ;;  %v1561_v23 = vld [vmem:[#allocation8 + $0x1800] sm:$0xff] }
 0x2a7   :  { %7525 = vmatpush1.bf16.msra.mxu1 %v11306_v45  ;;  %7198 = vmatprep.subr.bf16.mxu0 %v11313_v20  ;;  %v11346_v45 = vcombine.low %v1522_v28, %v1526_v29  ;;  %v11353_v20 = vcombine.high %v1529_v24, %v1533_v59  ;;  %v1565_v25 = vld [vmem:[#allocation8 + $0x1820] sm:$0xff]  ;;  %v1562_v28 = vld [vmem:[#allocation8 + $0x1808] sm:$0xff] }
 0x2a8   :  { %7526 = vmatprep.subr.bf16.mxu1 %v11315_v46  ;;  %v11355_v46 = vcombine.high %v1530_v41, %v1534_v42  ;;  %v1566_v29 = vld [vmem:[#allocation8 + $0x1828] sm:$0xff] }
 0x2aa   :  { %7199 = vmatpush1.bf16.msra.mxu0 %v11312_v55  ;;  %v11352_v55 = vcombine.low %v1529_v24, %v1533_v59  ;;  %v11387_v24 = vcombine.high %v1562_v28, %v1566_v29  ;;  %v774_v59 = vmax.f32 %v13034_v52, 0.0 }
 0x2ab   :  { %7527 = vmatpush1.bf16.msra.mxu1 %v11314_v58  ;;  %7200 = vmatprep.subr.bf16.mxu0 %v11321_v60  ;;  %v11354_v58 = vcombine.low %v1530_v41, %v1534_v42  ;;  %v11361_v60 = vcombine.high %v1537_v50, %v1541_v51  ;;  %v1569_v41 = vld [vmem:[#allocation8 + $0x1840] sm:$0xff] }
 0x2ac   :  { %7528 = vmatprep.subr.bf16.mxu1 %v11323_v61  ;;  %v11363_v61 = vcombine.high %v1538_v53, %v1542_v54  ;;  %v1573_v42 = vld [vmem:[#allocation8 + $0x1860] sm:$0xff] }
 0x2ae   :  { %7201 = vmatpush1.bf16.msra.mxu0 %v11320_v2  ;;  %v11360_v2 = vcombine.low %v1537_v50, %v1541_v51  ;;  %v11386_v50 = vcombine.low %v1562_v28, %v1566_v29  ;;  %v1577_v51 = vld [vmem:[#allocation8 + $0x1880] sm:$0xff] }
 0x2af   :  { %7529 = vmatpush1.bf16.msra.mxu1 %v11322_v16  ;;  %7202 = vmatprep.subr.bf16.mxu0 %v11329_v8  ;;  %v11362_v16 = vcombine.low %v1538_v53, %v1542_v54  ;;  %v11369_v8 = vcombine.high %v1545_v11, %v1549_v62  ;;  %v1581_v53 = vld [vmem:[#allocation8 + $0x18a0] sm:$0xff]  ;;  %v13124_v54 = vpack.c.bf16 %v774_v59, %v774_v59 }
 0x2b0   :  { %7530 = vmatprep.subr.bf16.mxu1 %v11331_v27  ;;  %v11371_v27 = vcombine.high %v1546_v63, %v1550_v0  ;;  %v1601_v28 = vld [vmem:[#allocation8 + $0x1940] sm:$0xff] }
 0x2b1   :  { %v1605_v29 = vld [vmem:[#allocation8 + $0x1960] sm:$0xff] }
 0x2b2   :  { %7203 = vmatpush1.bf16.msra.mxu0 %v11328_v19  ;;  %v11368_v19 = vcombine.low %v1545_v11, %v1549_v62  ;;  %v11401_v11 = vcombine.high %v1577_v51, %v1581_v53 }
 0x2b3   :  { %7531 = vmatpush1.bf16.msra.mxu1 %v11330_v1  ;;  %7204 = vmatprep.subr.bf16.mxu0 %v11337_v49  ;;  %v11370_v1 = vcombine.low %v1546_v63, %v1550_v0  ;;  %v11377_v49 = vcombine.high %v1553_v6, %v1557_v10  ;;  %v1585_v63 = vld [vmem:[#allocation8 + $0x18c0] sm:$0xff] }
 0x2b4   :  { %7532 = vmatprep.subr.bf16.mxu1 %v11339_v5  ;;  %v11379_v5 = vcombine.high %v1554_v12, %v1558_v13  ;;  %v1589_v0 = vld [vmem:[#allocation8 + $0x18e0] sm:$0xff] }
 0x2b6   :  { %7205 = vmatpush1.bf16.msra.mxu0 %v11336_v14  ;;  %v11376_v14 = vcombine.low %v1553_v6, %v1557_v10  ;;  %v11409_v6 = vcombine.high %v1585_v63, %v1589_v0 }
 0x2b7   :  { %7533 = vmatpush1.bf16.msra.mxu1 %v11338_v35  ;;  %7206 = vmatprep.subr.bf16.mxu0 %v11345_v48  ;;  %v771_v35 = vmax.f32 %v13047_v57, 0.0  ;;  %v11378_v48 = vcombine.low %v1554_v12, %v1558_v13  ;;  %v11393_v57 = vcombine.high %v1569_v41, %v1573_v42  ;;  %v1593_v12 = vld [vmem:[#allocation8 + $0x1900] sm:$0xff] }
 0x2b8   :  { %7534 = vmatprep.subr.bf16.mxu1 %v11347_v37  ;;  %v11385_v37 = vcombine.high %v1561_v23, %v1565_v25  ;;  %v1597_v13 = vld [vmem:[#allocation8 + $0x1920] sm:$0xff] }
 0x2ba   :  { %7207 = vmatpush1.bf16.msra.mxu0 %v11344_v43  ;;  %v11384_v43 = vcombine.low %v1561_v23, %v1565_v25  ;;  %v11417_v23 = vcombine.high %v1593_v12, %v1597_v13 }
 0x2bb   :  { %7535 = vmatpush1.bf16.msra.mxu1 %v11346_v45  ;;  %7208 = vmatprep.subr.bf16.mxu0 %v11353_v20  ;;  %v1570_v45 = vld [vmem:[#allocation8 + $0x1848] sm:$0xff] }
 0x2bc   :  { %7536 = vmatprep.subr.bf16.mxu1 %v11355_v46  ;;  %v1574_v20 = vld [vmem:[#allocation8 + $0x1868] sm:$0xff]  ;;  %v13122_v46 = vpack.c.bf16 %v771_v35, %v771_v35 }
 0x2bd   :  { %v11395_v52 = vcombine.high %v1570_v45, %v1574_v20  ;;  %v1606_v35 = vld [vmem:[#allocation8 + $0x1968] sm:$0xff] }
 0x2be   :  { %7209 = vmatpush1.bf16.msra.mxu0 %v11352_v55  ;;  %v1578_v55 = vld [vmem:[#allocation8 + $0x1888] sm:$0xff] }
 0x2bf   :  { %7537 = vmatpush1.bf16.msra.mxu1 %v11354_v58  ;;  %7210 = vmatprep.subr.bf16.mxu0 %v11361_v60  ;;  %v1582_v58 = vld [vmem:[#allocation8 + $0x18a8] sm:$0xff]  ;;  %v11392_v60 = vcombine.low %v1569_v41, %v1573_v42  ;;  %v1609_v41 = vld [vmem:[#allocation8 + $0x1980] sm:$0xff] }
 0x2c0   :  { %7538 = vmatprep.subr.bf16.mxu1 %v11363_v61  ;;  %v11394_v61 = vcombine.low %v1570_v45, %v1574_v20  ;;  %v11403_v62 = vcombine.high %v1578_v55, %v1582_v58  ;;  %v1613_v42 = vld [vmem:[#allocation8 + $0x19a0] sm:$0xff]  ;;  %v1614_v45 = vld [vmem:[#allocation8 + $0x19a8] sm:$0xff]  ;;  %v11424_v20 = vcombine.low %v1601_v28, %v1605_v29 }
 0x2c2   :  { %7211 = vmatpush1.bf16.msra.mxu0 %v11360_v2  ;;  %v1586_v2 = vld [vmem:[#allocation8 + $0x18c8] sm:$0xff] }
 0x2c3   :  { %7539 = vmatpush1.bf16.msra.mxu1 %v11362_v16  ;;  %7212 = vmatprep.subr.bf16.mxu0 %v11369_v8  ;;  %v1590_v16 = vld [vmem:[#allocation8 + $0x18e8] sm:$0xff]  ;;  %v11400_v8 = vcombine.low %v1577_v51, %v1581_v53  ;;  %v1617_v53 = vld [vmem:[#allocation8 + $0x19c0] sm:$0xff] }
 0x2c4   :  { %7540 = vmatprep.subr.bf16.mxu1 %v11371_v27  ;;  %v11402_v27 = vcombine.low %v1578_v55, %v1582_v58  ;;  %v11411_v10 = vcombine.high %v1586_v2, %v1590_v16  ;;  %v1618_v55 = vld [vmem:[#allocation8 + $0x19c8] sm:$0xff] }
 0x2c5   :  { %v1622_v58 = vld [vmem:[#allocation8 + $0x19e8] sm:$0xff] }
 0x2c6   :  { %7213 = vmatpush1.bf16.msra.mxu0 %v11368_v19  ;;  %v1594_v19 = vld [vmem:[#allocation8 + $0x1908] sm:$0xff] }
 0x2c7   :  { %7541 = vmatpush1.bf16.msra.mxu1 %v11370_v1  ;;  %7214 = vmatprep.subr.bf16.mxu0 %v11377_v49  ;;  %v1598_v1 = vld [vmem:[#allocation8 + $0x1928] sm:$0xff]  ;;  %v11408_v49 = vcombine.low %v1585_v63, %v1589_v0  ;;  %v1625_v63 = vld [vmem:[#allocation8 + $0x1a00] sm:$0xff] }
 0x2c8   :  { %7542 = vmatprep.subr.bf16.mxu1 %v11379_v5  ;;  %v11410_v5 = vcombine.low %v1586_v2, %v1590_v16  ;;  %v11419_v25 = vcombine.high %v1594_v19, %v1598_v1  ;;  %v1629_v0 = vld [vmem:[#allocation8 + $0x1a20] sm:$0xff]  ;;  %v1626_v2 = vld [vmem:[#allocation8 + $0x1a08] sm:$0xff] }
 0x2c9   :  { %v1630_v16 = vld [vmem:[#allocation8 + $0x1a28] sm:$0xff] }
 0x2ca   :  { %7215 = vmatpush1.bf16.msra.mxu0 %v11376_v14  ;;  %v1602_v14 = vld [vmem:[#allocation8 + $0x1948] sm:$0xff] }
 0x2cb   :  { %7543 = vmatpush1.bf16.msra.mxu1 %v11378_v48  ;;  %7225 = vmatprep.subr.bf16.mxu0 %v11385_v37  ;;  %v11416_v48 = vcombine.low %v1593_v12, %v1597_v13  ;;  %v11418_v37 = vcombine.low %v1594_v19, %v1598_v1  ;;  %v11427_v59 = vcombine.high %v1602_v14, %v1606_v35  ;;  %v1633_v12 = vld [vmem:[#allocation8 + $0x1a40] sm:$0xff]  ;;  %v1634_v19 = vld [vmem:[#allocation8 + $0x1a48] sm:$0xff] }
 0x2cc   :  { %7553 = vmatprep.subr.bf16.mxu1 %v11387_v24  ;;  %v11425_v24 = vcombine.high %v1601_v28, %v1605_v29  ;;  %v1637_v13 = vld [vmem:[#allocation8 + $0x1a60] sm:$0xff]  ;;  %v1638_v1 = vld [vmem:[#allocation8 + $0x1a68] sm:$0xff] }
 0x2cd   :  { %7217 = vmatmul.mubr.bf16.vlgmr.msra.gmra.mrb[16].mxu0 %v13122_v46  ;;  %v1641_v28 = vld [vmem:[#allocation8 + $0x1a80] sm:$0xff] }
 0x2ce   :  { %7545 = vmatmul.mubr.bf16.vlgmr.msra.gmra.mrb[16].mxu1 %v13122_v46  ;;  %7226 = vmatpush1.bf16.msra.mxu0 %v11384_v43  ;;  %v1610_v43 = vld [vmem:[#allocation8 + $0x1988] sm:$0xff]  ;;  %v1645_v29 = vld [vmem:[#allocation8 + $0x1aa0] sm:$0xff] }
 0x2cf   :  { %7257 = vmatprep.mubr.bf16.mxu0 %v13124_v54  ;;  %7554 = vmatpush1.bf16.msra.mxu1 %v11386_v50  ;;  %v11426_v50 = vcombine.low %v1602_v14, %v1606_v35  ;;  %v11435_v51 = vcombine.high %v1610_v43, %v1614_v45  ;;  %v1642_v14 = vld [vmem:[#allocation8 + $0x1a88] sm:$0xff] }
 0x2d0   :  { %7585 = vmatprep.mubr.bf16.mxu1 %v13124_v54  ;;  %7227 = vmatprep.subr.bf16.mxu0 %v11393_v57  ;;  %v11433_v57 = vcombine.high %v1609_v41, %v1613_v42  ;;  %v1646_v35 = vld [vmem:[#allocation8 + $0x1aa8] sm:$0xff] }
 0x2d1   :  { %7555 = vmatprep.subr.bf16.mxu1 %v11395_v52  ;;  %v1621_v52 = vld [vmem:[#allocation8 + $0x19e0] sm:$0xff] }
 0x2d2   :  { %7228 = vmatpush1.bf16.msra.mxu0 %v11392_v60  ;;  %v11432_v60 = vcombine.low %v1609_v41, %v1613_v42  ;;  %v1649_v41 = vld [vmem:[#allocation8 + $0x1ac0] sm:$0xff] }
 0x2d3   :  { %7556 = vmatpush1.bf16.msra.mxu1 %v11394_v61  ;;  %7229 = vmatprep.subr.bf16.mxu0 %v11401_v11  ;;  %v11434_v61 = vcombine.low %v1610_v43, %v1614_v45  ;;  %v11441_v11 = vcombine.high %v1617_v53, %v1621_v52  ;;  %v1653_v42 = vld [vmem:[#allocation8 + $0x1ae0] sm:$0xff]  ;;  %v1650_v43 = vld [vmem:[#allocation8 + $0x1ac8] sm:$0xff] }
 0x2d4   :  { %7557 = vmatprep.subr.bf16.mxu1 %v11403_v62  ;;  %v11443_v62 = vcombine.high %v1618_v55, %v1622_v58  ;;  %v1654_v45 = vld [vmem:[#allocation8 + $0x1ae8] sm:$0xff] }
 0x2d6   :  { %7230 = vmatpush1.bf16.msra.mxu0 %v11400_v8  ;;  %v11440_v8 = vcombine.low %v1617_v53, %v1621_v52  ;;  %v1657_v53 = vld [vmem:[#allocation8 + $0x1b00] sm:$0xff] }
 0x2d7   :  { %7558 = vmatpush1.bf16.msra.mxu1 %v11402_v27  ;;  %7231 = vmatprep.subr.bf16.mxu0 %v11409_v6  ;;  %v11442_v27 = vcombine.low %v1618_v55, %v1622_v58  ;;  %v11449_v6 = vcombine.high %v1625_v63, %v1629_v0  ;;  %v1661_v52 = vld [vmem:[#allocation8 + $0x1b20] sm:$0xff]  ;;  %v1658_v55 = vld [vmem:[#allocation8 + $0x1b08] sm:$0xff] }
 0x2d8   :  { %7559 = vmatprep.subr.bf16.mxu1 %v11411_v10  ;;  %v11451_v10 = vcombine.high %v1626_v2, %v1630_v16  ;;  %v1662_v58 = vld [vmem:[#allocation8 + $0x1b28] sm:$0xff] }
 0x2da   :  { %7232 = vmatpush1.bf16.msra.mxu0 %v11408_v49  ;;  %v11448_v49 = vcombine.low %v1625_v63, %v1629_v0  ;;  %v1665_v63 = vld [vmem:[#allocation8 + $0x1b40] sm:$0xff] }
 0x2db   :  { %7560 = vmatpush1.bf16.msra.mxu1 %v11410_v5  ;;  %7233 = vmatprep.subr.bf16.mxu0 %v11417_v23  ;;  %v11450_v5 = vcombine.low %v1626_v2, %v1630_v16  ;;  %v11457_v23 = vcombine.high %v1633_v12, %v1637_v13  ;;  %v1669_v0 = vld [vmem:[#allocation8 + $0x1b60] sm:$0xff]  ;;  %v1666_v2 = vld [vmem:[#allocation8 + $0x1b48] sm:$0xff] }
 0x2dc   :  { %7561 = vmatprep.subr.bf16.mxu1 %v11419_v25  ;;  %v11459_v25 = vcombine.high %v1634_v19, %v1638_v1  ;;  %v1670_v16 = vld [vmem:[#allocation8 + $0x1b68] sm:$0xff] }
 0x2de   :  { %7234 = vmatpush1.bf16.msra.mxu0 %v11416_v48  ;;  %v11456_v48 = vcombine.low %v1633_v12, %v1637_v13  ;;  %v1673_v12 = vld [vmem:[#allocation8 + $0x1b80] sm:$0xff] }
 0x2df   :  { %7562 = vmatpush1.bf16.msra.mxu1 %v11418_v37  ;;  %7235 = vmatprep.subr.bf16.mxu0 %v11425_v24  ;;  %v11458_v37 = vcombine.low %v1634_v19, %v1638_v1  ;;  %v11465_v24 = vcombine.high %v1641_v28, %v1645_v29  ;;  %v1677_v13 = vld [vmem:[#allocation8 + $0x1ba0] sm:$0xff]  ;;  %v1674_v19 = vld [vmem:[#allocation8 + $0x1b88] sm:$0xff] }
 0x2e0   :  { %7563 = vmatprep.subr.bf16.mxu1 %v11427_v59  ;;  %v11467_v59 = vcombine.high %v1642_v14, %v1646_v35  ;;  %v1678_v1 = vld [vmem:[#allocation8 + $0x1ba8] sm:$0xff] }
 0x2e2   :  { %7236 = vmatpush1.bf16.msra.mxu0 %v11424_v20  ;;  %v11464_v20 = vcombine.low %v1641_v28, %v1645_v29  ;;  %v1681_v28 = vld [vmem:[#allocation8 + $0x1bc0] sm:$0xff] }
 0x2e3   :  { %7564 = vmatpush1.bf16.msra.mxu1 %v11426_v50  ;;  %7237 = vmatprep.subr.bf16.mxu0 %v11433_v57  ;;  %v11466_v50 = vcombine.low %v1642_v14, %v1646_v35  ;;  %v11473_v57 = vcombine.high %v1649_v41, %v1653_v42  ;;  %v1685_v29 = vld [vmem:[#allocation8 + $0x1be0] sm:$0xff]  ;;  %v1682_v14 = vld [vmem:[#allocation8 + $0x1bc8] sm:$0xff] }
 0x2e4   :  { %7565 = vmatprep.subr.bf16.mxu1 %v11435_v51  ;;  %v11475_v51 = vcombine.high %v1650_v43, %v1654_v45  ;;  %v1686_v35 = vld [vmem:[#allocation8 + $0x1be8] sm:$0xff] }
 0x2e6   :  { %7238 = vmatpush1.bf16.msra.mxu0 %v11432_v60  ;;  %v11472_v60 = vcombine.low %v1649_v41, %v1653_v42  ;;  %v1689_v41 = vld [vmem:[#allocation8 + $0x1c00] sm:$0xff] }
 0x2e7   :  { %7566 = vmatpush1.bf16.msra.mxu1 %v11434_v61  ;;  %7239 = vmatprep.subr.bf16.mxu0 %v11441_v11  ;;  %v11474_v61 = vcombine.low %v1650_v43, %v1654_v45  ;;  %v11481_v11 = vcombine.high %v1657_v53, %v1661_v52  ;;  %v1693_v42 = vld [vmem:[#allocation8 + $0x1c20] sm:$0xff]  ;;  %v1690_v43 = vld [vmem:[#allocation8 + $0x1c08] sm:$0xff] }
 0x2e8   :  { %7567 = vmatprep.subr.bf16.mxu1 %v11443_v62  ;;  %v11483_v62 = vcombine.high %v1658_v55, %v1662_v58  ;;  %v1694_v45 = vld [vmem:[#allocation8 + $0x1c28] sm:$0xff] }
 0x2ea   :  { %7240 = vmatpush1.bf16.msra.mxu0 %v11440_v8  ;;  %v11480_v8 = vcombine.low %v1657_v53, %v1661_v52  ;;  %v11515_v53 = vcombine.high %v1690_v43, %v1694_v45  ;;  %v776_v52 = vmax.f32 %v13063_v32, 0.0 }
 0x2eb   :  { %7568 = vmatpush1.bf16.msra.mxu1 %v11442_v27  ;;  %7241 = vmatprep.subr.bf16.mxu0 %v11449_v6  ;;  %v11482_v27 = vcombine.low %v1658_v55, %v1662_v58  ;;  %v11489_v6 = vcombine.high %v1665_v63, %v1669_v0  ;;  %v1697_v55 = vld [vmem:[#allocation8 + $0x1c40] sm:$0xff] }
 0x2ec   :  { %7569 = vmatprep.subr.bf16.mxu1 %v11451_v10  ;;  %v11491_v10 = vcombine.high %v1666_v2, %v1670_v16  ;;  %v1701_v58 = vld [vmem:[#allocation8 + $0x1c60] sm:$0xff] }
 0x2ee   :  { %7242 = vmatpush1.bf16.msra.mxu0 %v11448_v49  ;;  %v11488_v49 = vcombine.low %v1665_v63, %v1669_v0  ;;  %v11514_v63 = vcombine.low %v1690_v43, %v1694_v45  ;;  %v1705_v0 = vld [vmem:[#allocation8 + $0x1c80] sm:$0xff] }
 0x2ef   :  { %7570 = vmatpush1.bf16.msra.mxu1 %v11450_v5  ;;  %7243 = vmatprep.subr.bf16.mxu0 %v11457_v23  ;;  %v11490_v5 = vcombine.low %v1666_v2, %v1670_v16  ;;  %v11497_v23 = vcombine.high %v1673_v12, %v1677_v13  ;;  %v1709_v2 = vld [vmem:[#allocation8 + $0x1ca0] sm:$0xff]  ;;  %v13134_v16 = vpack.c.bf16 %v776_v52, %v776_v52 }
 0x2f0   :  { %7571 = vmatprep.subr.bf16.mxu1 %v11459_v25  ;;  %v11499_v25 = vcombine.high %v1674_v19, %v1678_v1  ;;  %v1729_v43 = vld [vmem:[#allocation8 + $0x1d40] sm:$0xff] }
 0x2f1   :  { %v1733_v45 = vld [vmem:[#allocation8 + $0x1d60] sm:$0xff] }
 0x2f2   :  { %7244 = vmatpush1.bf16.msra.mxu0 %v11456_v48  ;;  %v11496_v48 = vcombine.low %v1673_v12, %v1677_v13  ;;  %v11529_v12 = vcombine.high %v1705_v0, %v1709_v2 }
 0x2f3   :  { %7572 = vmatpush1.bf16.msra.mxu1 %v11458_v37  ;;  %7245 = vmatprep.subr.bf16.mxu0 %v11465_v24  ;;  %v11498_v37 = vcombine.low %v1674_v19, %v1678_v1  ;;  %v11505_v24 = vcombine.high %v1681_v28, %v1685_v29  ;;  %v1713_v19 = vld [vmem:[#allocation8 + $0x1cc0] sm:$0xff] }
 0x2f4   :  { %7573 = vmatprep.subr.bf16.mxu1 %v11467_v59  ;;  %v11507_v59 = vcombine.high %v1682_v14, %v1686_v35  ;;  %v1717_v1 = vld [vmem:[#allocation8 + $0x1ce0] sm:$0xff] }
 0x2f6   :  { %7246 = vmatpush1.bf16.msra.mxu0 %v11464_v20  ;;  %v11504_v20 = vcombine.low %v1681_v28, %v1685_v29  ;;  %v11537_v28 = vcombine.high %v1713_v19, %v1717_v1 }
 0x2f7   :  { %7574 = vmatpush1.bf16.msra.mxu1 %v11466_v50  ;;  %7247 = vmatprep.subr.bf16.mxu0 %v11473_v57  ;;  %v773_v50 = vmax.f32 %v13030_v36, 0.0  ;;  %v11506_v57 = vcombine.low %v1682_v14, %v1686_v35  ;;  %v11521_v36 = vcombine.high %v1697_v55, %v1701_v58  ;;  %v1721_v14 = vld [vmem:[#allocation8 + $0x1d00] sm:$0xff] }
 0x2f8   :  { %7575 = vmatprep.subr.bf16.mxu1 %v11475_v51  ;;  %v11513_v51 = vcombine.high %v1689_v41, %v1693_v42  ;;  %v1725_v35 = vld [vmem:[#allocation8 + $0x1d20] sm:$0xff] }
 0x2fa   :  { %7248 = vmatpush1.bf16.msra.mxu0 %v11472_v60  ;;  %v11512_v60 = vcombine.low %v1689_v41, %v1693_v42  ;;  %v11545_v41 = vcombine.high %v1721_v14, %v1725_v35 }
 0x2fb   :  { %7576 = vmatpush1.bf16.msra.mxu1 %v11474_v61  ;;  %7249 = vmatprep.subr.bf16.mxu0 %v11481_v11  ;;  %v1698_v61 = vld [vmem:[#allocation8 + $0x1c48] sm:$0xff] }
 0x2fc   :  { %7577 = vmatprep.subr.bf16.mxu1 %v11483_v62  ;;  %v1702_v11 = vld [vmem:[#allocation8 + $0x1c68] sm:$0xff]  ;;  %v13132_v62 = vpack.c.bf16 %v773_v50, %v773_v50 }
 0x2fd   :  { %v11523_v32 = vcombine.high %v1698_v61, %v1702_v11  ;;  %v1734_v50 = vld [vmem:[#allocation8 + $0x1d68] sm:$0xff] }
 0x2fe   :  { %7250 = vmatpush1.bf16.msra.mxu0 %v11480_v8  ;;  %v1706_v8 = vld [vmem:[#allocation8 + $0x1c88] sm:$0xff] }
 0x2ff   :  { %7578 = vmatpush1.bf16.msra.mxu1 %v11482_v27  ;;  %7251 = vmatprep.subr.bf16.mxu0 %v11489_v6  ;;  %v1710_v27 = vld [vmem:[#allocation8 + $0x1ca8] sm:$0xff]  ;;  %v11520_v6 = vcombine.low %v1697_v55, %v1701_v58  ;;  %v1737_v55 = vld [vmem:[#allocation8 + $0x1d80] sm:$0xff] }
 0x300   :  { %7579 = vmatprep.subr.bf16.mxu1 %v11491_v10  ;;  %v11522_v10 = vcombine.low %v1698_v61, %v1702_v11  ;;  %v11531_v13 = vcombine.high %v1706_v8, %v1710_v27  ;;  %v1741_v58 = vld [vmem:[#allocation8 + $0x1da0] sm:$0xff]  ;;  %v1742_v61 = vld [vmem:[#allocation8 + $0x1da8] sm:$0xff]  ;;  %v11552_v11 = vcombine.low %v1729_v43, %v1733_v45 }
 0x302   :  { %7252 = vmatpush1.bf16.msra.mxu0 %v11488_v49  ;;  %v1714_v49 = vld [vmem:[#allocation8 + $0x1cc8] sm:$0xff] }
 0x303   :  { %7580 = vmatpush1.bf16.msra.mxu1 %v11490_v5  ;;  %7253 = vmatprep.subr.bf16.mxu0 %v11497_v23  ;;  %v1718_v5 = vld [vmem:[#allocation8 + $0x1ce8] sm:$0xff]  ;;  %v11528_v23 = vcombine.low %v1705_v0, %v1709_v2  ;;  %v1745_v2 = vld [vmem:[#allocation8 + $0x1dc0] sm:$0xff] }
 0x304   :  { %7581 = vmatprep.subr.bf16.mxu1 %v11499_v25  ;;  %v11530_v25 = vcombine.low %v1706_v8, %v1710_v27  ;;  %v11539_v29 = vcombine.high %v1714_v49, %v1718_v5  ;;  %v1746_v8 = vld [vmem:[#allocation8 + $0x1dc8] sm:$0xff] }
 0x305   :  { %v1750_v27 = vld [vmem:[#allocation8 + $0x1de8] sm:$0xff] }
 0x306   :  { %7254 = vmatpush1.bf16.msra.mxu0 %v11496_v48  ;;  %v1722_v48 = vld [vmem:[#allocation8 + $0x1d08] sm:$0xff] }
 0x307   :  { %7582 = vmatpush1.bf16.msra.mxu1 %v11498_v37  ;;  %7255 = vmatprep.subr.bf16.mxu0 %v11505_v24  ;;  %v1726_v37 = vld [vmem:[#allocation8 + $0x1d28] sm:$0xff]  ;;  %v11536_v24 = vcombine.low %v1713_v19, %v1717_v1  ;;  %v1753_v19 = vld [vmem:[#allocation8 + $0x1e00] sm:$0xff] }
 0x308   :  { %7583 = vmatprep.subr.bf16.mxu1 %v11507_v59  ;;  %v11538_v59 = vcombine.low %v1714_v49, %v1718_v5  ;;  %v11547_v42 = vcombine.high %v1722_v48, %v1726_v37  ;;  %v1757_v1 = vld [vmem:[#allocation8 + $0x1e20] sm:$0xff]  ;;  %v1754_v49 = vld [vmem:[#allocation8 + $0x1e08] sm:$0xff] }
 0x309   :  { %v1758_v5 = vld [vmem:[#allocation8 + $0x1e28] sm:$0xff] }
 0x30a   :  { %7256 = vmatpush1.bf16.msra.mxu0 %v11504_v20  ;;  %v1730_v20 = vld [vmem:[#allocation8 + $0x1d48] sm:$0xff] }
 0x30b   :  { %7584 = vmatpush1.bf16.msra.mxu1 %v11506_v57  ;;  %7266 = vmatprep.subr.bf16.mxu0 %v11513_v51  ;;  %v11544_v57 = vcombine.low %v1721_v14, %v1725_v35  ;;  %v11546_v51 = vcombine.low %v1722_v48, %v1726_v37  ;;  %v11555_v52 = vcombine.high %v1730_v20, %v1734_v50  ;;  %v1761_v14 = vld [vmem:[#allocation8 + $0x1e40] sm:$0xff]  ;;  %v1762_v48 = vld [vmem:[#allocation8 + $0x1e48] sm:$0xff] }
 0x30c   :  { %7594 = vmatprep.subr.bf16.mxu1 %v11515_v53  ;;  %v11553_v53 = vcombine.high %v1729_v43, %v1733_v45  ;;  %v1765_v35 = vld [vmem:[#allocation8 + $0x1e60] sm:$0xff]  ;;  %v1766_v37 = vld [vmem:[#allocation8 + $0x1e68] sm:$0xff] }
 0x30d   :  { %7258 = vmatmul.mubr.bf16.vlgmr.msra.gmra.mrb[16].mxu0 %v13132_v62  ;;  %v1769_v43 = vld [vmem:[#allocation8 + $0x1e80] sm:$0xff] }
 0x30e   :  { %7586 = vmatmul.mubr.bf16.vlgmr.msra.gmra.mrb[16].mxu1 %v13132_v62  ;;  %7267 = vmatpush1.bf16.msra.mxu0 %v11512_v60  ;;  %v1738_v60 = vld [vmem:[#allocation8 + $0x1d88] sm:$0xff]  ;;  %v1773_v45 = vld [vmem:[#allocation8 + $0x1ea0] sm:$0xff] }
 0x30f   :  { %7298 = vmatprep.mubr.bf16.mxu0 %v13134_v16  ;;  %7595 = vmatpush1.bf16.msra.mxu1 %v11514_v63  ;;  %v11554_v63 = vcombine.low %v1730_v20, %v1734_v50  ;;  %v11563_v0 = vcombine.high %v1738_v60, %v1742_v61  ;;  %v1770_v20 = vld [vmem:[#allocation8 + $0x1e88] sm:$0xff] }
 0x310   :  { %7626 = vmatprep.mubr.bf16.mxu1 %v13134_v16  ;;  %7268 = vmatprep.subr.bf16.mxu0 %v11521_v36  ;;  %v11561_v36 = vcombine.high %v1737_v55, %v1741_v58  ;;  %v1774_v50 = vld [vmem:[#allocation8 + $0x1ea8] sm:$0xff] }
 0x311   :  { %7596 = vmatprep.subr.bf16.mxu1 %v11523_v32  ;;  %v1749_v32 = vld [vmem:[#allocation8 + $0x1de0] sm:$0xff] }
 0x312   :  { %7269 = vmatpush1.bf16.msra.mxu0 %v11520_v6  ;;  %v11560_v6 = vcombine.low %v1737_v55, %v1741_v58  ;;  %v1777_v55 = vld [vmem:[#allocation8 + $0x1ec0] sm:$0xff] }
 0x313   :  { %7597 = vmatpush1.bf16.msra.mxu1 %v11522_v10  ;;  %7270 = vmatprep.subr.bf16.mxu0 %v11529_v12  ;;  %v11562_v10 = vcombine.low %v1738_v60, %v1742_v61  ;;  %v11569_v12 = vcombine.high %v1745_v2, %v1749_v32  ;;  %v1781_v58 = vld [vmem:[#allocation8 + $0x1ee0] sm:$0xff]  ;;  %v1778_v60 = vld [vmem:[#allocation8 + $0x1ec8] sm:$0xff] }
 0x314   :  { %7598 = vmatprep.subr.bf16.mxu1 %v11531_v13  ;;  %v11571_v13 = vcombine.high %v1746_v8, %v1750_v27  ;;  %v1782_v61 = vld [vmem:[#allocation8 + $0x1ee8] sm:$0xff] }
 0x316   :  { %7271 = vmatpush1.bf16.msra.mxu0 %v11528_v23  ;;  %v11568_v23 = vcombine.low %v1745_v2, %v1749_v32  ;;  %v1785_v2 = vld [vmem:[#allocation8 + $0x1f00] sm:$0xff] }
 0x317   :  { %7599 = vmatpush1.bf16.msra.mxu1 %v11530_v25  ;;  %7272 = vmatprep.subr.bf16.mxu0 %v11537_v28  ;;  %v11570_v25 = vcombine.low %v1746_v8, %v1750_v27  ;;  %v11577_v28 = vcombine.high %v1753_v19, %v1757_v1  ;;  %v1789_v32 = vld [vmem:[#allocation8 + $0x1f20] sm:$0xff]  ;;  %v1786_v8 = vld [vmem:[#allocation8 + $0x1f08] sm:$0xff] }
 0x318   :  { %7600 = vmatprep.subr.bf16.mxu1 %v11539_v29  ;;  %v11579_v29 = vcombine.high %v1754_v49, %v1758_v5  ;;  %v1790_v27 = vld [vmem:[#allocation8 + $0x1f28] sm:$0xff] }
 0x31a   :  { %7273 = vmatpush1.bf16.msra.mxu0 %v11536_v24  ;;  %v11576_v24 = vcombine.low %v1753_v19, %v1757_v1  ;;  %v1793_v19 = vld [vmem:[#allocation8 + $0x1f40] sm:$0xff] }
 0x31b   :  { %7601 = vmatpush1.bf16.msra.mxu1 %v11538_v59  ;;  %7274 = vmatprep.subr.bf16.mxu0 %v11545_v41  ;;  %v11578_v59 = vcombine.low %v1754_v49, %v1758_v5  ;;  %v11585_v41 = vcombine.high %v1761_v14, %v1765_v35  ;;  %v1797_v1 = vld [vmem:[#allocation8 + $0x1f60] sm:$0xff]  ;;  %v1794_v49 = vld [vmem:[#allocation8 + $0x1f48] sm:$0xff] }
 0x31c   :  { %7602 = vmatprep.subr.bf16.mxu1 %v11547_v42  ;;  %v11587_v42 = vcombine.high %v1762_v48, %v1766_v37  ;;  %v1798_v5 = vld [vmem:[#allocation8 + $0x1f68] sm:$0xff] }
 0x31e   :  { %7275 = vmatpush1.bf16.msra.mxu0 %v11544_v57  ;;  %v11584_v57 = vcombine.low %v1761_v14, %v1765_v35  ;;  %v1801_v14 = vld [vmem:[#allocation8 + $0x1f80] sm:$0xff] }
 0x31f   :  { %7603 = vmatpush1.bf16.msra.mxu1 %v11546_v51  ;;  %7276 = vmatprep.subr.bf16.mxu0 %v11553_v53  ;;  %v11586_v51 = vcombine.low %v1762_v48, %v1766_v37  ;;  %v11593_v53 = vcombine.high %v1769_v43, %v1773_v45  ;;  %v1805_v35 = vld [vmem:[#allocation8 + $0x1fa0] sm:$0xff]  ;;  %v1802_v48 = vld [vmem:[#allocation8 + $0x1f88] sm:$0xff] }
 0x320   :  { %7604 = vmatprep.subr.bf16.mxu1 %v11555_v52  ;;  %v11595_v52 = vcombine.high %v1770_v20, %v1774_v50  ;;  %v1806_v37 = vld [vmem:[#allocation8 + $0x1fa8] sm:$0xff] }
 0x322   :  { %7277 = vmatpush1.bf16.msra.mxu0 %v11552_v11  ;;  %v11592_v11 = vcombine.low %v1769_v43, %v1773_v45  ;;  %v1809_v43 = vld [vmem:[#allocation8 + $0x1fc0] sm:$0xff] }
 0x323   :  { %7605 = vmatpush1.bf16.msra.mxu1 %v11554_v63  ;;  %7278 = vmatprep.subr.bf16.mxu0 %v11561_v36  ;;  %v11594_v63 = vcombine.low %v1770_v20, %v1774_v50  ;;  %v11601_v36 = vcombine.high %v1777_v55, %v1781_v58  ;;  %v1813_v45 = vld [vmem:[#allocation8 + $0x1fe0] sm:$0xff]  ;;  %v1810_v20 = vld [vmem:[#allocation8 + $0x1fc8] sm:$0xff] }
 0x324   :  { %7606 = vmatprep.subr.bf16.mxu1 %v11563_v0  ;;  %v11603_v0 = vcombine.high %v1778_v60, %v1782_v61  ;;  %v1814_v50 = vld [vmem:[#allocation8 + $0x1fe8] sm:$0xff] }
 0x326   :  { %7279 = vmatpush1.bf16.msra.mxu0 %v11560_v6  ;;  %v11600_v6 = vcombine.low %v1777_v55, %v1781_v58  ;;  %v795_v55 = vld [vmem:[#allocation8 + $0x10] sm:$0xff] }
 0x327   :  { %7607 = vmatpush1.bf16.msra.mxu1 %v11562_v10  ;;  %7280 = vmatprep.subr.bf16.mxu0 %v11569_v12  ;;  %v11602_v10 = vcombine.low %v1778_v60, %v1782_v61  ;;  %v11609_v12 = vcombine.high %v1785_v2, %v1789_v32  ;;  %v799_v58 = vld [vmem:[#allocation8 + $0x30] sm:$0xff]  ;;  %v796_v60 = vld [vmem:[#allocation8 + $0x18] sm:$0xff] }
 0x328   :  { %7608 = vmatprep.subr.bf16.mxu1 %v11571_v13  ;;  %v11611_v13 = vcombine.high %v1786_v8, %v1790_v27  ;;  %v800_v61 = vld [vmem:[#allocation8 + $0x38] sm:$0xff] }
 0x32a   :  { %7281 = vmatpush1.bf16.msra.mxu0 %v11568_v23  ;;  %v11608_v23 = vcombine.low %v1785_v2, %v1789_v32  ;;  %v10623_v2 = vcombine.high %v796_v60, %v800_v61  ;;  %v803_v32 = vld [vmem:[#allocation8 + $0x50] sm:$0xff] }
 0x32b   :  { %7609 = vmatpush1.bf16.msra.mxu1 %v11570_v25  ;;  %7282 = vmatprep.subr.bf16.mxu0 %v11577_v28  ;;  %v11610_v25 = vcombine.low %v1786_v8, %v1790_v27  ;;  %v11617_v28 = vcombine.high %v1793_v19, %v1797_v1  ;;  %v807_v8 = vld [vmem:[#allocation8 + $0x70] sm:$0xff]  ;;  %v10620_v27 = vcombine.low %v795_v55, %v799_v58 }
 0x32c   :  { %7610 = vmatprep.subr.bf16.mxu1 %v11579_v29  ;;  %v11619_v29 = vcombine.high %v1794_v49, %v1798_v5 }
 0x32e   :  { %7283 = vmatpush1.bf16.msra.mxu0 %v11576_v24  ;;  %v11616_v24 = vcombine.low %v1793_v19, %v1797_v1  ;;  %v10629_v19 = vcombine.high %v803_v32, %v807_v8  ;;  %v815_v1 = vld [vmem:[#allocation8 + $0xb0] sm:$0xff] }
 0x32f   :  { %7611 = vmatpush1.bf16.msra.mxu1 %v11578_v59  ;;  %7284 = vmatprep.subr.bf16.mxu0 %v11585_v41  ;;  %v11618_v59 = vcombine.low %v1794_v49, %v1798_v5  ;;  %v11625_v41 = vcombine.high %v1801_v14, %v1805_v35  ;;  %v812_v5 = vld [vmem:[#allocation8 + $0x98] sm:$0xff] }
 0x330   :  { %7612 = vmatprep.subr.bf16.mxu1 %v11587_v42  ;;  %v11627_v42 = vcombine.high %v1802_v48, %v1806_v37 }
 0x332   :  { %7285 = vmatpush1.bf16.msra.mxu0 %v11584_v57  ;;  %v11624_v57 = vcombine.low %v1801_v14, %v1805_v35  ;;  %v819_v35 = vld [vmem:[#allocation8 + $0xd0] sm:$0xff] }
 0x333   :  { %7613 = vmatpush1.bf16.msra.mxu1 %v11586_v51  ;;  %7286 = vmatprep.subr.bf16.mxu0 %v11593_v53  ;;  %v11626_v51 = vcombine.low %v1802_v48, %v1806_v37  ;;  %v11633_v53 = vcombine.high %v1809_v43, %v1813_v45  ;;  %v823_v48 = vld [vmem:[#allocation8 + $0xf0] sm:$0xff]  ;;  %v820_v37 = vld [vmem:[#allocation8 + $0xd8] sm:$0xff] }
 0x334   :  { %7614 = vmatprep.subr.bf16.mxu1 %v11595_v52  ;;  %v11635_v52 = vcombine.high %v1810_v20, %v1814_v50 }
 0x336   :  { %7287 = vmatpush1.bf16.msra.mxu0 %v11592_v11  ;;  %v11632_v11 = vcombine.low %v1809_v43, %v1813_v45  ;;  %v827_v45 = vld [vmem:[#allocation8 + $0x110] sm:$0xff] }
 0x337   :  { %7615 = vmatpush1.bf16.msra.mxu1 %v11594_v63  ;;  %7288 = vmatprep.subr.bf16.mxu0 %v11601_v36  ;;  %v775_v63 = vmax.f32 %v13061_v31, 0.0  ;;  %v11634_v36 = vcombine.low %v1810_v20, %v1814_v50  ;;  %v811_v31 = vld [vmem:[#allocation8 + $0x90] sm:$0xff]  ;;  %v828_v50 = vld [vmem:[#allocation8 + $0x118] sm:$0xff] }
 0x338   :  { %7616 = vmatprep.subr.bf16.mxu1 %v11603_v0  ;;  %v10621_v0 = vcombine.high %v795_v55, %v799_v58  ;;  %v831_v20 = vld [vmem:[#allocation8 + $0x130] sm:$0xff] }
 0x339   :  { %v835_v55 = vld [vmem:[#allocation8 + $0x150] sm:$0xff] }
 0x33a   :  { %7289 = vmatpush1.bf16.msra.mxu0 %v11600_v6  ;;  %v804_v6 = vld [vmem:[#allocation8 + $0x58] sm:$0xff]  ;;  %v839_v58 = vld [vmem:[#allocation8 + $0x170] sm:$0xff] }
 0x33b   :  { %7617 = vmatpush1.bf16.msra.mxu1 %v11602_v10  ;;  %7290 = vmatprep.subr.bf16.mxu0 %v11609_v12  ;;  %v808_v10 = vld [vmem:[#allocation8 + $0x78] sm:$0xff]  ;;  %v13141_v12 = vpack.c.bf16 %v775_v63, %v775_v63 }
 0x33c   :  { %7618 = vmatprep.subr.bf16.mxu1 %v11611_v13  ;;  %v10622_v13 = vcombine.low %v796_v60, %v800_v61  ;;  %v10631_v49 = vcombine.high %v804_v6, %v808_v10  ;;  %v836_v60 = vld [vmem:[#allocation8 + $0x158] sm:$0xff] }
 0x33d   :  { %v840_v61 = vld [vmem:[#allocation8 + $0x178] sm:$0xff] }
 0x33e   :  { %7291 = vmatpush1.bf16.msra.mxu0 %v11608_v23  ;;  %v816_v23 = vld [vmem:[#allocation8 + $0xb8] sm:$0xff] }
 0x33f   :  { %7619 = vmatpush1.bf16.msra.mxu1 %v11610_v25  ;;  %7292 = vmatprep.subr.bf16.mxu0 %v11617_v28  ;;  %v10628_v25 = vcombine.low %v803_v32, %v807_v8  ;;  %v10630_v28 = vcombine.low %v804_v6, %v808_v10  ;;  %v10639_v14 = vcombine.high %v812_v5, %v816_v23  ;;  %v847_v32 = vld [vmem:[#allocation8 + $0x1b0] sm:$0xff]  ;;  %v844_v8 = vld [vmem:[#allocation8 + $0x198] sm:$0xff] }
 0x340   :  { %7620 = vmatprep.subr.bf16.mxu1 %v11619_v29  ;;  %v10637_v29 = vcombine.high %v811_v31, %v815_v1  ;;  %v10660_v6 = vcombine.low %v835_v55, %v839_v58  ;;  %v10662_v10 = vcombine.low %v836_v60, %v840_v61 }
 0x342   :  { %7293 = vmatpush1.bf16.msra.mxu0 %v11616_v24  ;;  %v824_v24 = vld [vmem:[#allocation8 + $0xf8] sm:$0xff] }
 0x343   :  { %7621 = vmatpush1.bf16.msra.mxu1 %v11618_v59  ;;  %7294 = vmatprep.subr.bf16.mxu0 %v11625_v41  ;;  %v10636_v59 = vcombine.low %v811_v31, %v815_v1  ;;  %v10638_v41 = vcombine.low %v812_v5, %v816_v23  ;;  %v10647_v43 = vcombine.high %v820_v37, %v824_v24  ;;  %v851_v31 = vld [vmem:[#allocation8 + $0x1d0] sm:$0xff]  ;;  %v856_v5 = vld [vmem:[#allocation8 + $0x1f8] sm:$0xff] }
 0x344   :  { %7622 = vmatprep.subr.bf16.mxu1 %v11627_v42  ;;  %v10645_v42 = vcombine.high %v819_v35, %v823_v48  ;;  %v855_v1 = vld [vmem:[#allocation8 + $0x1f0] sm:$0xff] }
 0x346   :  { %7295 = vmatpush1.bf16.msra.mxu0 %v11624_v57  ;;  %v832_v57 = vld [vmem:[#allocation8 + $0x138] sm:$0xff] }
 0x347   :  { %7623 = vmatpush1.bf16.msra.mxu1 %v11626_v51  ;;  %7296 = vmatprep.subr.bf16.mxu0 %v11633_v53  ;;  %v10646_v51 = vcombine.low %v820_v37, %v824_v24  ;;  %v10653_v53 = vcombine.high %v827_v45, %v831_v20  ;;  %v10654_v63 = vcombine.low %v828_v50, %v832_v57  ;;  %v864_v37 = vld [vmem:[#allocation8 + $0x238] sm:$0xff] }
 0x348   :  { %7624 = vmatprep.subr.bf16.mxu1 %v11635_v52  ;;  %v10655_v52 = vcombine.high %v828_v50, %v832_v57  ;;  %v10676_v24 = vcombine.low %v851_v31, %v855_v1  ;;  %v872_v50 = vld [vmem:[#allocation8 + $0x278] sm:$0xff] }
 0x34a   :  { %7297 = vmatpush1.bf16.msra.mxu0 %v11632_v11  ;;  %v10652_v11 = vcombine.low %v827_v45, %v831_v20  ;;  %v871_v45 = vld [vmem:[#allocation8 + $0x270] sm:$0xff]  ;;  %v868_v20 = vld [vmem:[#allocation8 + $0x258] sm:$0xff] }
 0x34b   :  { %7625 = vmatpush1.bf16.msra.mxu1 %v11634_v36  ;;  %7635 = vmatprep.subr.bf16.mxu0 %v10621_v0  ;;  %v10661_v36 = vcombine.high %v835_v55, %v839_v58  ;;  %v10663_v0 = vcombine.high %v836_v60, %v840_v61  ;;  %v879_v55 = vld [vmem:[#allocation8 + $0x2b0] sm:$0xff]  ;;  %v876_v58 = vld [vmem:[#allocation8 + $0x298] sm:$0xff] }
 0x34c   :  { %7963 = vmatprep.subr.bf16.mxu1 %v10623_v2  ;;  %v843_v2 = vld [vmem:[#allocation8 + $0x190] sm:$0xff]  ;;  %v880_v60 = vld [vmem:[#allocation8 + $0x2b8] sm:$0xff] }
 0x34d   :  { %7299 = vmatmul.mubr.bf16.vlgmr.msra.gmra.mrb[16].mxu0 %v13141_v12  ;;  %v10668_v23 = vcombine.low %v843_v2, %v847_v32 }
 0x34e   :  { %7627 = vmatmul.mubr.bf16.vlgmr.msra.gmra.mrb[16].mxu1 %v13141_v12  ;;  %7636 = vmatpush1.bf16.msra.mxu0 %v10620_v27  ;;  %v848_v27 = vld [vmem:[#allocation8 + $0x1b8] sm:$0xff] }
 0x34f   :  { %7667 = vmatprep.mubr.bf16.mxu0 %v13000_v38  ;;  %7964 = vmatpush1.bf16.msra.mxu1 %v10622_v13  ;;  %v10669_v13 = vcombine.high %v843_v2, %v847_v32  ;;  %v887_v2 = vld [vmem:[#allocation8 + $0x2f0] sm:$0xff]  ;;  %v884_v32 = vld [vmem:[#allocation8 + $0x2d8] sm:$0xff] }
 0x350   :  { %7995 = vmatprep.mubr.bf16.mxu1 %v13000_v38  ;;  %7637 = vmatprep.subr.bf16.mxu0 %v10629_v19  ;;  %v10644_v38 = vcombine.low %v819_v35, %v823_v48  ;;  %v10671_v19 = vcombine.high %v844_v8, %v848_v27  ;;  %v863_v35 = vld [vmem:[#allocation8 + $0x230] sm:$0xff]  ;;  %v860_v48 = vld [vmem:[#allocation8 + $0x218] sm:$0xff] }
 0x351   :  { %7965 = vmatprep.subr.bf16.mxu1 %v10631_v49  ;;  %v852_v49 = vld [vmem:[#allocation8 + $0x1d8] sm:$0xff] }
 0x352   :  { %7638 = vmatpush1.bf16.msra.mxu0 %v10628_v25  ;;  %v10670_v25 = vcombine.low %v844_v8, %v848_v27  ;;  %v888_v8 = vld [vmem:[#allocation8 + $0x2f8] sm:$0xff] }
 0x353   :  { %7966 = vmatpush1.bf16.msra.mxu1 %v10630_v28  ;;  %7639 = vmatprep.subr.bf16.mxu0 %v10637_v29  ;;  %v10677_v28 = vcombine.high %v851_v31, %v855_v1  ;;  %v10679_v29 = vcombine.high %v852_v49, %v856_v5  ;;  %v895_v31 = vld [vmem:[#allocation8 + $0x330] sm:$0xff]  ;;  %v892_v1 = vld [vmem:[#allocation8 + $0x318] sm:$0xff] }
 0x354   :  { %7967 = vmatprep.subr.bf16.mxu1 %v10639_v14  ;;  %v859_v14 = vld [vmem:[#allocation8 + $0x210] sm:$0xff] }
 0x355   :  { %v10684_v57 = vcombine.low %v859_v14, %v863_v35 }
 0x356   :  { %7640 = vmatpush1.bf16.msra.mxu0 %v10636_v59  ;;  %v10678_v59 = vcombine.low %v852_v49, %v856_v5  ;;  %v896_v49 = vld [vmem:[#allocation8 + $0x338] sm:$0xff] }
 0x357   :  { %7968 = vmatpush1.bf16.msra.mxu1 %v10638_v41  ;;  %7641 = vmatprep.subr.bf16.mxu0 %v10645_v42  ;;  %v10685_v41 = vcombine.high %v859_v14, %v863_v35  ;;  %v10687_v42 = vcombine.high %v860_v48, %v864_v37  ;;  %v903_v14 = vld [vmem:[#allocation8 + $0x370] sm:$0xff]  ;;  %v900_v35 = vld [vmem:[#allocation8 + $0x358] sm:$0xff] }
 0x358   :  { %7969 = vmatprep.subr.bf16.mxu1 %v10647_v43  ;;  %v867_v43 = vld [vmem:[#allocation8 + $0x250] sm:$0xff] }
 0x359   :  { %v10692_v61 = vcombine.low %v867_v43, %v871_v45 }
 0x35a   :  { %7642 = vmatpush1.bf16.msra.mxu0 %v10644_v38  ;;  %v10686_v38 = vcombine.low %v860_v48, %v864_v37  ;;  %v904_v48 = vld [vmem:[#allocation8 + $0x378] sm:$0xff] }
 0x35b   :  { %7970 = vmatpush1.bf16.msra.mxu1 %v10646_v51  ;;  %7643 = vmatprep.subr.bf16.mxu0 %v10653_v53  ;;  %v10693_v51 = vcombine.high %v867_v43, %v871_v45  ;;  %v10695_v53 = vcombine.high %v868_v20, %v872_v50  ;;  %v911_v43 = vld [vmem:[#allocation8 + $0x3b0] sm:$0xff]  ;;  %v908_v45 = vld [vmem:[#allocation8 + $0x398] sm:$0xff] }
 0x35c   :  { %7971 = vmatprep.subr.bf16.mxu1 %v10655_v52  ;;  %v875_v52 = vld [vmem:[#allocation8 + $0x290] sm:$0xff] }
 0x35d   :  { %v10700_v27 = vcombine.low %v875_v52, %v879_v55 }
 0x35e   :  { %7644 = vmatpush1.bf16.msra.mxu0 %v10652_v11  ;;  %v10694_v11 = vcombine.low %v868_v20, %v872_v50  ;;  %v912_v20 = vld [vmem:[#allocation8 + $0x3b8] sm:$0xff] }
 0x35f   :  { %7972 = vmatpush1.bf16.msra.mxu1 %v10654_v63  ;;  %7645 = vmatprep.subr.bf16.mxu0 %v10661_v36  ;;  %v10701_v63 = vcombine.high %v875_v52, %v879_v55  ;;  %v10703_v36 = vcombine.high %v876_v58, %v880_v60  ;;  %v919_v52 = vld [vmem:[#allocation8 + $0x3f0] sm:$0xff]  ;;  %v916_v55 = vld [vmem:[#allocation8 + $0x3d8] sm:$0xff] }
 0x360   :  { %7973 = vmatprep.subr.bf16.mxu1 %v10663_v0  ;;  %v883_v0 = vld [vmem:[#allocation8 + $0x2d0] sm:$0xff] }
 0x361   :  { %v10708_v5 = vcombine.low %v883_v0, %v887_v2 }
 0x362   :  { %7646 = vmatpush1.bf16.msra.mxu0 %v10660_v6  ;;  %v10702_v6 = vcombine.low %v876_v58, %v880_v60  ;;  %v920_v58 = vld [vmem:[#allocation8 + $0x3f8] sm:$0xff] }
 0x363   :  { %7974 = vmatpush1.bf16.msra.mxu1 %v10662_v10  ;;  %7647 = vmatprep.subr.bf16.mxu0 %v10669_v13  ;;  %v10709_v10 = vcombine.high %v883_v0, %v887_v2  ;;  %v10711_v13 = vcombine.high %v884_v32, %v888_v8  ;;  %v927_v0 = vld [vmem:[#allocation8 + $0x430] sm:$0xff]  ;;  %v924_v2 = vld [vmem:[#allocation8 + $0x418] sm:$0xff] }
 0x364   :  { %7975 = vmatprep.subr.bf16.mxu1 %v10671_v19  ;;  %v891_v19 = vld [vmem:[#allocation8 + $0x310] sm:$0xff] }
 0x365   :  { %v10716_v37 = vcombine.low %v891_v19, %v895_v31 }
 0x366   :  { %7648 = vmatpush1.bf16.msra.mxu0 %v10668_v23  ;;  %v10710_v23 = vcombine.low %v884_v32, %v888_v8  ;;  %v928_v32 = vld [vmem:[#allocation8 + $0x438] sm:$0xff] }
 0x367   :  { %7976 = vmatpush1.bf16.msra.mxu1 %v10670_v25  ;;  %7649 = vmatprep.subr.bf16.mxu0 %v10677_v28  ;;  %v10717_v25 = vcombine.high %v891_v19, %v895_v31  ;;  %v10719_v28 = vcombine.high %v892_v1, %v896_v49  ;;  %v935_v19 = vld [vmem:[#allocation8 + $0x470] sm:$0xff] }
 0x368   :  { %7977 = vmatprep.subr.bf16.mxu1 %v10679_v29  ;;  %v899_v29 = vld [vmem:[#allocation8 + $0x350] sm:$0xff] }
 0x369   :  { %v10724_v50 = vcombine.low %v899_v29, %v903_v14 }
 0x36a   :  { %7650 = vmatpush1.bf16.msra.mxu0 %v10676_v24  ;;  %v10718_v24 = vcombine.low %v892_v1, %v896_v49  ;;  %v932_v1 = vld [vmem:[#allocation8 + $0x458] sm:$0xff] }
 0x36b   :  { %7978 = vmatpush1.bf16.msra.mxu1 %v10678_v59  ;;  %7651 = vmatprep.subr.bf16.mxu0 %v10685_v41  ;;  %v10725_v59 = vcombine.high %v899_v29, %v903_v14  ;;  %v10727_v41 = vcombine.high %v900_v35, %v904_v48  ;;  %v936_v49 = vld [vmem:[#allocation8 + $0x478] sm:$0xff] }
 0x36c   :  { %7979 = vmatprep.subr.bf16.mxu1 %v10687_v42  ;;  %v907_v42 = vld [vmem:[#allocation8 + $0x390] sm:$0xff]  ;;  %v10759_v29 = vcombine.high %v932_v1, %v936_v49  ;;  %v940_v14 = vld [vmem:[#allocation8 + $0x498] sm:$0xff] }
 0x36d   :  { %v10732_v60 = vcombine.low %v907_v42, %v911_v43 }
 0x36e   :  { %7652 = vmatpush1.bf16.msra.mxu0 %v10684_v57  ;;  %v10726_v57 = vcombine.low %v900_v35, %v904_v48  ;;  %v944_v35 = vld [vmem:[#allocation8 + $0x4b8] sm:$0xff] }
 0x36f   :  { %7980 = vmatpush1.bf16.msra.mxu1 %v10686_v38  ;;  %7653 = vmatprep.subr.bf16.mxu0 %v10693_v51  ;;  %v10733_v38 = vcombine.high %v907_v42, %v911_v43  ;;  %v10735_v51 = vcombine.high %v908_v45, %v912_v20  ;;  %v951_v42 = vld [vmem:[#allocation8 + $0x4f0] sm:$0xff]  ;;  %v948_v43 = vld [vmem:[#allocation8 + $0x4d8] sm:$0xff] }
 0x370   :  { %7981 = vmatprep.subr.bf16.mxu1 %v10695_v53  ;;  %v915_v53 = vld [vmem:[#allocation8 + $0x3d0] sm:$0xff] }
 0x371   :  { %v10740_v8 = vcombine.low %v915_v53, %v919_v52 }
 0x372   :  { %7654 = vmatpush1.bf16.msra.mxu0 %v10692_v61  ;;  %v10734_v61 = vcombine.low %v908_v45, %v912_v20  ;;  %v952_v45 = vld [vmem:[#allocation8 + $0x4f8] sm:$0xff] }
 0x373   :  { %7982 = vmatpush1.bf16.msra.mxu1 %v10694_v11  ;;  %7655 = vmatprep.subr.bf16.mxu0 %v10701_v63  ;;  %v10741_v11 = vcombine.high %v915_v53, %v919_v52  ;;  %v10743_v63 = vcombine.high %v916_v55, %v920_v58  ;;  %v956_v53 = vld [vmem:[#allocation8 + $0x518] sm:$0xff] }
 0x374   :  { %7983 = vmatprep.subr.bf16.mxu1 %v10703_v36  ;;  %v923_v36 = vld [vmem:[#allocation8 + $0x410] sm:$0xff]  ;;  %v960_v52 = vld [vmem:[#allocation8 + $0x538] sm:$0xff] }
 0x375   :  { %v10748_v31 = vcombine.low %v923_v36, %v927_v0 }
 0x376   :  { %7656 = vmatpush1.bf16.msra.mxu0 %v10700_v27  ;;  %v10742_v27 = vcombine.low %v916_v55, %v920_v58  ;;  %v10774_v55 = vcombine.low %v948_v43, %v952_v45 }
 0x377   :  { %7984 = vmatpush1.bf16.msra.mxu1 %v10702_v6  ;;  %7657 = vmatprep.subr.bf16.mxu0 %v10709_v10  ;;  %v10749_v6 = vcombine.high %v923_v36, %v927_v0  ;;  %v10751_v10 = vcombine.high %v924_v2, %v928_v32  ;;  %v968_v36 = vld [vmem:[#allocation8 + $0x578] sm:$0xff] }
 0x378   :  { %7985 = vmatprep.subr.bf16.mxu1 %v10711_v13  ;;  %v931_v13 = vld [vmem:[#allocation8 + $0x450] sm:$0xff] }
 0x379   :  { %v10756_v48 = vcombine.low %v931_v13, %v935_v19 }
 0x37a   :  { %7658 = vmatpush1.bf16.msra.mxu0 %v10708_v5  ;;  %v10750_v5 = vcombine.low %v924_v2, %v928_v32  ;;  %v10782_v2 = vcombine.low %v956_v53, %v960_v52 }
 0x37b   :  { %7986 = vmatpush1.bf16.msra.mxu1 %v10710_v23  ;;  %7659 = vmatprep.subr.bf16.mxu0 %v10717_v25  ;;  %v10757_v23 = vcombine.high %v931_v13, %v935_v19  ;;  %v939_v25 = vld [vmem:[#allocation8 + $0x490] sm:$0xff]  ;;  %v976_v13 = vld [vmem:[#allocation8 + $0x5b8] sm:$0xff] }
 0x37c   :  { %7987 = vmatprep.subr.bf16.mxu1 %v10719_v28  ;;  %v943_v28 = vld [vmem:[#allocation8 + $0x4b0] sm:$0xff] }
 0x37d   :  { %v10764_v20 = vcombine.low %v939_v25, %v943_v28 }
 0x37e   :  { %7660 = vmatpush1.bf16.msra.mxu0 %v10716_v37  ;;  %v10758_v37 = vcombine.low %v932_v1, %v936_v49 }
 0x37f   :  { %7988 = vmatpush1.bf16.msra.mxu1 %v10718_v24  ;;  %7661 = vmatprep.subr.bf16.mxu0 %v10725_v59  ;;  %v10765_v24 = vcombine.high %v939_v25, %v943_v28  ;;  %v10767_v59 = vcombine.high %v940_v14, %v944_v35  ;;  %v980_v25 = vld [vmem:[#allocation8 + $0x5d8] sm:$0xff] }
 0x380   :  { %7989 = vmatprep.subr.bf16.mxu1 %v10727_v41  ;;  %v947_v41 = vld [vmem:[#allocation8 + $0x4d0] sm:$0xff]  ;;  %v984_v28 = vld [vmem:[#allocation8 + $0x5f8] sm:$0xff] }
 0x382   :  { %7662 = vmatpush1.bf16.msra.mxu0 %v10724_v50  ;;  %v10773_v50 = vcombine.high %v947_v41, %v951_v42 }
 0x383   :  { %7990 = vmatpush1.bf16.msra.mxu1 %v10726_v57  ;;  %7663 = vmatprep.subr.bf16.mxu0 %v10733_v38  ;;  %v10775_v57 = vcombine.high %v948_v43, %v952_v45  ;;  %v955_v38 = vld [vmem:[#allocation8 + $0x510] sm:$0xff]  ;;  %v10806_v43 = vcombine.low %v980_v25, %v984_v28 }
 0x384   :  { %7991 = vmatprep.subr.bf16.mxu1 %v10735_v51  ;;  %v959_v51 = vld [vmem:[#allocation8 + $0x530] sm:$0xff] }
 0x385   :  { %v10781_v58 = vcombine.high %v955_v38, %v959_v51  ;;  %v10780_v0 = vcombine.low %v955_v38, %v959_v51  ;;  %v1000_v38 = vld [vmem:[#allocation8 + $0x678] sm:$0xff] }
 0x386   :  { %7664 = vmatpush1.bf16.msra.mxu0 %v10732_v60  ;;  %v10783_v60 = vcombine.high %v956_v53, %v960_v52 }
 0x387   :  { %7992 = vmatpush1.bf16.msra.mxu1 %v10734_v61  ;;  %7665 = vmatprep.subr.bf16.mxu0 %v10741_v11  ;;  %v963_v61 = vld [vmem:[#allocation8 + $0x550] sm:$0xff] }
 0x388   :  { %7993 = vmatprep.subr.bf16.mxu1 %v10743_v63  ;;  %v967_v11 = vld [vmem:[#allocation8 + $0x570] sm:$0xff]  ;;  %v964_v63 = vld [vmem:[#allocation8 + $0x558] sm:$0xff] }
 0x389   :  { %v10789_v32 = vcombine.high %v963_v61, %v967_v11  ;;  %v10788_v19 = vcombine.low %v963_v61, %v967_v11  ;;  %v1008_v61 = vld [vmem:[#allocation8 + $0x6b8] sm:$0xff] }
 0x38a   :  { %7666 = vmatpush1.bf16.msra.mxu0 %v10740_v8  ;;  %v10791_v8 = vcombine.high %v964_v63, %v968_v36 }
 0x38b   :  { %7994 = vmatpush1.bf16.msra.mxu1 %v10742_v27  ;;  %7676 = vmatprep.subr.bf16.mxu0 %v10749_v6  ;;  %v971_v27 = vld [vmem:[#allocation8 + $0x590] sm:$0xff] }
 0x38c   :  { %8004 = vmatprep.subr.bf16.mxu1 %v10751_v10  ;;  %v975_v6 = vld [vmem:[#allocation8 + $0x5b0] sm:$0xff]  ;;  %v972_v10 = vld [vmem:[#allocation8 + $0x598] sm:$0xff] }
 0x38d   :  { %7668 = vmatmul.mubr.bf16.vlgmr.msra.gmra.mrb[20].mxu0 %v13002_v40  ;;  %v10797_v1 = vcombine.high %v971_v27, %v975_v6  ;;  %v10799_v49 = vcombine.high %v972_v10, %v976_v13 }
 0x38e   :  { %7996 = vmatmul.mubr.bf16.vlgmr.msra.gmra.mrb[20].mxu1 %v13002_v40  ;;  %7677 = vmatpush1.bf16.msra.mxu0 %v10748_v31  ;;  %v10766_v40 = vcombine.low %v940_v14, %v944_v35  ;;  %v10790_v31 = vcombine.low %v964_v63, %v968_v36  ;;  %v10798_v14 = vcombine.low %v972_v10, %v976_v13 }
 0x38f   :  { %7708 = vmatprep.mubr.bf16.mxu0 %v13006_v47  ;;  %8005 = vmatpush1.bf16.msra.mxu1 %v10750_v5  ;;  %v979_v5 = vld [vmem:[#allocation8 + $0x5d0] sm:$0xff] }
 0x390   :  { %8036 = vmatprep.mubr.bf16.mxu1 %v13006_v47  ;;  %7678 = vmatprep.subr.bf16.mxu0 %v10757_v23  ;;  %v10772_v47 = vcombine.low %v947_v41, %v951_v42  ;;  %v983_v23 = vld [vmem:[#allocation8 + $0x5f0] sm:$0xff]  ;;  %v992_v41 = vld [vmem:[#allocation8 + $0x638] sm:$0xff] }
 0x391   :  { %8006 = vmatprep.subr.bf16.mxu1 %v10759_v29  ;;  %v10796_v29 = vcombine.low %v971_v27, %v975_v6  ;;  %v10805_v35 = vcombine.high %v979_v5, %v983_v23  ;;  %v10804_v42 = vcombine.low %v979_v5, %v983_v23  ;;  %v1016_v27 = vld [vmem:[#allocation8 + $0x6f8] sm:$0xff] }
 0x392   :  { %7679 = vmatpush1.bf16.msra.mxu0 %v10756_v48  ;;  %v10807_v48 = vcombine.high %v980_v25, %v984_v28  ;;  %v1024_v5 = vld [vmem:[#allocation8 + $0x738] sm:$0xff] }
 0x393   :  { %8007 = vmatpush1.bf16.msra.mxu1 %v10758_v37  ;;  %7680 = vmatprep.subr.bf16.mxu0 %v10765_v24  ;;  %v987_v37 = vld [vmem:[#allocation8 + $0x610] sm:$0xff] }
 0x394   :  { %8008 = vmatprep.subr.bf16.mxu1 %v10767_v59  ;;  %v991_v24 = vld [vmem:[#allocation8 + $0x630] sm:$0xff]  ;;  %v988_v59 = vld [vmem:[#allocation8 + $0x618] sm:$0xff] }
 0x395   :  { %v10813_v45 = vcombine.high %v987_v37, %v991_v24  ;;  %v10812_v51 = vcombine.low %v987_v37, %v991_v24  ;;  %v10814_v53 = vcombine.low %v988_v59, %v992_v41  ;;  %v1032_v37 = vld [vmem:[#allocation8 + $0x778] sm:$0xff] }
 0x396   :  { %7681 = vmatpush1.bf16.msra.mxu0 %v10764_v20  ;;  %v10815_v20 = vcombine.high %v988_v59, %v992_v41 }
 0x397   :  { %8009 = vmatpush1.bf16.msra.mxu1 %v10766_v40  ;;  %7682 = vmatprep.subr.bf16.mxu0 %v10773_v50  ;;  %v995_v40 = vld [vmem:[#allocation8 + $0x650] sm:$0xff] }
 0x398   :  { %8010 = vmatprep.subr.bf16.mxu1 %v10775_v57  ;;  %v999_v50 = vld [vmem:[#allocation8 + $0x670] sm:$0xff]  ;;  %v996_v57 = vld [vmem:[#allocation8 + $0x658] sm:$0xff] }
 0x399   :  { %v10821_v52 = vcombine.high %v995_v40, %v999_v50  ;;  %v10820_v11 = vcombine.low %v995_v40, %v999_v50  ;;  %v10822_v63 = vcombine.low %v996_v57, %v1000_v38  ;;  %v1040_v40 = vld [vmem:[#allocation8 + $0x7b8] sm:$0xff] }
 0x39a   :  { %7683 = vmatpush1.bf16.msra.mxu0 %v10772_v47  ;;  %v10823_v47 = vcombine.high %v996_v57, %v1000_v38 }
 0x39b   :  { %8011 = vmatpush1.bf16.msra.mxu1 %v10774_v55  ;;  %7684 = vmatprep.subr.bf16.mxu0 %v10781_v58  ;;  %v1003_v55 = vld [vmem:[#allocation8 + $0x690] sm:$0xff] }
 0x39c   :  { %8012 = vmatprep.subr.bf16.mxu1 %v10783_v60  ;;  %v1007_v58 = vld [vmem:[#allocation8 + $0x6b0] sm:$0xff]  ;;  %v1004_v60 = vld [vmem:[#allocation8 + $0x698] sm:$0xff] }
 0x39d   :  { %v10829_v36 = vcombine.high %v1003_v55, %v1007_v58  ;;  %v10828_v6 = vcombine.low %v1003_v55, %v1007_v58  ;;  %v10830_v10 = vcombine.low %v1004_v60, %v1008_v61  ;;  %v1048_v55 = vld [vmem:[#allocation8 + $0x7f8] sm:$0xff] }
 0x39e   :  { %7685 = vmatpush1.bf16.msra.mxu0 %v10780_v0  ;;  %v10831_v0 = vcombine.high %v1004_v60, %v1008_v61 }
 0x39f   :  { %8013 = vmatpush1.bf16.msra.mxu1 %v10782_v2  ;;  %7686 = vmatprep.subr.bf16.mxu0 %v10789_v32  ;;  %v1011_v2 = vld [vmem:[#allocation8 + $0x6d0] sm:$0xff] }
 0x3a0   :  { %8014 = vmatprep.subr.bf16.mxu1 %v10791_v8  ;;  %v1015_v32 = vld [vmem:[#allocation8 + $0x6f0] sm:$0xff]  ;;  %v1012_v8 = vld [vmem:[#allocation8 + $0x6d8] sm:$0xff] }
 0x3a1   :  { %v10837_v13 = vcombine.high %v1011_v2, %v1015_v32  ;;  %v10836_v23 = vcombine.low %v1011_v2, %v1015_v32  ;;  %v10838_v25 = vcombine.low %v1012_v8, %v1016_v27  ;;  %v1056_v2 = vld [vmem:[#allocation8 + $0x838] sm:$0xff] }
 0x3a2   :  { %7687 = vmatpush1.bf16.msra.mxu0 %v10788_v19  ;;  %v10839_v19 = vcombine.high %v1012_v8, %v1016_v27 }
 0x3a3   :  { %8015 = vmatpush1.bf16.msra.mxu1 %v10790_v31  ;;  %7688 = vmatprep.subr.bf16.mxu0 %v10797_v1  ;;  %v1019_v31 = vld [vmem:[#allocation8 + $0x710] sm:$0xff] }
 0x3a4   :  { %8016 = vmatprep.subr.bf16.mxu1 %v10799_v49  ;;  %v1023_v1 = vld [vmem:[#allocation8 + $0x730] sm:$0xff]  ;;  %v1020_v49 = vld [vmem:[#allocation8 + $0x718] sm:$0xff] }
 0x3a5   :  { %v10845_v28 = vcombine.high %v1019_v31, %v1023_v1  ;;  %v10844_v24 = vcombine.low %v1019_v31, %v1023_v1  ;;  %v10846_v59 = vcombine.low %v1020_v49, %v1024_v5  ;;  %v1060_v31 = vld [vmem:[#allocation8 + $0x858] sm:$0xff] }
 0x3a6   :  { %7689 = vmatpush1.bf16.msra.mxu0 %v10796_v29  ;;  %v10847_v29 = vcombine.high %v1020_v49, %v1024_v5  ;;  %v1064_v1 = vld [vmem:[#allocation8 + $0x878] sm:$0xff] }
 0x3a7   :  { %8017 = vmatpush1.bf16.msra.mxu1 %v10798_v14  ;;  %7690 = vmatprep.subr.bf16.mxu0 %v10805_v35  ;;  %v1027_v14 = vld [vmem:[#allocation8 + $0x750] sm:$0xff] }
 0x3a8   :  { %8018 = vmatprep.subr.bf16.mxu1 %v10807_v48  ;;  %v1031_v35 = vld [vmem:[#allocation8 + $0x770] sm:$0xff]  ;;  %v1028_v48 = vld [vmem:[#allocation8 + $0x758] sm:$0xff] }
 0x3a9   :  { %v10853_v41 = vcombine.high %v1027_v14, %v1031_v35  ;;  %v10852_v50 = vcombine.low %v1027_v14, %v1031_v35  ;;  %v10854_v57 = vcombine.low %v1028_v48, %v1032_v37  ;;  %v1072_v14 = vld [vmem:[#allocation8 + $0x8b8] sm:$0xff] }
 0x3aa   :  { %7691 = vmatpush1.bf16.msra.mxu0 %v10804_v42  ;;  %v10855_v42 = vcombine.high %v1028_v48, %v1032_v37  ;;  %v10886_v48 = vcombine.low %v1060_v31, %v1064_v1 }
 0x3ab   :  { %8019 = vmatpush1.bf16.msra.mxu1 %v10806_v43  ;;  %7692 = vmatprep.subr.bf16.mxu0 %v10813_v45  ;;  %v1035_v43 = vld [vmem:[#allocation8 + $0x790] sm:$0xff] }
 0x3ac   :  { %8020 = vmatprep.subr.bf16.mxu1 %v10815_v20  ;;  %v1039_v45 = vld [vmem:[#allocation8 + $0x7b0] sm:$0xff]  ;;  %v1036_v20 = vld [vmem:[#allocation8 + $0x798] sm:$0xff] }
 0x3ad   :  { %v10861_v38 = vcombine.high %v1035_v43, %v1039_v45  ;;  %v10860_v58 = vcombine.low %v1035_v43, %v1039_v45  ;;  %v10862_v60 = vcombine.low %v1036_v20, %v1040_v40  ;;  %v1080_v43 = vld [vmem:[#allocation8 + $0x8f8] sm:$0xff] }
 0x3ae   :  { %7693 = vmatpush1.bf16.msra.mxu0 %v10812_v51  ;;  %v10863_v51 = vcombine.high %v1036_v20, %v1040_v40 }
 0x3af   :  { %8021 = vmatpush1.bf16.msra.mxu1 %v10814_v53  ;;  %7694 = vmatprep.subr.bf16.mxu0 %v10821_v52  ;;  %v1043_v53 = vld [vmem:[#allocation8 + $0x7d0] sm:$0xff] }
 0x3b0   :  { %8022 = vmatprep.subr.bf16.mxu1 %v10823_v47  ;;  %v1047_v52 = vld [vmem:[#allocation8 + $0x7f0] sm:$0xff]  ;;  %v1044_v47 = vld [vmem:[#allocation8 + $0x7d8] sm:$0xff] }
 0x3b1   :  { %v10869_v61 = vcombine.high %v1043_v53, %v1047_v52  ;;  %v10868_v32 = vcombine.low %v1043_v53, %v1047_v52  ;;  %v10870_v8 = vcombine.low %v1044_v47, %v1048_v55 }
 0x3b2   :  { %7695 = vmatpush1.bf16.msra.mxu0 %v10820_v11  ;;  %v10871_v11 = vcombine.high %v1044_v47, %v1048_v55  ;;  %v1091_v55 = vld [vmem:[#allocation8 + $0x950] sm:$0xff] }
 0x3b3   :  { %8023 = vmatpush1.bf16.msra.mxu1 %v10822_v63  ;;  %7696 = vmatprep.subr.bf16.mxu0 %v10829_v36  ;;  %v1051_v63 = vld [vmem:[#allocation8 + $0x810] sm:$0xff] }
 0x3b4   :  { %8024 = vmatprep.subr.bf16.mxu1 %v10831_v0  ;;  %v1055_v36 = vld [vmem:[#allocation8 + $0x830] sm:$0xff]  ;;  %v1052_v0 = vld [vmem:[#allocation8 + $0x818] sm:$0xff] }
 0x3b5   :  { %v10877_v27 = vcombine.high %v1051_v63, %v1055_v36  ;;  %v10878_v49 = vcombine.low %v1052_v0, %v1056_v2 }
 0x3b6   :  { %7697 = vmatpush1.bf16.msra.mxu0 %v10828_v6  ;;  %v10879_v6 = vcombine.high %v1052_v0, %v1056_v2  ;;  %v1099_v2 = vld [vmem:[#allocation8 + $0x990] sm:$0xff] }
 0x3b7   :  { %8025 = vmatpush1.bf16.msra.mxu1 %v10830_v10  ;;  %7698 = vmatprep.subr.bf16.mxu0 %v10837_v13  ;;  %v1059_v10 = vld [vmem:[#allocation8 + $0x850] sm:$0xff] }
 0x3b8   :  { %8026 = vmatprep.subr.bf16.mxu1 %v10839_v19  ;;  %v1063_v13 = vld [vmem:[#allocation8 + $0x870] sm:$0xff]  ;;  %v10876_v19 = vcombine.low %v1051_v63, %v1055_v36 }
 0x3b9   :  { %v10885_v5 = vcombine.high %v1059_v10, %v1063_v13  ;;  %v10884_v35 = vcombine.low %v1059_v10, %v1063_v13 }
 0x3ba   :  { %7699 = vmatpush1.bf16.msra.mxu0 %v10836_v23  ;;  %v1067_v23 = vld [vmem:[#allocation8 + $0x890] sm:$0xff] }
 0x3bb   :  { %8027 = vmatpush1.bf16.msra.mxu1 %v10838_v25  ;;  %7700 = vmatprep.subr.bf16.mxu0 %v10845_v28  ;;  %v1071_v25 = vld [vmem:[#allocation8 + $0x8b0] sm:$0xff]  ;;  %v10887_v28 = vcombine.high %v1060_v31, %v1064_v1 }
 0x3bc   :  { %8028 = vmatprep.subr.bf16.mxu1 %v10847_v29  ;;  %v1068_v29 = vld [vmem:[#allocation8 + $0x898] sm:$0xff]  ;;  %v10893_v37 = vcombine.high %v1067_v23, %v1071_v25  ;;  %v10892_v45 = vcombine.low %v1067_v23, %v1071_v25  ;;  %v1107_v31 = vld [vmem:[#allocation8 + $0x9d0] sm:$0xff] }
 0x3bd   :  { %v1111_v1 = vld [vmem:[#allocation8 + $0x9f0] sm:$0xff] }
 0x3be   :  { %7701 = vmatpush1.bf16.msra.mxu0 %v10844_v24  ;;  %v10895_v24 = vcombine.high %v1068_v29, %v1072_v14 }
 0x3bf   :  { %8029 = vmatpush1.bf16.msra.mxu1 %v10846_v59  ;;  %7702 = vmatprep.subr.bf16.mxu0 %v10853_v41  ;;  %v1075_v59 = vld [vmem:[#allocation8 + $0x8d0] sm:$0xff] }
 0x3c0   :  { %8030 = vmatprep.subr.bf16.mxu1 %v10855_v42  ;;  %v1079_v41 = vld [vmem:[#allocation8 + $0x8f0] sm:$0xff]  ;;  %v1076_v42 = vld [vmem:[#allocation8 + $0x8d8] sm:$0xff] }
 0x3c1   :  { %v10901_v20 = vcombine.high %v1075_v59, %v1079_v41  ;;  %v10903_v40 = vcombine.high %v1076_v42, %v1080_v43  ;;  %v10902_v53 = vcombine.low %v1076_v42, %v1080_v43  ;;  %v1123_v43 = vld [vmem:[#allocation8 + $0xa50] sm:$0xff] }
 0x3c2   :  { %7703 = vmatpush1.bf16.msra.mxu0 %v10852_v50  ;;  %v1083_v50 = vld [vmem:[#allocation8 + $0x910] sm:$0xff] }
 0x3c3   :  { %8031 = vmatpush1.bf16.msra.mxu1 %v10854_v57  ;;  %7704 = vmatprep.subr.bf16.mxu0 %v10861_v38  ;;  %v1087_v57 = vld [vmem:[#allocation8 + $0x930] sm:$0xff]  ;;  %v1084_v38 = vld [vmem:[#allocation8 + $0x918] sm:$0xff] }
 0x3c4   :  { %8032 = vmatprep.subr.bf16.mxu1 %v10863_v51  ;;  %v1088_v51 = vld [vmem:[#allocation8 + $0x938] sm:$0xff]  ;;  %v10909_v52 = vcombine.high %v1083_v50, %v1087_v57 }
 0x3c5   :  { %v10911_v47 = vcombine.high %v1084_v38, %v1088_v51  ;;  %v10910_v63 = vcombine.low %v1084_v38, %v1088_v51  ;;  %v1131_v51 = vld [vmem:[#allocation8 + $0xa90] sm:$0xff] }
 0x3c6   :  { %7705 = vmatpush1.bf16.msra.mxu0 %v10860_v58  ;;  %v1095_v58 = vld [vmem:[#allocation8 + $0x970] sm:$0xff] }
 0x3c7   :  { %8033 = vmatpush1.bf16.msra.mxu1 %v10862_v60  ;;  %7706 = vmatprep.subr.bf16.mxu0 %v10869_v61  ;;  %v1092_v60 = vld [vmem:[#allocation8 + $0x958] sm:$0xff]  ;;  %v10917_v36 = vcombine.high %v1091_v55, %v1095_v58 }
 0x3c8   :  { %8034 = vmatprep.subr.bf16.mxu1 %v10871_v11  ;;  %v1096_v61 = vld [vmem:[#allocation8 + $0x978] sm:$0xff]  ;;  %v10908_v11 = vcombine.low %v1083_v50, %v1087_v57 }
 0x3c9   :  { %v10919_v0 = vcombine.high %v1092_v60, %v1096_v61  ;;  %v10918_v10 = vcombine.low %v1092_v60, %v1096_v61  ;;  %v1139_v61 = vld [vmem:[#allocation8 + $0xad0] sm:$0xff] }
 0x3ca   :  { %7707 = vmatpush1.bf16.msra.mxu0 %v10868_v32  ;;  %v1103_v32 = vld [vmem:[#allocation8 + $0x9b0] sm:$0xff] }
 0x3cb   :  { %8035 = vmatpush1.bf16.msra.mxu1 %v10870_v8  ;;  %7717 = vmatprep.subr.bf16.mxu0 %v10877_v27  ;;  %v1100_v8 = vld [vmem:[#allocation8 + $0x998] sm:$0xff]  ;;  %v10925_v13 = vcombine.high %v1099_v2, %v1103_v32  ;;  %v10924_v23 = vcombine.low %v1099_v2, %v1103_v32 }
 0x3cc   :  { %8045 = vmatprep.subr.bf16.mxu1 %v10879_v6  ;;  %v1104_v27 = vld [vmem:[#allocation8 + $0x9b8] sm:$0xff]  ;;  %v10916_v6 = vcombine.low %v1091_v55, %v1095_v58 }
 0x3cd   :  { %7709 = vmatmul.mubr.bf16.vlgmr.msra.gmra.mrb[20].mxu0 %v13071_v21  ;;  %v10926_v25 = vcombine.low %v1100_v8, %v1104_v27 }
 0x3ce   :  { %8037 = vmatmul.mubr.bf16.vlgmr.msra.gmra.mrb[20].mxu1 %v13071_v21  ;;  %7718 = vmatpush1.bf16.msra.mxu0 %v10876_v19  ;;  %v10894_v21 = vcombine.low %v1068_v29, %v1072_v14  ;;  %v10927_v19 = vcombine.high %v1100_v8, %v1104_v27  ;;  %v1115_v14 = vld [vmem:[#allocation8 + $0xa10] sm:$0xff] }
 0x3cf   :  { %7749 = vmatprep.mubr.bf16.mxu0 %v13073_v33  ;;  %8046 = vmatpush1.bf16.msra.mxu1 %v10878_v49  ;;  %v1108_v49 = vld [vmem:[#allocation8 + $0x9d8] sm:$0xff]  ;;  %v1147_v27 = vld [vmem:[#allocation8 + $0xb10] sm:$0xff] }
 0x3d0   :  { %8077 = vmatprep.mubr.bf16.mxu1 %v13073_v33  ;;  %7719 = vmatprep.subr.bf16.mxu0 %v10885_v5  ;;  %v10900_v33 = vcombine.low %v1075_v59, %v1079_v41  ;;  %v1112_v5 = vld [vmem:[#allocation8 + $0x9f8] sm:$0xff] }
 0x3d1   :  { %8047 = vmatprep.subr.bf16.mxu1 %v10887_v28  ;;  %v10933_v28 = vcombine.high %v1107_v31, %v1111_v1  ;;  %v10935_v29 = vcombine.high %v1108_v49, %v1112_v5  ;;  %v10934_v59 = vcombine.low %v1108_v49, %v1112_v5  ;;  %v1155_v5 = vld [vmem:[#allocation8 + $0xb50] sm:$0xff] }
 0x3d2   :  { %7720 = vmatpush1.bf16.msra.mxu0 %v10884_v35  ;;  %v1119_v35 = vld [vmem:[#allocation8 + $0xa30] sm:$0xff] }
 0x3d3   :  { %8048 = vmatpush1.bf16.msra.mxu1 %v10886_v48  ;;  %7721 = vmatprep.subr.bf16.mxu0 %v10893_v37  ;;  %v1116_v48 = vld [vmem:[#allocation8 + $0xa18] sm:$0xff]  ;;  %v10941_v41 = vcombine.high %v1115_v14, %v1119_v35 }
 0x3d4   :  { %8049 = vmatprep.subr.bf16.mxu1 %v10895_v24  ;;  %v1120_v37 = vld [vmem:[#allocation8 + $0xa38] sm:$0xff]  ;;  %v10932_v24 = vcombine.low %v1107_v31, %v1111_v1 }
 0x3d5   :  { %v10943_v42 = vcombine.high %v1116_v48, %v1120_v37  ;;  %v10942_v50 = vcombine.low %v1116_v48, %v1120_v37  ;;  %v1163_v37 = vld [vmem:[#allocation8 + $0xb90] sm:$0xff] }
 0x3d6   :  { %7722 = vmatpush1.bf16.msra.mxu0 %v10892_v45  ;;  %v1127_v45 = vld [vmem:[#allocation8 + $0xa70] sm:$0xff] }
 0x3d7   :  { %8050 = vmatpush1.bf16.msra.mxu1 %v10894_v21  ;;  %7723 = vmatprep.subr.bf16.mxu0 %v10901_v20  ;;  %v1124_v21 = vld [vmem:[#allocation8 + $0xa58] sm:$0xff]  ;;  %v10949_v57 = vcombine.high %v1123_v43, %v1127_v45 }
 0x3d8   :  { %8051 = vmatprep.subr.bf16.mxu1 %v10903_v40  ;;  %v1128_v20 = vld [vmem:[#allocation8 + $0xa78] sm:$0xff]  ;;  %v10940_v40 = vcombine.low %v1115_v14, %v1119_v35 }
 0x3d9   :  { %v10951_v38 = vcombine.high %v1124_v21, %v1128_v20  ;;  %v10950_v55 = vcombine.low %v1124_v21, %v1128_v20  ;;  %v1171_v20 = vld [vmem:[#allocation8 + $0xbd0] sm:$0xff] }
 0x3da   :  { %7724 = vmatpush1.bf16.msra.mxu0 %v10900_v33  ;;  %v1135_v33 = vld [vmem:[#allocation8 + $0xab0] sm:$0xff] }
 0x3db   :  { %8052 = vmatpush1.bf16.msra.mxu1 %v10902_v53  ;;  %7725 = vmatprep.subr.bf16.mxu0 %v10909_v52  ;;  %v1132_v53 = vld [vmem:[#allocation8 + $0xa98] sm:$0xff]  ;;  %v10957_v58 = vcombine.high %v1131_v51, %v1135_v33 }
 0x3dc   :  { %8053 = vmatprep.subr.bf16.mxu1 %v10911_v47  ;;  %v1136_v52 = vld [vmem:[#allocation8 + $0xab8] sm:$0xff]  ;;  %v10948_v47 = vcombine.low %v1123_v43, %v1127_v45 }
 0x3dd   :  { %v10959_v60 = vcombine.high %v1132_v53, %v1136_v52  ;;  %v10958_v2 = vcombine.low %v1132_v53, %v1136_v52  ;;  %v1179_v52 = vld [vmem:[#allocation8 + $0xc10] sm:$0xff] }
 0x3de   :  { %7726 = vmatpush1.bf16.msra.mxu0 %v10908_v11  ;;  %v1143_v11 = vld [vmem:[#allocation8 + $0xaf0] sm:$0xff] }
 0x3df   :  { %8054 = vmatpush1.bf16.msra.mxu1 %v10910_v63  ;;  %7727 = vmatprep.subr.bf16.mxu0 %v10917_v36  ;;  %v1140_v63 = vld [vmem:[#allocation8 + $0xad8] sm:$0xff]  ;;  %v10965_v32 = vcombine.high %v1139_v61, %v1143_v11 }
 0x3e0   :  { %8055 = vmatprep.subr.bf16.mxu1 %v10919_v0  ;;  %v1144_v36 = vld [vmem:[#allocation8 + $0xaf8] sm:$0xff]  ;;  %v10956_v0 = vcombine.low %v1131_v51, %v1135_v33 }
 0x3e1   :  { %v10967_v8 = vcombine.high %v1140_v63, %v1144_v36  ;;  %v10966_v31 = vcombine.low %v1140_v63, %v1144_v36  ;;  %v1187_v36 = vld [vmem:[#allocation8 + $0xc50] sm:$0xff] }
 0x3e2   :  { %7728 = vmatpush1.bf16.msra.mxu0 %v10916_v6  ;;  %v1151_v6 = vld [vmem:[#allocation8 + $0xb30] sm:$0xff] }
 0x3e3   :  { %8056 = vmatpush1.bf16.msra.mxu1 %v10918_v10  ;;  %7729 = vmatprep.subr.bf16.mxu0 %v10925_v13  ;;  %v1148_v10 = vld [vmem:[#allocation8 + $0xb18] sm:$0xff]  ;;  %v10973_v1 = vcombine.high %v1147_v27, %v1151_v6 }
 0x3e4   :  { %8057 = vmatprep.subr.bf16.mxu1 %v10927_v19  ;;  %v1152_v13 = vld [vmem:[#allocation8 + $0xb38] sm:$0xff]  ;;  %v10964_v19 = vcombine.low %v1139_v61, %v1143_v11 }
 0x3e5   :  { %v10975_v49 = vcombine.high %v1148_v10, %v1152_v13  ;;  %v10974_v14 = vcombine.low %v1148_v10, %v1152_v13  ;;  %v1195_v10 = vld [vmem:[#allocation8 + $0xc90] sm:$0xff] }
 0x3e6   :  { %7730 = vmatpush1.bf16.msra.mxu0 %v10924_v23  ;;  %v1159_v23 = vld [vmem:[#allocation8 + $0xb70] sm:$0xff] }
 0x3e7   :  { %8058 = vmatpush1.bf16.msra.mxu1 %v10926_v25  ;;  %7731 = vmatprep.subr.bf16.mxu0 %v10933_v28  ;;  %v1156_v25 = vld [vmem:[#allocation8 + $0xb58] sm:$0xff]  ;;  %v10981_v35 = vcombine.high %v1155_v5, %v1159_v23  ;;  %v1199_v13 = vld [vmem:[#allocation8 + $0xcb0] sm:$0xff] }
 0x3e8   :  { %8059 = vmatprep.subr.bf16.mxu1 %v10935_v29  ;;  %v1160_v28 = vld [vmem:[#allocation8 + $0xb78] sm:$0xff]  ;;  %v10972_v29 = vcombine.low %v1147_v27, %v1151_v6 }
 0x3e9   :  { %v10983_v48 = vcombine.high %v1156_v25, %v1160_v28  ;;  %v10982_v43 = vcombine.low %v1156_v25, %v1160_v28  ;;  %v1203_v28 = vld [vmem:[#allocation8 + $0xcd0] sm:$0xff] }
 0x3ea   :  { %7732 = vmatpush1.bf16.msra.mxu0 %v10932_v24  ;;  %v1167_v24 = vld [vmem:[#allocation8 + $0xbb0] sm:$0xff] }
 0x3eb   :  { %8060 = vmatpush1.bf16.msra.mxu1 %v10934_v59  ;;  %7733 = vmatprep.subr.bf16.mxu0 %v10941_v41  ;;  %v1164_v59 = vld [vmem:[#allocation8 + $0xb98] sm:$0xff]  ;;  %v10989_v45 = vcombine.high %v1163_v37, %v1167_v24 }
 0x3ec   :  { %8061 = vmatprep.subr.bf16.mxu1 %v10943_v42  ;;  %v1168_v41 = vld [vmem:[#allocation8 + $0xbb8] sm:$0xff]  ;;  %v10980_v42 = vcombine.low %v1155_v5, %v1159_v23  ;;  %v11021_v23 = vcombine.high %v1195_v10, %v1199_v13 }
 0x3ed   :  { %v10991_v21 = vcombine.high %v1164_v59, %v1168_v41  ;;  %v10990_v51 = vcombine.low %v1164_v59, %v1168_v41  ;;  %v1211_v59 = vld [vmem:[#allocation8 + $0xd10] sm:$0xff] }
 0x3ee   :  { %7734 = vmatpush1.bf16.msra.mxu0 %v10940_v40  ;;  %v1175_v40 = vld [vmem:[#allocation8 + $0xbf0] sm:$0xff] }
 0x3ef   :  { %8062 = vmatpush1.bf16.msra.mxu1 %v10942_v50  ;;  %7735 = vmatprep.subr.bf16.mxu0 %v10949_v57  ;;  %v1172_v50 = vld [vmem:[#allocation8 + $0xbd8] sm:$0xff]  ;;  %v10997_v33 = vcombine.high %v1171_v20, %v1175_v40  ;;  %v1215_v41 = vld [vmem:[#allocation8 + $0xd30] sm:$0xff] }
 0x3f0   :  { %8063 = vmatprep.subr.bf16.mxu1 %v10951_v38  ;;  %v1176_v57 = vld [vmem:[#allocation8 + $0xbf8] sm:$0xff]  ;;  %v10988_v38 = vcombine.low %v1163_v37, %v1167_v24 }
 0x3f1   :  { %v10999_v53 = vcombine.high %v1172_v50, %v1176_v57  ;;  %v10998_v61 = vcombine.low %v1172_v50, %v1176_v57  ;;  %v1223_v50 = vld [vmem:[#allocation8 + $0xd70] sm:$0xff]  ;;  %v1220_v57 = vld [vmem:[#allocation8 + $0xd58] sm:$0xff] }
 0x3f2   :  { %7736 = vmatpush1.bf16.msra.mxu0 %v10948_v47  ;;  %v1183_v47 = vld [vmem:[#allocation8 + $0xc30] sm:$0xff] }
 0x3f3   :  { %8064 = vmatpush1.bf16.msra.mxu1 %v10950_v55  ;;  %7737 = vmatprep.subr.bf16.mxu0 %v10957_v58  ;;  %v1180_v55 = vld [vmem:[#allocation8 + $0xc18] sm:$0xff]  ;;  %v11005_v11 = vcombine.high %v1179_v52, %v1183_v47 }
 0x3f4   :  { %8065 = vmatprep.subr.bf16.mxu1 %v10959_v60  ;;  %v1184_v58 = vld [vmem:[#allocation8 + $0xc38] sm:$0xff]  ;;  %v10996_v60 = vcombine.low %v1171_v20, %v1175_v40  ;;  %v1219_v40 = vld [vmem:[#allocation8 + $0xd50] sm:$0xff] }
 0x3f5   :  { %v11007_v63 = vcombine.high %v1180_v55, %v1184_v58  ;;  %v11006_v27 = vcombine.low %v1180_v55, %v1184_v58  ;;  %v1231_v55 = vld [vmem:[#allocation8 + $0xdb0] sm:$0xff]  ;;  %v1228_v58 = vld [vmem:[#allocation8 + $0xd98] sm:$0xff] }
 0x3f6   :  { %7738 = vmatpush1.bf16.msra.mxu0 %v10956_v0  ;;  %v1191_v0 = vld [vmem:[#allocation8 + $0xc70] sm:$0xff] }
 0x3f7   :  { %8066 = vmatpush1.bf16.msra.mxu1 %v10958_v2  ;;  %7739 = vmatprep.subr.bf16.mxu0 %v10965_v32  ;;  %v11004_v2 = vcombine.low %v1179_v52, %v1183_v47  ;;  %v1188_v32 = vld [vmem:[#allocation8 + $0xc58] sm:$0xff]  ;;  %v11013_v6 = vcombine.high %v1187_v36, %v1191_v0  ;;  %v1227_v47 = vld [vmem:[#allocation8 + $0xd90] sm:$0xff] }
 0x3f8   :  { %8067 = vmatprep.subr.bf16.mxu1 %v10967_v8  ;;  %v1192_v8 = vld [vmem:[#allocation8 + $0xc78] sm:$0xff] }
 0x3f9   :  { %v11014_v5 = vcombine.low %v1188_v32, %v1192_v8 }
 0x3fa   :  { %7740 = vmatpush1.bf16.msra.mxu0 %v10964_v19  ;;  %v11015_v19 = vcombine.high %v1188_v32, %v1192_v8  ;;  %v1239_v32 = vld [vmem:[#allocation8 + $0xdf0] sm:$0xff] }
 0x3fb   :  { %8068 = vmatpush1.bf16.msra.mxu1 %v10966_v31  ;;  %7741 = vmatprep.subr.bf16.mxu0 %v10973_v1  ;;  %v1196_v31 = vld [vmem:[#allocation8 + $0xc98] sm:$0xff] }
 0x3fc   :  { %8069 = vmatprep.subr.bf16.mxu1 %v10975_v49  ;;  %v1200_v1 = vld [vmem:[#allocation8 + $0xcb8] sm:$0xff]  ;;  %v11012_v49 = vcombine.low %v1187_v36, %v1191_v0 }
 0x3fd   :  { %v11023_v25 = vcombine.high %v1196_v31, %v1200_v1 }
 0x3fe   :  { %7742 = vmatpush1.bf16.msra.mxu0 %v10972_v29  ;;  %v1207_v29 = vld [vmem:[#allocation8 + $0xcf0] sm:$0xff] }
 0x3ff   :  { %8070 = vmatpush1.bf16.msra.mxu1 %v10974_v14  ;;  %7743 = vmatprep.subr.bf16.mxu0 %v10981_v35  ;;  %v1204_v14 = vld [vmem:[#allocation8 + $0xcd8] sm:$0xff]  ;;  %v11029_v37 = vcombine.high %v1203_v28, %v1207_v29 }
 0x400   :  { %8071 = vmatprep.subr.bf16.mxu1 %v10983_v48  ;;  %v1208_v35 = vld [vmem:[#allocation8 + $0xcf8] sm:$0xff]  ;;  %v11020_v48 = vcombine.low %v1195_v10, %v1199_v13 }
 0x401   :  { %v11031_v24 = vcombine.high %v1204_v14, %v1208_v35  ;;  %v1240_v10 = vld [vmem:[#allocation8 + $0xdf8] sm:$0xff] }
 0x402   :  { %7744 = vmatpush1.bf16.msra.mxu0 %v10980_v42  ;;  %v1212_v42 = vld [vmem:[#allocation8 + $0xd18] sm:$0xff] }
 0x403   :  { %8072 = vmatpush1.bf16.msra.mxu1 %v10982_v43  ;;  %7745 = vmatprep.subr.bf16.mxu0 %v10989_v45  ;;  %v1216_v43 = vld [vmem:[#allocation8 + $0xd38] sm:$0xff]  ;;  %v11030_v45 = vcombine.low %v1204_v14, %v1208_v35  ;;  %v1247_v14 = vld [vmem:[#allocation8 + $0xe30] sm:$0xff] }
 0x404   :  { %8073 = vmatprep.subr.bf16.mxu1 %v10991_v21  ;;  %v11037_v21 = vcombine.high %v1211_v59, %v1215_v41  ;;  %v11039_v20 = vcombine.high %v1212_v42, %v1216_v43  ;;  %v1244_v35 = vld [vmem:[#allocation8 + $0xe18] sm:$0xff] }
 0x406   :  { %7746 = vmatpush1.bf16.msra.mxu0 %v10988_v38  ;;  %v1224_v38 = vld [vmem:[#allocation8 + $0xd78] sm:$0xff] }
 0x407   :  { %8074 = vmatpush1.bf16.msra.mxu1 %v10990_v51  ;;  %7747 = vmatprep.subr.bf16.mxu0 %v10997_v33  ;;  %v11036_v51 = vcombine.low %v1211_v59, %v1215_v41  ;;  %v11038_v33 = vcombine.low %v1212_v42, %v1216_v43  ;;  %v11047_v52 = vcombine.high %v1220_v57, %v1224_v38  ;;  %v1251_v41 = vld [vmem:[#allocation8 + $0xe50] sm:$0xff]  ;;  %v1252_v43 = vld [vmem:[#allocation8 + $0xe58] sm:$0xff] }
 0x408   :  { %8075 = vmatprep.subr.bf16.mxu1 %v10999_v53  ;;  %v11045_v53 = vcombine.high %v1219_v40, %v1223_v50  ;;  %v1255_v42 = vld [vmem:[#allocation8 + $0xe70] sm:$0xff] }
 0x40a   :  { %7748 = vmatpush1.bf16.msra.mxu0 %v10996_v60  ;;  %v1232_v60 = vld [vmem:[#allocation8 + $0xdb8] sm:$0xff] }
 0x40b   :  { %8076 = vmatpush1.bf16.msra.mxu1 %v10998_v61  ;;  %7758 = vmatprep.subr.bf16.mxu0 %v11005_v11  ;;  %v11044_v61 = vcombine.low %v1219_v40, %v1223_v50  ;;  %v11046_v11 = vcombine.low %v1220_v57, %v1224_v38  ;;  %v11055_v0 = vcombine.high %v1228_v58, %v1232_v60  ;;  %v1259_v50 = vld [vmem:[#allocation8 + $0xe90] sm:$0xff]  ;;  %v1260_v38 = vld [vmem:[#allocation8 + $0xe98] sm:$0xff] }
 0x40c   :  { %8086 = vmatprep.subr.bf16.mxu1 %v11007_v63  ;;  %v11053_v63 = vcombine.high %v1227_v47, %v1231_v55  ;;  %v1263_v57 = vld [vmem:[#allocation8 + $0xeb0] sm:$0xff] }
 0x40d   :  { %7750 = vmatmul.mubr.bf16.vlgmr.msra.gmra.mrb[20].mxu0 %v13085_v44 }
 0x40e   :  { %8078 = vmatmul.mubr.bf16.vlgmr.msra.gmra.mrb[20].mxu1 %v13085_v44  ;;  %7759 = vmatpush1.bf16.msra.mxu0 %v11004_v2  ;;  %v11022_v44 = vcombine.low %v1196_v31, %v1200_v1  ;;  %v1235_v2 = vld [vmem:[#allocation8 + $0xdd0] sm:$0xff]  ;;  %v11052_v31 = vcombine.low %v1227_v47, %v1231_v55 }
 0x40f   :  { %7790 = vmatprep.mubr.bf16.mxu0 %v13087_v56  ;;  %8087 = vmatpush1.bf16.msra.mxu1 %v11006_v27  ;;  %v1267_v55 = vld [vmem:[#allocation8 + $0xed0] sm:$0xff] }
 0x410   :  { %8118 = vmatprep.mubr.bf16.mxu1 %v13087_v56  ;;  %7760 = vmatprep.subr.bf16.mxu0 %v11013_v6  ;;  %v11028_v56 = vcombine.low %v1203_v28, %v1207_v29  ;;  %v1236_v6 = vld [vmem:[#allocation8 + $0xdd8] sm:$0xff]  ;;  %v1243_v29 = vld [vmem:[#allocation8 + $0xe10] sm:$0xff] }
 0x411   :  { %8088 = vmatprep.subr.bf16.mxu1 %v11015_v19  ;;  %v11063_v28 = vcombine.high %v1236_v6, %v1240_v10 }
 0x412   :  { %7761 = vmatpush1.bf16.msra.mxu0 %v11012_v49 }
 0x413   :  { %8089 = vmatpush1.bf16.msra.mxu1 %v11014_v5  ;;  %7762 = vmatprep.subr.bf16.mxu0 %v11021_v23  ;;  %v11054_v5 = vcombine.low %v1228_v58, %v1232_v60  ;;  %v11061_v23 = vcombine.high %v1235_v2, %v1239_v32  ;;  %v1271_v58 = vld [vmem:[#allocation8 + $0xef0] sm:$0xff]  ;;  %v1268_v60 = vld [vmem:[#allocation8 + $0xed8] sm:$0xff] }
 0x414   :  { %8090 = vmatprep.subr.bf16.mxu1 %v11023_v25 }
 0x416   :  { %7763 = vmatpush1.bf16.msra.mxu0 %v11020_v48  ;;  %v1248_v48 = vld [vmem:[#allocation8 + $0xe38] sm:$0xff] }
 0x417   :  { %8091 = vmatpush1.bf16.msra.mxu1 %v11022_v44  ;;  %7764 = vmatprep.subr.bf16.mxu0 %v11029_v37  ;;  %v11060_v44 = vcombine.low %v1235_v2, %v1239_v32  ;;  %v11062_v37 = vcombine.low %v1236_v6, %v1240_v10  ;;  %v11071_v59 = vcombine.high %v1244_v35, %v1248_v48  ;;  %v1275_v32 = vld [vmem:[#allocation8 + $0xf10] sm:$0xff]  ;;  %v1276_v10 = vld [vmem:[#allocation8 + $0xf18] sm:$0xff] }
 0x418   :  { %8092 = vmatprep.subr.bf16.mxu1 %v11031_v24  ;;  %v11069_v24 = vcombine.high %v1243_v29, %v1247_v14  ;;  %v1279_v6 = vld [vmem:[#allocation8 + $0xf30] sm:$0xff] }
 0x41a   :  { %7765 = vmatpush1.bf16.msra.mxu0 %v11028_v56  ;;  %v1256_v56 = vld [vmem:[#allocation8 + $0xe78] sm:$0xff] }
 0x41b   :  { %8093 = vmatpush1.bf16.msra.mxu1 %v11030_v45  ;;  %7766 = vmatprep.subr.bf16.mxu0 %v11037_v21  ;;  %v11068_v45 = vcombine.low %v1243_v29, %v1247_v14  ;;  %v11070_v21 = vcombine.low %v1244_v35, %v1248_v48  ;;  %v11079_v40 = vcombine.high %v1252_v43, %v1256_v56  ;;  %v1288_v29 = vld [vmem:[#allocation8 + $0xf78] sm:$0xff] }
 0x41c   :  { %8094 = vmatprep.subr.bf16.mxu1 %v11039_v20  ;;  %v11077_v20 = vcombine.high %v1251_v41, %v1255_v42  ;;  %v11100_v14 = vcombine.low %v1275_v32, %v1279_v6 }
 0x41e   :  { %7767 = vmatpush1.bf16.msra.mxu0 %v11036_v51  ;;  %v1264_v51 = vld [vmem:[#allocation8 + $0xeb8] sm:$0xff] }
 0x41f   :  { %8095 = vmatpush1.bf16.msra.mxu1 %v11038_v33  ;;  %7768 = vmatprep.subr.bf16.mxu0 %v11045_v53  ;;  %v11076_v33 = vcombine.low %v1251_v41, %v1255_v42  ;;  %v11078_v53 = vcombine.low %v1252_v43, %v1256_v56  ;;  %v11087_v47 = vcombine.high %v1260_v38, %v1264_v51  ;;  %v1296_v41 = vld [vmem:[#allocation8 + $0xfb8] sm:$0xff] }
 0x420   :  { %v13159_v36 = vpop.f32.mrb[16].mxu0  ;;  %8096 = vmatprep.subr.bf16.mxu1 %v11047_v52  ;;  %v11085_v52 = vcombine.high %v1259_v50, %v1263_v57 }
 0x421   :  { %v13161_v8 = vpop.f32.mrb[16].mxu1  ;;  %v13163_v27 = vpop.f32.mrb[17].mxu0 }
 0x422   :  { %v13165_v13 = vpop.f32.mrb[17].mxu1  ;;  %v7304_v19 = vpop.f32.mrb[18].mxu0  ;;  %7769 = vmatpush1.bf16.msra.mxu0 %v11044_v61  ;;  %v1272_v61 = vld [vmem:[#allocation8 + $0xef8] sm:$0xff] }
 0x423   :  { %v7632_v1 = vpop.f32.mrb[18].mxu1  ;;  %8097 = vmatpush1.bf16.msra.mxu1 %v11046_v11  ;;  %v7305_v49 = vpop.f32.mrb[19].mxu0  ;;  %7770 = vmatprep.subr.bf16.mxu0 %v11053_v63  ;;  %v11084_v11 = vcombine.low %v1259_v50, %v1263_v57  ;;  %v11086_v63 = vcombine.low %v1260_v38, %v1264_v51  ;;  %v11095_v2 = vcombine.high %v1268_v60, %v1272_v61  ;;  %v1280_v19 = vld [vmem:[#allocation8 + $0xf38] sm:$0xff] }
 0x424   :  { %v7633_v25 = vpop.f32.mrb[19].mxu1  ;;  %8098 = vmatprep.subr.bf16.mxu1 %v11055_v0  ;;  %v11093_v0 = vcombine.high %v1267_v55, %v1271_v58  ;;  %v11094_v1 = vcombine.low %v1268_v60, %v1272_v61  ;;  %v11101_v49 = vcombine.high %v1275_v32, %v1279_v6  ;;  %v11102_v35 = vcombine.low %v1276_v10, %v1280_v19  ;;  %v1304_v50 = vld [vmem:[#allocation8 + $0xff8] sm:$0xff] }
 0x425   :  { %v1287_v25 = vld [vmem:[#allocation8 + $0xf70] sm:$0xff]  ;;  %v1316_v32 = vld [vmem:[#allocation8 + $0x1058] sm:$0xff] }
 0x426   :  { %7771 = vmatpush1.bf16.msra.mxu0 %v11052_v31  ;;  %v11092_v31 = vcombine.low %v1267_v55, %v1271_v58  ;;  %v1312_v55 = vld [vmem:[#allocation8 + $0x1038] sm:$0xff] }
 0x427   :  { %8099 = vmatpush1.bf16.msra.mxu1 %v11054_v5  ;;  %7772 = vmatprep.subr.bf16.mxu0 %v11061_v23  ;;  %v11103_v5 = vcombine.high %v1276_v10, %v1280_v19  ;;  %v1283_v23 = vld [vmem:[#allocation8 + $0xf50] sm:$0xff]  ;;  %v1320_v6 = vld [vmem:[#allocation8 + $0x1078] sm:$0xff] }
 0x428   :  { %8100 = vmatprep.subr.bf16.mxu1 %v11063_v28  ;;  %v1284_v28 = vld [vmem:[#allocation8 + $0xf58] sm:$0xff]  ;;  %v11109_v48 = vcombine.high %v1283_v23, %v1287_v25  ;;  %v11108_v42 = vcombine.low %v1283_v23, %v1287_v25 }
 0x429   :  { %v11110_v43 = vcombine.low %v1284_v28, %v1288_v29  ;;  %v1328_v23 = vld [vmem:[#allocation8 + $0x10b8] sm:$0xff] }
 0x42a   :  { %7773 = vmatpush1.bf16.msra.mxu0 %v11060_v44  ;;  %v11111_v44 = vcombine.high %v1284_v28, %v1288_v29  ;;  %v11142_v28 = vcombine.low %v1316_v32, %v1320_v6 }
 0x42b   :  { %8101 = vmatpush1.bf16.msra.mxu1 %v11062_v37  ;;  %7774 = vmatprep.subr.bf16.mxu0 %v11069_v24  ;;  %v1291_v37 = vld [vmem:[#allocation8 + $0xf90] sm:$0xff] }
 0x42c   :  { %8102 = vmatprep.subr.bf16.mxu1 %v11071_v59  ;;  %v1295_v24 = vld [vmem:[#allocation8 + $0xfb0] sm:$0xff]  ;;  %v1292_v59 = vld [vmem:[#allocation8 + $0xf98] sm:$0xff] }
 0x42d   :  { %v11117_v56 = vcombine.high %v1291_v37, %v1295_v24  ;;  %v11116_v57 = vcombine.low %v1291_v37, %v1295_v24  ;;  %v11118_v38 = vcombine.low %v1292_v59, %v1296_v41  ;;  %v1336_v37 = vld [vmem:[#allocation8 + $0x10f8] sm:$0xff] }
 0x42e   :  { %7775 = vmatpush1.bf16.msra.mxu0 %v11068_v45  ;;  %v11119_v45 = vcombine.high %v1292_v59, %v1296_v41 }
 0x42f   :  { %8103 = vmatpush1.bf16.msra.mxu1 %v11070_v21  ;;  %7776 = vmatprep.subr.bf16.mxu0 %v11077_v20  ;;  %v1299_v21 = vld [vmem:[#allocation8 + $0xfd0] sm:$0xff] }
 0x430   :  { %8104 = vmatprep.subr.bf16.mxu1 %v11079_v40  ;;  %v1303_v20 = vld [vmem:[#allocation8 + $0xff0] sm:$0xff]  ;;  %v1300_v40 = vld [vmem:[#allocation8 + $0xfd8] sm:$0xff] }
 0x431   :  { %v11125_v51 = vcombine.high %v1299_v21, %v1303_v20  ;;  %v11124_v58 = vcombine.low %v1299_v21, %v1303_v20  ;;  %v11126_v60 = vcombine.low %v1300_v40, %v1304_v50 }
 0x432   :  { %7777 = vmatpush1.bf16.msra.mxu0 %v11076_v33  ;;  %v11127_v33 = vcombine.high %v1300_v40, %v1304_v50  ;;  %v1347_v50 = vld [vmem:[#allocation8 + $0x1150] sm:$0xff] }
 0x433   :  { %8105 = vmatpush1.bf16.msra.mxu1 %v11078_v53  ;;  %7778 = vmatprep.subr.bf16.mxu0 %v11085_v52  ;;  %v1307_v53 = vld [vmem:[#allocation8 + $0x1010] sm:$0xff] }
 0x434   :  { %8106 = vmatprep.subr.bf16.mxu1 %v11087_v47  ;;  %v1311_v52 = vld [vmem:[#allocation8 + $0x1030] sm:$0xff]  ;;  %v1308_v47 = vld [vmem:[#allocation8 + $0x1018] sm:$0xff] }
 0x435   :  { %v11133_v61 = vcombine.high %v1307_v53, %v1311_v52  ;;  %v11134_v10 = vcombine.low %v1308_v47, %v1312_v55 }
 0x436   :  { %7779 = vmatpush1.bf16.msra.mxu0 %v11084_v11  ;;  %v11135_v11 = vcombine.high %v1308_v47, %v1312_v55  ;;  %v1355_v55 = vld [vmem:[#allocation8 + $0x1190] sm:$0xff] }
 0x437   :  { %8107 = vmatpush1.bf16.msra.mxu1 %v11086_v63  ;;  %7780 = vmatprep.subr.bf16.mxu0 %v11093_v0  ;;  %v1315_v63 = vld [vmem:[#allocation8 + $0x1050] sm:$0xff] }
 0x438   :  { %8108 = vmatprep.subr.bf16.mxu1 %v11095_v2  ;;  %v1319_v0 = vld [vmem:[#allocation8 + $0x1070] sm:$0xff]  ;;  %v11132_v2 = vcombine.low %v1307_v53, %v1311_v52 }
 0x439   :  { %v11141_v19 = vcombine.high %v1315_v63, %v1319_v0  ;;  %v11140_v25 = vcombine.low %v1315_v63, %v1319_v0 }
 0x43a   :  { %7781 = vmatpush1.bf16.msra.mxu0 %v11092_v31  ;;  %v1323_v31 = vld [vmem:[#allocation8 + $0x1090] sm:$0xff] }
 0x43b   :  { %8109 = vmatpush1.bf16.msra.mxu1 %v11094_v1  ;;  %7782 = vmatprep.subr.bf16.mxu0 %v11101_v49  ;;  %v1327_v1 = vld [vmem:[#allocation8 + $0x10b0] sm:$0xff]  ;;  %v11143_v49 = vcombine.high %v1316_v32, %v1320_v6 }
 0x43c   :  { %8110 = vmatprep.subr.bf16.mxu1 %v11103_v5  ;;  %v1324_v5 = vld [vmem:[#allocation8 + $0x1098] sm:$0xff]  ;;  %v11149_v29 = vcombine.high %v1323_v31, %v1327_v1  ;;  %v11148_v24 = vcombine.low %v1323_v31, %v1327_v1  ;;  %v1363_v32 = vld [vmem:[#allocation8 + $0x11d0] sm:$0xff] }
 0x43d   :  { %v1367_v6 = vld [vmem:[#allocation8 + $0x11f0] sm:$0xff] }
 0x43e   :  { %7783 = vmatpush1.bf16.msra.mxu0 %v11100_v14  ;;  %v11151_v14 = vcombine.high %v1324_v5, %v1328_v23 }
 0x43f   :  { %8111 = vmatpush1.bf16.msra.mxu1 %v11102_v35  ;;  %7784 = vmatprep.subr.bf16.mxu0 %v11109_v48  ;;  %v1331_v35 = vld [vmem:[#allocation8 + $0x10d0] sm:$0xff] }
 0x440   :  { %8112 = vmatprep.subr.bf16.mxu1 %v11111_v44  ;;  %v1335_v48 = vld [vmem:[#allocation8 + $0x10f0] sm:$0xff]  ;;  %v1332_v44 = vld [vmem:[#allocation8 + $0x10d8] sm:$0xff] }
 0x441   :  { %v11157_v59 = vcombine.high %v1331_v35, %v1335_v48  ;;  %v11159_v41 = vcombine.high %v1332_v44, %v1336_v37  ;;  %v11158_v21 = vcombine.low %v1332_v44, %v1336_v37  ;;  %v1379_v37 = vld [vmem:[#allocation8 + $0x1250] sm:$0xff] }
 0x442   :  { %7785 = vmatpush1.bf16.msra.mxu0 %v11108_v42  ;;  %v1339_v42 = vld [vmem:[#allocation8 + $0x1110] sm:$0xff] }
 0x443   :  { %8113 = vmatpush1.bf16.msra.mxu1 %v11110_v43  ;;  %7786 = vmatprep.subr.bf16.mxu0 %v11117_v56  ;;  %v1343_v43 = vld [vmem:[#allocation8 + $0x1130] sm:$0xff]  ;;  %v1340_v56 = vld [vmem:[#allocation8 + $0x1118] sm:$0xff] }
 0x444   :  { %8114 = vmatprep.subr.bf16.mxu1 %v11119_v45  ;;  %v1344_v45 = vld [vmem:[#allocation8 + $0x1138] sm:$0xff]  ;;  %v11165_v20 = vcombine.high %v1339_v42, %v1343_v43 }
 0x445   :  { %v11167_v40 = vcombine.high %v1340_v56, %v1344_v45  ;;  %v11166_v53 = vcombine.low %v1340_v56, %v1344_v45  ;;  %v1387_v45 = vld [vmem:[#allocation8 + $0x1290] sm:$0xff] }
 0x446   :  { %7787 = vmatpush1.bf16.msra.mxu0 %v11116_v57  ;;  %v1351_v57 = vld [vmem:[#allocation8 + $0x1170] sm:$0xff] }
 0x447   :  { %8115 = vmatpush1.bf16.msra.mxu1 %v11118_v38  ;;  %7788 = vmatprep.subr.bf16.mxu0 %v11125_v51  ;;  %v1348_v38 = vld [vmem:[#allocation8 + $0x1158] sm:$0xff]  ;;  %v11173_v52 = vcombine.high %v1347_v50, %v1351_v57 }
 0x448   :  { %8116 = vmatprep.subr.bf16.mxu1 %v11127_v33  ;;  %v1352_v51 = vld [vmem:[#allocation8 + $0x1178] sm:$0xff]  ;;  %v11164_v33 = vcombine.low %v1339_v42, %v1343_v43 }
 0x449   :  { %v11175_v47 = vcombine.high %v1348_v38, %v1352_v51  ;;  %v11174_v63 = vcombine.low %v1348_v38, %v1352_v51  ;;  %v1395_v51 = vld [vmem:[#allocation8 + $0x12d0] sm:$0xff] }
 0x44a   :  { %7789 = vmatpush1.bf16.msra.mxu0 %v11124_v58  ;;  %v1359_v58 = vld [vmem:[#allocation8 + $0x11b0] sm:$0xff] }
 0x44b   :  { %8117 = vmatpush1.bf16.msra.mxu1 %v11126_v60  ;;  %7799 = vmatprep.subr.bf16.mxu0 %v11133_v61  ;;  %v1356_v60 = vld [vmem:[#allocation8 + $0x1198] sm:$0xff]  ;;  %v11181_v0 = vcombine.high %v1355_v55, %v1359_v58  ;;  %v11180_v31 = vcombine.low %v1355_v55, %v1359_v58 }
 0x44c   :  { %8127 = vmatprep.subr.bf16.mxu1 %v11135_v11  ;;  %v1360_v61 = vld [vmem:[#allocation8 + $0x11b8] sm:$0xff]  ;;  %v11172_v11 = vcombine.low %v1347_v50, %v1351_v57 }
 0x44d   :  { %7791 = vmatmul.mubr.bf16.vlgmr.msra.gmra.mrb[20].mxu0 %v13100_v3  ;;  %v11182_v1 = vcombine.low %v1356_v60, %v1360_v61 }
 0x44e   :  { %8119 = vmatmul.mubr.bf16.vlgmr.msra.gmra.mrb[20].mxu1 %v13100_v3  ;;  %7800 = vmatpush1.bf16.msra.mxu0 %v11132_v2  ;;  %v11150_v3 = vcombine.low %v1324_v5, %v1328_v23  ;;  %v11183_v2 = vcombine.high %v1356_v60, %v1360_v61  ;;  %v1371_v23 = vld [vmem:[#allocation8 + $0x1210] sm:$0xff] }
 0x44f   :  { %7831 = vmatprep.mubr.bf16.mxu0 %v13102_v4  ;;  %8128 = vmatpush1.bf16.msra.mxu1 %v11134_v10  ;;  %v1364_v10 = vld [vmem:[#allocation8 + $0x11d8] sm:$0xff]  ;;  %v1403_v61 = vld [vmem:[#allocation8 + $0x1310] sm:$0xff] }
 0x450   :  { %8159 = vmatprep.mubr.bf16.mxu1 %v13102_v4  ;;  %7801 = vmatprep.subr.bf16.mxu0 %v11141_v19  ;;  %v11156_v4 = vcombine.low %v1331_v35, %v1335_v48  ;;  %v1368_v19 = vld [vmem:[#allocation8 + $0x11f8] sm:$0xff] }
 0x451   :  { %8129 = vmatprep.subr.bf16.mxu1 %v11143_v49  ;;  %v11189_v49 = vcombine.high %v1363_v32, %v1367_v6  ;;  %v11191_v5 = vcombine.high %v1364_v10, %v1368_v19  ;;  %v11190_v35 = vcombine.low %v1364_v10, %v1368_v19  ;;  %v1411_v19 = vld [vmem:[#allocation8 + $0x1350] sm:$0xff] }
 0x452   :  { %7802 = vmatpush1.bf16.msra.mxu0 %v11140_v25  ;;  %v1375_v25 = vld [vmem:[#allocation8 + $0x1230] sm:$0xff] }
 0x453   :  { %8130 = vmatpush1.bf16.msra.mxu1 %v11142_v28  ;;  %7803 = vmatprep.subr.bf16.mxu0 %v11149_v29  ;;  %v1372_v28 = vld [vmem:[#allocation8 + $0x1218] sm:$0xff]  ;;  %v11197_v48 = vcombine.high %v1371_v23, %v1375_v25 }
 0x454   :  { %8131 = vmatprep.subr.bf16.mxu1 %v11151_v14  ;;  %v1376_v29 = vld [vmem:[#allocation8 + $0x1238] sm:$0xff]  ;;  %v11188_v14 = vcombine.low %v1363_v32, %v1367_v6 }
 0x455   :  { %v11199_v44 = vcombine.high %v1372_v28, %v1376_v29  ;;  %v11198_v42 = vcombine.low %v1372_v28, %v1376_v29  ;;  %v1419_v29 = vld [vmem:[#allocation8 + $0x1390] sm:$0xff] }
 0x456   :  { %7804 = vmatpush1.bf16.msra.mxu0 %v11148_v24  ;;  %v1383_v24 = vld [vmem:[#allocation8 + $0x1270] sm:$0xff] }
 0x457   :  { %8132 = vmatpush1.bf16.msra.mxu1 %v11150_v3  ;;  %7805 = vmatprep.subr.bf16.mxu0 %v11157_v59  ;;  %v1380_v3 = vld [vmem:[#allocation8 + $0x1258] sm:$0xff]  ;;  %v11205_v43 = vcombine.high %v1379_v37, %v1383_v24 }
 0x458   :  { %8133 = vmatprep.subr.bf16.mxu1 %v11159_v41  ;;  %v1384_v59 = vld [vmem:[#allocation8 + $0x1278] sm:$0xff]  ;;  %v11196_v41 = vcombine.low %v1371_v23, %v1375_v25 }
 0x459   :  { %v11207_v56 = vcombine.high %v1380_v3, %v1384_v59  ;;  %v11206_v50 = vcombine.low %v1380_v3, %v1384_v59  ;;  %v1427_v59 = vld [vmem:[#allocation8 + $0x13d0] sm:$0xff] }
 0x45a   :  { %7806 = vmatpush1.bf16.msra.mxu0 %v11156_v4  ;;  %v1391_v4 = vld [vmem:[#allocation8 + $0x12b0] sm:$0xff] }
 0x45b   :  { %8134 = vmatpush1.bf16.msra.mxu1 %v11158_v21  ;;  %7807 = vmatprep.subr.bf16.mxu0 %v11165_v20  ;;  %v1388_v21 = vld [vmem:[#allocation8 + $0x1298] sm:$0xff]  ;;  %v11213_v57 = vcombine.high %v1387_v45, %v1391_v4 }
 0x45c   :  { %8135 = vmatprep.subr.bf16.mxu1 %v11167_v40  ;;  %v1392_v20 = vld [vmem:[#allocation8 + $0x12b8] sm:$0xff]  ;;  %v11204_v40 = vcombine.low %v1379_v37, %v1383_v24 }
 0x45d   :  { %v11215_v38 = vcombine.high %v1388_v21, %v1392_v20  ;;  %v11214_v55 = vcombine.low %v1388_v21, %v1392_v20  ;;  %v1435_v20 = vld [vmem:[#allocation8 + $0x1410] sm:$0xff] }
 0x45e   :  { %7808 = vmatpush1.bf16.msra.mxu0 %v11164_v33  ;;  %v1399_v33 = vld [vmem:[#allocation8 + $0x12f0] sm:$0xff] }
 0x45f   :  { %8136 = vmatpush1.bf16.msra.mxu1 %v11166_v53  ;;  %7809 = vmatprep.subr.bf16.mxu0 %v11173_v52  ;;  %v1396_v53 = vld [vmem:[#allocation8 + $0x12d8] sm:$0xff]  ;;  %v11221_v58 = vcombine.high %v1395_v51, %v1399_v33 }
 0x460   :  { %8137 = vmatprep.subr.bf16.mxu1 %v11175_v47  ;;  %v1400_v52 = vld [vmem:[#allocation8 + $0x12f8] sm:$0xff]  ;;  %v11212_v47 = vcombine.low %v1387_v45, %v1391_v4 }
 0x461   :  { %v11223_v60 = vcombine.high %v1396_v53, %v1400_v52  ;;  %v11222_v32 = vcombine.low %v1396_v53, %v1400_v52  ;;  %v1443_v52 = vld [vmem:[#allocation8 + $0x1450] sm:$0xff] }
 0x462   :  { %7810 = vmatpush1.bf16.msra.mxu0 %v11172_v11  ;;  %v1407_v11 = vld [vmem:[#allocation8 + $0x1330] sm:$0xff] }
 0x463   :  { %8138 = vmatpush1.bf16.msra.mxu1 %v11174_v63  ;;  %7811 = vmatprep.subr.bf16.mxu0 %v11181_v0  ;;  %v1404_v63 = vld [vmem:[#allocation8 + $0x1318] sm:$0xff]  ;;  %v11229_v6 = vcombine.high %v1403_v61, %v1407_v11 }
 0x464   :  { %8139 = vmatprep.subr.bf16.mxu1 %v11183_v2  ;;  %v1408_v0 = vld [vmem:[#allocation8 + $0x1338] sm:$0xff]  ;;  %v11220_v2 = vcombine.low %v1395_v51, %v1399_v33 }
 0x465   :  { %v11231_v10 = vcombine.high %v1404_v63, %v1408_v0  ;;  %v11230_v23 = vcombine.low %v1404_v63, %v1408_v0  ;;  %v1451_v63 = vld [vmem:[#allocation8 + $0x1490] sm:$0xff] }
 0x466   :  { %7812 = vmatpush1.bf16.msra.mxu0 %v11180_v31  ;;  %v1415_v31 = vld [vmem:[#allocation8 + $0x1370] sm:$0xff] }
 0x467   :  { %8140 = vmatpush1.bf16.msra.mxu1 %v11182_v1  ;;  %7813 = vmatprep.subr.bf16.mxu0 %v11189_v49  ;;  %v1412_v1 = vld [vmem:[#allocation8 + $0x1358] sm:$0xff]  ;;  %v11237_v25 = vcombine.high %v1411_v19, %v1415_v31  ;;  %v1455_v0 = vld [vmem:[#allocation8 + $0x14b0] sm:$0xff] }
 0x468   :  { %8141 = vmatprep.subr.bf16.mxu1 %v11191_v5  ;;  %v1416_v49 = vld [vmem:[#allocation8 + $0x1378] sm:$0xff]  ;;  %v11228_v5 = vcombine.low %v1403_v61, %v1407_v11 }
 0x469   :  { %v11239_v28 = vcombine.high %v1412_v1, %v1416_v49  ;;  %v11238_v37 = vcombine.low %v1412_v1, %v1416_v49  ;;  %v1459_v49 = vld [vmem:[#allocation8 + $0x14d0] sm:$0xff] }
 0x46a   :  { %7814 = vmatpush1.bf16.msra.mxu0 %v11188_v14  ;;  %v1423_v14 = vld [vmem:[#allocation8 + $0x13b0] sm:$0xff] }
 0x46b   :  { %8142 = vmatpush1.bf16.msra.mxu1 %v11190_v35  ;;  %7815 = vmatprep.subr.bf16.mxu0 %v11197_v48  ;;  %v1420_v35 = vld [vmem:[#allocation8 + $0x1398] sm:$0xff]  ;;  %v11245_v24 = vcombine.high %v1419_v29, %v1423_v14 }
 0x46c   :  { %8143 = vmatprep.subr.bf16.mxu1 %v11199_v44  ;;  %v1424_v48 = vld [vmem:[#allocation8 + $0x13b8] sm:$0xff]  ;;  %v11236_v44 = vcombine.low %v1411_v19, %v1415_v31  ;;  %v11277_v31 = vcombine.high %v1451_v63, %v1455_v0 }
 0x46d   :  { %v11247_v3 = vcombine.high %v1420_v35, %v1424_v48  ;;  %v11246_v45 = vcombine.low %v1420_v35, %v1424_v48  ;;  %v1467_v35 = vld [vmem:[#allocation8 + $0x1510] sm:$0xff] }
 0x46e   :  { %7816 = vmatpush1.bf16.msra.mxu0 %v11196_v41  ;;  %v1431_v41 = vld [vmem:[#allocation8 + $0x13f0] sm:$0xff] }
 0x46f   :  { %8144 = vmatpush1.bf16.msra.mxu1 %v11198_v42  ;;  %7817 = vmatprep.subr.bf16.mxu0 %v11205_v43  ;;  %v1428_v42 = vld [vmem:[#allocation8 + $0x13d8] sm:$0xff]  ;;  %v11253_v4 = vcombine.high %v1427_v59, %v1431_v41  ;;  %v1471_v48 = vld [vmem:[#allocation8 + $0x1530] sm:$0xff] }
 0x470   :  { %8145 = vmatprep.subr.bf16.mxu1 %v11207_v56  ;;  %v1432_v43 = vld [vmem:[#allocation8 + $0x13f8] sm:$0xff]  ;;  %v11244_v56 = vcombine.low %v1419_v29, %v1423_v14 }
 0x471   :  { %v11255_v21 = vcombine.high %v1428_v42, %v1432_v43  ;;  %v11254_v51 = vcombine.low %v1428_v42, %v1432_v43  ;;  %v1479_v42 = vld [vmem:[#allocation8 + $0x1570] sm:$0xff]  ;;  %v1476_v43 = vld [vmem:[#allocation8 + $0x1558] sm:$0xff] }
 0x472   :  { %7818 = vmatpush1.bf16.msra.mxu0 %v11204_v40  ;;  %v1439_v40 = vld [vmem:[#allocation8 + $0x1430] sm:$0xff] }
 0x473   :  { %8146 = vmatpush1.bf16.msra.mxu1 %v11206_v50  ;;  %7819 = vmatprep.subr.bf16.mxu0 %v11213_v57  ;;  %v1436_v50 = vld [vmem:[#allocation8 + $0x1418] sm:$0xff]  ;;  %v11261_v33 = vcombine.high %v1435_v20, %v1439_v40 }
 0x474   :  { %8147 = vmatprep.subr.bf16.mxu1 %v11215_v38  ;;  %v1440_v57 = vld [vmem:[#allocation8 + $0x1438] sm:$0xff]  ;;  %v11252_v38 = vcombine.low %v1427_v59, %v1431_v41  ;;  %v1475_v41 = vld [vmem:[#allocation8 + $0x1550] sm:$0xff] }
 0x475   :  { %v11263_v53 = vcombine.high %v1436_v50, %v1440_v57  ;;  %v11262_v61 = vcombine.low %v1436_v50, %v1440_v57  ;;  %v1487_v50 = vld [vmem:[#allocation8 + $0x15b0] sm:$0xff]  ;;  %v1484_v57 = vld [vmem:[#allocation8 + $0x1598] sm:$0xff] }
 0x476   :  { %7820 = vmatpush1.bf16.msra.mxu0 %v11212_v47  ;;  %v1447_v47 = vld [vmem:[#allocation8 + $0x1470] sm:$0xff] }
 0x477   :  { %8148 = vmatpush1.bf16.msra.mxu1 %v11214_v55  ;;  %7821 = vmatprep.subr.bf16.mxu0 %v11221_v58  ;;  %v11260_v55 = vcombine.low %v1435_v20, %v1439_v40  ;;  %v1444_v58 = vld [vmem:[#allocation8 + $0x1458] sm:$0xff]  ;;  %v11269_v11 = vcombine.high %v1443_v52, %v1447_v47  ;;  %v1483_v40 = vld [vmem:[#allocation8 + $0x1590] sm:$0xff] }
 0x478   :  { %8149 = vmatprep.subr.bf16.mxu1 %v11223_v60  ;;  %v1448_v60 = vld [vmem:[#allocation8 + $0x1478] sm:$0xff] }
 0x479   :  { %v11270_v19 = vcombine.low %v1444_v58, %v1448_v60 }
 0x47a   :  { %7822 = vmatpush1.bf16.msra.mxu0 %v11220_v2  ;;  %v11271_v2 = vcombine.high %v1444_v58, %v1448_v60  ;;  %v1492_v58 = vld [vmem:[#allocation8 + $0x15d8] sm:$0xff] }
 0x47b   :  { %8150 = vmatpush1.bf16.msra.mxu1 %v11222_v32  ;;  %7823 = vmatprep.subr.bf16.mxu0 %v11229_v6  ;;  %v1452_v32 = vld [vmem:[#allocation8 + $0x1498] sm:$0xff] }
 0x47c   :  { %8151 = vmatprep.subr.bf16.mxu1 %v11231_v10  ;;  %v1456_v6 = vld [vmem:[#allocation8 + $0x14b8] sm:$0xff]  ;;  %v11268_v10 = vcombine.low %v1443_v52, %v1447_v47  ;;  %v1491_v47 = vld [vmem:[#allocation8 + $0x15d0] sm:$0xff] }
 0x47d   :  { %v11279_v1 = vcombine.high %v1452_v32, %v1456_v6  ;;  %v1496_v60 = vld [vmem:[#allocation8 + $0x15f8] sm:$0xff] }
 0x47e   :  { %7824 = vmatpush1.bf16.msra.mxu0 %v11228_v5  ;;  %v1463_v5 = vld [vmem:[#allocation8 + $0x14f0] sm:$0xff] }
 0x47f   :  { %8152 = vmatpush1.bf16.msra.mxu1 %v11230_v23  ;;  %7825 = vmatprep.subr.bf16.mxu0 %v11237_v25  ;;  %v1460_v23 = vld [vmem:[#allocation8 + $0x14d8] sm:$0xff]  ;;  %v11285_v29 = vcombine.high %v1459_v49, %v1463_v5 }
 0x480   :  { %8153 = vmatprep.subr.bf16.mxu1 %v11239_v28  ;;  %v1464_v25 = vld [vmem:[#allocation8 + $0x14f8] sm:$0xff]  ;;  %v11276_v28 = vcombine.low %v1451_v63, %v1455_v0  ;;  %v11319_v0 = vcombine.high %v1492_v58, %v1496_v60 }
 0x481   :  { %v11287_v14 = vcombine.high %v1460_v23, %v1464_v25 }
 0x482   :  { %7826 = vmatpush1.bf16.msra.mxu0 %v11236_v44  ;;  %v1468_v44 = vld [vmem:[#allocation8 + $0x1518] sm:$0xff] }
 0x483   :  { %8154 = vmatpush1.bf16.msra.mxu1 %v11238_v37  ;;  %7827 = vmatprep.subr.bf16.mxu0 %v11245_v24  ;;  %v1472_v37 = vld [vmem:[#allocation8 + $0x1538] sm:$0xff]  ;;  %v11286_v24 = vcombine.low %v1460_v23, %v1464_v25  ;;  %v1511_v23 = vld [vmem:[#allocation8 + $0x1670] sm:$0xff] }
 0x484   :  { %8155 = vmatprep.subr.bf16.mxu1 %v11247_v3  ;;  %v11293_v3 = vcombine.high %v1467_v35, %v1471_v48  ;;  %v11295_v59 = vcombine.high %v1468_v44, %v1472_v37  ;;  %v1508_v25 = vld [vmem:[#allocation8 + $0x1658] sm:$0xff] }
 0x486   :  { %7828 = vmatpush1.bf16.msra.mxu0 %v11244_v56  ;;  %v1480_v56 = vld [vmem:[#allocation8 + $0x1578] sm:$0xff] }
 0x487   :  { %8156 = vmatpush1.bf16.msra.mxu1 %v11246_v45  ;;  %7829 = vmatprep.subr.bf16.mxu0 %v11253_v4  ;;  %v11292_v45 = vcombine.low %v1467_v35, %v1471_v48  ;;  %v11294_v4 = vcombine.low %v1468_v44, %v1472_v37  ;;  %v11303_v20 = vcombine.high %v1476_v43, %v1480_v56  ;;  %v1515_v48 = vld [vmem:[#allocation8 + $0x1690] sm:$0xff]  ;;  %v1516_v37 = vld [vmem:[#allocation8 + $0x1698] sm:$0xff] }
 0x488   :  { %8157 = vmatprep.subr.bf16.mxu1 %v11255_v21  ;;  %v11301_v21 = vcombine.high %v1475_v41, %v1479_v42  ;;  %v1519_v44 = vld [vmem:[#allocation8 + $0x16b0] sm:$0xff] }
 0x48a   :  { %7830 = vmatpush1.bf16.msra.mxu0 %v11252_v38  ;;  %v1488_v38 = vld [vmem:[#allocation8 + $0x15b8] sm:$0xff] }
 0x48b   :  { %8158 = vmatpush1.bf16.msra.mxu1 %v11254_v51  ;;  %7840 = vmatprep.subr.bf16.mxu0 %v11261_v33  ;;  %v11300_v51 = vcombine.low %v1475_v41, %v1479_v42  ;;  %v11302_v33 = vcombine.low %v1476_v43, %v1480_v56  ;;  %v11311_v52 = vcombine.high %v1484_v57, %v1488_v38  ;;  %v1523_v42 = vld [vmem:[#allocation8 + $0x16d0] sm:$0xff]  ;;  %v1524_v56 = vld [vmem:[#allocation8 + $0x16d8] sm:$0xff] }
 0x48c   :  { %8168 = vmatprep.subr.bf16.mxu1 %v11263_v53  ;;  %v11309_v53 = vcombine.high %v1483_v40, %v1487_v50  ;;  %v1527_v43 = vld [vmem:[#allocation8 + $0x16f0] sm:$0xff] }
 0x48d   :  { %7832 = vmatmul.mubr.bf16.vlgmr.msra.gmra.mrb[20].mxu0 %v13112_v30 }
 0x48e   :  { %8160 = vmatmul.mubr.bf16.vlgmr.msra.gmra.mrb[20].mxu1 %v13112_v30  ;;  %7841 = vmatpush1.bf16.msra.mxu0 %v11260_v55  ;;  %v11278_v30 = vcombine.low %v1452_v32, %v1456_v6  ;;  %v1495_v55 = vld [vmem:[#allocation8 + $0x15f0] sm:$0xff]  ;;  %v1500_v6 = vld [vmem:[#allocation8 + $0x1618] sm:$0xff] }
 0x48f   :  { %7872 = vmatprep.mubr.bf16.mxu0 %v13114_v26  ;;  %8169 = vmatpush1.bf16.msra.mxu1 %v11262_v61  ;;  %v11308_v61 = vcombine.low %v1483_v40, %v1487_v50  ;;  %v11317_v63 = vcombine.high %v1491_v47, %v1495_v55  ;;  %v1503_v32 = vld [vmem:[#allocation8 + $0x1630] sm:$0xff] }
 0x490   :  { %8200 = vmatprep.mubr.bf16.mxu1 %v13114_v26  ;;  %7842 = vmatprep.subr.bf16.mxu0 %v11269_v11  ;;  %v11284_v26 = vcombine.low %v1459_v49, %v1463_v5  ;;  %v11310_v11 = vcombine.low %v1484_v57, %v1488_v38  ;;  %v1507_v5 = vld [vmem:[#allocation8 + $0x1650] sm:$0xff]  ;;  %v1532_v38 = vld [vmem:[#allocation8 + $0x1718] sm:$0xff] }
 0x491   :  { %8170 = vmatprep.subr.bf16.mxu1 %v11271_v2  ;;  %v1499_v2 = vld [vmem:[#allocation8 + $0x1610] sm:$0xff] }
 0x492   :  { %7843 = vmatpush1.bf16.msra.mxu0 %v11268_v10  ;;  %v1504_v10 = vld [vmem:[#allocation8 + $0x1638] sm:$0xff]  ;;  %v1531_v50 = vld [vmem:[#allocation8 + $0x1710] sm:$0xff] }
 0x493   :  { %8171 = vmatpush1.bf16.msra.mxu1 %v11270_v19  ;;  %7844 = vmatprep.subr.bf16.mxu0 %v11277_v31  ;;  %v11316_v19 = vcombine.low %v1491_v47, %v1495_v55  ;;  %v11318_v31 = vcombine.low %v1492_v58, %v1496_v60  ;;  %v11327_v49 = vcombine.high %v1500_v6, %v1504_v10  ;;  %v1535_v57 = vld [vmem:[#allocation8 + $0x1730] sm:$0xff]  ;;  %v1540_v60 = vld [vmem:[#allocation8 + $0x1758] sm:$0xff] }
 0x494   :  { %8172 = vmatprep.subr.bf16.mxu1 %v11279_v1  ;;  %v11325_v1 = vcombine.high %v1499_v2, %v1503_v32  ;;  %v1539_v55 = vld [vmem:[#allocation8 + $0x1750] sm:$0xff] }
 0x495   :  { %v1543_v58 = vld [vmem:[#allocation8 + $0x1770] sm:$0xff] }
 0x496   :  { %7845 = vmatpush1.bf16.msra.mxu0 %v11276_v28  ;;  %v1512_v28 = vld [vmem:[#allocation8 + $0x1678] sm:$0xff] }
 0x497   :  { %8173 = vmatpush1.bf16.msra.mxu1 %v11278_v30  ;;  %7846 = vmatprep.subr.bf16.mxu0 %v11285_v29  ;;  %v11324_v30 = vcombine.low %v1499_v2, %v1503_v32  ;;  %v11326_v29 = vcombine.low %v1500_v6, %v1504_v10  ;;  %v11335_v35 = vcombine.high %v1508_v25, %v1512_v28  ;;  %v1547_v32 = vld [vmem:[#allocation8 + $0x1790] sm:$0xff]  ;;  %v1548_v10 = vld [vmem:[#allocation8 + $0x1798] sm:$0xff] }
 0x498   :  { %8174 = vmatprep.subr.bf16.mxu1 %v11287_v14  ;;  %v11333_v14 = vcombine.high %v1507_v5, %v1511_v23  ;;  %v1551_v6 = vld [vmem:[#allocation8 + $0x17b0] sm:$0xff] }
 0x49a   :  { %7847 = vmatpush1.bf16.msra.mxu0 %v11284_v26  ;;  %v1520_v26 = vld [vmem:[#allocation8 + $0x16b8] sm:$0xff] }
 0x49b   :  { %8175 = vmatpush1.bf16.msra.mxu1 %v11286_v24  ;;  %7848 = vmatprep.subr.bf16.mxu0 %v11293_v3  ;;  %v11332_v24 = vcombine.low %v1507_v5, %v1511_v23  ;;  %v11334_v3 = vcombine.low %v1508_v25, %v1512_v28  ;;  %v11343_v41 = vcombine.high %v1516_v37, %v1520_v26  ;;  %v1555_v23 = vld [vmem:[#allocation8 + $0x17d0] sm:$0xff]  ;;  %v1556_v28 = vld [vmem:[#allocation8 + $0x17d8] sm:$0xff] }
 0x49c   :  { %8176 = vmatprep.subr.bf16.mxu1 %v11295_v59  ;;  %v11341_v59 = vcombine.high %v1515_v48, %v1519_v44  ;;  %v1559_v25 = vld [vmem:[#allocation8 + $0x17f0] sm:$0xff] }
 0x49e   :  { %7849 = vmatpush1.bf16.msra.mxu0 %v11292_v45  ;;  %v1528_v45 = vld [vmem:[#allocation8 + $0x16f8] sm:$0xff] }
 0x49f   :  { %8177 = vmatpush1.bf16.msra.mxu1 %v11294_v4  ;;  %7850 = vmatprep.subr.bf16.mxu0 %v11301_v21  ;;  %v11340_v4 = vcombine.low %v1515_v48, %v1519_v44  ;;  %v11342_v21 = vcombine.low %v1516_v37, %v1520_v26  ;;  %v11351_v40 = vcombine.high %v1524_v56, %v1528_v45  ;;  %v1563_v44 = vld [vmem:[#allocation8 + $0x1810] sm:$0xff]  ;;  %v1564_v26 = vld [vmem:[#allocation8 + $0x1818] sm:$0xff] }
 0x4a0   :  { %8178 = vmatprep.subr.bf16.mxu1 %v11303_v20  ;;  %v11349_v20 = vcombine.high %v1523_v42, %v1527_v43  ;;  %v1567_v37 = vld [vmem:[#allocation8 + $0x1830] sm:$0xff] }
 0x4a2   :  { %7851 = vmatpush1.bf16.msra.mxu0 %v11300_v51  ;;  %v1536_v51 = vld [vmem:[#allocation8 + $0x1738] sm:$0xff] }
 0x4a3   :  { %8179 = vmatpush1.bf16.msra.mxu1 %v11302_v33  ;;  %7852 = vmatprep.subr.bf16.mxu0 %v11309_v53  ;;  %v11348_v33 = vcombine.low %v1523_v42, %v1527_v43  ;;  %v11350_v53 = vcombine.low %v1524_v56, %v1528_v45  ;;  %v11359_v47 = vcombine.high %v1532_v38, %v1536_v51  ;;  %v1571_v43 = vld [vmem:[#allocation8 + $0x1850] sm:$0xff] }
 0x4a4   :  { %8180 = vmatprep.subr.bf16.mxu1 %v11311_v52  ;;  %v11357_v52 = vcombine.high %v1531_v50, %v1535_v57  ;;  %v1575_v56 = vld [vmem:[#allocation8 + $0x1870] sm:$0xff]  ;;  %v11388_v45 = vcombine.low %v1563_v44, %v1567_v37 }
 0x4a6   :  { %7853 = vmatpush1.bf16.msra.mxu0 %v11308_v61  ;;  %v1544_v61 = vld [vmem:[#allocation8 + $0x1778] sm:$0xff] }
 0x4a7   :  { %8181 = vmatpush1.bf16.msra.mxu1 %v11310_v11  ;;  %7854 = vmatprep.subr.bf16.mxu0 %v11317_v63  ;;  %v11356_v11 = vcombine.low %v1531_v50, %v1535_v57  ;;  %v11358_v63 = vcombine.low %v1532_v38, %v1536_v51  ;;  %v11367_v2 = vcombine.high %v1540_v60, %v1544_v61  ;;  %v1579_v50 = vld [vmem:[#allocation8 + $0x1890] sm:$0xff]  ;;  %v1580_v51 = vld [vmem:[#allocation8 + $0x1898] sm:$0xff] }
 0x4a8   :  { %8182 = vmatprep.subr.bf16.mxu1 %v11319_v0  ;;  %v11365_v0 = vcombine.high %v1539_v55, %v1543_v58  ;;  %v1583_v57 = vld [vmem:[#allocation8 + $0x18b0] sm:$0xff] }
 0x4aa   :  { %7855 = vmatpush1.bf16.msra.mxu0 %v11316_v19  ;;  %v1552_v19 = vld [vmem:[#allocation8 + $0x17b8] sm:$0xff] }
 0x4ab   :  { %8183 = vmatpush1.bf16.msra.mxu1 %v11318_v31  ;;  %7856 = vmatprep.subr.bf16.mxu0 %v11325_v1  ;;  %v11364_v31 = vcombine.low %v1539_v55, %v1543_v58  ;;  %v11366_v1 = vcombine.low %v1540_v60, %v1544_v61  ;;  %v11375_v5 = vcombine.high %v1548_v10, %v1552_v19  ;;  %v1587_v58 = vld [vmem:[#allocation8 + $0x18d0] sm:$0xff]  ;;  %v1588_v61 = vld [vmem:[#allocation8 + $0x18d8] sm:$0xff] }
 0x4ac   :  { %8184 = vmatprep.subr.bf16.mxu1 %v11327_v49  ;;  %v11373_v49 = vcombine.high %v1547_v32, %v1551_v6  ;;  %v1591_v60 = vld [vmem:[#allocation8 + $0x18f0] sm:$0xff] }
 0x4ae   :  { %7857 = vmatpush1.bf16.msra.mxu0 %v11324_v30  ;;  %v1560_v30 = vld [vmem:[#allocation8 + $0x17f8] sm:$0xff] }
 0x4af   :  { %8185 = vmatpush1.bf16.msra.mxu1 %v11326_v29  ;;  %7858 = vmatprep.subr.bf16.mxu0 %v11333_v14  ;;  %v11372_v29 = vcombine.low %v1547_v32, %v1551_v6  ;;  %v11374_v14 = vcombine.low %v1548_v10, %v1552_v19  ;;  %v11383_v48 = vcombine.high %v1556_v28, %v1560_v30  ;;  %v1595_v32 = vld [vmem:[#allocation8 + $0x1910] sm:$0xff]  ;;  %v1596_v10 = vld [vmem:[#allocation8 + $0x1918] sm:$0xff] }
 0x4b0   :  { %8186 = vmatprep.subr.bf16.mxu1 %v11335_v35  ;;  %v11381_v35 = vcombine.high %v1555_v23, %v1559_v25  ;;  %v1599_v6 = vld [vmem:[#allocation8 + $0x1930] sm:$0xff]  ;;  %v1600_v19 = vld [vmem:[#allocation8 + $0x1938] sm:$0xff] }
 0x4b2   :  { %7859 = vmatpush1.bf16.msra.mxu0 %v11332_v24  ;;  %v1568_v24 = vld [vmem:[#allocation8 + $0x1838] sm:$0xff] }
 0x4b3   :  { %8187 = vmatpush1.bf16.msra.mxu1 %v11334_v3  ;;  %7860 = vmatprep.subr.bf16.mxu0 %v11341_v59  ;;  %v11380_v3 = vcombine.low %v1555_v23, %v1559_v25  ;;  %v11382_v59 = vcombine.low %v1556_v28, %v1560_v30  ;;  %v11391_v42 = vcombine.high %v1564_v26, %v1568_v24  ;;  %v1607_v23 = vld [vmem:[#allocation8 + $0x1970] sm:$0xff]  ;;  %v1604_v25 = vld [vmem:[#allocation8 + $0x1958] sm:$0xff] }
 0x4b4   :  { %8188 = vmatprep.subr.bf16.mxu1 %v11343_v41  ;;  %v11389_v41 = vcombine.high %v1563_v44, %v1567_v37  ;;  %v1608_v28 = vld [vmem:[#allocation8 + $0x1978] sm:$0xff]  ;;  %v11420_v30 = vcombine.low %v1595_v32, %v1599_v6  ;;  %v1615_v44 = vld [vmem:[#allocation8 + $0x19b0] sm:$0xff] }
 0x4b5   :  { %v1612_v37 = vld [vmem:[#allocation8 + $0x1998] sm:$0xff] }
 0x4b6   :  { %7861 = vmatpush1.bf16.msra.mxu0 %v11340_v4  ;;  %v1572_v4 = vld [vmem:[#allocation8 + $0x1858] sm:$0xff] }
 0x4b7   :  { %8189 = vmatpush1.bf16.msra.mxu1 %v11342_v21  ;;  %7862 = vmatprep.subr.bf16.mxu0 %v11349_v20  ;;  %v1576_v21 = vld [vmem:[#allocation8 + $0x1878] sm:$0xff]  ;;  %v11390_v20 = vcombine.low %v1564_v26, %v1568_v24 }
 0x4b8   :  { %8190 = vmatprep.subr.bf16.mxu1 %v11351_v40  ;;  %v11397_v40 = vcombine.high %v1571_v43, %v1575_v56  ;;  %v11399_v38 = vcombine.high %v1572_v4, %v1576_v21  ;;  %v1616_v26 = vld [vmem:[#allocation8 + $0x19b8] sm:$0xff] }
 0x4ba   :  { %7863 = vmatpush1.bf16.msra.mxu0 %v11348_v33  ;;  %v1584_v33 = vld [vmem:[#allocation8 + $0x18b8] sm:$0xff] }
 0x4bb   :  { %8191 = vmatpush1.bf16.msra.mxu1 %v11350_v53  ;;  %7864 = vmatprep.subr.bf16.mxu0 %v11357_v52  ;;  %v11396_v53 = vcombine.low %v1571_v43, %v1575_v56  ;;  %v11398_v52 = vcombine.low %v1572_v4, %v1576_v21  ;;  %v11407_v55 = vcombine.high %v1580_v51, %v1584_v33  ;;  %v1623_v43 = vld [vmem:[#allocation8 + $0x19f0] sm:$0xff]  ;;  %v1620_v56 = vld [vmem:[#allocation8 + $0x19d8] sm:$0xff] }
 0x4bc   :  { %8192 = vmatprep.subr.bf16.mxu1 %v11359_v47  ;;  %v11405_v47 = vcombine.high %v1579_v50, %v1583_v57  ;;  %v11438_v21 = vcombine.low %v1612_v37, %v1616_v26 }
 0x4be   :  { %7865 = vmatpush1.bf16.msra.mxu0 %v11356_v11  ;;  %v1592_v11 = vld [vmem:[#allocation8 + $0x18f8] sm:$0xff] }
 0x4bf   :  { %8193 = vmatpush1.bf16.msra.mxu1 %v11358_v63  ;;  %7866 = vmatprep.subr.bf16.mxu0 %v11365_v0  ;;  %v11404_v63 = vcombine.low %v1579_v50, %v1583_v57  ;;  %v11413_v0 = vcombine.high %v1587_v58, %v1591_v60  ;;  %v1627_v50 = vld [vmem:[#allocation8 + $0x1a10] sm:$0xff] }
 0x4c0   :  { %8194 = vmatprep.subr.bf16.mxu1 %v11367_v2  ;;  %v11415_v2 = vcombine.high %v1588_v61, %v1592_v11  ;;  %v1631_v57 = vld [vmem:[#allocation8 + $0x1a30] sm:$0xff] }
 0x4c2   :  { %7867 = vmatpush1.bf16.msra.mxu0 %v11364_v31  ;;  %v11414_v31 = vcombine.low %v1588_v61, %v1592_v11  ;;  %v1640_v61 = vld [vmem:[#allocation8 + $0x1a78] sm:$0xff]  ;;  %v11452_v11 = vcombine.low %v1627_v50, %v1631_v57 }
 0x4c3   :  { %8195 = vmatpush1.bf16.msra.mxu1 %v11366_v1  ;;  %7868 = vmatprep.subr.bf16.mxu0 %v11373_v49  ;;  %v11421_v1 = vcombine.high %v1595_v32, %v1599_v6  ;;  %v11423_v49 = vcombine.high %v1596_v10, %v1600_v19  ;;  %v1647_v32 = vld [vmem:[#allocation8 + $0x1ab0] sm:$0xff]  ;;  %v1644_v6 = vld [vmem:[#allocation8 + $0x1a98] sm:$0xff] }
 0x4c4   :  { %8196 = vmatprep.subr.bf16.mxu1 %v11375_v5  ;;  %v1603_v5 = vld [vmem:[#allocation8 + $0x1950] sm:$0xff] }
 0x4c5   :  { %v11428_v24 = vcombine.low %v1603_v5, %v1607_v23 }
 0x4c6   :  { %7869 = vmatpush1.bf16.msra.mxu0 %v11372_v29  ;;  %v11422_v29 = vcombine.low %v1596_v10, %v1600_v19  ;;  %v1648_v10 = vld [vmem:[#allocation8 + $0x1ab8] sm:$0xff] }
 0x4c7   :  { %8197 = vmatpush1.bf16.msra.mxu1 %v11374_v14  ;;  %7870 = vmatprep.subr.bf16.mxu0 %v11381_v35  ;;  %v11429_v14 = vcombine.high %v1603_v5, %v1607_v23  ;;  %v11431_v35 = vcombine.high %v1604_v25, %v1608_v28  ;;  %v1655_v5 = vld [vmem:[#allocation8 + $0x1af0] sm:$0xff]  ;;  %v1652_v23 = vld [vmem:[#allocation8 + $0x1ad8] sm:$0xff] }
 0x4c8   :  { %8198 = vmatprep.subr.bf16.mxu1 %v11383_v48  ;;  %v1611_v48 = vld [vmem:[#allocation8 + $0x1990] sm:$0xff] }
 0x4c9   :  { %v11436_v4 = vcombine.low %v1611_v48, %v1615_v44 }
 0x4ca   :  { %7871 = vmatpush1.bf16.msra.mxu0 %v11380_v3  ;;  %v11430_v3 = vcombine.low %v1604_v25, %v1608_v28  ;;  %v1656_v25 = vld [vmem:[#allocation8 + $0x1af8] sm:$0xff] }
 0x4cb   :  { %8199 = vmatpush1.bf16.msra.mxu1 %v11382_v59  ;;  %7881 = vmatprep.subr.bf16.mxu0 %v11389_v41  ;;  %v11437_v59 = vcombine.high %v1611_v48, %v1615_v44  ;;  %v11439_v41 = vcombine.high %v1612_v37, %v1616_v26  ;;  %v1663_v48 = vld [vmem:[#allocation8 + $0x1b30] sm:$0xff]  ;;  %v1660_v44 = vld [vmem:[#allocation8 + $0x1b18] sm:$0xff] }
 0x4cc   :  { %8209 = vmatprep.subr.bf16.mxu1 %v11391_v42  ;;  %v1619_v42 = vld [vmem:[#allocation8 + $0x19d0] sm:$0xff]  ;;  %v1664_v37 = vld [vmem:[#allocation8 + $0x1b38] sm:$0xff] }
 0x4cd   :  { %7873 = vmatmul.mubr.bf16.vlgmr.msra.gmra.mrb[20].mxu0 %v13122_v46 }
 0x4ce   :  { %8201 = vmatmul.mubr.bf16.vlgmr.msra.gmra.mrb[20].mxu1 %v13122_v46  ;;  %7882 = vmatpush1.bf16.msra.mxu0 %v11388_v45  ;;  %v11406_v46 = vcombine.low %v1580_v51, %v1584_v33  ;;  %v1624_v45 = vld [vmem:[#allocation8 + $0x19f8] sm:$0xff]  ;;  %v11444_v33 = vcombine.low %v1619_v42, %v1623_v43 }
 0x4cf   :  { %7913 = vmatprep.mubr.bf16.mxu0 %v13124_v54  ;;  %8210 = vmatpush1.bf16.msra.mxu1 %v11390_v20  ;;  %v11445_v20 = vcombine.high %v1619_v42, %v1623_v43  ;;  %v1632_v51 = vld [vmem:[#allocation8 + $0x1a38] sm:$0xff]  ;;  %v1671_v42 = vld [vmem:[#allocation8 + $0x1b70] sm:$0xff] }
 0x4d0   :  { %8241 = vmatprep.mubr.bf16.mxu1 %v13124_v54  ;;  %7883 = vmatprep.subr.bf16.mxu0 %v11397_v40  ;;  %v11412_v54 = vcombine.low %v1587_v58, %v1591_v60  ;;  %v11447_v40 = vcombine.high %v1620_v56, %v1624_v45  ;;  %v1639_v58 = vld [vmem:[#allocation8 + $0x1a70] sm:$0xff]  ;;  %v1636_v60 = vld [vmem:[#allocation8 + $0x1a58] sm:$0xff] }
 0x4d1   :  { %8211 = vmatprep.subr.bf16.mxu1 %v11399_v38  ;;  %v1628_v38 = vld [vmem:[#allocation8 + $0x1a18] sm:$0xff] }
 0x4d2   :  { %7884 = vmatpush1.bf16.msra.mxu0 %v11396_v53  ;;  %v11446_v53 = vcombine.low %v1620_v56, %v1624_v45  ;;  %v1668_v43 = vld [vmem:[#allocation8 + $0x1b58] sm:$0xff] }
 0x4d3   :  { %8212 = vmatpush1.bf16.msra.mxu1 %v11398_v52  ;;  %7885 = vmatprep.subr.bf16.mxu0 %v11405_v47  ;;  %v11453_v52 = vcombine.high %v1627_v50, %v1631_v57  ;;  %v11455_v47 = vcombine.high %v1628_v38, %v1632_v51  ;;  %v1672_v56 = vld [vmem:[#allocation8 + $0x1b78] sm:$0xff]  ;;  %v1679_v50 = vld [vmem:[#allocation8 + $0x1bb0] sm:$0xff] }
 0x4d4   :  { %8213 = vmatprep.subr.bf16.mxu1 %v11407_v55  ;;  %v1635_v55 = vld [vmem:[#allocation8 + $0x1a50] sm:$0xff]  ;;  %v1676_v57 = vld [vmem:[#allocation8 + $0x1b98] sm:$0xff] }
 0x4d5   :  { %v11460_v19 = vcombine.low %v1635_v55, %v1639_v58 }
 0x4d6   :  { %7886 = vmatpush1.bf16.msra.mxu0 %v11404_v63  ;;  %v11454_v63 = vcombine.low %v1628_v38, %v1632_v51  ;;  %v1680_v38 = vld [vmem:[#allocation8 + $0x1bb8] sm:$0xff] }
 0x4d7   :  { %8214 = vmatpush1.bf16.msra.mxu1 %v11406_v46  ;;  %7887 = vmatprep.subr.bf16.mxu0 %v11413_v0  ;;  %v11461_v46 = vcombine.high %v1635_v55, %v1639_v58  ;;  %v11463_v0 = vcombine.high %v1636_v60, %v1640_v61  ;;  %v1687_v55 = vld [vmem:[#allocation8 + $0x1bf0] sm:$0xff]  ;;  %v1684_v58 = vld [vmem:[#allocation8 + $0x1bd8] sm:$0xff] }
 0x4d8   :  { %8215 = vmatprep.subr.bf16.mxu1 %v11415_v2  ;;  %v1643_v2 = vld [vmem:[#allocation8 + $0x1a90] sm:$0xff] }
 0x4d9   :  { %v11468_v28 = vcombine.low %v1643_v2, %v1647_v32 }
 0x4da   :  { %7888 = vmatpush1.bf16.msra.mxu0 %v11412_v54  ;;  %v11462_v54 = vcombine.low %v1636_v60, %v1640_v61  ;;  %v1688_v60 = vld [vmem:[#allocation8 + $0x1bf8] sm:$0xff] }
 0x4db   :  { %8216 = vmatpush1.bf16.msra.mxu1 %v11414_v31  ;;  %7889 = vmatprep.subr.bf16.mxu0 %v11421_v1  ;;  %v11469_v31 = vcombine.high %v1643_v2, %v1647_v32  ;;  %v11471_v1 = vcombine.high %v1644_v6, %v1648_v10  ;;  %v1695_v2 = vld [vmem:[#allocation8 + $0x1c30] sm:$0xff]  ;;  %v1692_v32 = vld [vmem:[#allocation8 + $0x1c18] sm:$0xff] }
 0x4dc   :  { %8217 = vmatprep.subr.bf16.mxu1 %v11423_v49  ;;  %v1651_v49 = vld [vmem:[#allocation8 + $0x1ad0] sm:$0xff] }
 0x4dd   :  { %v11476_v26 = vcombine.low %v1651_v49, %v1655_v5 }
 0x4de   :  { %7890 = vmatpush1.bf16.msra.mxu0 %v11420_v30  ;;  %v11470_v30 = vcombine.low %v1644_v6, %v1648_v10  ;;  %v1696_v6 = vld [vmem:[#allocation8 + $0x1c38] sm:$0xff] }
 0x4df   :  { %8218 = vmatpush1.bf16.msra.mxu1 %v11422_v29  ;;  %7891 = vmatprep.subr.bf16.mxu0 %v11429_v14  ;;  %v11477_v29 = vcombine.high %v1651_v49, %v1655_v5  ;;  %v11479_v14 = vcombine.high %v1652_v23, %v1656_v25  ;;  %v1703_v49 = vld [vmem:[#allocation8 + $0x1c70] sm:$0xff] }
 0x4e0   :  { %8219 = vmatprep.subr.bf16.mxu1 %v11431_v35  ;;  %v1659_v35 = vld [vmem:[#allocation8 + $0x1b10] sm:$0xff] }
 0x4e1   :  { %v11484_v45 = vcombine.low %v1659_v35, %v1663_v48 }
 0x4e2   :  { %7892 = vmatpush1.bf16.msra.mxu0 %v11428_v24  ;;  %v11478_v24 = vcombine.low %v1652_v23, %v1656_v25  ;;  %v1700_v23 = vld [vmem:[#allocation8 + $0x1c58] sm:$0xff] }
 0x4e3   :  { %8220 = vmatpush1.bf16.msra.mxu1 %v11430_v3  ;;  %7893 = vmatprep.subr.bf16.mxu0 %v11437_v59  ;;  %v11485_v3 = vcombine.high %v1659_v35, %v1663_v48  ;;  %v11487_v59 = vcombine.high %v1660_v44, %v1664_v37  ;;  %v1704_v25 = vld [vmem:[#allocation8 + $0x1c78] sm:$0xff] }
 0x4e4   :  { %8221 = vmatprep.subr.bf16.mxu1 %v11439_v41  ;;  %v1667_v41 = vld [vmem:[#allocation8 + $0x1b50] sm:$0xff]  ;;  %v11527_v35 = vcombine.high %v1700_v23, %v1704_v25  ;;  %v1708_v48 = vld [vmem:[#allocation8 + $0x1c98] sm:$0xff] }
 0x4e5   :  { %v11492_v51 = vcombine.low %v1667_v41, %v1671_v42 }
 0x4e6   :  { %7894 = vmatpush1.bf16.msra.mxu0 %v11436_v4  ;;  %v11486_v4 = vcombine.low %v1660_v44, %v1664_v37  ;;  %v1712_v44 = vld [vmem:[#allocation8 + $0x1cb8] sm:$0xff] }
 0x4e7   :  { %8222 = vmatpush1.bf16.msra.mxu1 %v11438_v21  ;;  %7895 = vmatprep.subr.bf16.mxu0 %v11445_v20  ;;  %v11493_v21 = vcombine.high %v1667_v41, %v1671_v42  ;;  %v11495_v20 = vcombine.high %v1668_v43, %v1672_v56  ;;  %v1719_v41 = vld [vmem:[#allocation8 + $0x1cf0] sm:$0xff]  ;;  %v1716_v42 = vld [vmem:[#allocation8 + $0x1cd8] sm:$0xff] }
 0x4e8   :  { %8223 = vmatprep.subr.bf16.mxu1 %v11447_v40  ;;  %v1675_v40 = vld [vmem:[#allocation8 + $0x1b90] sm:$0xff] }
 0x4e9   :  { %v11500_v61 = vcombine.low %v1675_v40, %v1679_v50 }
 0x4ea   :  { %7896 = vmatpush1.bf16.msra.mxu0 %v11444_v33  ;;  %v11494_v33 = vcombine.low %v1668_v43, %v1672_v56  ;;  %v1720_v43 = vld [vmem:[#allocation8 + $0x1cf8] sm:$0xff] }
 0x4eb   :  { %8224 = vmatpush1.bf16.msra.mxu1 %v11446_v53  ;;  %7897 = vmatprep.subr.bf16.mxu0 %v11453_v52  ;;  %v11501_v53 = vcombine.high %v1675_v40, %v1679_v50  ;;  %v11503_v52 = vcombine.high %v1676_v57, %v1680_v38  ;;  %v1724_v40 = vld [vmem:[#allocation8 + $0x1d18] sm:$0xff] }
 0x4ec   :  { %8225 = vmatprep.subr.bf16.mxu1 %v11455_v47  ;;  %v1683_v47 = vld [vmem:[#allocation8 + $0x1bd0] sm:$0xff]  ;;  %v1728_v50 = vld [vmem:[#allocation8 + $0x1d38] sm:$0xff] }
 0x4ed   :  { %v11508_v10 = vcombine.low %v1683_v47, %v1687_v55 }
 0x4ee   :  { %7898 = vmatpush1.bf16.msra.mxu0 %v11452_v11  ;;  %v11502_v11 = vcombine.low %v1676_v57, %v1680_v38  ;;  %v11542_v57 = vcombine.low %v1716_v42, %v1720_v43 }
 0x4ef   :  { %8226 = vmatpush1.bf16.msra.mxu1 %v11454_v63  ;;  %7899 = vmatprep.subr.bf16.mxu0 %v11461_v46  ;;  %v11509_v63 = vcombine.high %v1683_v47, %v1687_v55  ;;  %v11511_v46 = vcombine.high %v1684_v58, %v1688_v60  ;;  %v1736_v47 = vld [vmem:[#allocation8 + $0x1d78] sm:$0xff] }
 0x4f0   :  { %8227 = vmatprep.subr.bf16.mxu1 %v11463_v0  ;;  %v1691_v0 = vld [vmem:[#allocation8 + $0x1c10] sm:$0xff] }
 0x4f1   :  { %v11516_v5 = vcombine.low %v1691_v0, %v1695_v2 }
 0x4f2   :  { %7900 = vmatpush1.bf16.msra.mxu0 %v11460_v19  ;;  %v11510_v19 = vcombine.low %v1684_v58, %v1688_v60  ;;  %v11550_v58 = vcombine.low %v1724_v40, %v1728_v50 }
 0x4f3   :  { %8228 = vmatpush1.bf16.msra.mxu1 %v11462_v54  ;;  %7901 = vmatprep.subr.bf16.mxu0 %v11469_v31  ;;  %v11517_v54 = vcombine.high %v1691_v0, %v1695_v2  ;;  %v11519_v31 = vcombine.high %v1692_v32, %v1696_v6  ;;  %v1744_v0 = vld [vmem:[#allocation8 + $0x1db8] sm:$0xff] }
 0x4f4   :  { %8229 = vmatprep.subr.bf16.mxu1 %v11471_v1  ;;  %v1699_v1 = vld [vmem:[#allocation8 + $0x1c50] sm:$0xff] }
 0x4f5   :  { %v11524_v37 = vcombine.low %v1699_v1, %v1703_v49 }
 0x4f6   :  { %7902 = vmatpush1.bf16.msra.mxu0 %v11468_v28  ;;  %v11518_v28 = vcombine.low %v1692_v32, %v1696_v6 }
 0x4f7   :  { %8230 = vmatpush1.bf16.msra.mxu1 %v11470_v30  ;;  %7903 = vmatprep.subr.bf16.mxu0 %v11477_v29  ;;  %v11525_v30 = vcombine.high %v1699_v1, %v1703_v49  ;;  %v1707_v29 = vld [vmem:[#allocation8 + $0x1c90] sm:$0xff]  ;;  %v1752_v1 = vld [vmem:[#allocation8 + $0x1df8] sm:$0xff] }
 0x4f8   :  { %8231 = vmatprep.subr.bf16.mxu1 %v11479_v14  ;;  %v1711_v14 = vld [vmem:[#allocation8 + $0x1cb0] sm:$0xff] }
 0x4f9   :  { %v11532_v56 = vcombine.low %v1707_v29, %v1711_v14 }
 0x4fa   :  { %7904 = vmatpush1.bf16.msra.mxu0 %v11476_v26  ;;  %v11526_v26 = vcombine.low %v1700_v23, %v1704_v25 }
 0x4fb   :  { %8232 = vmatpush1.bf16.msra.mxu1 %v11478_v24  ;;  %7905 = vmatprep.subr.bf16.mxu0 %v11485_v3  ;;  %v11533_v24 = vcombine.high %v1707_v29, %v1711_v14  ;;  %v11535_v3 = vcombine.high %v1708_v48, %v1712_v44  ;;  %v1756_v29 = vld [vmem:[#allocation8 + $0x1e18] sm:$0xff] }
 0x4fc   :  { %8233 = vmatprep.subr.bf16.mxu1 %v11487_v59  ;;  %v1715_v59 = vld [vmem:[#allocation8 + $0x1cd0] sm:$0xff]  ;;  %v1760_v14 = vld [vmem:[#allocation8 + $0x1e38] sm:$0xff] }
 0x4fe   :  { %7906 = vmatpush1.bf16.msra.mxu0 %v11484_v45  ;;  %v11541_v45 = vcombine.high %v1715_v59, %v1719_v41 }
 0x4ff   :  { %8234 = vmatpush1.bf16.msra.mxu1 %v11486_v4  ;;  %7907 = vmatprep.subr.bf16.mxu0 %v11493_v21  ;;  %v11543_v4 = vcombine.high %v1716_v42, %v1720_v43  ;;  %v1723_v21 = vld [vmem:[#allocation8 + $0x1d10] sm:$0xff]  ;;  %v11582_v42 = vcombine.low %v1756_v29, %v1760_v14 }
 0x500   :  { %8235 = vmatprep.subr.bf16.mxu1 %v11495_v20  ;;  %v1727_v20 = vld [vmem:[#allocation8 + $0x1d30] sm:$0xff] }
 0x501   :  { %v11549_v38 = vcombine.high %v1723_v21, %v1727_v20  ;;  %v11548_v55 = vcombine.low %v1723_v21, %v1727_v20  ;;  %v1776_v21 = vld [vmem:[#allocation8 + $0x1eb8] sm:$0xff] }
 0x502   :  { %7908 = vmatpush1.bf16.msra.mxu0 %v11492_v51  ;;  %v11551_v51 = vcombine.high %v1724_v40, %v1728_v50 }
 0x503   :  { %8236 = vmatpush1.bf16.msra.mxu1 %v11494_v33  ;;  %7909 = vmatprep.subr.bf16.mxu0 %v11501_v53  ;;  %v1731_v33 = vld [vmem:[#allocation8 + $0x1d50] sm:$0xff] }
 0x504   :  { %8237 = vmatprep.subr.bf16.mxu1 %v11503_v52  ;;  %v1735_v53 = vld [vmem:[#allocation8 + $0x1d70] sm:$0xff]  ;;  %v1732_v52 = vld [vmem:[#allocation8 + $0x1d58] sm:$0xff] }
 0x505   :  { %v11557_v60 = vcombine.high %v1731_v33, %v1735_v53  ;;  %v11556_v2 = vcombine.low %v1731_v33, %v1735_v53  ;;  %v11558_v32 = vcombine.low %v1732_v52, %v1736_v47  ;;  %v1784_v33 = vld [vmem:[#allocation8 + $0x1ef8] sm:$0xff] }
 0x506   :  { %7910 = vmatpush1.bf16.msra.mxu0 %v11500_v61  ;;  %v11559_v61 = vcombine.high %v1732_v52, %v1736_v47 }
 0x507   :  { %8238 = vmatpush1.bf16.msra.mxu1 %v11502_v11  ;;  %7911 = vmatprep.subr.bf16.mxu0 %v11509_v63  ;;  %v1739_v11 = vld [vmem:[#allocation8 + $0x1d90] sm:$0xff] }
 0x508   :  { %8239 = vmatprep.subr.bf16.mxu1 %v11511_v46  ;;  %v1743_v63 = vld [vmem:[#allocation8 + $0x1db0] sm:$0xff]  ;;  %v1740_v46 = vld [vmem:[#allocation8 + $0x1d98] sm:$0xff] }
 0x509   :  { %v11565_v6 = vcombine.high %v1739_v11, %v1743_v63  ;;  %v11564_v49 = vcombine.low %v1739_v11, %v1743_v63  ;;  %v1792_v11 = vld [vmem:[#allocation8 + $0x1f38] sm:$0xff] }
 0x50a   :  { %7912 = vmatpush1.bf16.msra.mxu0 %v11508_v10  ;;  %v11567_v10 = vcombine.high %v1740_v46, %v1744_v0 }
 0x50b   :  { %8240 = vmatpush1.bf16.msra.mxu1 %v11510_v19  ;;  %7922 = vmatprep.subr.bf16.mxu0 %v11517_v54  ;;  %v1747_v19 = vld [vmem:[#allocation8 + $0x1dd0] sm:$0xff] }
 0x50c   :  { %8250 = vmatprep.subr.bf16.mxu1 %v11519_v31  ;;  %v1751_v54 = vld [vmem:[#allocation8 + $0x1df0] sm:$0xff]  ;;  %v1748_v31 = vld [vmem:[#allocation8 + $0x1dd8] sm:$0xff] }
 0x50d   :  { %7914 = vmatmul.mubr.bf16.vlgmr.msra.gmra.mrb[20].mxu0 %v13132_v62  ;;  %v11573_v23 = vcombine.high %v1747_v19, %v1751_v54  ;;  %v11575_v25 = vcombine.high %v1748_v31, %v1752_v1 }
 0x50e   :  { %8242 = vmatmul.mubr.bf16.vlgmr.msra.gmra.mrb[20].mxu1 %v13132_v62  ;;  %7923 = vmatpush1.bf16.msra.mxu0 %v11516_v5  ;;  %v11534_v62 = vcombine.low %v1708_v48, %v1712_v44  ;;  %v11566_v5 = vcombine.low %v1740_v46, %v1744_v0  ;;  %v11574_v48 = vcombine.low %v1748_v31, %v1752_v1 }
 0x50f   :  { %7954 = vmatprep.mubr.bf16.mxu0 %v13134_v16  ;;  %8251 = vmatpush1.bf16.msra.mxu1 %v11518_v28  ;;  %v1755_v28 = vld [vmem:[#allocation8 + $0x1e10] sm:$0xff] }
 0x510   :  { %8282 = vmatprep.mubr.bf16.mxu1 %v13134_v16  ;;  %7924 = vmatprep.subr.bf16.mxu0 %v11525_v30  ;;  %v11540_v16 = vcombine.low %v1715_v59, %v1719_v41  ;;  %v1759_v30 = vld [vmem:[#allocation8 + $0x1e30] sm:$0xff]  ;;  %v1768_v59 = vld [vmem:[#allocation8 + $0x1e78] sm:$0xff] }
 0x511   :  { %8252 = vmatprep.subr.bf16.mxu1 %v11527_v35  ;;  %v11572_v35 = vcombine.low %v1747_v19, %v1751_v54  ;;  %v11581_v44 = vcombine.high %v1755_v28, %v1759_v30  ;;  %v11580_v41 = vcombine.low %v1755_v28, %v1759_v30  ;;  %v1800_v19 = vld [vmem:[#allocation8 + $0x1f78] sm:$0xff]  ;;  %v13183_v30 = vld [vmem:[#allocation10] sm:$0xff] }
 0x512   :  { %7925 = vmatpush1.bf16.msra.mxu0 %v11524_v37  ;;  %v11583_v37 = vcombine.high %v1756_v29, %v1760_v14  ;;  %v1808_v28 = vld [vmem:[#allocation8 + $0x1fb8] sm:$0xff] }
 0x513   :  { %8253 = vmatpush1.bf16.msra.mxu1 %v11526_v26  ;;  %7926 = vmatprep.subr.bf16.mxu0 %v11533_v24  ;;  %v1763_v26 = vld [vmem:[#allocation8 + $0x1e50] sm:$0xff] }
 0x514   :  { %8254 = vmatprep.subr.bf16.mxu1 %v11535_v3  ;;  %v1767_v24 = vld [vmem:[#allocation8 + $0x1e70] sm:$0xff]  ;;  %v1764_v3 = vld [vmem:[#allocation8 + $0x1e58] sm:$0xff] }
 0x515   :  { %v11589_v43 = vcombine.high %v1763_v26, %v1767_v24  ;;  %v11588_v20 = vcombine.low %v1763_v26, %v1767_v24  ;;  %v11590_v40 = vcombine.low %v1764_v3, %v1768_v59  ;;  %v1826_v26 = vrot.slane %v13183_v30, %v12987_v17  ;;  %v1812_v24 = vld [vmem:[#allocation8 + $0x1fd8] sm:$0xff] }
 0x516   :  { %7927 = vmatpush1.bf16.msra.mxu0 %v11532_v56  ;;  %v11591_v56 = vcombine.high %v1764_v3, %v1768_v59  ;;  %v1816_v3 = vld [vmem:[#allocation8 + $0x1ff8] sm:$0xff] }
 0x517   :  { %8255 = vmatpush1.bf16.msra.mxu1 %v11534_v62  ;;  %7928 = vmatprep.subr.bf16.mxu0 %v11541_v45  ;;  %v1771_v62 = vld [vmem:[#allocation8 + $0x1e90] sm:$0xff] }
 0x518   :  { %8256 = vmatprep.subr.bf16.mxu1 %v11543_v4  ;;  %v1775_v45 = vld [vmem:[#allocation8 + $0x1eb0] sm:$0xff]  ;;  %v1772_v4 = vld [vmem:[#allocation8 + $0x1e98] sm:$0xff] }
 0x519   :  { %v11597_v50 = vcombine.high %v1771_v62, %v1775_v45  ;;  %v11596_v53 = vcombine.low %v1771_v62, %v1775_v45  ;;  %v11598_v52 = vcombine.low %v1772_v4, %v1776_v21  ;;  %v11638_v45 = vcombine.low %v1812_v24, %v1816_v3 }
 0x51a   :  { %7929 = vmatpush1.bf16.msra.mxu0 %v11540_v16  ;;  %v11599_v16 = vcombine.high %v1772_v4, %v1776_v21  ;;  %v12141_v4 = vld [vmem:[#allocation11 + $0x4] ss:$16 sps:$4 sm:$0xff]   ;;  %v12144_v21 = vld [vmem:[#allocation11 + $0xc] ss:$16 sps:$4 sm:$0xff]  }
 0x51b   :  { %8257 = vmatpush1.bf16.msra.mxu1 %v11542_v57  ;;  %7930 = vmatprep.subr.bf16.mxu0 %v11549_v38  ;;  %v1779_v57 = vld [vmem:[#allocation8 + $0x1ed0] sm:$0xff] }
 0x51c   :  { %8258 = vmatprep.subr.bf16.mxu1 %v11551_v51  ;;  %v1783_v38 = vld [vmem:[#allocation8 + $0x1ef0] sm:$0xff]  ;;  %v1780_v51 = vld [vmem:[#allocation8 + $0x1ed8] sm:$0xff] }
 0x51d   :  { %v11605_v47 = vcombine.high %v1779_v57, %v1783_v38  ;;  %v11604_v63 = vcombine.low %v1779_v57, %v1783_v38  ;;  %v11606_v46 = vcombine.low %v1780_v51, %v1784_v33  ;;  %v12145_v38 = vld [vmem:[#allocation11 + $0x20] ss:$16 sps:$4 sm:$0xff]  }
 0x51e   :  { %7931 = vmatpush1.bf16.msra.mxu0 %v11548_v55  ;;  %v11607_v55 = vcombine.high %v1780_v51, %v1784_v33  ;;  %v12148_v51 = vld [vmem:[#allocation11 + $0x28] ss:$16 sps:$4 sm:$0xff]   ;;  %v12153_v33 = vld [vmem:[#allocation11 + $0x44] ss:$16 sps:$4 sm:$0xff]  }
 0x51f   :  { %8259 = vmatpush1.bf16.msra.mxu1 %v11550_v58  ;;  %7932 = vmatprep.subr.bf16.mxu0 %v11557_v60  ;;  %v1787_v58 = vld [vmem:[#allocation8 + $0x1f10] sm:$0xff] }
 0x520   :  { %8260 = vmatprep.subr.bf16.mxu1 %v11559_v61  ;;  %v1791_v60 = vld [vmem:[#allocation8 + $0x1f30] sm:$0xff]  ;;  %v1788_v61 = vld [vmem:[#allocation8 + $0x1f18] sm:$0xff] }
 0x521   :  { %v11613_v0 = vcombine.high %v1787_v58, %v1791_v60  ;;  %v11612_v54 = vcombine.low %v1787_v58, %v1791_v60  ;;  %v11614_v31 = vcombine.low %v1788_v61, %v1792_v11  ;;  %v12162_v58 = vld [vmem:[#allocation11 + $0x6c] ss:$16 sps:$4 sm:$0xff]   ;;  %v12160_v60 = vld [vmem:[#allocation11 + $0x68] ss:$16 sps:$4 sm:$0xff]  }
 0x522   :  { %7933 = vmatpush1.bf16.msra.mxu0 %v11556_v2  ;;  %v11615_v2 = vcombine.high %v1788_v61, %v1792_v11  ;;  %v12165_v61 = vld [vmem:[#allocation11 + $0x84] ss:$16 sps:$4 sm:$0xff]   ;;  %v12168_v11 = vld [vmem:[#allocation11 + $0x8c] ss:$16 sps:$4 sm:$0xff]  }
 0x523   :  { %8261 = vmatpush1.bf16.msra.mxu1 %v11558_v32  ;;  %7934 = vmatprep.subr.bf16.mxu0 %v11565_v6  ;;  %v1795_v32 = vld [vmem:[#allocation8 + $0x1f50] sm:$0xff] }
 0x524   :  { %8262 = vmatprep.subr.bf16.mxu1 %v11567_v10  ;;  %v1799_v6 = vld [vmem:[#allocation8 + $0x1f70] sm:$0xff]  ;;  %v1796_v10 = vld [vmem:[#allocation8 + $0x1f58] sm:$0xff] }
 0x525   :  { %v11621_v1 = vcombine.high %v1795_v32, %v1799_v6  ;;  %v11620_v29 = vcombine.low %v1795_v32, %v1799_v6  ;;  %v11622_v14 = vcombine.low %v1796_v10, %v1800_v19  ;;  %v12169_v32 = vld [vmem:[#allocation11 + $0xa0] ss:$16 sps:$4 sm:$0xff]   ;;  %v12172_v6 = vld [vmem:[#allocation11 + $0xa8] ss:$16 sps:$4 sm:$0xff]  }
 0x526   :  { %7935 = vmatpush1.bf16.msra.mxu0 %v11564_v49  ;;  %v11623_v49 = vcombine.high %v1796_v10, %v1800_v19  ;;  %v12177_v10 = vld [vmem:[#allocation11 + $0xc4] ss:$16 sps:$4 sm:$0xff]   ;;  %v12180_v19 = vld [vmem:[#allocation11 + $0xcc] ss:$16 sps:$4 sm:$0xff]  }
 0x527   :  { %8263 = vmatpush1.bf16.msra.mxu1 %v11566_v5  ;;  %7936 = vmatprep.subr.bf16.mxu0 %v11573_v23  ;;  %v1803_v5 = vld [vmem:[#allocation8 + $0x1f90] sm:$0xff] }
 0x528   :  { %8264 = vmatprep.subr.bf16.mxu1 %v11575_v25  ;;  %v1807_v23 = vld [vmem:[#allocation8 + $0x1fb0] sm:$0xff]  ;;  %v1804_v25 = vld [vmem:[#allocation8 + $0x1f98] sm:$0xff] }
 0x529   :  { %v11628_v59 = vcombine.low %v1803_v5, %v1807_v23 }
 0x52a   :  { %7937 = vmatpush1.bf16.msra.mxu0 %v11572_v35  ;;  %v11629_v35 = vcombine.high %v1803_v5, %v1807_v23  ;;  %v12181_v5 = vld [vmem:[#allocation11 + $0xe0] ss:$16 sps:$4 sm:$0xff]   ;;  %v12184_v23 = vld [vmem:[#allocation11 + $0xe8] ss:$16 sps:$4 sm:$0xff]  }
 0x52b   :  { %8265 = vmatpush1.bf16.msra.mxu1 %v11574_v48  ;;  %7938 = vmatprep.subr.bf16.mxu0 %v11581_v44  ;;  %v11631_v48 = vcombine.high %v1804_v25, %v1808_v28  ;;  %v1811_v44 = vld [vmem:[#allocation8 + $0x1fd0] sm:$0xff] }
 0x52c   :  { %8266 = vmatprep.subr.bf16.mxu1 %v11583_v37  ;;  %v1815_v37 = vld [vmem:[#allocation8 + $0x1ff0] sm:$0xff] }
 0x52d   :  { %v11636_v62 = vcombine.low %v1811_v44, %v1815_v37 }
 0x52e   :  { %7939 = vmatpush1.bf16.msra.mxu0 %v11580_v41  ;;  %v11630_v41 = vcombine.low %v1804_v25, %v1808_v28  ;;  %v12189_v25 = vld [vmem:[#allocation11 + $0x104] ss:$16 sps:$4 sm:$0xff]   ;;  %v12192_v28 = vld [vmem:[#allocation11 + $0x10c] ss:$16 sps:$4 sm:$0xff]  }
 0x52f   :  { %8267 = vmatpush1.bf16.msra.mxu1 %v11582_v42  ;;  %7940 = vmatprep.subr.bf16.mxu0 %v11589_v43  ;;  %v11637_v42 = vcombine.high %v1811_v44, %v1815_v37  ;;  %v11639_v43 = vcombine.high %v1812_v24, %v1816_v3  ;;  %v12193_v44 = vld [vmem:[#allocation11 + $0x120] ss:$16 sps:$4 sm:$0xff]   ;;  %v12196_v37 = vld [vmem:[#allocation11 + $0x128] ss:$16 sps:$4 sm:$0xff]   ;;  %v12204_v24 = vld [vmem:[#allocation11 + $0x14c] ss:$16 sps:$4 sm:$0xff]  }
 0x530   :  { %8268 = vmatprep.subr.bf16.mxu1 %v11591_v56  ;;  %v11976_v56 = vadd.f32 %v13163_v27, %v1826_v26  ;;  %v12150_v27 = vld [vmem:[#allocation11 + $0x2c] ss:$16 sps:$4 sm:$0xff]   ;;  %v12201_v26 = vld [vmem:[#allocation11 + $0x144] ss:$16 sps:$4 sm:$0xff]   ;;  %v12199_v3 = vld [vmem:[#allocation11 + $0x140] ss:$16 sps:$4 sm:$0xff]  }
 0x532   :  { %7941 = vmatpush1.bf16.msra.mxu0 %v11588_v20  ;;  %v8292_v20 = vmax.f32 %v11976_v56, 0.0  ;;  %v12208_v56 = vld [vmem:[#allocation11 + $0x168] ss:$16 sps:$4 sm:$0xff]  }
 0x533   :  { %8269 = vmatpush1.bf16.msra.mxu1 %v11590_v40  ;;  %7942 = vmatprep.subr.bf16.mxu0 %v11597_v50  ;;  %v12139_v40 = vld [vmem:[#allocation11] ss:$16 sps:$4 sm:$0xff]   ;;  %v12142_v50 = vld [vmem:[#allocation11 + $0x8] ss:$16 sps:$4 sm:$0xff]  }
 0x534   :  { %8270 = vmatprep.subr.bf16.mxu1 %v11599_v16  ;;  %v12147_v16 = vld [vmem:[#allocation11 + $0x24] ss:$16 sps:$4 sm:$0xff]   ;;  %v8300_v57 = vpack.c.bf16 %v8292_v20, %v8292_v20 }
 0x535   :  { %v12219_v20 = vld [vmem:[#allocation11 + $0x1a4] ss:$16 sps:$4 sm:$0xff]  }
 0x536   :  { %7943 = vmatpush1.bf16.msra.mxu0 %v11596_v53  ;;  %v12156_v53 = vld [vmem:[#allocation11 + $0x4c] ss:$16 sps:$4 sm:$0xff]  }
 0x537   :  { %8271 = vmatpush1.bf16.msra.mxu1 %v11598_v52  ;;  %7944 = vmatprep.subr.bf16.mxu0 %v11605_v47  ;;  %v12151_v52 = vld [vmem:[#allocation11 + $0x40] ss:$16 sps:$4 sm:$0xff]   ;;  %v12154_v47 = vld [vmem:[#allocation11 + $0x48] ss:$16 sps:$4 sm:$0xff]  }
 0x538   :  { %8272 = vmatprep.subr.bf16.mxu1 %v11607_v55  ;;  %v12159_v55 = vld [vmem:[#allocation11 + $0x64] ss:$16 sps:$4 sm:$0xff]  }
 0x53a   :  { %7945 = vmatpush1.bf16.msra.mxu0 %v11604_v63  ;;  %v12163_v63 = vld [vmem:[#allocation11 + $0x80] ss:$16 sps:$4 sm:$0xff]  }
 0x53b   :  { %8273 = vmatpush1.bf16.msra.mxu1 %v11606_v46  ;;  %7946 = vmatprep.subr.bf16.mxu0 %v11613_v0  ;;  %v12166_v46 = vld [vmem:[#allocation11 + $0x88] ss:$16 sps:$4 sm:$0xff]   ;;  %v12171_v0 = vld [vmem:[#allocation11 + $0xa4] ss:$16 sps:$4 sm:$0xff]  }
 0x53c   :  { %8274 = vmatprep.subr.bf16.mxu1 %v11615_v2  ;;  %v12174_v2 = vld [vmem:[#allocation11 + $0xac] ss:$16 sps:$4 sm:$0xff]  }
 0x53e   :  { %7947 = vmatpush1.bf16.msra.mxu0 %v11612_v54  ;;  %v12175_v54 = vld [vmem:[#allocation11 + $0xc0] ss:$16 sps:$4 sm:$0xff]  }
 0x53f   :  { %8275 = vmatpush1.bf16.msra.mxu1 %v11614_v31  ;;  %7948 = vmatprep.subr.bf16.mxu0 %v11621_v1  ;;  %v12178_v31 = vld [vmem:[#allocation11 + $0xc8] ss:$16 sps:$4 sm:$0xff]   ;;  %v12183_v1 = vld [vmem:[#allocation11 + $0xe4] ss:$16 sps:$4 sm:$0xff]  }
 0x540   :  { %8276 = vmatprep.subr.bf16.mxu1 %v11623_v49  ;;  %v12186_v49 = vld [vmem:[#allocation11 + $0xec] ss:$16 sps:$4 sm:$0xff]  }
 0x542   :  { %7949 = vmatpush1.bf16.msra.mxu0 %v11620_v29  ;;  %v12187_v29 = vld [vmem:[#allocation11 + $0x100] ss:$16 sps:$4 sm:$0xff]  }
 0x543   :  { %8277 = vmatpush1.bf16.msra.mxu1 %v11622_v14  ;;  %7950 = vmatprep.subr.bf16.mxu0 %v11629_v35  ;;  %v12190_v14 = vld [vmem:[#allocation11 + $0x108] ss:$16 sps:$4 sm:$0xff]   ;;  %v12195_v35 = vld [vmem:[#allocation11 + $0x124] ss:$16 sps:$4 sm:$0xff]  }
 0x544   :  { %8278 = vmatprep.subr.bf16.mxu1 %v11631_v48  ;;  %v12198_v48 = vld [vmem:[#allocation11 + $0x12c] ss:$16 sps:$4 sm:$0xff]  }
 0x546   :  { %7951 = vmatpush1.bf16.msra.mxu0 %v11628_v59  ;;  %v12202_v59 = vld [vmem:[#allocation11 + $0x148] ss:$16 sps:$4 sm:$0xff]  }
 0x547   :  { %8279 = vmatpush1.bf16.msra.mxu1 %v11630_v41  ;;  %7952 = vmatprep.subr.bf16.mxu0 %v11637_v42  ;;  %v12207_v41 = vld [vmem:[#allocation11 + $0x164] ss:$16 sps:$4 sm:$0xff]   ;;  %v12210_v42 = vld [vmem:[#allocation11 + $0x16c] ss:$16 sps:$4 sm:$0xff]  }
 0x548   :  { %8280 = vmatprep.subr.bf16.mxu1 %v11639_v43  ;;  %v12205_v43 = vld [vmem:[#allocation11 + $0x160] ss:$16 sps:$4 sm:$0xff]  }
 0x54a   :  { %7953 = vmatpush1.bf16.msra.mxu0 %v11636_v62  ;;  %v12213_v62 = vld [vmem:[#allocation11 + $0x184] ss:$16 sps:$4 sm:$0xff]  }
 0x54b   :  { %8281 = vmatpush1.bf16.msra.mxu1 %v11638_v45  ;;  %9865 = vmatprep.subr.bf16.mxu0 %v12141_v4  ;;  %v12216_v45 = vld [vmem:[#allocation11 + $0x18c] ss:$16 sps:$4 sm:$0xff]   ;;  %v12211_v4 = vld [vmem:[#allocation11 + $0x180] ss:$16 sps:$4 sm:$0xff]  }
 0x54c   :  { %10029 = vmatprep.subr.bf16.mxu1 %v12144_v21  ;;  %v12214_v21 = vld [vmem:[#allocation11 + $0x188] ss:$16 sps:$4 sm:$0xff]  }
 0x54d   :  { %7955 = vmatmul.mubr.bf16.vlgmr.msra.gmra.mrb[20].mxu0 %v13141_v12 }
 0x54e   :  { %8283 = vmatmul.mubr.bf16.vlgmr.msra.gmra.mrb[20].mxu1 %v13141_v12  ;;  %9866 = vmatpush1.bf16.msra.mxu0 %v12139_v40  ;;  %v12157_v12 = vld [vmem:[#allocation11 + $0x60] ss:$16 sps:$4 sm:$0xff]   ;;  %v12222_v40 = vld [vmem:[#allocation11 + $0x1ac] ss:$16 sps:$4 sm:$0xff]  }
 0x54f   :  { %9897 = vmatprep.mubr.bf16.mxu0 %v8300_v57  ;;  %10030 = vmatpush1.bf16.msra.mxu1 %v12142_v50  ;;  %v12217_v50 = vld [vmem:[#allocation11 + $0x1a0] ss:$16 sps:$4 sm:$0xff]  }
 0x550   :  { %10061 = vmatprep.mubr.bf16.mxu1 %v8300_v57  ;;  %9867 = vmatprep.subr.bf16.mxu0 %v12147_v16  ;;  %v1822_v16 = vrot.slane %v13183_v30, %v12982_v15  ;;  %v12220_v57 = vld [vmem:[#allocation11 + $0x1a8] ss:$16 sps:$4 sm:$0xff]  }
 0x551   :  { %10031 = vmatprep.subr.bf16.mxu1 %v12150_v27  ;;  %v12225_v27 = vld [vmem:[#allocation11 + $0x1c4] ss:$16 sps:$4 sm:$0xff]  }
 0x552   :  { %9868 = vmatpush1.bf16.msra.mxu0 %v12145_v38  ;;  %v12228_v38 = vld [vmem:[#allocation11 + $0x1cc] ss:$16 sps:$4 sm:$0xff]  }
 0x553   :  { %10032 = vmatpush1.bf16.msra.mxu1 %v12148_v51  ;;  %9869 = vmatprep.subr.bf16.mxu0 %v12153_v33  ;;  %v1834_v51 = vrot.slane %v13183_v30, %v12990_v18  ;;  %v12223_v33 = vld [vmem:[#allocation11 + $0x1c0] ss:$16 sps:$4 sm:$0xff]  }
 0x554   :  { %10033 = vmatprep.subr.bf16.mxu1 %v12156_v53  ;;  %v11975_v53 = vadd.f32 %v13159_v36, %v1822_v16  ;;  %v12235_v36 = vld [vmem:[#allocation11 + $0x200] ss:$16 sps:$4 sm:$0xff]   ;;  %v12294_v16 = vld [vmem:[#allocation11 + $0x32c] ss:$16 sps:$4 sm:$0xff]  }
 0x556   :  { %9870 = vmatpush1.bf16.msra.mxu0 %v12151_v52  ;;  %v12226_v52 = vld [vmem:[#allocation11 + $0x1c8] ss:$16 sps:$4 sm:$0xff]  }
 0x557   :  { %10034 = vmatpush1.bf16.msra.mxu1 %v12154_v47  ;;  %9871 = vmatprep.subr.bf16.mxu0 %v12159_v55  ;;  %v12231_v47 = vld [vmem:[#allocation11 + $0x1e4] ss:$16 sps:$4 sm:$0xff]   ;;  %v12234_v55 = vld [vmem:[#allocation11 + $0x1ec] ss:$16 sps:$4 sm:$0xff]  }
 0x558   :  { %10035 = vmatprep.subr.bf16.mxu1 %v12162_v58  ;;  %v11978_v58 = vadd.f32 %v13165_v13, %v1834_v51  ;;  %v12246_v13 = vld [vmem:[#allocation11 + $0x22c] ss:$16 sps:$4 sm:$0xff]  }
 0x559   :  { %v12300_v51 = vld [vmem:[#allocation11 + $0x34c] ss:$16 sps:$4 sm:$0xff]  }
 0x55a   :  { %9872 = vmatpush1.bf16.msra.mxu0 %v12157_v12  ;;  %v12229_v12 = vld [vmem:[#allocation11 + $0x1e0] ss:$16 sps:$4 sm:$0xff]  }
 0x55b   :  { %10036 = vmatpush1.bf16.msra.mxu1 %v12160_v60  ;;  %9873 = vmatprep.subr.bf16.mxu0 %v12165_v61  ;;  %v8291_v60 = vmax.f32 %v11975_v53, 0.0  ;;  %v12232_v61 = vld [vmem:[#allocation11 + $0x1e8] ss:$16 sps:$4 sm:$0xff]  }
 0x55c   :  { %10037 = vmatprep.subr.bf16.mxu1 %v12168_v11  ;;  %v12237_v11 = vld [vmem:[#allocation11 + $0x204] ss:$16 sps:$4 sm:$0xff]   ;;  %v12298_v53 = vld [vmem:[#allocation11 + $0x348] ss:$16 sps:$4 sm:$0xff]  }
 0x55e   :  { %9874 = vmatpush1.bf16.msra.mxu0 %v12163_v63  ;;  %v12240_v63 = vld [vmem:[#allocation11 + $0x20c] ss:$16 sps:$4 sm:$0xff]  }
 0x55f   :  { %10038 = vmatpush1.bf16.msra.mxu1 %v12166_v46  ;;  %9875 = vmatprep.subr.bf16.mxu0 %v12171_v0  ;;  %v8294_v46 = vmax.f32 %v11978_v58, 0.0  ;;  %v8299_v0 = vpack.c.bf16 %v8291_v60, %v8291_v60  ;;  %v12304_v58 = vld [vmem:[#allocation11 + $0x368] ss:$16 sps:$4 sm:$0xff]   ;;  %v12312_v60 = vld [vmem:[#allocation11 + $0x38c] ss:$16 sps:$4 sm:$0xff]  }
 0x560   :  { %10039 = vmatprep.subr.bf16.mxu1 %v12174_v2  ;;  %v12238_v2 = vld [vmem:[#allocation11 + $0x208] ss:$16 sps:$4 sm:$0xff]  }
 0x562   :  { %9876 = vmatpush1.bf16.msra.mxu0 %v12169_v32  ;;  %v12243_v32 = vld [vmem:[#allocation11 + $0x224] ss:$16 sps:$4 sm:$0xff]  }
 0x563   :  { %10040 = vmatpush1.bf16.msra.mxu1 %v12172_v6  ;;  %9877 = vmatprep.subr.bf16.mxu0 %v12177_v10  ;;  %v8302_v6 = vpack.c.bf16 %v8294_v46, %v8294_v46  ;;  %v12241_v10 = vld [vmem:[#allocation11 + $0x220] ss:$16 sps:$4 sm:$0xff]   ;;  %v12318_v46 = vld [vmem:[#allocation11 + $0x3ac] ss:$16 sps:$4 sm:$0xff]  }
 0x564   :  { %10041 = vmatprep.subr.bf16.mxu1 %v12180_v19  ;;  %v12244_v19 = vld [vmem:[#allocation11 + $0x228] ss:$16 sps:$4 sm:$0xff]  }
 0x566   :  { %9878 = vmatpush1.bf16.msra.mxu0 %v12175_v54  ;;  %v12249_v54 = vld [vmem:[#allocation11 + $0x244] ss:$16 sps:$4 sm:$0xff]  }
 0x567   :  { %10042 = vmatpush1.bf16.msra.mxu1 %v12178_v31  ;;  %9879 = vmatprep.subr.bf16.mxu0 %v12183_v1  ;;  %v12252_v31 = vld [vmem:[#allocation11 + $0x24c] ss:$16 sps:$4 sm:$0xff]   ;;  %v12247_v1 = vld [vmem:[#allocation11 + $0x240] ss:$16 sps:$4 sm:$0xff]  }
 0x568   :  { %10043 = vmatprep.subr.bf16.mxu1 %v12186_v49  ;;  %v12250_v49 = vld [vmem:[#allocation11 + $0x248] ss:$16 sps:$4 sm:$0xff]  }
 0x56a   :  { %9880 = vmatpush1.bf16.msra.mxu0 %v12181_v5  ;;  %v12255_v5 = vld [vmem:[#allocation11 + $0x264] ss:$16 sps:$4 sm:$0xff]  }
 0x56b   :  { %10044 = vmatpush1.bf16.msra.mxu1 %v12184_v23  ;;  %9881 = vmatprep.subr.bf16.mxu0 %v12189_v25  ;;  %v12258_v23 = vld [vmem:[#allocation11 + $0x26c] ss:$16 sps:$4 sm:$0xff]   ;;  %v12253_v25 = vld [vmem:[#allocation11 + $0x260] ss:$16 sps:$4 sm:$0xff]  }
 0x56c   :  { %10045 = vmatprep.subr.bf16.mxu1 %v12192_v28  ;;  %v12256_v28 = vld [vmem:[#allocation11 + $0x268] ss:$16 sps:$4 sm:$0xff]  }
 0x56e   :  { %9882 = vmatpush1.bf16.msra.mxu0 %v12187_v29  ;;  %v12261_v29 = vld [vmem:[#allocation11 + $0x284] ss:$16 sps:$4 sm:$0xff]  }
 0x56f   :  { %10046 = vmatpush1.bf16.msra.mxu1 %v12190_v14  ;;  %9883 = vmatprep.subr.bf16.mxu0 %v12195_v35  ;;  %v12264_v14 = vld [vmem:[#allocation11 + $0x28c] ss:$16 sps:$4 sm:$0xff]   ;;  %v12259_v35 = vld [vmem:[#allocation11 + $0x280] ss:$16 sps:$4 sm:$0xff]  }
 0x570   :  { %10047 = vmatprep.subr.bf16.mxu1 %v12198_v48  ;;  %v12262_v48 = vld [vmem:[#allocation11 + $0x288] ss:$16 sps:$4 sm:$0xff]  }
 0x572   :  { %9884 = vmatpush1.bf16.msra.mxu0 %v12193_v44  ;;  %v12267_v44 = vld [vmem:[#allocation11 + $0x2a4] ss:$16 sps:$4 sm:$0xff]  }
 0x573   :  { %10048 = vmatpush1.bf16.msra.mxu1 %v12196_v37  ;;  %9885 = vmatprep.subr.bf16.mxu0 %v12201_v26  ;;  %v12270_v37 = vld [vmem:[#allocation11 + $0x2ac] ss:$16 sps:$4 sm:$0xff]   ;;  %v12265_v26 = vld [vmem:[#allocation11 + $0x2a0] ss:$16 sps:$4 sm:$0xff]  }
 0x574   :  { %10049 = vmatprep.subr.bf16.mxu1 %v12204_v24  ;;  %v12268_v24 = vld [vmem:[#allocation11 + $0x2a8] ss:$16 sps:$4 sm:$0xff]  }
 0x576   :  { %9886 = vmatpush1.bf16.msra.mxu0 %v12199_v3  ;;  %v12273_v3 = vld [vmem:[#allocation11 + $0x2c4] ss:$16 sps:$4 sm:$0xff]  }
 0x577   :  { %10050 = vmatpush1.bf16.msra.mxu1 %v12202_v59  ;;  %9887 = vmatprep.subr.bf16.mxu0 %v12207_v41  ;;  %v12276_v59 = vld [vmem:[#allocation11 + $0x2cc] ss:$16 sps:$4 sm:$0xff]   ;;  %v12271_v41 = vld [vmem:[#allocation11 + $0x2c0] ss:$16 sps:$4 sm:$0xff]  }
 0x578   :  { %10051 = vmatprep.subr.bf16.mxu1 %v12210_v42  ;;  %v12274_v42 = vld [vmem:[#allocation11 + $0x2c8] ss:$16 sps:$4 sm:$0xff]  }
 0x57a   :  { %9888 = vmatpush1.bf16.msra.mxu0 %v12205_v43  ;;  %v12279_v43 = vld [vmem:[#allocation11 + $0x2e4] ss:$16 sps:$4 sm:$0xff]  }
 0x57b   :  { %10052 = vmatpush1.bf16.msra.mxu1 %v12208_v56  ;;  %9889 = vmatprep.subr.bf16.mxu0 %v12213_v62  ;;  %v12282_v56 = vld [vmem:[#allocation11 + $0x2ec] ss:$16 sps:$4 sm:$0xff]   ;;  %v12277_v62 = vld [vmem:[#allocation11 + $0x2e0] ss:$16 sps:$4 sm:$0xff]  }
 0x57c   :  { %10053 = vmatprep.subr.bf16.mxu1 %v12216_v45  ;;  %v12280_v45 = vld [vmem:[#allocation11 + $0x2e8] ss:$16 sps:$4 sm:$0xff]  }
 0x57e   :  { %9890 = vmatpush1.bf16.msra.mxu0 %v12211_v4  ;;  %v12285_v4 = vld [vmem:[#allocation11 + $0x304] ss:$16 sps:$4 sm:$0xff]  }
 0x57f   :  { %10054 = vmatpush1.bf16.msra.mxu1 %v12214_v21  ;;  %9891 = vmatprep.subr.bf16.mxu0 %v12219_v20  ;;  %v12288_v21 = vld [vmem:[#allocation11 + $0x30c] ss:$16 sps:$4 sm:$0xff]   ;;  %v12283_v20 = vld [vmem:[#allocation11 + $0x300] ss:$16 sps:$4 sm:$0xff]  }
 0x580   :  { %10055 = vmatprep.subr.bf16.mxu1 %v12222_v40  ;;  %v12286_v40 = vld [vmem:[#allocation11 + $0x308] ss:$16 sps:$4 sm:$0xff]  }
 0x582   :  { %9892 = vmatpush1.bf16.msra.mxu0 %v12217_v50  ;;  %v12291_v50 = vld [vmem:[#allocation11 + $0x324] ss:$16 sps:$4 sm:$0xff]  }
 0x583   :  { %10056 = vmatpush1.bf16.msra.mxu1 %v12220_v57  ;;  %9893 = vmatprep.subr.bf16.mxu0 %v12225_v27  ;;  %v12289_v57 = vld [vmem:[#allocation11 + $0x320] ss:$16 sps:$4 sm:$0xff]   ;;  %v12292_v27 = vld [vmem:[#allocation11 + $0x328] ss:$16 sps:$4 sm:$0xff]  }
 0x584   :  { %10057 = vmatprep.subr.bf16.mxu1 %v12228_v38  ;;  %v12297_v38 = vld [vmem:[#allocation11 + $0x344] ss:$16 sps:$4 sm:$0xff]  }
 0x586   :  { %9894 = vmatpush1.bf16.msra.mxu0 %v12223_v33  ;;  %v12295_v33 = vld [vmem:[#allocation11 + $0x340] ss:$16 sps:$4 sm:$0xff]  }
 0x587   :  { %10058 = vmatpush1.bf16.msra.mxu1 %v12226_v52  ;;  %9895 = vmatprep.subr.bf16.mxu0 %v12231_v47  ;;  %v12303_v52 = vld [vmem:[#allocation11 + $0x364] ss:$16 sps:$4 sm:$0xff]   ;;  %v12306_v47 = vld [vmem:[#allocation11 + $0x36c] ss:$16 sps:$4 sm:$0xff]  }
 0x588   :  { %10059 = vmatprep.subr.bf16.mxu1 %v12234_v55  ;;  %v12301_v55 = vld [vmem:[#allocation11 + $0x360] ss:$16 sps:$4 sm:$0xff]  }
 0x58a   :  { %9896 = vmatpush1.bf16.msra.mxu0 %v12229_v12  ;;  %v12309_v12 = vld [vmem:[#allocation11 + $0x384] ss:$16 sps:$4 sm:$0xff]  }
 0x58b   :  { %10060 = vmatpush1.bf16.msra.mxu1 %v12232_v61  ;;  %9906 = vmatprep.subr.bf16.mxu0 %v12237_v11  ;;  %v12307_v61 = vld [vmem:[#allocation11 + $0x380] ss:$16 sps:$4 sm:$0xff]   ;;  %v12310_v11 = vld [vmem:[#allocation11 + $0x388] ss:$16 sps:$4 sm:$0xff]  }
 0x58c   :  { %10070 = vmatprep.subr.bf16.mxu1 %v12240_v63  ;;  %v12315_v63 = vld [vmem:[#allocation11 + $0x3a4] ss:$16 sps:$4 sm:$0xff]  }
 0x58d   :  { %9898 = vmatmul.mubr.bf16.vlgmr.msra.gmra.mrb[24].mxu0 %v8299_v0 }
 0x58e   :  { %10062 = vmatmul.mubr.bf16.vlgmr.msra.gmra.mrb[24].mxu1 %v8299_v0  ;;  %9907 = vmatpush1.bf16.msra.mxu0 %v12235_v36  ;;  %v12313_v36 = vld [vmem:[#allocation11 + $0x3a0] ss:$16 sps:$4 sm:$0xff]   ;;  %v1830_v0 = vrot.slane %v13183_v30, %v13041_v39 }
 0x58f   :  { %9938 = vmatprep.mubr.bf16.mxu0 %v8302_v6  ;;  %10071 = vmatpush1.bf16.msra.mxu1 %v12238_v2  ;;  %v12316_v2 = vld [vmem:[#allocation11 + $0x3a8] ss:$16 sps:$4 sm:$0xff]  }
 0x590   :  { %10102 = vmatprep.mubr.bf16.mxu1 %v8302_v6  ;;  %9908 = vmatprep.subr.bf16.mxu0 %v12243_v32  ;;  %v12321_v32 = vld [vmem:[#allocation11 + $0x3c4] ss:$16 sps:$4 sm:$0xff]   ;;  %v12324_v6 = vld [vmem:[#allocation11 + $0x3cc] ss:$16 sps:$4 sm:$0xff]  }
 0x591   :  { %10072 = vmatprep.subr.bf16.mxu1 %v12246_v13  ;;  %v12319_v13 = vld [vmem:[#allocation11 + $0x3c0] ss:$16 sps:$4 sm:$0xff]  }
 0x592   :  { %9909 = vmatpush1.bf16.msra.mxu0 %v12241_v10  ;;  %v11977_v10 = vadd.f32 %v13161_v8, %v1830_v0  ;;  %v12334_v8 = vld [vmem:[#allocation11 + $0x408] ss:$16 sps:$4 sm:$0xff]   ;;  %v12391_v0 = vld [vmem:[#allocation11 + $0x540] ss:$16 sps:$4 sm:$0xff]  }
 0x593   :  { %10073 = vmatpush1.bf16.msra.mxu1 %v12244_v19  ;;  %9910 = vmatprep.subr.bf16.mxu0 %v12249_v54  ;;  %v12322_v19 = vld [vmem:[#allocation11 + $0x3c8] ss:$16 sps:$4 sm:$0xff]   ;;  %v12327_v54 = vld [vmem:[#allocation11 + $0x3e4] ss:$16 sps:$4 sm:$0xff]  }
 0x594   :  { %10074 = vmatprep.subr.bf16.mxu1 %v12252_v31  ;;  %v12330_v31 = vld [vmem:[#allocation11 + $0x3ec] ss:$16 sps:$4 sm:$0xff]  }
 0x596   :  { %9911 = vmatpush1.bf16.msra.mxu0 %v12247_v1  ;;  %v12325_v1 = vld [vmem:[#allocation11 + $0x3e0] ss:$16 sps:$4 sm:$0xff]  }
 0x597   :  { %10075 = vmatpush1.bf16.msra.mxu1 %v12250_v49  ;;  %9912 = vmatprep.subr.bf16.mxu0 %v12255_v5  ;;  %v8293_v49 = vmax.f32 %v11977_v10, 0.0  ;;  %v12328_v5 = vld [vmem:[#allocation11 + $0x3e8] ss:$16 sps:$4 sm:$0xff]  }
 0x598   :  { %10076 = vmatprep.subr.bf16.mxu1 %v12258_v23  ;;  %v12333_v23 = vld [vmem:[#allocation11 + $0x404] ss:$16 sps:$4 sm:$0xff]   ;;  %v12400_v10 = vld [vmem:[#allocation11 + $0x568] ss:$16 sps:$4 sm:$0xff]  }
 0x59a   :  { %9913 = vmatpush1.bf16.msra.mxu0 %v12253_v25  ;;  %v12336_v25 = vld [vmem:[#allocation11 + $0x40c] ss:$16 sps:$4 sm:$0xff]  }
 0x59b   :  { %10077 = vmatpush1.bf16.msra.mxu1 %v12256_v28  ;;  %9914 = vmatprep.subr.bf16.mxu0 %v12261_v29  ;;  %v12331_v28 = vld [vmem:[#allocation11 + $0x400] ss:$16 sps:$4 sm:$0xff]   ;;  %v8301_v29 = vpack.c.bf16 %v8293_v49, %v8293_v49  ;;  %v12411_v49 = vld [vmem:[#allocation11 + $0x5a4] ss:$16 sps:$4 sm:$0xff]  }
 0x59c   :  { %10078 = vmatprep.subr.bf16.mxu1 %v12264_v14  ;;  %v12339_v14 = vld [vmem:[#allocation11 + $0x424] ss:$16 sps:$4 sm:$0xff]  }
 0x59e   :  { %9915 = vmatpush1.bf16.msra.mxu0 %v12259_v35  ;;  %v12342_v35 = vld [vmem:[#allocation11 + $0x42c] ss:$16 sps:$4 sm:$0xff]  }
 0x59f   :  { %10079 = vmatpush1.bf16.msra.mxu1 %v12262_v48  ;;  %9916 = vmatprep.subr.bf16.mxu0 %v12267_v44  ;;  %v12337_v48 = vld [vmem:[#allocation11 + $0x420] ss:$16 sps:$4 sm:$0xff]   ;;  %v12340_v44 = vld [vmem:[#allocation11 + $0x428] ss:$16 sps:$4 sm:$0xff]  }
 0x5a0   :  { %10080 = vmatprep.subr.bf16.mxu1 %v12270_v37  ;;  %v12345_v37 = vld [vmem:[#allocation11 + $0x444] ss:$16 sps:$4 sm:$0xff]  }
 0x5a2   :  { %9917 = vmatpush1.bf16.msra.mxu0 %v12265_v26  ;;  %v12348_v26 = vld [vmem:[#allocation11 + $0x44c] ss:$16 sps:$4 sm:$0xff]  }
 0x5a3   :  { %10081 = vmatpush1.bf16.msra.mxu1 %v12268_v24  ;;  %9918 = vmatprep.subr.bf16.mxu0 %v12273_v3  ;;  %v12343_v24 = vld [vmem:[#allocation11 + $0x440] ss:$16 sps:$4 sm:$0xff]   ;;  %v12346_v3 = vld [vmem:[#allocation11 + $0x448] ss:$16 sps:$4 sm:$0xff]  }
 0x5a4   :  { %10082 = vmatprep.subr.bf16.mxu1 %v12276_v59  ;;  %v12351_v59 = vld [vmem:[#allocation11 + $0x464] ss:$16 sps:$4 sm:$0xff]  }
 0x5a6   :  { %9919 = vmatpush1.bf16.msra.mxu0 %v12271_v41  ;;  %v12354_v41 = vld [vmem:[#allocation11 + $0x46c] ss:$16 sps:$4 sm:$0xff]  }
 0x5a7   :  { %10083 = vmatpush1.bf16.msra.mxu1 %v12274_v42  ;;  %9920 = vmatprep.subr.bf16.mxu0 %v12279_v43  ;;  %v12349_v42 = vld [vmem:[#allocation11 + $0x460] ss:$16 sps:$4 sm:$0xff]   ;;  %v12352_v43 = vld [vmem:[#allocation11 + $0x468] ss:$16 sps:$4 sm:$0xff]  }
 0x5a8   :  { %10084 = vmatprep.subr.bf16.mxu1 %v12282_v56  ;;  %v12357_v56 = vld [vmem:[#allocation11 + $0x484] ss:$16 sps:$4 sm:$0xff]  }
 0x5aa   :  { %9921 = vmatpush1.bf16.msra.mxu0 %v12277_v62  ;;  %v12360_v62 = vld [vmem:[#allocation11 + $0x48c] ss:$16 sps:$4 sm:$0xff]  }
 0x5ab   :  { %10085 = vmatpush1.bf16.msra.mxu1 %v12280_v45  ;;  %9922 = vmatprep.subr.bf16.mxu0 %v12285_v4  ;;  %v12355_v45 = vld [vmem:[#allocation11 + $0x480] ss:$16 sps:$4 sm:$0xff]   ;;  %v12358_v4 = vld [vmem:[#allocation11 + $0x488] ss:$16 sps:$4 sm:$0xff]  }
 0x5ac   :  { %10086 = vmatprep.subr.bf16.mxu1 %v12288_v21  ;;  %v12363_v21 = vld [vmem:[#allocation11 + $0x4a4] ss:$16 sps:$4 sm:$0xff]  }
 0x5ae   :  { %9923 = vmatpush1.bf16.msra.mxu0 %v12283_v20  ;;  %v12366_v20 = vld [vmem:[#allocation11 + $0x4ac] ss:$16 sps:$4 sm:$0xff]  }
 0x5af   :  { %10087 = vmatpush1.bf16.msra.mxu1 %v12286_v40  ;;  %9924 = vmatprep.subr.bf16.mxu0 %v12291_v50  ;;  %v12361_v40 = vld [vmem:[#allocation11 + $0x4a0] ss:$16 sps:$4 sm:$0xff]   ;;  %v12364_v50 = vld [vmem:[#allocation11 + $0x4a8] ss:$16 sps:$4 sm:$0xff]  }
 0x5b0   :  { %10088 = vmatprep.subr.bf16.mxu1 %v12294_v16  ;;  %v12369_v16 = vld [vmem:[#allocation11 + $0x4c4] ss:$16 sps:$4 sm:$0xff]  }
 0x5b2   :  { %9925 = vmatpush1.bf16.msra.mxu0 %v12289_v57  ;;  %v12372_v57 = vld [vmem:[#allocation11 + $0x4cc] ss:$16 sps:$4 sm:$0xff]  }
 0x5b3   :  { %10089 = vmatpush1.bf16.msra.mxu1 %v12292_v27  ;;  %9926 = vmatprep.subr.bf16.mxu0 %v12297_v38  ;;  %v12367_v27 = vld [vmem:[#allocation11 + $0x4c0] ss:$16 sps:$4 sm:$0xff]   ;;  %v12370_v38 = vld [vmem:[#allocation11 + $0x4c8] ss:$16 sps:$4 sm:$0xff]  }
 0x5b4   :  { %10090 = vmatprep.subr.bf16.mxu1 %v12300_v51  ;;  %v12375_v51 = vld [vmem:[#allocation11 + $0x4e4] ss:$16 sps:$4 sm:$0xff]  }
 0x5b6   :  { %9927 = vmatpush1.bf16.msra.mxu0 %v12295_v33  ;;  %v12378_v33 = vld [vmem:[#allocation11 + $0x4ec] ss:$16 sps:$4 sm:$0xff]  }
 0x5b7   :  { %10091 = vmatpush1.bf16.msra.mxu1 %v12298_v53  ;;  %9928 = vmatprep.subr.bf16.mxu0 %v12303_v52  ;;  %v12373_v53 = vld [vmem:[#allocation11 + $0x4e0] ss:$16 sps:$4 sm:$0xff]   ;;  %v12376_v52 = vld [vmem:[#allocation11 + $0x4e8] ss:$16 sps:$4 sm:$0xff]  }
 0x5b8   :  { %10092 = vmatprep.subr.bf16.mxu1 %v12306_v47  ;;  %v12381_v47 = vld [vmem:[#allocation11 + $0x504] ss:$16 sps:$4 sm:$0xff]  }
 0x5ba   :  { %9929 = vmatpush1.bf16.msra.mxu0 %v12301_v55  ;;  %v12384_v55 = vld [vmem:[#allocation11 + $0x50c] ss:$16 sps:$4 sm:$0xff]  }
 0x5bb   :  { %10093 = vmatpush1.bf16.msra.mxu1 %v12304_v58  ;;  %9930 = vmatprep.subr.bf16.mxu0 %v12309_v12  ;;  %v12379_v58 = vld [vmem:[#allocation11 + $0x500] ss:$16 sps:$4 sm:$0xff]   ;;  %v12382_v12 = vld [vmem:[#allocation11 + $0x508] ss:$16 sps:$4 sm:$0xff]  }
 0x5bc   :  { %10094 = vmatprep.subr.bf16.mxu1 %v12312_v60  ;;  %v12387_v60 = vld [vmem:[#allocation11 + $0x524] ss:$16 sps:$4 sm:$0xff]  }
 0x5be   :  { %9931 = vmatpush1.bf16.msra.mxu0 %v12307_v61  ;;  %v12390_v61 = vld [vmem:[#allocation11 + $0x52c] ss:$16 sps:$4 sm:$0xff]  }
 0x5bf   :  { %10095 = vmatpush1.bf16.msra.mxu1 %v12310_v11  ;;  %9932 = vmatprep.subr.bf16.mxu0 %v12315_v63  ;;  %v12385_v11 = vld [vmem:[#allocation11 + $0x520] ss:$16 sps:$4 sm:$0xff]   ;;  %v12388_v63 = vld [vmem:[#allocation11 + $0x528] ss:$16 sps:$4 sm:$0xff]  }
 0x5c0   :  { %10096 = vmatprep.subr.bf16.mxu1 %v12318_v46  ;;  %v12393_v46 = vld [vmem:[#allocation11 + $0x544] ss:$16 sps:$4 sm:$0xff]  }
 0x5c2   :  { %9933 = vmatpush1.bf16.msra.mxu0 %v12313_v36  ;;  %v12396_v36 = vld [vmem:[#allocation11 + $0x54c] ss:$16 sps:$4 sm:$0xff]  }
 0x5c3   :  { %10097 = vmatpush1.bf16.msra.mxu1 %v12316_v2  ;;  %9934 = vmatprep.subr.bf16.mxu0 %v12321_v32  ;;  %v12394_v2 = vld [vmem:[#allocation11 + $0x548] ss:$16 sps:$4 sm:$0xff]   ;;  %v12399_v32 = vld [vmem:[#allocation11 + $0x564] ss:$16 sps:$4 sm:$0xff]  }
 0x5c4   :  { %10098 = vmatprep.subr.bf16.mxu1 %v12324_v6  ;;  %v12402_v6 = vld [vmem:[#allocation11 + $0x56c] ss:$16 sps:$4 sm:$0xff]  }
 0x5c6   :  { %9935 = vmatpush1.bf16.msra.mxu0 %v12319_v13  ;;  %v12397_v13 = vld [vmem:[#allocation11 + $0x560] ss:$16 sps:$4 sm:$0xff]  }
 0x5c7   :  { %10099 = vmatpush1.bf16.msra.mxu1 %v12322_v19  ;;  %9936 = vmatprep.subr.bf16.mxu0 %v12327_v54  ;;  %v12405_v19 = vld [vmem:[#allocation11 + $0x584] ss:$16 sps:$4 sm:$0xff]   ;;  %v12408_v54 = vld [vmem:[#allocation11 + $0x58c] ss:$16 sps:$4 sm:$0xff]  }
 0x5c8   :  { %10100 = vmatprep.subr.bf16.mxu1 %v12330_v31  ;;  %v12403_v31 = vld [vmem:[#allocation11 + $0x580] ss:$16 sps:$4 sm:$0xff]  }
 0x5ca   :  { %9937 = vmatpush1.bf16.msra.mxu0 %v12325_v1  ;;  %v12406_v1 = vld [vmem:[#allocation11 + $0x588] ss:$16 sps:$4 sm:$0xff]  }
 0x5cb   :  { %10101 = vmatpush1.bf16.msra.mxu1 %v12328_v5  ;;  %9947 = vmatprep.subr.bf16.mxu0 %v12333_v23  ;;  %v12414_v5 = vld [vmem:[#allocation11 + $0x5ac] ss:$16 sps:$4 sm:$0xff]   ;;  %v12409_v23 = vld [vmem:[#allocation11 + $0x5a0] ss:$16 sps:$4 sm:$0xff]  }
 0x5cc   :  { %10111 = vmatprep.subr.bf16.mxu1 %v12336_v25  ;;  %v12412_v25 = vld [vmem:[#allocation11 + $0x5a8] ss:$16 sps:$4 sm:$0xff]  }
 0x5cd   :  { %9939 = vmatmul.mubr.bf16.vlgmr.msra.gmra.mrb[24].mxu0 %v8301_v29 }
 0x5ce   :  { %10103 = vmatmul.mubr.bf16.vlgmr.msra.gmra.mrb[24].mxu1 %v8301_v29  ;;  %9948 = vmatpush1.bf16.msra.mxu0 %v12331_v28  ;;  %v12417_v28 = vld [vmem:[#allocation11 + $0x5c4] ss:$16 sps:$4 sm:$0xff]   ;;  %v12420_v29 = vld [vmem:[#allocation11 + $0x5cc] ss:$16 sps:$4 sm:$0xff]  }
 0x5cf   :  { %10112 = vmatpush1.bf16.msra.mxu1 %v12334_v8  ;;  %9949 = vmatprep.subr.bf16.mxu0 %v12339_v14  ;;  %v12415_v8 = vld [vmem:[#allocation11 + $0x5c0] ss:$16 sps:$4 sm:$0xff]   ;;  %v12418_v14 = vld [vmem:[#allocation11 + $0x5c8] ss:$16 sps:$4 sm:$0xff]  }
 0x5d0   :  { %10113 = vmatprep.subr.bf16.mxu1 %v12342_v35  ;;  %v12423_v35 = vld [vmem:[#allocation11 + $0x5e4] ss:$16 sps:$4 sm:$0xff]  }
 0x5d2   :  { %9950 = vmatpush1.bf16.msra.mxu0 %v12337_v48  ;;  %v12426_v48 = vld [vmem:[#allocation11 + $0x5ec] ss:$16 sps:$4 sm:$0xff]  }
 0x5d3   :  { %10114 = vmatpush1.bf16.msra.mxu1 %v12340_v44  ;;  %9951 = vmatprep.subr.bf16.mxu0 %v12345_v37  ;;  %v12421_v44 = vld [vmem:[#allocation11 + $0x5e0] ss:$16 sps:$4 sm:$0xff]   ;;  %v12424_v37 = vld [vmem:[#allocation11 + $0x5e8] ss:$16 sps:$4 sm:$0xff]  }
 0x5d4   :  { %10115 = vmatprep.subr.bf16.mxu1 %v12348_v26  ;;  %v12429_v26 = vld [vmem:[#allocation11 + $0x604] ss:$16 sps:$4 sm:$0xff]  }
 0x5d6   :  { %9952 = vmatpush1.bf16.msra.mxu0 %v12343_v24  ;;  %v12432_v24 = vld [vmem:[#allocation11 + $0x60c] ss:$16 sps:$4 sm:$0xff]  }
 0x5d7   :  { %10116 = vmatpush1.bf16.msra.mxu1 %v12346_v3  ;;  %9953 = vmatprep.subr.bf16.mxu0 %v12351_v59  ;;  %v1838_v3 = vrot.slane %v13183_v30, %v13021_v22  ;;  %v1842_v59 = vrot.slane %v13183_v30, %v13028_v34  ;;  %v12427_v34 = vld [vmem:[#allocation11 + $0x600] ss:$16 sps:$4 sm:$0xff]  }
 0x5d8   :  { %10117 = vmatprep.subr.bf16.mxu1 %v12354_v41  ;;  %v1850_v41 = vrot.slane %v13183_v30, %v13055_v9  ;;  %v12435_v9 = vld [vmem:[#allocation11 + $0x624] ss:$16 sps:$4 sm:$0xff]   ;;  %v12438_v30 = vld [vmem:[#allocation11 + $0x62c] ss:$16 sps:$4 sm:$0xff]  }
 0x5da   :  { %9954 = vmatpush1.bf16.msra.mxu0 %v12349_v42 }
 0x5db   :  { %10118 = vmatpush1.bf16.msra.mxu1 %v12352_v43  ;;  %9955 = vmatprep.subr.bf16.mxu0 %v12357_v56 }
 0x5dc   :  { %10119 = vmatprep.subr.bf16.mxu1 %v12360_v62 }
 0x5de   :  { %9956 = vmatpush1.bf16.msra.mxu0 %v12355_v45 }
 0x5df   :  { %10120 = vmatpush1.bf16.msra.mxu1 %v12358_v4  ;;  %9957 = vmatprep.subr.bf16.mxu0 %v12363_v21 }
 0x5e0   :  { %10121 = vmatprep.subr.bf16.mxu1 %v12366_v20 }
 0x5e2   :  { %9958 = vmatpush1.bf16.msra.mxu0 %v12361_v40 }
 0x5e3   :  { %10122 = vmatpush1.bf16.msra.mxu1 %v12364_v50  ;;  %9959 = vmatprep.subr.bf16.mxu0 %v12369_v16 }
 0x5e4   :  { %10123 = vmatprep.subr.bf16.mxu1 %v12372_v57 }
 0x5e6   :  { %9960 = vmatpush1.bf16.msra.mxu0 %v12367_v27 }
 0x5e7   :  { %10124 = vmatpush1.bf16.msra.mxu1 %v12370_v38  ;;  %9961 = vmatprep.subr.bf16.mxu0 %v12375_v51  ;;  %v12430_v51 = vld [vmem:[#allocation11 + $0x608] ss:$16 sps:$4 sm:$0xff]  }
 0x5e8   :  { %10125 = vmatprep.subr.bf16.mxu1 %v12378_v33 }
 0x5ea   :  { %9962 = vmatpush1.bf16.msra.mxu0 %v12373_v53 }
 0x5eb   :  { %10126 = vmatpush1.bf16.msra.mxu1 %v12376_v52  ;;  %9963 = vmatprep.subr.bf16.mxu0 %v12381_v47  ;;  %v12433_v52 = vld [vmem:[#allocation11 + $0x620] ss:$16 sps:$4 sm:$0xff]   ;;  %v12436_v47 = vld [vmem:[#allocation11 + $0x628] ss:$16 sps:$4 sm:$0xff]  }
 0x5ec   :  { %10127 = vmatprep.subr.bf16.mxu1 %v12384_v55  ;;  %v12441_v55 = vld [vmem:[#allocation11 + $0x644] ss:$16 sps:$4 sm:$0xff]  }
 0x5ee   :  { %9964 = vmatpush1.bf16.msra.mxu0 %v12379_v58  ;;  %v12444_v58 = vld [vmem:[#allocation11 + $0x64c] ss:$16 sps:$4 sm:$0xff]  }
 0x5ef   :  { %10128 = vmatpush1.bf16.msra.mxu1 %v12382_v12  ;;  %9965 = vmatprep.subr.bf16.mxu0 %v12387_v60  ;;  %v12439_v12 = vld [vmem:[#allocation11 + $0x640] ss:$16 sps:$4 sm:$0xff]   ;;  %v12442_v60 = vld [vmem:[#allocation11 + $0x648] ss:$16 sps:$4 sm:$0xff]  }
 0x5f0   :  { %10129 = vmatprep.subr.bf16.mxu1 %v12390_v61  ;;  %v12447_v61 = vld [vmem:[#allocation11 + $0x664] ss:$16 sps:$4 sm:$0xff]  }
 0x5f2   :  { %9966 = vmatpush1.bf16.msra.mxu0 %v12385_v11  ;;  %v12450_v11 = vld [vmem:[#allocation11 + $0x66c] ss:$16 sps:$4 sm:$0xff]  }
 0x5f3   :  { %10130 = vmatpush1.bf16.msra.mxu1 %v12388_v63  ;;  %9967 = vmatprep.subr.bf16.mxu0 %v12393_v46  ;;  %v12445_v63 = vld [vmem:[#allocation11 + $0x660] ss:$16 sps:$4 sm:$0xff]   ;;  %v12448_v46 = vld [vmem:[#allocation11 + $0x668] ss:$16 sps:$4 sm:$0xff]  }
 0x5f4   :  { %10131 = vmatprep.subr.bf16.mxu1 %v12396_v36  ;;  %v12453_v36 = vld [vmem:[#allocation11 + $0x684] ss:$16 sps:$4 sm:$0xff]  }
 0x5f6   :  { %9968 = vmatpush1.bf16.msra.mxu0 %v12391_v0  ;;  %v12456_v0 = vld [vmem:[#allocation11 + $0x68c] ss:$16 sps:$4 sm:$0xff]  }
 0x5f7   :  { %10132 = vmatpush1.bf16.msra.mxu1 %v12394_v2  ;;  %9969 = vmatprep.subr.bf16.mxu0 %v12399_v32  ;;  %v12451_v2 = vld [vmem:[#allocation11 + $0x680] ss:$16 sps:$4 sm:$0xff]   ;;  %v12454_v32 = vld [vmem:[#allocation11 + $0x688] ss:$16 sps:$4 sm:$0xff]  }
 0x5f8   :  { %10133 = vmatprep.subr.bf16.mxu1 %v12402_v6  ;;  %v12459_v6 = vld [vmem:[#allocation11 + $0x6a4] ss:$16 sps:$4 sm:$0xff]  }
 0x5fa   :  { %9970 = vmatpush1.bf16.msra.mxu0 %v12397_v13  ;;  %v12462_v13 = vld [vmem:[#allocation11 + $0x6ac] ss:$16 sps:$4 sm:$0xff]  }
 0x5fb   :  { %10134 = vmatpush1.bf16.msra.mxu1 %v12400_v10  ;;  %9971 = vmatprep.subr.bf16.mxu0 %v12405_v19  ;;  %v12457_v10 = vld [vmem:[#allocation11 + $0x6a0] ss:$16 sps:$4 sm:$0xff]   ;;  %v12460_v19 = vld [vmem:[#allocation11 + $0x6a8] ss:$16 sps:$4 sm:$0xff]  }
 0x5fc   :  { %10135 = vmatprep.subr.bf16.mxu1 %v12408_v54  ;;  %v12465_v54 = vld [vmem:[#allocation11 + $0x6c4] ss:$16 sps:$4 sm:$0xff]  }
 0x5fe   :  { %9972 = vmatpush1.bf16.msra.mxu0 %v12403_v31  ;;  %v12468_v31 = vld [vmem:[#allocation11 + $0x6cc] ss:$16 sps:$4 sm:$0xff]  }
 0x5ff   :  { %10136 = vmatpush1.bf16.msra.mxu1 %v12406_v1  ;;  %9973 = vmatprep.subr.bf16.mxu0 %v12411_v49  ;;  %v12463_v1 = vld [vmem:[#allocation11 + $0x6c0] ss:$16 sps:$4 sm:$0xff]   ;;  %v12466_v49 = vld [vmem:[#allocation11 + $0x6c8] ss:$16 sps:$4 sm:$0xff]  }
 0x600   :  { %10137 = vmatprep.subr.bf16.mxu1 %v12414_v5  ;;  %v12471_v5 = vld [vmem:[#allocation11 + $0x6e4] ss:$16 sps:$4 sm:$0xff]  }
 0x602   :  { %9974 = vmatpush1.bf16.msra.mxu0 %v12409_v23  ;;  %v12474_v23 = vld [vmem:[#allocation11 + $0x6ec] ss:$16 sps:$4 sm:$0xff]  }
 0x603   :  { %10138 = vmatpush1.bf16.msra.mxu1 %v12412_v25  ;;  %9975 = vmatprep.subr.bf16.mxu0 %v12417_v28  ;;  %v12469_v25 = vld [vmem:[#allocation11 + $0x6e0] ss:$16 sps:$4 sm:$0xff]   ;;  %v12472_v28 = vld [vmem:[#allocation11 + $0x6e8] ss:$16 sps:$4 sm:$0xff]  }
 0x604   :  { %10139 = vmatprep.subr.bf16.mxu1 %v12420_v29  ;;  %v12477_v29 = vld [vmem:[#allocation11 + $0x704] ss:$16 sps:$4 sm:$0xff]  }
 0x606   :  { %9976 = vmatpush1.bf16.msra.mxu0 %v12415_v8  ;;  %v12480_v8 = vld [vmem:[#allocation11 + $0x70c] ss:$16 sps:$4 sm:$0xff]  }
 0x607   :  { %10140 = vmatpush1.bf16.msra.mxu1 %v12418_v14  ;;  %9977 = vmatprep.subr.bf16.mxu0 %v12423_v35  ;;  %v12475_v14 = vld [vmem:[#allocation11 + $0x700] ss:$16 sps:$4 sm:$0xff]   ;;  %v12478_v35 = vld [vmem:[#allocation11 + $0x708] ss:$16 sps:$4 sm:$0xff]  }
 0x608   :  { %10141 = vmatprep.subr.bf16.mxu1 %v12426_v48  ;;  %v12483_v48 = vld [vmem:[#allocation11 + $0x724] ss:$16 sps:$4 sm:$0xff]  }
 0x60a   :  { %9978 = vmatpush1.bf16.msra.mxu0 %v12421_v44  ;;  %v12486_v44 = vld [vmem:[#allocation11 + $0x72c] ss:$16 sps:$4 sm:$0xff]  }
 0x60b   :  { %10142 = vmatpush1.bf16.msra.mxu1 %v12424_v37  ;;  %9988 = vmatprep.subr.bf16.mxu0 %v12429_v26  ;;  %v12481_v37 = vld [vmem:[#allocation11 + $0x720] ss:$16 sps:$4 sm:$0xff]   ;;  %v12484_v26 = vld [vmem:[#allocation11 + $0x728] ss:$16 sps:$4 sm:$0xff]  }
 0x60c   :  { %10152 = vmatprep.subr.bf16.mxu1 %v12432_v24  ;;  %v12489_v24 = vld [vmem:[#allocation11 + $0x744] ss:$16 sps:$4 sm:$0xff]  }
 0x620   :  { %v7956_v42 = vpop.f32.mrb[20].mxu0 }
 0x621   :  { %v11979_v43 = vadd.f32 %v7956_v42, %v1838_v3  ;;  %v13205_v56 = vpop.f32.mrb[20].mxu1  ;;  %v7958_v62 = vpop.f32.mrb[21].mxu0  ;;  %v12492_v3 = vld [vmem:[#allocation11 + $0x74c] ss:$16 sps:$4 sm:$0xff]   ;;  %v12495_v42 = vld [vmem:[#allocation11 + $0x764] ss:$16 sps:$4 sm:$0xff]  }
 0x622   :  { %v11980_v45 = vadd.f32 %v7958_v62, %v1842_v59  ;;  %v8286_v4 = vpop.f32.mrb[21].mxu1  ;;  %v7960_v21 = vpop.f32.mrb[22].mxu0  ;;  %v12487_v59 = vld [vmem:[#allocation11 + $0x740] ss:$16 sps:$4 sm:$0xff]  }
 0x623   :  { %v8295_v20 = vmax.f32 %v11979_v43, 0.0  ;;  %v11982_v40 = vadd.f32 %v8286_v4, %v1850_v41  ;;  %v8288_v50 = vpop.f32.mrb[22].mxu1  ;;  %v7961_v16 = vpop.f32.mrb[23].mxu0  ;;  %v12490_v41 = vld [vmem:[#allocation11 + $0x748] ss:$16 sps:$4 sm:$0xff]  }
 0x624   :  { %v8296_v57 = vmax.f32 %v11980_v45, 0.0  ;;  %v8289_v22 = vpop.f32.mrb[23].mxu1  ;;  %v12498_v43 = vld [vmem:[#allocation11 + $0x76c] ss:$16 sps:$4 sm:$0xff]   ;;  %v12493_v62 = vld [vmem:[#allocation11 + $0x760] ss:$16 sps:$4 sm:$0xff]  }
 0x625   :  { %v8298_v27 = vmax.f32 %v11982_v40, 0.0  ;;  %v8303_v33 = vpack.c.bf16 %v8295_v20, %v8295_v20  ;;  %v12496_v45 = vld [vmem:[#allocation11 + $0x768] ss:$16 sps:$4 sm:$0xff]   ;;  %v12501_v4 = vld [vmem:[#allocation11 + $0x784] ss:$16 sps:$4 sm:$0xff]  }
 0x626   :  { %v8304_v38 = vpack.c.bf16 %v8296_v57, %v8296_v57  ;;  %v12504_v21 = vld [vmem:[#allocation11 + $0x78c] ss:$16 sps:$4 sm:$0xff]   ;;  %v12499_v20 = vld [vmem:[#allocation11 + $0x780] ss:$16 sps:$4 sm:$0xff]   ;;  %v12502_v40 = vld [vmem:[#allocation11 + $0x788] ss:$16 sps:$4 sm:$0xff]  }
 0x627   :  { %v8306_v53 = vpack.c.bf16 %v8298_v27, %v8298_v27  ;;  %v12507_v50 = vld [vmem:[#allocation11 + $0x7a4] ss:$16 sps:$4 sm:$0xff]   ;;  %v12510_v16 = vld [vmem:[#allocation11 + $0x7ac] ss:$16 sps:$4 sm:$0xff]   ;;  %v12505_v57 = vld [vmem:[#allocation11 + $0x7a0] ss:$16 sps:$4 sm:$0xff]  }
 0x628   :  { %9979 = vmatprep.mubr.bf16.mxu0 %v8304_v38  ;;  %10143 = vmatprep.mubr.bf16.mxu1 %v8304_v38  ;;  %v12508_v22 = vld [vmem:[#allocation11 + $0x7a8] ss:$16 sps:$4 sm:$0xff]  }
 0x629   :  { %9980 = vmatmul.mubr.bf16.vlgmr.msra.gmra.mrb[24].mxu0 %v8303_v33  ;;  %10144 = vmatmul.mubr.bf16.vlgmr.msra.gmra.mrb[24].mxu1 %v8303_v33  ;;  %v12557_v27 = vld [vmem:[#allocation10] sm:$0xff]  ;;  %v12511_v33 = vld [vmem:[#allocation11 + $0x7c0] ss:$16 sps:$4 sm:$0xff]  }
 0x62a   :  { %9989 = vmatpush1.bf16.msra.mxu0 %v12427_v34  ;;  %10153 = vmatpush1.bf16.msra.mxu1 %v12430_v51  ;;  %v1846_v38 = vrot.slane %v12557_v27, %v13052_v7  ;;  %v12513_v34 = vld [vmem:[#allocation11 + $0x7c4] ss:$16 sps:$4 sm:$0xff]   ;;  %v12516_v51 = vld [vmem:[#allocation11 + $0x7cc] ss:$16 sps:$4 sm:$0xff]  }
 0x62b   :  { %10020 = vmatprep.mubr.bf16.mxu0 %v8306_v53  ;;  %10184 = vmatprep.mubr.bf16.mxu1 %v8306_v53  ;;  %v12519_v53 = vld [vmem:[#allocation11 + $0x7e4] ss:$16 sps:$4 sm:$0xff]  }
 0x62c   :  { %9990 = vmatprep.subr.bf16.mxu0 %v12435_v9  ;;  %10154 = vmatprep.subr.bf16.mxu1 %v12438_v30  ;;  %v12514_v9 = vld [vmem:[#allocation11 + $0x7c8] ss:$16 sps:$4 sm:$0xff]   ;;  %v11981_v30 = vadd.f32 %v13205_v56, %v1846_v38  ;;  %v12523_v7 = vld [vmem:[%s13319_s7 + $0x40] sm:$0xff]  }
 0x62d   :  { %v12525_v56 = vld [vmem:[%s13319_s7] sm:$0xff]  }
 0x62e   :  { %9991 = vmatpush1.bf16.msra.mxu0 %v12433_v52  ;;  %10155 = vmatpush1.bf16.msra.mxu1 %v12436_v47  ;;  %v12522_v52 = vld [vmem:[#allocation11 + $0x7ec] ss:$16 sps:$4 sm:$0xff]   ;;  %v12517_v47 = vld [vmem:[#allocation11 + $0x7e0] ss:$16 sps:$4 sm:$0xff]  }
 0x62f   :  { %9992 = vmatprep.subr.bf16.mxu0 %v12441_v55  ;;  %10156 = vmatprep.subr.bf16.mxu1 %v12444_v58  ;;  %v12520_v55 = vld [vmem:[#allocation11 + $0x7e8] ss:$16 sps:$4 sm:$0xff]   ;;  %v8297_v58 = vmax.f32 %v11981_v30, 0.0 }
 0x632   :  { %9993 = vmatpush1.bf16.msra.mxu0 %v12439_v12  ;;  %10157 = vmatpush1.bf16.msra.mxu1 %v12442_v60  ;;  %v12524_v12 = vld [vmem:[%s13319_s7 + $0xc0] sm:$0xff]  }
 0x633   :  { %9994 = vmatprep.subr.bf16.mxu0 %v12447_v61  ;;  %10158 = vmatprep.subr.bf16.mxu1 %v12450_v11  ;;  %v12526_v60 = vld [vmem:[%s13319_s7 + $0x80] sm:$0xff]   ;;  %v8305_v61 = vpack.c.bf16 %v8297_v58, %v8297_v58  ;;  %v12527_v11 = vld [vmem:[%s13319_s7 + $0x48] sm:$0xff]  }
 0x636   :  { %9995 = vmatpush1.bf16.msra.mxu0 %v12445_v63  ;;  %10159 = vmatpush1.bf16.msra.mxu1 %v12448_v46  ;;  %v12528_v63 = vld [vmem:[%s13319_s7 + $0xc8] sm:$0xff]  }
 0x637   :  { %9996 = vmatprep.subr.bf16.mxu0 %v12453_v36  ;;  %10160 = vmatprep.subr.bf16.mxu1 %v12456_v0  ;;  %v12529_v46 = vld [vmem:[%s13319_s7 + $0x8] sm:$0xff]   ;;  %v12531_v0 = vld [vmem:[%s13319_s7 + $0x50] sm:$0xff]  }
 0x638   :  { %v12530_v36 = vld [vmem:[%s13319_s7 + $0x88] sm:$0xff]  }
 0x63a   :  { %9997 = vmatpush1.bf16.msra.mxu0 %v12451_v2  ;;  %10161 = vmatpush1.bf16.msra.mxu1 %v12454_v32  ;;  %v12532_v2 = vld [vmem:[%s13319_s7 + $0xd0] sm:$0xff]  }
 0x63b   :  { %9998 = vmatprep.subr.bf16.mxu0 %v12459_v6  ;;  %10162 = vmatprep.subr.bf16.mxu1 %v12462_v13  ;;  %v12533_v32 = vld [vmem:[%s13319_s7 + $0x10] sm:$0xff]   ;;  %v12535_v13 = vld [vmem:[%s13319_s7 + $0x58] sm:$0xff]  }
 0x63c   :  { %v12534_v6 = vld [vmem:[%s13319_s7 + $0x90] sm:$0xff]  }
 0x63e   :  { %9999 = vmatpush1.bf16.msra.mxu0 %v12457_v10  ;;  %10163 = vmatpush1.bf16.msra.mxu1 %v12460_v19  ;;  %v12536_v10 = vld [vmem:[%s13319_s7 + $0xd8] sm:$0xff]  }
 0x63f   :  { %10000 = vmatprep.subr.bf16.mxu0 %v12465_v54  ;;  %10164 = vmatprep.subr.bf16.mxu1 %v12468_v31  ;;  %v12537_v19 = vld [vmem:[%s13319_s7 + $0x18] sm:$0xff]   ;;  %v12539_v31 = vld [vmem:[%s13319_s7 + $0x60] sm:$0xff]  }
 0x640   :  { %v12538_v54 = vld [vmem:[%s13319_s7 + $0x98] sm:$0xff]  }
 0x642   :  { %10001 = vmatpush1.bf16.msra.mxu0 %v12463_v1  ;;  %10165 = vmatpush1.bf16.msra.mxu1 %v12466_v49  ;;  %v12540_v1 = vld [vmem:[%s13319_s7 + $0xe0] sm:$0xff]  }
 0x643   :  { %10002 = vmatprep.subr.bf16.mxu0 %v12471_v5  ;;  %10166 = vmatprep.subr.bf16.mxu1 %v12474_v23  ;;  %v12541_v49 = vld [vmem:[%s13319_s7 + $0x20] sm:$0xff]   ;;  %v12543_v23 = vld [vmem:[%s13319_s7 + $0x68] sm:$0xff]  }
 0x644   :  { %v12542_v5 = vld [vmem:[%s13319_s7 + $0xa0] sm:$0xff]  }
 0x646   :  { %10003 = vmatpush1.bf16.msra.mxu0 %v12469_v25  ;;  %10167 = vmatpush1.bf16.msra.mxu1 %v12472_v28  ;;  %v12544_v25 = vld [vmem:[%s13319_s7 + $0xe8] sm:$0xff]  }
 0x647   :  { %10004 = vmatprep.subr.bf16.mxu0 %v12477_v29  ;;  %10168 = vmatprep.subr.bf16.mxu1 %v12480_v8  ;;  %v12545_v28 = vld [vmem:[%s13319_s7 + $0x28] sm:$0xff]   ;;  %v12547_v8 = vld [vmem:[%s13319_s7 + $0x70] sm:$0xff]  }
 0x648   :  { %v12546_v29 = vld [vmem:[%s13319_s7 + $0xa8] sm:$0xff]  }
 0x64a   :  { %10005 = vmatpush1.bf16.msra.mxu0 %v12475_v14  ;;  %10169 = vmatpush1.bf16.msra.mxu1 %v12478_v35  ;;  %v12548_v14 = vld [vmem:[%s13319_s7 + $0xf0] sm:$0xff]  }
 0x64b   :  { %10006 = vmatprep.subr.bf16.mxu0 %v12483_v48  ;;  %10170 = vmatprep.subr.bf16.mxu1 %v12486_v44  ;;  %v12549_v35 = vld [vmem:[%s13319_s7 + $0x30] sm:$0xff]   ;;  %v12551_v44 = vld [vmem:[%s13319_s7 + $0x78] sm:$0xff]  }
 0x64c   :  { %v12550_v48 = vld [vmem:[%s13319_s7 + $0xb0] sm:$0xff]  }
 0x64e   :  { %10007 = vmatpush1.bf16.msra.mxu0 %v12481_v37  ;;  %10171 = vmatpush1.bf16.msra.mxu1 %v12484_v26  ;;  %v12552_v37 = vld [vmem:[%s13319_s7 + $0xf8] sm:$0xff]  }
 0x64f   :  { %10008 = vmatprep.subr.bf16.mxu0 %v12489_v24  ;;  %10172 = vmatprep.subr.bf16.mxu1 %v12492_v3  ;;  %v12553_v26 = vld [vmem:[%s13319_s7 + $0x38] sm:$0xff]   ;;  %v8563_v3 = vld [vmem:[#allocation13] sm:$0xf] }
 0x650   :  { %v12554_v24 = vld [vmem:[%s13319_s7 + $0xb8] sm:$0xff]  }
 0x652   :  { %10009 = vmatpush1.bf16.msra.mxu0 %v12487_v59  ;;  %10173 = vmatpush1.bf16.msra.mxu1 %v12490_v41  ;;  %v8568_v59 = vrot.slane %v8563_v3, %v12982_v15  ;;  %v8576_v41 = vrot.slane %v8563_v3, %v13041_v39 }
 0x653   :  { %10010 = vmatprep.subr.bf16.mxu0 %v12495_v42  ;;  %10174 = vmatprep.subr.bf16.mxu1 %v12498_v43  ;;  %v8572_v42 = vrot.slane %v8563_v3, %v12987_v17  ;;  %v8580_v43 = vrot.slane %v8563_v3, %v12990_v18 }
 0x656   :  { %10011 = vmatpush1.bf16.msra.mxu0 %v12493_v62  ;;  %10175 = vmatpush1.bf16.msra.mxu1 %v12496_v45 }
 0x657   :  { %10012 = vmatprep.subr.bf16.mxu0 %v12501_v4  ;;  %10176 = vmatprep.subr.bf16.mxu1 %v12504_v21 }
 0x65a   :  { %10013 = vmatpush1.bf16.msra.mxu0 %v12499_v20  ;;  %10177 = vmatpush1.bf16.msra.mxu1 %v12502_v40 }
 0x65b   :  { %10014 = vmatprep.subr.bf16.mxu0 %v12507_v50  ;;  %10178 = vmatprep.subr.bf16.mxu1 %v12510_v16 }
 0x65e   :  { %10015 = vmatpush1.bf16.msra.mxu0 %v12505_v57  ;;  %10179 = vmatpush1.bf16.msra.mxu1 %v12508_v22 }
 0x65f   :  { %10016 = vmatprep.subr.bf16.mxu0 %v12513_v34  ;;  %10180 = vmatprep.subr.bf16.mxu1 %v12516_v51 }
 0x662   :  { %10017 = vmatpush1.bf16.msra.mxu0 %v12511_v33  ;;  %10181 = vmatpush1.bf16.msra.mxu1 %v12514_v9 }
 0x663   :  { %10018 = vmatprep.subr.bf16.mxu0 %v12519_v53  ;;  %10182 = vmatprep.subr.bf16.mxu1 %v12522_v52  ;;  %v11896_v52 = vld [vmem:[#allocation14] ss:$0 sm:$0xff] }
 0x666   :  { %10019 = vmatpush1.bf16.msra.mxu0 %v12517_v47  ;;  %10183 = vmatpush1.bf16.msra.mxu1 %v12520_v55 }
 0x667   :  { %11931 = vmatprep.subr.bf16.mxu0 %v12523_v7  ;;  %11953 = vmatprep.subr.bf16.mxu1 %v12524_v12 }
 0x669   :  { %10021 = vmatmul.mubr.bf16.vlgmr.msra.gmra.mrb[24].mxu0 %v8305_v61  ;;  %10185 = vmatmul.mubr.bf16.vlgmr.msra.gmra.mrb[24].mxu1 %v8305_v61 }
 0x66a   :  { %11932 = vmatpush3.bf16.msra.mxu0 %v12525_v56  ;;  %11954 = vmatpush3.bf16.msra.mxu1 %v12526_v60 }
 0x66b   :  { %11933 = vmatprep.subr.bf16.mxu0 %v12527_v11  ;;  %11955 = vmatprep.subr.bf16.mxu1 %v12528_v63 }
 0x66e   :  { %11934 = vmatpush3.bf16.msra.mxu0 %v12529_v46  ;;  %11956 = vmatpush3.bf16.msra.mxu1 %v12530_v36  ;;  %v11929_v46 = vld [vmem:[#allocation16] ss:$0 sm:$0xff] }
 0x66f   :  { %11935 = vmatprep.subr.bf16.mxu0 %v12531_v0  ;;  %11957 = vmatprep.subr.bf16.mxu1 %v12532_v2 }
 0x672   :  { %11936 = vmatpush3.bf16.msra.mxu0 %v12533_v32  ;;  %11958 = vmatpush3.bf16.msra.mxu1 %v12534_v6  ;;  %v11930_v32 = vld [vmem:[#allocation2] ss:$0 sm:$0xff] }
 0x673   :  { %11937 = vmatprep.subr.bf16.mxu0 %v12535_v13  ;;  %11959 = vmatprep.subr.bf16.mxu1 %v12536_v10 }
 0x676   :  { %11938 = vmatpush3.bf16.msra.mxu0 %v12537_v19  ;;  %11960 = vmatpush3.bf16.msra.mxu1 %v12538_v54 }
 0x677   :  { %11939 = vmatprep.subr.bf16.mxu0 %v12539_v31  ;;  %11961 = vmatprep.subr.bf16.mxu1 %v12540_v1 }
 0x67a   :  { %11940 = vmatpush3.bf16.msra.mxu0 %v12541_v49  ;;  %11962 = vmatpush3.bf16.msra.mxu1 %v12542_v5 }
 0x67b   :  { %11941 = vmatprep.subr.bf16.mxu0 %v12543_v23  ;;  %11963 = vmatprep.subr.bf16.mxu1 %v12544_v25 }
 0x67e   :  { %11942 = vmatpush3.bf16.msra.mxu0 %v12545_v28  ;;  %11964 = vmatpush3.bf16.msra.mxu1 %v12546_v29 }
 0x67f   :  { %11943 = vmatprep.subr.bf16.mxu0 %v12547_v8  ;;  %11965 = vmatprep.subr.bf16.mxu1 %v12548_v14 }
 0x682   :  { %11944 = vmatpush3.bf16.msra.mxu0 %v12549_v35  ;;  %11966 = vmatpush3.bf16.msra.mxu1 %v12550_v48 }
 0x683   :  { %11945 = vmatprep.subr.bf16.mxu0 %v12551_v44  ;;  %11967 = vmatprep.subr.bf16.mxu1 %v12552_v37 }
 0x686   :  { %11946 = vmatpush3.bf16.msra.mxu0 %v12553_v26  ;;  %11968 = vmatpush3.bf16.msra.mxu1 %v12554_v24 }
 0x73c   :  { %v10022_v62 = vpop.f32.mrb[24].mxu0  ;;  %v10186_v45 = vpop.f32.mrb[24].mxu1 }
 0x73d   :  { %v11983_v4 = vadd.f32 %v10022_v62, %v8568_v59  ;;  %v11985_v21 = vadd.f32 %v10186_v45, %v8576_v41  ;;  %v10024_v20 = vpop.f32.mrb[25].mxu0  ;;  %v10188_v40 = vpop.f32.mrb[25].mxu1 }
 0x73e   :  { %v11984_v50 = vadd.f32 %v10024_v20, %v8572_v42  ;;  %v11986_v16 = vadd.f32 %v10188_v40, %v8580_v43  ;;  %v10026_v57 = vpop.f32.mrb[26].mxu0  ;;  %v10190_v22 = vpop.f32.mrb[26].mxu1 }
 0x73f   :  { %v10193_v27 = vmax.f32 %v11983_v4, 0.0  ;;  %v10195_v38 = vmax.f32 %v11985_v21, 0.0  ;;  %v10027_v34 = vpop.f32.mrb[27].mxu0  ;;  %v10191_v15 = vpop.f32.mrb[27].mxu1 }
 0x740   :  { %v10194_v51 = vmax.f32 %v11984_v50, 0.0  ;;  %v10196_v39 = vmax.f32 %v11986_v16, 0.0 }
 0x741   :  { %v10197_v9 = vpack.c.bf16 %v10193_v27, %v10193_v27  ;;  %v10199_v18 = vpack.c.bf16 %v10195_v38, %v10195_v38 }
 0x742   :  { %v10198_v33 = vpack.c.bf16 %v10194_v51, %v10194_v51  ;;  %v10200_v17 = vpack.c.bf16 %v10196_v39, %v10196_v39 }
 0x744   :  { %10496 = vmatprep.mubr.bf16.mxu0 %v10198_v33  ;;  %10536 = vmatprep.mubr.bf16.mxu1 %v10200_v17 }
 0x745   :  { %10497 = vmatmul.mubr.bf16.vlgmr.msra.gmra.mrb[28].mxu0 %v10197_v9  ;;  %10537 = vmatmul.mubr.bf16.vlgmr.msra.gmra.mrb[28].mxu1 %v10199_v18 }
 0x818   :  { %v11947_v30 = vpop.f32.mrb[28].mxu0  ;;  %v11969_v53 = vpop.f32.mrb[28].mxu1 }
 0x819   :  { %v11948_v47 = vpop.f32.mrb[29].mxu0  ;;  %v11970_v55 = vpop.f32.mrb[29].mxu1 }
 0x81a   :  { %v11949_v58 = vadd.f32 %v11948_v47, %v11947_v30  ;;  %v11971_v7 = vadd.f32 %v11970_v55, %v11969_v53  ;;  %v11950_v12 = vpop.f32.mrb[30].mxu0  ;;  %v11972_v56 = vpop.f32.mrb[30].mxu1 }
 0x81b   :  { %v11951_v60 = vpop.f32.mrb[31].mxu0  ;;  %v11973_v61 = vpop.f32.mrb[31].mxu1 }
 0x81c   :  { %v10499_v11 = vadd.f32 %v11949_v58, %v11896_v52 }
 0x81e   :  { %v10539_v63 = vadd.f32 %v11971_v7, %v10499_v11 }
 0x820   :  { %v10544_v36 = vmax.f32 %v10539_v63, 0.0 }
 0x822   :  { %v10552_v0 = vmul.f32 %v11929_v46, %v10544_v36 }
 0x824   :  { %v10554_v2 = vsel %vm10553_vm1, %v10552_v0, 0.0 }
 0x825   :  { %10555 = vadd.xlane.f32.xlu0 %v10554_v2 }
 0x8b2   :  { %v10556_v6 = vpop.xlane.xlu0 %10555 }
 0x8b3   :  { %v10564_v13 = vadd.f32 %v11930_v32, %v10556_v6 }
 0x8b5   :  { %10566 = vst.msk [vmem:[%s13323_s11] sm:$0xff] %vm10565_vm2, %v10564_v13 }
 0x8b6   :  { %10571 = vsyncpa [#allocation4], 1 }
 0x8b7   :  { %10572 = vsyncpa [#allocation6], 1 }
 0x8b8   :  { %10573 = vsyncpa [#allocation9], 1 }
 0x8b9   :  { %10574 = vsyncpa [#allocation12], 1 }
 0x8ba   :  { %10575 = vsyncpa [#allocation15], 1 }

</bundles_post_ra>
